<compile_context>
chip_gen: v6e
topology: v6e:2x2x1
jax: 0.10.0
libtpu: 0.0.40
codegen_flags: <defaults>
</compile_context>

<pallas_src>
import functools

import jax
import jax.numpy as jnp
from jax.experimental import pallas as pl
from jax.experimental.pallas import tpu as pltpu

BN_EPS = 1e-5


def _gelu_tanh(x):
    # tanh-approx GELU: EUP (tanh) instead of a VALU erf polynomial.
    c = 0.7978845608028654  # sqrt(2/pi)
    return 0.5 * x * (1.0 + jnp.tanh(c * (x + 0.044715 * x * x * x)))


def _fold_bn(gamma, beta, mean, var):
    scale = gamma / jnp.sqrt(var + BN_EPS)
    bias = beta - mean * scale
    return scale, bias


def _zero_halo(p_ref, H, W, C):
    """Zero only the 1-px halo ring of a (H+2, W+2, C) padded scratch."""
    dt = p_ref.dtype
    p_ref[0:1, :, :] = jnp.zeros((1, W + 2, C), dt)
    p_ref[H + 1:H + 2, :, :] = jnp.zeros((1, W + 2, C), dt)
    p_ref[:, 0:1, :] = jnp.zeros((H + 2, 1, C), dt)
    p_ref[:, W + 1:W + 2, :] = jnp.zeros((H + 2, 1, C), dt)


def _im2col_3x3(src_ref, col_ref, H, W, C):
    """Write the 9 shifted windows of a padded (H+2, W+2, C) ref into a
    (H*W, 9*C) im2col scratch (tap-major, channel-minor columns)."""
    for ky in range(3):
        for kx in range(3):
            t = ky * 3 + kx
            col_ref[:, t * C:(t + 1) * C] = (
                src_ref[ky:ky + H, kx:kx + W, :].reshape(H * W, C))


def _residual_block_kernel(*refs, H, W, Cin, Cout, has_proj):
    if has_proj:
        (x_ref, w1_ref, b1_ref, w2_ref, b2_ref, fc1_ref, fc2_ref,
         wsc_ref, bsc_ref, o_ref, xp_s, col1_s, y1p_s, col2_s) = refs
    else:
        (x_ref, w1_ref, b1_ref, w2_ref, b2_ref, fc1_ref, fc2_ref,
         o_ref, xp_s, col1_s, y1p_s, col2_s) = refs

    x = x_ref[0]                                   # (H, W, Cin) float32
    x_flat = x.reshape(H * W, Cin)

    # ---- shortcut first: depends only on x, so it can overlap conv work ----
    if has_proj:
        sc = jnp.dot(x_flat.astype(jnp.bfloat16), wsc_ref[...],
                     preferred_element_type=jnp.float32) + bsc_ref[...]
    else:
        sc = x_flat

    # ---- stage padded input (bf16) + build im2col for conv1 ----
    _zero_halo(xp_s, H, W, Cin)
    xp_s[1:H + 1, 1:W + 1, :] = x.astype(xp_s.dtype)
    _im2col_3x3(xp_s, col1_s, H, W, Cin)

    # ---- conv1 (BN1 scale folded into weights) as ONE MXU matmul + GELU ----
    y1 = jnp.dot(col1_s[...], w1_ref[...],
                 preferred_element_type=jnp.float32) + b1_ref[...]
    y1 = _gelu_tanh(y1)                            # (H*W, Cout) f32

    # ---- re-pad y1 on-chip (bf16) + build im2col for conv2 ----
    _zero_halo(y1p_s, H, W, Cout)
    y1p_s[1:H + 1, 1:W + 1, :] = y1.reshape(H, W, Cout).astype(y1p_s.dtype)
    _im2col_3x3(y1p_s, col2_s, H, W, Cout)

    # ---- conv2 (BN2 scale folded into weights) as ONE MXU matmul ----
    y2 = jnp.dot(col2_s[...], w2_ref[...],
                 preferred_element_type=jnp.float32) + b2_ref[...]

    # ---- SE: global average pool -> FC -> ReLU -> FC -> sigmoid ----
    pool = jnp.sum(y2, axis=0, keepdims=True) * (1.0 / (H * W))    # (1, Cout)
    h = jnp.maximum(jnp.dot(pool, fc1_ref[...],
                            preferred_element_type=jnp.float32), 0.0)  # (1, mid)
    mid = fc2_ref.shape[0]
    s_pre = jnp.zeros((1, Cout), jnp.float32)
    for j in range(mid):                            # tiny K: VPU, not MXU
        s_pre = s_pre + h[:, j:j + 1] * fc2_ref[j:j + 1, :]
    s = jax.nn.sigmoid(s_pre)                       # (1, Cout)

    # ---- SE scale + residual + final GELU ----
    out = _gelu_tanh(y2 * s + sc)
    o_ref[...] = out.reshape(1, H, W, Cout).astype(o_ref.dtype)


def residual_block_forward(x_nhwc, p, *, stride=1):
    """Fused ResidualBlock forward.  NHWC in, NHWC out (keep the network NHWC
    end-to-end instead of transposing per block)."""
    # TODO(synk): stride > 1 not implemented in the Pallas path.
    assert stride == 1
    x = x_nhwc.astype(jnp.float32)
    N, H, W, Cin = x.shape
    Cout = p["conv1_w"].shape[0]
    mid = p["se_fc1_w"].shape[0]
    has_proj = (stride != 1) or (Cin != Cout)

    # Fold BN (eval mode) scale into conv weights; keep only the bias add.
    s1, b1 = _fold_bn(**p["bn1"])
    s2, b2 = _fold_bn(**p["bn2"])
    # (O,I,3,3) -> (ky,kx,I,O) * scale -> im2col weight (9*I, O), bf16.
    w1 = (jnp.transpose(p["conv1_w"], (2, 3, 1, 0)) * s1
          ).reshape(9 * Cin, Cout).astype(jnp.bfloat16)
    w2 = (jnp.transpose(p["conv2_w"], (2, 3, 1, 0)) * s2
          ).reshape(9 * Cout, Cout).astype(jnp.bfloat16)
    fc1_t = p["se_fc1_w"].T.astype(jnp.float32)     # (Cout, mid)
    fc2_t = p["se_fc2_w"].T.astype(jnp.float32)     # (mid, Cout)

    inputs = [x, w1, b1.reshape(1, Cout).astype(jnp.float32),
              w2, b2.reshape(1, Cout).astype(jnp.float32), fc1_t, fc2_t]
    in_specs = [
        pl.BlockSpec((1, H, W, Cin), lambda n: (n, 0, 0, 0)),
        pl.BlockSpec((9 * Cin, Cout), lambda n: (0, 0)),
        pl.BlockSpec((1, Cout), lambda n: (0, 0)),
        pl.BlockSpec((9 * Cout, Cout), lambda n: (0, 0)),
        pl.BlockSpec((1, Cout), lambda n: (0, 0)),
        pl.BlockSpec((Cout, mid), lambda n: (0, 0)),
        pl.BlockSpec((mid, Cout), lambda n: (0, 0)),
    ]
    if has_proj:
        ssc, bsc = _fold_bn(**p["bn_sc"])
        wsc = (jnp.transpose(p["sc_w"][:, :, 0, 0], (1, 0)) * ssc
               ).astype(jnp.bfloat16)                               # (Cin, Cout)
        inputs += [wsc, bsc.reshape(1, Cout).astype(jnp.float32)]
        in_specs += [
            pl.BlockSpec((Cin, Cout), lambda n: (0, 0)),
            pl.BlockSpec((1, Cout), lambda n: (0, 0)),
        ]

    kern = functools.partial(_residual_block_kernel, H=H, W=W, Cin=Cin,
                             Cout=Cout, has_proj=has_proj)
    out = pl.pallas_call(
        kern,
        out_shape=jax.ShapeDtypeStruct((N, H, W, Cout), jnp.float32),
        grid=(N,),
        in_specs=in_specs,
        out_specs=pl.BlockSpec((1, H, W, Cout), lambda n: (n, 0, 0, 0)),
        scratch_shapes=[
            pltpu.VMEM((H + 2, W + 2, Cin), jnp.bfloat16),     # padded input
            pltpu.VMEM((H * W, 9 * Cin), jnp.bfloat16),        # im2col conv1
            pltpu.VMEM((H + 2, W + 2, Cout), jnp.bfloat16),    # padded GELU(bn1(conv1))
            pltpu.VMEM((H * W, 9 * Cout), jnp.bfloat16),       # im2col conv2
        ],
        compiler_params=pltpu.CompilerParams(
            dimension_semantics=("parallel",)),
    )(*inputs)
    return out                                                  # NHWC


# ---------------------------- pure-JAX reference ----------------------------
def reference_forward(x_nchw, p, *, stride=1):
    def conv2d(x, w, stride, pad):
        return jax.lax.conv_general_dilated(
            x, w, (stride, stride), [(pad, pad), (pad, pad)],
            dimension_numbers=("NCHW", "OIHW", "NCHW"))

    def bn(x, q):
        s = q["gamma"] / jnp.sqrt(q["var"] + BN_EPS)
        b = q["beta"] - q["mean"] * s
        return x * s[None, :, None, None] + b[None, :, None, None]

    gelu = lambda v: jax.nn.gelu(v, approximate=False)   # nn.GELU() exact
    out = gelu(bn(conv2d(x_nchw, p["conv1_w"], stride, 1), p["bn1"]))
    out = bn(conv2d(out, p["conv2_w"], 1, 1), p["bn2"])
    y = jnp.mean(out, axis=(2, 3))
    y = jnp.maximum(y @ p["se_fc1_w"].T, 0.0)
    y = jax.nn.sigmoid(y @ p["se_fc2_w"].T)
    out = out * y[:, :, None, None]
    Cin, Cout = x_nchw.shape[1], p["conv1_w"].shape[0]
    if stride != 1 or Cin != Cout:
        sc = bn(conv2d(x_nchw, p["sc_w"], stride, 0), p["bn_sc"])
    else:
        sc = x_nchw
    return gelu(out + sc)


if __name__ == "__main__":
    key = jax.random.PRNGKey(0)
    ks = jax.random.split(key, 20)

    def bn_params(k, c):
        k1, k2, k3, k4 = jax.random.split(k, 4)
        return dict(gamma=1.0 + 0.1 * jax.random.normal(k1, (c,), jnp.float32),
                    beta=0.1 * jax.random.normal(k2, (c,), jnp.float32),
                    mean=0.1 * jax.random.normal(k3, (c,), jnp.float32),
                    var=0.5 + jnp.abs(jax.random.normal(k4, (c,), jnp.float32)))

    def make_params(kseq, cin, cout):
        return dict(
            conv1_w=0.1 * jax.random.normal(kseq[0], (cout, cin, 3, 3), jnp.float32),
            bn1=bn_params(kseq[1], cout),
            conv2_w=0.1 * jax.random.normal(kseq[2], (cout, cout, 3, 3), jnp.float32),
            bn2=bn_params(kseq[3], cout),
            se_fc1_w=0.2 * jax.random.normal(kseq[4], (cout // 16, cout), jnp.float32),
            se_fc2_w=0.2 * jax.random.normal(kseq[5], (cout, cout // 16), jnp.float32),
            sc_w=0.1 * jax.random.normal(kseq[6], (cout, cin, 1, 1), jnp.float32),
            bn_sc=bn_params(kseq[7], cout),
        )

    N, H, W = 2, 16, 16
    # Tolerance budget: bf16 MXU operands (~2e-2 worst case here) + tanh-GELU
    # (<~1e-3 per application) vs. the exact-f32 reference.
    ATOL = RTOL = 5e-2

    # Case 1: projection shortcut (Cin != Cout)
    Cin, Cout = 16, 32   # Cout >= 16 so SE reduction 16 gives mid=2
    params = make_params(ks[0:8], Cin, Cout)
    x_nhwc = jax.random.normal(ks[8], (N, H, W, Cin), jnp.float32)
    out = jax.block_until_ready(residual_block_forward(x_nhwc, params, stride=1))
    assert out.shape == (N, H, W, Cout)
    ref = jnp.transpose(
        reference_forward(jnp.transpose(x_nhwc, (0, 3, 1, 2)), params, stride=1),
        (0, 2, 3, 1))
    err = float(jnp.max(jnp.abs(out - ref)))
    assert jnp.allclose(out, ref, atol=ATOL, rtol=RTOL), f"proj max abs err {err}"

    # Case 2: identity shortcut (Cin == Cout)
    Cin2 = Cout2 = 32
    params2 = make_params(ks[9:17], Cin2, Cout2)
    x2_nhwc = jax.random.normal(ks[17], (N, H, W, Cin2), jnp.float32)
    out2 = jax.block_until_ready(residual_block_forward(x2_nhwc, params2, stride=1))
    assert out2.shape == (N, H, W, Cout2)
    ref2 = jnp.transpose(
        reference_forward(jnp.transpose(x2_nhwc, (0, 3, 1, 2)), params2, stride=1),
        (0, 2, 3, 1))
    err2 = float(jnp.max(jnp.abs(out2 - ref2)))
    assert jnp.allclose(out2, ref2, atol=ATOL, rtol=RTOL), f"identity max abs err {err2}"

    print("KERNEL_OK")
</pallas_src>

<mosaic_0001>
module attributes {stable_mosaic.version = 11 : i64} {
  func.func @_residual_block_kernel(%arg0: i32, %arg1: memref<1x16x16x16xf32, #tpu.memory_space<vmem>>, %arg2: memref<144x32xbf16, #tpu.memory_space<vmem>>, %arg3: memref<1x32xf32, #tpu.memory_space<vmem>>, %arg4: memref<288x32xbf16, #tpu.memory_space<vmem>>, %arg5: memref<1x32xf32, #tpu.memory_space<vmem>>, %arg6: memref<32x2xf32, #tpu.memory_space<vmem>>, %arg7: memref<2x32xf32, #tpu.memory_space<vmem>>, %arg8: memref<16x32xbf16, #tpu.memory_space<vmem>>, %arg9: memref<1x32xf32, #tpu.memory_space<vmem>>, %arg10: memref<1x16x16x32xf32, #tpu.memory_space<vmem>>, %arg11: memref<18x18x16xbf16, #tpu.memory_space<vmem>>, %arg12: memref<256x144xbf16, #tpu.memory_space<vmem>>, %arg13: memref<18x18x32xbf16, #tpu.memory_space<vmem>>, %arg14: memref<256x288xbf16, #tpu.memory_space<vmem>>) attributes {dimension_semantics = [#tpu.dimension_semantics<parallel>], iteration_bounds = array<i64: 2>, scalar_prefetch = 0 : i64, scratch_operands = 4 : i64, tpu.core_type = #tpu.core_type<tc>, window_params = [{transform_indices = @transform_0, window_bounds = array<i64: 1, 16, 16, 16>}, {pipeline_mode = #tpu.pipeline_mode<synchronous>, transform_indices = @transform_1, window_bounds = array<i64: 144, 32>}, {pipeline_mode = #tpu.pipeline_mode<synchronous>, transform_indices = @transform_2, window_bounds = array<i64: 1, 32>}, {pipeline_mode = #tpu.pipeline_mode<synchronous>, transform_indices = @transform_3, window_bounds = array<i64: 288, 32>}, {pipeline_mode = #tpu.pipeline_mode<synchronous>, transform_indices = @transform_4, window_bounds = array<i64: 1, 32>}, {pipeline_mode = #tpu.pipeline_mode<synchronous>, transform_indices = @transform_5, window_bounds = array<i64: 32, 2>}, {pipeline_mode = #tpu.pipeline_mode<synchronous>, transform_indices = @transform_6, window_bounds = array<i64: 2, 32>}, {pipeline_mode = #tpu.pipeline_mode<synchronous>, transform_indices = @transform_7, window_bounds = array<i64: 16, 32>}, {pipeline_mode = #tpu.pipeline_mode<synchronous>, transform_indices = @transform_8, window_bounds = array<i64: 1, 32>}, {transform_indices = @transform_9, window_bounds = array<i64: 1, 16, 16, 32>}]} {
    %c0 = arith.constant 0 : index
    %c0_0 = arith.constant 0 : index
    %c0_1 = arith.constant 0 : index
    %c0_2 = arith.constant 0 : index
    %0 = vector.load %arg1[%c0, %c0_0, %c0_1, %c0_2] : memref<1x16x16x16xf32, #tpu.memory_space<vmem>>, vector<1x16x16x16xf32>
    %1 = vector.shape_cast %0 : vector<1x16x16x16xf32> to vector<16x16x16xf32>
    %2 = vector.shape_cast %1 : vector<16x16x16xf32> to vector<256x16xf32>
    %3 = arith.truncf %2 : vector<256x16xf32> to vector<256x16xbf16>
    %c0_3 = arith.constant 0 : index
    %c0_4 = arith.constant 0 : index
    %4 = vector.load %arg8[%c0_3, %c0_4] : memref<16x32xbf16, #tpu.memory_space<vmem>>, vector<16x32xbf16>
    %cst = arith.constant dense<0.000000e+00> : vector<256x32xf32>
    %5 = tpu.matmul %3, %4, %cst {dimension_numbers = #tpu.dot_dimension_numbers<[1], [0], [0], [1], [0, 0, 1, 1], [], []>} : vector<256x16xbf16>, vector<16x32xbf16>, vector<256x32xf32> -> vector<256x32xf32>
    %c0_5 = arith.constant 0 : index
    %c0_6 = arith.constant 0 : index
    %6 = vector.load %arg9[%c0_5, %c0_6] : memref<1x32xf32, #tpu.memory_space<vmem>>, vector<1x32xf32>
    %7 = vector.broadcast %6 : vector<1x32xf32> to vector<256x32xf32>
    %8 = arith.addf %5, %7 : vector<256x32xf32>
    %cst_7 = arith.constant 0.000000e+00 : bf16
    %9 = vector.broadcast %cst_7 : bf16 to vector<1x18x16xbf16>
    %c0_8 = arith.constant 0 : index
    %c0_9 = arith.constant 0 : index
    %c0_10 = arith.constant 0 : index
    %10 = vector.load %arg11[%c0_8, %c0_9, %c0_10] : memref<18x18x16xbf16, #tpu.memory_space<vmem>>, vector<1x18x16xbf16>
    tpu.vector_store %arg11[%c0_8, %c0_9, %c0_10], %9 {strides = array<i32>} : memref<18x18x16xbf16, #tpu.memory_space<vmem>>, vector<1x18x16xbf16>,
    %cst_11 = arith.constant 0.000000e+00 : bf16
    %11 = vector.broadcast %cst_11 : bf16 to vector<1x18x16xbf16>
    %c17 = arith.constant 17 : index
    %c0_12 = arith.constant 0 : index
    %c0_13 = arith.constant 0 : index
    %12 = vector.load %arg11[%c17, %c0_12, %c0_13] : memref<18x18x16xbf16, #tpu.memory_space<vmem>>, vector<1x18x16xbf16>
    tpu.vector_store %arg11[%c17, %c0_12, %c0_13], %11 {strides = array<i32>} : memref<18x18x16xbf16, #tpu.memory_space<vmem>>, vector<1x18x16xbf16>,
    %cst_14 = arith.constant 0.000000e+00 : bf16
    %13 = vector.broadcast %cst_14 : bf16 to vector<18x1x16xbf16>
    %c0_15 = arith.constant 0 : index
    %c0_16 = arith.constant 0 : index
    %c0_17 = arith.constant 0 : index
    %14 = vector.load %arg11[%c0_15, %c0_16, %c0_17] : memref<18x18x16xbf16, #tpu.memory_space<vmem>>, vector<18x1x16xbf16>
    tpu.vector_store %arg11[%c0_15, %c0_16, %c0_17], %13 {strides = array<i32>} : memref<18x18x16xbf16, #tpu.memory_space<vmem>>, vector<18x1x16xbf16>,
    %cst_18 = arith.constant 0.000000e+00 : bf16
    %15 = vector.broadcast %cst_18 : bf16 to vector<18x1x16xbf16>
    %c0_19 = arith.constant 0 : index
    %c17_20 = arith.constant 17 : index
    %c0_21 = arith.constant 0 : index
    %16 = vector.load %arg11[%c0_19, %c17_20, %c0_21] : memref<18x18x16xbf16, #tpu.memory_space<vmem>>, vector<18x1x16xbf16>
    tpu.vector_store %arg11[%c0_19, %c17_20, %c0_21], %15 {strides = array<i32>} : memref<18x18x16xbf16, #tpu.memory_space<vmem>>, vector<18x1x16xbf16>,
    %17 = arith.truncf %1 : vector<16x16x16xf32> to vector<16x16x16xbf16>
    %c1 = arith.constant 1 : index
    %c1_22 = arith.constant 1 : index
    %c0_23 = arith.constant 0 : index
    %18 = vector.load %arg11[%c1, %c1_22, %c0_23] : memref<18x18x16xbf16, #tpu.memory_space<vmem>>, vector<16x16x16xbf16>
    tpu.vector_store %arg11[%c1, %c1_22, %c0_23], %17 {strides = array<i32>} : memref<18x18x16xbf16, #tpu.memory_space<vmem>>, vector<16x16x16xbf16>,
    %c0_24 = arith.constant 0 : index
    %c0_25 = arith.constant 0 : index
    %c0_26 = arith.constant 0 : index
    %19 = vector.load %arg11[%c0_24, %c0_25, %c0_26] : memref<18x18x16xbf16, #tpu.memory_space<vmem>>, vector<16x16x16xbf16>
    %20 = vector.shape_cast %19 : vector<16x16x16xbf16> to vector<256x16xbf16>
    %c0_27 = arith.constant 0 : index
    %c0_28 = arith.constant 0 : index
    %21 = vector.load %arg12[%c0_27, %c0_28] : memref<256x144xbf16, #tpu.memory_space<vmem>>, vector<256x16xbf16>
    tpu.vector_store %arg12[%c0_27, %c0_28], %20 {strides = array<i32>} : memref<256x144xbf16, #tpu.memory_space<vmem>>, vector<256x16xbf16>,
    %c0_29 = arith.constant 0 : index
    %c1_30 = arith.constant 1 : index
    %c0_31 = arith.constant 0 : index
    %22 = vector.load %arg11[%c0_29, %c1_30, %c0_31] : memref<18x18x16xbf16, #tpu.memory_space<vmem>>, vector<16x16x16xbf16>
    %23 = vector.shape_cast %22 : vector<16x16x16xbf16> to vector<256x16xbf16>
    %c0_32 = arith.constant 0 : index
    %c16 = arith.constant 16 : index
    %24 = vector.load %arg12[%c0_32, %c16] : memref<256x144xbf16, #tpu.memory_space<vmem>>, vector<256x16xbf16>
    tpu.vector_store %arg12[%c0_32, %c16], %23 {strides = array<i32>} : memref<256x144xbf16, #tpu.memory_space<vmem>>, vector<256x16xbf16>,
    %c0_33 = arith.constant 0 : index
    %c2 = arith.constant 2 : index
    %c0_34 = arith.constant 0 : index
    %25 = vector.load %arg11[%c0_33, %c2, %c0_34] : memref<18x18x16xbf16, #tpu.memory_space<vmem>>, vector<16x16x16xbf16>
    %26 = vector.shape_cast %25 : vector<16x16x16xbf16> to vector<256x16xbf16>
    %c0_35 = arith.constant 0 : index
    %c32 = arith.constant 32 : index
    %27 = vector.load %arg12[%c0_35, %c32] : memref<256x144xbf16, #tpu.memory_space<vmem>>, vector<256x16xbf16>
    tpu.vector_store %arg12[%c0_35, %c32], %26 {strides = array<i32>} : memref<256x144xbf16, #tpu.memory_space<vmem>>, vector<256x16xbf16>,
    %c1_36 = arith.constant 1 : index
    %c0_37 = arith.constant 0 : index
    %c0_38 = arith.constant 0 : index
    %28 = vector.load %arg11[%c1_36, %c0_37, %c0_38] : memref<18x18x16xbf16, #tpu.memory_space<vmem>>, vector<16x16x16xbf16>
    %29 = vector.shape_cast %28 : vector<16x16x16xbf16> to vector<256x16xbf16>
    %c0_39 = arith.constant 0 : index
    %c48 = arith.constant 48 : index
    %30 = vector.load %arg12[%c0_39, %c48] : memref<256x144xbf16, #tpu.memory_space<vmem>>, vector<256x16xbf16>
    tpu.vector_store %arg12[%c0_39, %c48], %29 {strides = array<i32>} : memref<256x144xbf16, #tpu.memory_space<vmem>>, vector<256x16xbf16>,
    %c1_40 = arith.constant 1 : index
    %c1_41 = arith.constant 1 : index
    %c0_42 = arith.constant 0 : index
    %31 = vector.load %arg11[%c1_40, %c1_41, %c0_42] : memref<18x18x16xbf16, #tpu.memory_space<vmem>>, vector<16x16x16xbf16>
    %32 = vector.shape_cast %31 : vector<16x16x16xbf16> to vector<256x16xbf16>
    %c0_43 = arith.constant 0 : index
    %c64 = arith.constant 64 : index
    %33 = vector.load %arg12[%c0_43, %c64] : memref<256x144xbf16, #tpu.memory_space<vmem>>, vector<256x16xbf16>
    tpu.vector_store %arg12[%c0_43, %c64], %32 {strides = array<i32>} : memref<256x144xbf16, #tpu.memory_space<vmem>>, vector<256x16xbf16>,
    %c1_44 = arith.constant 1 : index
    %c2_45 = arith.constant 2 : index
    %c0_46 = arith.constant 0 : index
    %34 = vector.load %arg11[%c1_44, %c2_45, %c0_46] : memref<18x18x16xbf16, #tpu.memory_space<vmem>>, vector<16x16x16xbf16>
    %35 = vector.shape_cast %34 : vector<16x16x16xbf16> to vector<256x16xbf16>
    %c0_47 = arith.constant 0 : index
    %c80 = arith.constant 80 : index
    %36 = vector.load %arg12[%c0_47, %c80] : memref<256x144xbf16, #tpu.memory_space<vmem>>, vector<256x16xbf16>
    tpu.vector_store %arg12[%c0_47, %c80], %35 {strides = array<i32>} : memref<256x144xbf16, #tpu.memory_space<vmem>>, vector<256x16xbf16>,
    %c2_48 = arith.constant 2 : index
    %c0_49 = arith.constant 0 : index
    %c0_50 = arith.constant 0 : index
    %37 = vector.load %arg11[%c2_48, %c0_49, %c0_50] : memref<18x18x16xbf16, #tpu.memory_space<vmem>>, vector<16x16x16xbf16>
    %38 = vector.shape_cast %37 : vector<16x16x16xbf16> to vector<256x16xbf16>
    %c0_51 = arith.constant 0 : index
    %c96 = arith.constant 96 : index
    %39 = vector.load %arg12[%c0_51, %c96] : memref<256x144xbf16, #tpu.memory_space<vmem>>, vector<256x16xbf16>
    tpu.vector_store %arg12[%c0_51, %c96], %38 {strides = array<i32>} : memref<256x144xbf16, #tpu.memory_space<vmem>>, vector<256x16xbf16>,
    %c2_52 = arith.constant 2 : index
    %c1_53 = arith.constant 1 : index
    %c0_54 = arith.constant 0 : index
    %40 = vector.load %arg11[%c2_52, %c1_53, %c0_54] : memref<18x18x16xbf16, #tpu.memory_space<vmem>>, vector<16x16x16xbf16>
    %41 = vector.shape_cast %40 : vector<16x16x16xbf16> to vector<256x16xbf16>
    %c0_55 = arith.constant 0 : index
    %c112 = arith.constant 112 : index
    %42 = vector.load %arg12[%c0_55, %c112] : memref<256x144xbf16, #tpu.memory_space<vmem>>, vector<256x16xbf16>
    tpu.vector_store %arg12[%c0_55, %c112], %41 {strides = array<i32>} : memref<256x144xbf16, #tpu.memory_space<vmem>>, vector<256x16xbf16>,
    %c2_56 = arith.constant 2 : index
    %c2_57 = arith.constant 2 : index
    %c0_58 = arith.constant 0 : index
    %43 = vector.load %arg11[%c2_56, %c2_57, %c0_58] : memref<18x18x16xbf16, #tpu.memory_space<vmem>>, vector<16x16x16xbf16>
    %44 = vector.shape_cast %43 : vector<16x16x16xbf16> to vector<256x16xbf16>
    %c0_59 = arith.constant 0 : index
    %c128 = arith.constant 128 : index
    %45 = vector.load %arg12[%c0_59, %c128] : memref<256x144xbf16, #tpu.memory_space<vmem>>, vector<256x16xbf16>
    tpu.vector_store %arg12[%c0_59, %c128], %44 {strides = array<i32>} : memref<256x144xbf16, #tpu.memory_space<vmem>>, vector<256x16xbf16>,
    %c0_60 = arith.constant 0 : index
    %c0_61 = arith.constant 0 : index
    %46 = vector.load %arg12[%c0_60, %c0_61] : memref<256x144xbf16, #tpu.memory_space<vmem>>, vector<256x144xbf16>
    %c0_62 = arith.constant 0 : index
    %c0_63 = arith.constant 0 : index
    %47 = vector.load %arg2[%c0_62, %c0_63] : memref<144x32xbf16, #tpu.memory_space<vmem>>, vector<144x32xbf16>
    %cst_64 = arith.constant dense<0.000000e+00> : vector<256x32xf32>
    %48 = tpu.matmul %46, %47, %cst_64 {dimension_numbers = #tpu.dot_dimension_numbers<[1], [0], [0], [1], [0, 0, 1, 1], [], []>} : vector<256x144xbf16>, vector<144x32xbf16>, vector<256x32xf32> -> vector<256x32xf32>
    %c0_65 = arith.constant 0 : index
    %c0_66 = arith.constant 0 : index
    %49 = vector.load %arg3[%c0_65, %c0_66] : memref<1x32xf32, #tpu.memory_space<vmem>>, vector<1x32xf32>
    %50 = vector.broadcast %49 : vector<1x32xf32> to vector<256x32xf32>
    %51 = arith.addf %48, %50 : vector<256x32xf32>
    %cst_67 = arith.constant 5.000000e-01 : f32
    %52 = vector.broadcast %cst_67 : f32 to vector<256x32xf32>
    %53 = arith.mulf %52, %51 : vector<256x32xf32>
    %cst_68 = arith.constant 4.471500e-02 : f32
    %54 = vector.broadcast %cst_68 : f32 to vector<256x32xf32>
    %55 = arith.mulf %54, %51 : vector<256x32xf32>
    %56 = arith.mulf %55, %51 : vector<256x32xf32>
    %57 = arith.mulf %56, %51 : vector<256x32xf32>
    %58 = arith.addf %51, %57 : vector<256x32xf32>
    %cst_69 = arith.constant 0.797884583 : f32
    %59 = vector.broadcast %cst_69 : f32 to vector<256x32xf32>
    %60 = arith.mulf %59, %58 : vector<256x32xf32>
    %61 = math.tanh %60 : vector<256x32xf32>
    %cst_70 = arith.constant 1.000000e+00 : f32
    %62 = vector.broadcast %cst_70 : f32 to vector<256x32xf32>
    %63 = arith.addf %62, %61 : vector<256x32xf32>
    %64 = arith.mulf %53, %63 : vector<256x32xf32>
    %cst_71 = arith.constant 0.000000e+00 : bf16
    %65 = vector.broadcast %cst_71 : bf16 to vector<1x18x32xbf16>
    %c0_72 = arith.constant 0 : index
    %c0_73 = arith.constant 0 : index
    %c0_74 = arith.constant 0 : index
    %66 = vector.load %arg13[%c0_72, %c0_73, %c0_74] : memref<18x18x32xbf16, #tpu.memory_space<vmem>>, vector<1x18x32xbf16>
    tpu.vector_store %arg13[%c0_72, %c0_73, %c0_74], %65 {strides = array<i32>} : memref<18x18x32xbf16, #tpu.memory_space<vmem>>, vector<1x18x32xbf16>,
    %cst_75 = arith.constant 0.000000e+00 : bf16
    %67 = vector.broadcast %cst_75 : bf16 to vector<1x18x32xbf16>
    %c17_76 = arith.constant 17 : index
    %c0_77 = arith.constant 0 : index
    %c0_78 = arith.constant 0 : index
    %68 = vector.load %arg13[%c17_76, %c0_77, %c0_78] : memref<18x18x32xbf16, #tpu.memory_space<vmem>>, vector<1x18x32xbf16>
    tpu.vector_store %arg13[%c17_76, %c0_77, %c0_78], %67 {strides = array<i32>} : memref<18x18x32xbf16, #tpu.memory_space<vmem>>, vector<1x18x32xbf16>,
    %cst_79 = arith.constant 0.000000e+00 : bf16
    %69 = vector.broadcast %cst_79 : bf16 to vector<18x1x32xbf16>
    %c0_80 = arith.constant 0 : index
    %c0_81 = arith.constant 0 : index
    %c0_82 = arith.constant 0 : index
    %70 = vector.load %arg13[%c0_80, %c0_81, %c0_82] : memref<18x18x32xbf16, #tpu.memory_space<vmem>>, vector<18x1x32xbf16>
    tpu.vector_store %arg13[%c0_80, %c0_81, %c0_82], %69 {strides = array<i32>} : memref<18x18x32xbf16, #tpu.memory_space<vmem>>, vector<18x1x32xbf16>,
    %cst_83 = arith.constant 0.000000e+00 : bf16
    %71 = vector.broadcast %cst_83 : bf16 to vector<18x1x32xbf16>
    %c0_84 = arith.constant 0 : index
    %c17_85 = arith.constant 17 : index
    %c0_86 = arith.constant 0 : index
    %72 = vector.load %arg13[%c0_84, %c17_85, %c0_86] : memref<18x18x32xbf16, #tpu.memory_space<vmem>>, vector<18x1x32xbf16>
    tpu.vector_store %arg13[%c0_84, %c17_85, %c0_86], %71 {strides = array<i32>} : memref<18x18x32xbf16, #tpu.memory_space<vmem>>, vector<18x1x32xbf16>,
    %73 = vector.shape_cast %64 : vector<256x32xf32> to vector<16x16x32xf32>
    %74 = arith.truncf %73 : vector<16x16x32xf32> to vector<16x16x32xbf16>
    %c1_87 = arith.constant 1 : index
    %c1_88 = arith.constant 1 : index
    %c0_89 = arith.constant 0 : index
    %75 = vector.load %arg13[%c1_87, %c1_88, %c0_89] : memref<18x18x32xbf16, #tpu.memory_space<vmem>>, vector<16x16x32xbf16>
    tpu.vector_store %arg13[%c1_87, %c1_88, %c0_89], %74 {strides = array<i32>} : memref<18x18x32xbf16, #tpu.memory_space<vmem>>, vector<16x16x32xbf16>,
    %c0_90 = arith.constant 0 : index
    %c0_91 = arith.constant 0 : index
    %c0_92 = arith.constant 0 : index
    %76 = vector.load %arg13[%c0_90, %c0_91, %c0_92] : memref<18x18x32xbf16, #tpu.memory_space<vmem>>, vector<16x16x32xbf16>
    %77 = vector.shape_cast %76 : vector<16x16x32xbf16> to vector<256x32xbf16>
    %c0_93 = arith.constant 0 : index
    %c0_94 = arith.constant 0 : index
    %78 = vector.load %arg14[%c0_93, %c0_94] : memref<256x288xbf16, #tpu.memory_space<vmem>>, vector<256x32xbf16>
    tpu.vector_store %arg14[%c0_93, %c0_94], %77 {strides = array<i32>} : memref<256x288xbf16, #tpu.memory_space<vmem>>, vector<256x32xbf16>,
    %c0_95 = arith.constant 0 : index
    %c1_96 = arith.constant 1 : index
    %c0_97 = arith.constant 0 : index
    %79 = vector.load %arg13[%c0_95, %c1_96, %c0_97] : memref<18x18x32xbf16, #tpu.memory_space<vmem>>, vector<16x16x32xbf16>
    %80 = vector.shape_cast %79 : vector<16x16x32xbf16> to vector<256x32xbf16>
    %c0_98 = arith.constant 0 : index
    %c32_99 = arith.constant 32 : index
    %81 = vector.load %arg14[%c0_98, %c32_99] : memref<256x288xbf16, #tpu.memory_space<vmem>>, vector<256x32xbf16>
    tpu.vector_store %arg14[%c0_98, %c32_99], %80 {strides = array<i32>} : memref<256x288xbf16, #tpu.memory_space<vmem>>, vector<256x32xbf16>,
    %c0_100 = arith.constant 0 : index
    %c2_101 = arith.constant 2 : index
    %c0_102 = arith.constant 0 : index
    %82 = vector.load %arg13[%c0_100, %c2_101, %c0_102] : memref<18x18x32xbf16, #tpu.memory_space<vmem>>, vector<16x16x32xbf16>
    %83 = vector.shape_cast %82 : vector<16x16x32xbf16> to vector<256x32xbf16>
    %c0_103 = arith.constant 0 : index
    %c64_104 = arith.constant 64 : index
    %84 = vector.load %arg14[%c0_103, %c64_104] : memref<256x288xbf16, #tpu.memory_space<vmem>>, vector<256x32xbf16>
    tpu.vector_store %arg14[%c0_103, %c64_104], %83 {strides = array<i32>} : memref<256x288xbf16, #tpu.memory_space<vmem>>, vector<256x32xbf16>,
    %c1_105 = arith.constant 1 : index
    %c0_106 = arith.constant 0 : index
    %c0_107 = arith.constant 0 : index
    %85 = vector.load %arg13[%c1_105, %c0_106, %c0_107] : memref<18x18x32xbf16, #tpu.memory_space<vmem>>, vector<16x16x32xbf16>
    %86 = vector.shape_cast %85 : vector<16x16x32xbf16> to vector<256x32xbf16>
    %c0_108 = arith.constant 0 : index
    %c96_109 = arith.constant 96 : index
    %87 = vector.load %arg14[%c0_108, %c96_109] : memref<256x288xbf16, #tpu.memory_space<vmem>>, vector<256x32xbf16>
    tpu.vector_store %arg14[%c0_108, %c96_109], %86 {strides = array<i32>} : memref<256x288xbf16, #tpu.memory_space<vmem>>, vector<256x32xbf16>,
    %c1_110 = arith.constant 1 : index
    %c1_111 = arith.constant 1 : index
    %c0_112 = arith.constant 0 : index
    %88 = vector.load %arg13[%c1_110, %c1_111, %c0_112] : memref<18x18x32xbf16, #tpu.memory_space<vmem>>, vector<16x16x32xbf16>
    %89 = vector.shape_cast %88 : vector<16x16x32xbf16> to vector<256x32xbf16>
    %c0_113 = arith.constant 0 : index
    %c128_114 = arith.constant 128 : index
    %90 = vector.load %arg14[%c0_113, %c128_114] : memref<256x288xbf16, #tpu.memory_space<vmem>>, vector<256x32xbf16>
    tpu.vector_store %arg14[%c0_113, %c128_114], %89 {strides = array<i32>} : memref<256x288xbf16, #tpu.memory_space<vmem>>, vector<256x32xbf16>,
    %c1_115 = arith.constant 1 : index
    %c2_116 = arith.constant 2 : index
    %c0_117 = arith.constant 0 : index
    %91 = vector.load %arg13[%c1_115, %c2_116, %c0_117] : memref<18x18x32xbf16, #tpu.memory_space<vmem>>, vector<16x16x32xbf16>
    %92 = vector.shape_cast %91 : vector<16x16x32xbf16> to vector<256x32xbf16>
    %c0_118 = arith.constant 0 : index
    %c160 = arith.constant 160 : index
    %93 = vector.load %arg14[%c0_118, %c160] : memref<256x288xbf16, #tpu.memory_space<vmem>>, vector<256x32xbf16>
    tpu.vector_store %arg14[%c0_118, %c160], %92 {strides = array<i32>} : memref<256x288xbf16, #tpu.memory_space<vmem>>, vector<256x32xbf16>,
    %c2_119 = arith.constant 2 : index
    %c0_120 = arith.constant 0 : index
    %c0_121 = arith.constant 0 : index
    %94 = vector.load %arg13[%c2_119, %c0_120, %c0_121] : memref<18x18x32xbf16, #tpu.memory_space<vmem>>, vector<16x16x32xbf16>
    %95 = vector.shape_cast %94 : vector<16x16x32xbf16> to vector<256x32xbf16>
    %c0_122 = arith.constant 0 : index
    %c192 = arith.constant 192 : index
    %96 = vector.load %arg14[%c0_122, %c192] : memref<256x288xbf16, #tpu.memory_space<vmem>>, vector<256x32xbf16>
    tpu.vector_store %arg14[%c0_122, %c192], %95 {strides = array<i32>} : memref<256x288xbf16, #tpu.memory_space<vmem>>, vector<256x32xbf16>,
    %c2_123 = arith.constant 2 : index
    %c1_124 = arith.constant 1 : index
    %c0_125 = arith.constant 0 : index
    %97 = vector.load %arg13[%c2_123, %c1_124, %c0_125] : memref<18x18x32xbf16, #tpu.memory_space<vmem>>, vector<16x16x32xbf16>
    %98 = vector.shape_cast %97 : vector<16x16x32xbf16> to vector<256x32xbf16>
    %c0_126 = arith.constant 0 : index
    %c224 = arith.constant 224 : index
    %99 = vector.load %arg14[%c0_126, %c224] : memref<256x288xbf16, #tpu.memory_space<vmem>>, vector<256x32xbf16>
    tpu.vector_store %arg14[%c0_126, %c224], %98 {strides = array<i32>} : memref<256x288xbf16, #tpu.memory_space<vmem>>, vector<256x32xbf16>,
    %c2_127 = arith.constant 2 : index
    %c2_128 = arith.constant 2 : index
    %c0_129 = arith.constant 0 : index
    %100 = vector.load %arg13[%c2_127, %c2_128, %c0_129] : memref<18x18x32xbf16, #tpu.memory_space<vmem>>, vector<16x16x32xbf16>
    %101 = vector.shape_cast %100 : vector<16x16x32xbf16> to vector<256x32xbf16>
    %c0_130 = arith.constant 0 : index
    %c256 = arith.constant 256 : index
    %102 = vector.load %arg14[%c0_130, %c256] : memref<256x288xbf16, #tpu.memory_space<vmem>>, vector<256x32xbf16>
    tpu.vector_store %arg14[%c0_130, %c256], %101 {strides = array<i32>} : memref<256x288xbf16, #tpu.memory_space<vmem>>, vector<256x32xbf16>,
    %c0_131 = arith.constant 0 : index
    %c0_132 = arith.constant 0 : index
    %103 = vector.load %arg14[%c0_131, %c0_132] : memref<256x288xbf16, #tpu.memory_space<vmem>>, vector<256x288xbf16>
    %c0_133 = arith.constant 0 : index
    %c0_134 = arith.constant 0 : index
    %104 = vector.load %arg4[%c0_133, %c0_134] : memref<288x32xbf16, #tpu.memory_space<vmem>>, vector<288x32xbf16>
    %cst_135 = arith.constant dense<0.000000e+00> : vector<256x32xf32>
    %105 = tpu.matmul %103, %104, %cst_135 {dimension_numbers = #tpu.dot_dimension_numbers<[1], [0], [0], [1], [0, 0, 1, 1], [], []>} : vector<256x288xbf16>, vector<288x32xbf16>, vector<256x32xf32> -> vector<256x32xf32>
    %c0_136 = arith.constant 0 : index
    %c0_137 = arith.constant 0 : index
    %106 = vector.load %arg5[%c0_136, %c0_137] : memref<1x32xf32, #tpu.memory_space<vmem>>, vector<1x32xf32>
    %107 = vector.broadcast %106 : vector<1x32xf32> to vector<256x32xf32>
    %108 = arith.addf %105, %107 : vector<256x32xf32>
    %cst_138 = arith.constant dense<0.000000e+00> : vector<32xf32>
    %109 = vector.multi_reduction <add>, %108, %cst_138 [0] : vector<256x32xf32> to vector<32xf32>
    %110 = vector.shape_cast %109 : vector<32xf32> to vector<1x32xf32>
    %cst_139 = arith.constant 3.906250e-03 : f32
    %111 = vector.broadcast %cst_139 : f32 to vector<1x32xf32>
    %112 = arith.mulf %110, %111 : vector<1x32xf32>
    %c0_140 = arith.constant 0 : index
    %c0_141 = arith.constant 0 : index
    %113 = vector.load %arg6[%c0_140, %c0_141] : memref<32x2xf32, #tpu.memory_space<vmem>>, vector<32x2xf32>
    %cst_142 = arith.constant dense<0.000000e+00> : vector<1x2xf32>
    %114 = tpu.matmul %112, %113, %cst_142 {dimension_numbers = #tpu.dot_dimension_numbers<[1], [0], [0], [1], [0, 0, 1, 1], [], []>} : vector<1x32xf32>, vector<32x2xf32>, vector<1x2xf32> -> vector<1x2xf32>
    %cst_143 = arith.constant 0.000000e+00 : f32
    %115 = vector.broadcast %cst_143 : f32 to vector<1x2xf32>
    %116 = arith.maximumf %114, %115 : vector<1x2xf32>
    %cst_144 = arith.constant 0.000000e+00 : f32
    %117 = vector.broadcast %cst_144 : f32 to vector<1x32xf32>
    %118 = vector.extract_strided_slice %116 {offsets = [0, 0], sizes = [1, 1], strides = [1, 1]} : vector<1x2xf32> to vector<1x1xf32>
    %c0_145 = arith.constant 0 : index
    %c0_146 = arith.constant 0 : index
    %119 = vector.load %arg7[%c0_145, %c0_146] : memref<2x32xf32, #tpu.memory_space<vmem>>, vector<1x32xf32>
    %120 = vector.broadcast %118 : vector<1x1xf32> to vector<1x32xf32>
    %121 = arith.mulf %120, %119 : vector<1x32xf32>
    %122 = arith.addf %117, %121 : vector<1x32xf32>
    %123 = vector.extract_strided_slice %116 {offsets = [0, 1], sizes = [1, 1], strides = [1, 1]} : vector<1x2xf32> to vector<1x1xf32>
    %c1_147 = arith.constant 1 : index
    %c0_148 = arith.constant 0 : index
    %124 = vector.load %arg7[%c1_147, %c0_148] : memref<2x32xf32, #tpu.memory_space<vmem>>, vector<1x32xf32>
    %125 = vector.broadcast %123 : vector<1x1xf32> to vector<1x32xf32>
    %126 = arith.mulf %125, %124 : vector<1x32xf32>
    %127 = arith.addf %122, %126 : vector<1x32xf32>
    %128 = arith.negf %127 : vector<1x32xf32>
    %129 = math.exp %128 : vector<1x32xf32>
    %cst_149 = arith.constant 1.000000e+00 : f32
    %130 = vector.broadcast %cst_149 : f32 to vector<1x32xf32>
    %131 = arith.addf %130, %129 : vector<1x32xf32>
    %132 = arith.divf %130, %131 : vector<1x32xf32>
    %133 = vector.broadcast %132 : vector<1x32xf32> to vector<256x32xf32>
    %134 = arith.mulf %108, %133 : vector<256x32xf32>
    %135 = arith.addf %134, %8 : vector<256x32xf32>
    %cst_150 = arith.constant 5.000000e-01 : f32
    %136 = vector.broadcast %cst_150 : f32 to vector<256x32xf32>
    %137 = arith.mulf %136, %135 : vector<256x32xf32>
    %cst_151 = arith.constant 4.471500e-02 : f32
    %138 = vector.broadcast %cst_151 : f32 to vector<256x32xf32>
    %139 = arith.mulf %138, %135 : vector<256x32xf32>
    %140 = arith.mulf %139, %135 : vector<256x32xf32>
    %141 = arith.mulf %140, %135 : vector<256x32xf32>
    %142 = arith.addf %135, %141 : vector<256x32xf32>
    %cst_152 = arith.constant 0.797884583 : f32
    %143 = vector.broadcast %cst_152 : f32 to vector<256x32xf32>
    %144 = arith.mulf %143, %142 : vector<256x32xf32>
    %145 = math.tanh %144 : vector<256x32xf32>
    %cst_153 = arith.constant 1.000000e+00 : f32
    %146 = vector.broadcast %cst_153 : f32 to vector<256x32xf32>
    %147 = arith.addf %146, %145 : vector<256x32xf32>
    %148 = arith.mulf %137, %147 : vector<256x32xf32>
    %149 = vector.shape_cast %148 : vector<256x32xf32> to vector<1x16x16x32xf32>
    %c0_154 = arith.constant 0 : index
    %c0_155 = arith.constant 0 : index
    %c0_156 = arith.constant 0 : index
    %c0_157 = arith.constant 0 : index
    %150 = vector.load %arg10[%c0_154, %c0_155, %c0_156, %c0_157] : memref<1x16x16x32xf32, #tpu.memory_space<vmem>>, vector<1x16x16x32xf32>
    tpu.vector_store %arg10[%c0_154, %c0_155, %c0_156, %c0_157], %149 {strides = array<i32>} : memref<1x16x16x32xf32, #tpu.memory_space<vmem>>, vector<1x16x16x32xf32>,
    return
  }
  func.func @transform_0(%arg0: i32) -> (i32, i32, i32, i32) {
    %c0_i32 = arith.constant 0 : i32
    %c0_i32_0 = arith.constant 0 : i32
    %c0_i32_1 = arith.constant 0 : i32
    %c0_i32_2 = arith.constant 0 : i32
    return %arg0, %c0_i32, %c0_i32_0, %c0_i32_1 : i32, i32, i32, i32
  }
  func.func @transform_1(%arg0: i32) -> (i32, i32) {
    %c0_i32 = arith.constant 0 : i32
    %c0_i32_0 = arith.constant 0 : i32
    %c0_i32_1 = arith.constant 0 : i32
    return %c0_i32, %c0_i32_0 : i32, i32
  }
  func.func @transform_2(%arg0: i32) -> (i32, i32) {
    %c0_i32 = arith.constant 0 : i32
    %c0_i32_0 = arith.constant 0 : i32
    %c0_i32_1 = arith.constant 0 : i32
    return %c0_i32, %c0_i32_0 : i32, i32
  }
  func.func @transform_3(%arg0: i32) -> (i32, i32) {
    %c0_i32 = arith.constant 0 : i32
    %c0_i32_0 = arith.constant 0 : i32
    %c0_i32_1 = arith.constant 0 : i32
    return %c0_i32, %c0_i32_0 : i32, i32
  }
  func.func @transform_4(%arg0: i32) -> (i32, i32) {
    %c0_i32 = arith.constant 0 : i32
    %c0_i32_0 = arith.constant 0 : i32
    %c0_i32_1 = arith.constant 0 : i32
    return %c0_i32, %c0_i32_0 : i32, i32
  }
  func.func @transform_5(%arg0: i32) -> (i32, i32) {
    %c0_i32 = arith.constant 0 : i32
    %c0_i32_0 = arith.constant 0 : i32
    %c0_i32_1 = arith.constant 0 : i32
    return %c0_i32, %c0_i32_0 : i32, i32
  }
  func.func @transform_6(%arg0: i32) -> (i32, i32) {
    %c0_i32 = arith.constant 0 : i32
    %c0_i32_0 = arith.constant 0 : i32
    %c0_i32_1 = arith.constant 0 : i32
    return %c0_i32, %c0_i32_0 : i32, i32
  }
  func.func @transform_7(%arg0: i32) -> (i32, i32) {
    %c0_i32 = arith.constant 0 : i32
    %c0_i32_0 = arith.constant 0 : i32
    %c0_i32_1 = arith.constant 0 : i32
    return %c0_i32, %c0_i32_0 : i32, i32
  }
  func.func @transform_8(%arg0: i32) -> (i32, i32) {
    %c0_i32 = arith.constant 0 : i32
    %c0_i32_0 = arith.constant 0 : i32
    %c0_i32_1 = arith.constant 0 : i32
    return %c0_i32, %c0_i32_0 : i32, i32
  }
  func.func @transform_9(%arg0: i32) -> (i32, i32, i32, i32) {
    %c0_i32 = arith.constant 0 : i32
    %c0_i32_0 = arith.constant 0 : i32
    %c0_i32_1 = arith.constant 0 : i32
    %c0_i32_2 = arith.constant 0 : i32
    return %arg0, %c0_i32, %c0_i32_0, %c0_i32_1 : i32, i32, i32, i32
  }
}

</mosaic_0001>

<bundles_post_ra>
// kernel: tpu_custom_call.1
= control target key start
LH: loop header
LB: loop body
LE: loop exit
PB: predicated region body
PF: predicated region fallthrough
CT: control target
= control target key end

     0   :  { %14 = vsyncpa [#allocation7], 0  ;;  %s17127_s0 = inlined_call_operand.hbm [shape: f32[2,16,16,16], index: 0, kind: input, shape index: {}]   ;;  %s17128_s1 = inlined_call_operand.vmem [shape: bf16[144,32], index: 1, kind: input, shape index: {}]   ;;  %s17129_s2 = inlined_call_operand.vmem [shape: f32[1,32], index: 2, kind: input, shape index: {}]   ;;  %s17130_s3 = inlined_call_operand.vmem [shape: bf16[288,32], index: 3, kind: input, shape index: {}]   ;;  %s17131_s4 = inlined_call_operand.vmem [shape: f32[1,32], index: 4, kind: input, shape index: {}]   ;;  %s17132_s5 = inlined_call_operand.vmem [shape: f32[32,2], index: 5, kind: input, shape index: {}]   ;;  %s17133_s6 = inlined_call_operand.vmem [shape: f32[2,32], index: 6, kind: input, shape index: {}]   ;;  %s17134_s7 = inlined_call_operand.vmem [shape: bf16[16,32], index: 7, kind: input, shape index: {}]   ;;  %s17135_s8 = inlined_call_operand.vmem [shape: f32[1,32], index: 8, kind: input, shape index: {}]   ;;  %s17136_s9 = inlined_call_operand.hbm [shape: f32[2,16,16,32], index: 9, kind: output, shape index: {}]  }
   0x1   :  { %16 = vsyncpa [#allocation7 + $0x1], 0 }
   0x2   :  { %17 = vsyncpa [#allocation8], 0 }
   0x3   :  { %19 = vsyncpa [#allocation8 + $0x1], 0  ;;  %s11380_s30 = smov 0   ;;  %s11382_s10 = smov 0  }
   0x4   :  { %s11384_s11 = smov 0   ;;  %s11386_s12 = smov 0  }
   0x5 LB: > { %17192 = sst [smem:[#allocation12_spill]] %s11307_s11  ;;  %s11401_s13 = sadd.s32 4294967295, %s11311_s12   ;;  %s11311_s12 = sphi %s11386_s12, %s17541_s12   ;;  %s11307_s11 = sphi %s11384_s11, %s17538_s11   ;;  %s11303_s10 = sphi %s11382_s10, %s17540_s10   ;;  %s11299_s30 = sphi %s11380_s30, %s17539_s30  }
   0x6   : > { %s10235_s14 = sadd.s32 4294967294, %s11311_s12   ;;  %s11405_s15 = sadd.s32 1, %s11311_s12  }
   0x7   : > { %s32_s16 = sadd.s32 1, %s11307_s11  ;;  %s29_s17 = ssub.s32 %s11311_s12, %s11405_s15 }
   0x8   : > { %p39_p0 = scmp.ne.s32.totalorder %s11307_s11, %s11303_s10  ;;  %p30_p1 = scmp.eq.s32.totalorder %s29_s17, 0 }
   0x9   : > { %p40_p2 = scmp.eq.s32.totalorder %s11311_s12, 0  ;;  %p45_p3 = scmp.ne.s32.totalorder %s11303_s10, %s11299_s30 }
   0xa   : > { %p46_p4 = scmp.eq.s32.totalorder %s11401_s13, 0  ;;  %p237_p7 = scmp.eq.s32.totalorder %s11401_s13, 1 }
   0xb   : > { %s11417_s18 = scalar_select %p30_p1, %s11307_s11, %s32_s16  }
   0xc   : > { %p11419_p5 = por %p40_p2, %p39_p0  ;;  %p11423_p6 = por %p46_p4, %p45_p3 }
   0xd   : > { %17193 = sst [smem:[#allocation13_spill]] %s11417_s18  ;;  %p243_p8 = scmp.eq.s32.totalorder %s10235_s14, 1 }
   0xe   : > { %s17195_s20 = scalar_select %p11423_p6, 1, 0 }
   0xf   : > { %p10885_p10 = scmp.lt.s32.totalorder %s11311_s12, 2  ;;  %p11430_p11 = por %p237_p7, %p39_p0 }
  0x10   : > { %p11434_p12 = por %p243_p8, %p45_p3  ;;  %s287_s23 = sand.u32 1, %s11307_s11  }
  0x11   : > { %s17196_s21 = scalar_select %p11430_p11, 1, 0 }
  0x12   : > { %s17197_s22 = scalar_select %p11434_p12, 1, 0 }
  0x13   : > { %s10570_s24 = sshll.u32 %s11311_s12, 12  ;;  %s10238_s25 = sshll.u32 %s287_s23, 8 }
  0x14   : > { %s11443_s28 = scalar_lea.hbm %s17127_s0, %s10570_s24  ;;  %s291_s29 = scalar_lea.vmem [#allocation6], %s10238_s25 }
  0x15   : > { %s298_s14 = sshll.u32 %s291_s29, 4  ;;  %p11447_p13 = pnand %p10885_p10, %p11419_p5  ;;  %s11451_s14 = int_to_ptr.vmem [resolvable:$true] %s298_s14 }
  0x16   : > { %s11453_s17 = scalar_lea.sflag [#allocation7], %s287_s23  ;;  %s11219_s18 = scalar_lea.hbm %s11443_s28, 4096 }
  0x17   : > { %p11220_p0 = scmp.ne.s32.totalorder %s11443_s28, %s11219_s18  ;;  %p11221_p1 = pneg %p11447_p13 }
  0x18   : > { %s11224_s25 = scalar_lea.hbm %s17127_s0, 8192  ;;  %p11225_p4 = scmp.lt.s32.totalorder %s11443_s28, %s17127_s0 }
  0x19   : > { %p11222_p2 = pnand %p11221_p1, %p11220_p0  ;;  %p11226_p5 = scmp.lt.s32.totalorder %s11224_s25, %s11219_s18 }
  0x1b   : > { %p11223_p3 = pneg %p11222_p2  ;;  %p11227_p7 = por %p11226_p5, %p11225_p4 }
  0x1d   : > { %p11228_p8 = pnand %p11227_p7, %p11223_p3 }
  0x1f   : > { %11231 = shalt.err (!%p11228_p8)
}
  0x20   : > { %s11232_s23 = scalar_lea.vmem %s11451_s14, 4096  ;;  %s11313_s29 = smov [#allocation6]  }
  0x21   : > { %p11233_p10 = scmp.ne.s32.totalorder %s11451_s14, %s11232_s23  ;;  %s11237_s11 = sshll.u32 %s11313_s29, 4  ;;  %s11238_s11 = int_to_ptr.vmem [resolvable:$false] %s11237_s11 }
  0x22   : > { %s11239_s24 = scalar_lea.vmem %s11238_s11, 8192  ;;  %p11240_p2 = scmp.lt.s32.totalorder %s11451_s14, %s11238_s11 }
  0x23   : > { %p11235_p9 = pnand %p11233_p10, %p11221_p1  ;;  %p11241_p12 = scmp.lt.s32.totalorder %s11239_s24, %s11232_s23 }
  0x25   : > { %p11236_p0 = pneg %p11235_p9  ;;  %p11242_p11 = por %p11241_p12, %p11240_p2 }
  0x27   : > { %p11243_p6 = pnand %p11242_p11, %p11236_p0 }
  0x29   : > { %11246 = shalt.err (!%p11243_p6)
}
  0x2a   : > { %s11314_s18 = smov 128   ;;  %s11315_s26 = smov 8  }
  0x2b   : > { %10880 = dma.hbm_to_vmem [thread:$0]  (!%p11447_p13), %s11443_s28, 4096, %s11451_s14, %s11453_s17, %s11314_s18, %s11314_s18, %s11315_s26  }
  0x2c   : > { %p10241_p9 = scmp.ge.s32.totalorder %s11311_s12, 1  ;;  %p306_p1 = scmp.lt.s32.totalorder %s11311_s12, 3 }
  0x2e   : > { %p307_p3 = pnand %p10241_p9, %p306_p1 }
  0x30   : > { %310 = sbr.rel (%p307_p3) target bundleno = 1893 (0x765), region = 56 }
  0x35   : > { %s11477_s11 = sand.u32 1, %s11303_s10   ;;  %p17199_p6 = scmp.ne.s32.totalorder %s17195_s20, 0 }
  0x36   : > { %s10242_s25 = sshll.u32 %s11477_s11, 8  ;;  %s313_s19 = scalar_lea.sflag [#allocation7], %s11477_s11 }
  0x37   : > { %s11483_s27 = scalar_lea.vmem [#allocation6], %s10242_s25 }
  0x38   : > { %11290 = dma.done.wait (%p17199_p6), %s313_s19, 4096  }
  0x39   : > { %11292 = vsyncadd (%p17199_p6), %s313_s19, 4294963200  ;;  %vm625_vm0 = vcmask 125952   ;;  %v11316_v0 = vmov 0   ;;  %vm628_vm1 = vcmask 122880   ;;  %vm17140_vm2 = vcmask 257024   ;;  %v352_v3 = vld [vmem:[%s11483_s27] sm:$0xff] }
  0x3a   : > { %626 = vst.msk [vmem:[#allocation2] sm:$0xf] %vm625_vm0, %v11316_v0  ;;  %627 = vst.msk [vmem:[#allocation2 + $0x4] sm:$0xf] %vm625_vm0, %v11316_v0  ;;  %4653 = vmatprep.subr.bf16.mxu1 %v11316_v0  ;;  %10934 = vset.pattern.permute.xlu0 %v11316_v0  ;;  %vm1988_vm3 = vcmask 1042432   ;;  %vm1989_vm4 = vcmask 1046532   ;;  %v10571_v8 = vpack.c.bf16 %v352_v3, %v352_v3 }
  0x3b   : > { %631 = vst.msk [vmem:[#allocation2 + $0xcc] sm:$0xf] %vm625_vm0, %v11316_v0  ;;  %632 = vst.msk [vmem:[#allocation2 + $0xd0] sm:$0xf] %vm625_vm0, %v11316_v0  ;;  %vm17141_vm5 = vsmask.f32 7938 }
  0x3c   : > { %629 = vst.msk [vmem:[#allocation2 + $0x8] sm:$0x1] %vm628_vm1, %v11316_v0  ;;  %633 = vst.msk [vmem:[#allocation2 + $0xd4] sm:$0x1] %vm628_vm1, %v11316_v0  ;;  %vm635_vm7 = vsmask.f32 256 }
  0x3d   : > { %5103 = vst.msk [vmem:[#allocation4] sm:$0xf] %vm17140_vm2, %v11316_v0  ;;  %5104 = vst.msk [vmem:[#allocation4 + $0x4] sm:$0xf] %vm17140_vm2, %v11316_v0  ;;  %v353_v4 = vld [vmem:[%s11483_s27 + $0x8] sm:$0xff]  ;;  %v830_v17 = vshrl.u32 %v10571_v8, 16 }
  0x3e   : > { %5108 = vst.msk [vmem:[#allocation4 + $0xcc] sm:$0xf] %vm17140_vm2, %v11316_v0  ;;  %5109 = vst.msk [vmem:[#allocation4 + $0xd0] sm:$0xf] %vm17140_vm2, %v11316_v0  ;;  %vm827_vm9 = vsmask.f32 4368  ;;  %v10572_v9 = vpack.c.bf16 %v353_v4, %v353_v4 }
  0x3f   : > { %vm11511_vm6 = vmor %vm1988_vm3, %vm1989_vm4  ;;  %vm1376_vm11 = vsmask.f32 3328  ;;  %vm1377_vm12 = vsmask.f32 7440  ;;  %v640_v20 = vld [vmem:[#allocation2 + $0xc] sm:$0x1] }
  0x40   : > { %vm11517_vm8 = vmand %vm628_vm1, %vm17141_vm5  ;;  %v838_v18 = vshrl.u32 %v10572_v9, 16  ;;  %v841_v19 = vshll.u32 %v10572_v9, 16  ;;  %v354_v25 = vld [vmem:[%s11483_s27 + $0x10] sm:$0xff]  ;;  %v355_v26 = vld [vmem:[%s11483_s27 + $0x18] sm:$0xff]  ;;  %s11317_s20 = smov 32   ;;  %v832_v28 = vrot.slane %v830_v17, 7 }
  0x41   : > { %v1892_v5 = vld [vmem:[#allocation2] sm:$0xe]  ;;  %v1893_v6 = vld [vmem:[#allocation2 + $0x4] sm:$0xf]  ;;  %vm11525_vm10 = vmand %vm628_vm1, %vm635_vm7  ;;  %v833_v31 = vshll.u32 %v10571_v8, 16  ;;  %v10573_v34 = vpack.c.bf16 %v354_v25, %v354_v25  ;;  %v10574_v35 = vpack.c.bf16 %v355_v26, %v355_v26  ;;  %s11318_s23 = smov 16  }
  0x42   : > { %v1329_v7 = vld [vmem:[#allocation2 + $0x4] sm:$0xf]  ;;  %v10294_v10 = vrot.slane %v1892_v5, 9  ;;  %v1993_v11 = vrot.slane %v1893_v6, 5  ;;  %vm11542_vm13 = vmor %vm635_vm7, %vm827_vm9  ;;  %v11546_v29 = vrot.slane %v838_v18, 7  ;;  %v641_v30 = vsel %vm11525_vm10, 0, %v640_v20 }
  0x43   : > { %v693_v13 = vld [vmem:[#allocation2 + $0x8] sm:$0x1]  ;;  %v1389_v14 = vshll.u32 %v1329_v7, 16  ;;  %v1393_v15 = vshrl.u32 %v1329_v7, 16  ;;  %v643_v32 = vld [vmem:[#allocation2 + $0x18] sm:$0x1]  ;;  %v835_v42 = vor.u32 %v833_v31, %v832_v28  ;;  %vm11571_vm14 = vmand %vm625_vm0, %vm17141_vm5 }
  0x44   : > { %v694_v16 = vsel %vm11517_vm8, 0, %v693_v13  ;;  %v1994_v21 = vsel %vm11511_vm6, %v10294_v10, %v1993_v11  ;;  %v11533_v22 = vrot.slane %v1993_v11, 4  ;;  %642 = vst [vmem:[#allocation2 + $0xc] sm:$0x1] %v641_v30  ;;  %v644_v36 = vsel %vm11525_vm10, 0, %v643_v32  ;;  %v356_v39 = vld [vmem:[%s11483_s27 + $0x20] sm:$0xff]  ;;  %vm11585_vm15 = vmor %vm1376_vm11, %vm1377_vm12 }
  0x45   : > { %695 = vst [vmem:[#allocation2 + $0x8] sm:$0x1] %v694_v16  ;;  %v11535_v23 = vrot.slane %v1389_v14, 5  ;;  %v1395_v24 = vrot.slane %v1393_v15, 4  ;;  %2103 = vrot.lane.b32.xlu1 %v1994_v21, %s11317_s20  ;;  %v696_v37 = vld [vmem:[#allocation2 + $0x14] sm:$0x1]  ;;  %v843_v41 = vor.u32 %v841_v19, %v11546_v29  ;;  %v11567_v58 = vpack.c.bf16 %v356_v39, %v356_v39 }
  0x46   : > { %v637_v38 = vld [vmem:[#allocation2] sm:$0x1]  ;;  %v836_v40 = vrot.slane %v832_v28, 4  ;;  %645 = vst [vmem:[#allocation2 + $0x18] sm:$0x1] %v644_v36  ;;  %v357_v44 = vld [vmem:[%s11483_s27 + $0x28] sm:$0xff] }
  0x47   : > { %v1396_v33 = vor.u32 %v1395_v24, %v11535_v23  ;;  %v699_v43 = vld [vmem:[#allocation2 + $0x20] sm:$0x1]  ;;  %v702_v45 = vld [vmem:[#allocation2 + $0x2c] sm:$0x1]  ;;  %v847_v47 = vshrl.u32 %v10573_v34, 16  ;;  %v855_v48 = vshrl.u32 %v10574_v35, 16  ;;  %v10576_v62 = vpack.c.bf16 %v357_v44, %v357_v44 }
  0x48   : > { %v858_v49 = vshll.u32 %v10574_v35, 16  ;;  %v646_v50 = vld [vmem:[#allocation2 + $0x24] sm:$0x1]  ;;  %v844_v51 = vsel %vm11542_vm13, %v836_v40, %v843_v41  ;;  %v850_v52 = vshll.u32 %v10573_v34, 16  ;;  %v697_v53 = vsel %vm11517_vm8, 0, %v696_v37  ;;  %v10937_v8 = vld [vmem:[%s17128_s1 + $0x38] sm:$0xff]  }
  0x49   : > { %v1397_v46 = vrot.slane %v1396_v33, 4  ;;  %v638_v54 = vsel %vm11525_vm10, 0, %v637_v38  ;;  %1155 = vst.msk [vmem:[#allocation2 + $0x10] sm:$0xf] %vm625_vm0, %v844_v51  ;;  %v849_v55 = vrot.slane %v847_v47, 7  ;;  %v11563_v56 = vrot.slane %v855_v48, 7  ;;  %4654 = vmatpush1.bf16.msra.mxu1 %v10937_v8 }
  0x4a   : > { %698 = vst [vmem:[#allocation2 + $0x14] sm:$0x1] %v697_v53  ;;  %639 = vst [vmem:[#allocation2] sm:$0x1] %v638_v54  ;;  %v700_v57 = vsel %vm11517_vm8, 0, %v699_v43  ;;  %v703_v63 = vsel %vm11517_vm8, 0, %v702_v45  ;;  %4655 = vmatprep.subr.bf16.mxu1 %v11316_v0 }
  0x4b   : > { %701 = vst [vmem:[#allocation2 + $0x20] sm:$0x1] %v700_v57  ;;  %v647_v3 = vsel %vm11525_vm10, 0, %v646_v50  ;;  %v853_v6 = vrot.slane %v849_v55, 4  ;;  %v860_v7 = vor.u32 %v858_v49, %v11563_v56  ;;  %704 = vst [vmem:[#allocation2 + $0x2c] sm:$0x1] %v703_v63  ;;  %v852_v13 = vor.u32 %v850_v52, %v849_v55 }
  0x4c   : > { %v1894_v60 = vld [vmem:[#allocation2 + $0x8] sm:$0x1]  ;;  %648 = vst [vmem:[#allocation2 + $0x24] sm:$0x1] %v647_v3  ;;  %v845_v10 = vrot.slane %v11546_v29, 4  ;;  %v864_v14 = vshrl.u32 %v11567_v58, 16 }
  0x4d   : > { %v1330_v61 = vld [vmem:[#allocation2 + $0x8] sm:$0x1]  ;;  %v1996_v4 = vrot.slane %v1894_v60, 5  ;;  %v1152_v11 = vld [vmem:[#allocation2 + $0xc] sm:$0xf]  ;;  %v872_v15 = vshrl.u32 %v10576_v62, 16  ;;  %v861_v19 = vsel %vm11542_vm13, %v853_v6, %v860_v7 }
  0x4e   : > { %v1399_v5 = vshll.u32 %v1330_v61, 16  ;;  %v1153_v18 = vsel %vm11571_vm14, %v835_v42, %v1152_v11  ;;  %v1159_v20 = vld [vmem:[#allocation2 + $0x18] sm:$0xf]  ;;  %v10938_v21 = vld [vmem:[%s17128_s1 + $0x30] sm:$0xff]   ;;  %1162 = vst.msk [vmem:[#allocation2 + $0x1c] sm:$0xf] %vm625_vm0, %v861_v19 }
  0x4f   : > { %v1997_v16 = vsel %vm11511_vm6, %v11533_v22, %v1996_v4  ;;  %1154 = vst [vmem:[#allocation2 + $0xc] sm:$0xf] %v1153_v18  ;;  %v1160_v22 = vsel %vm11571_vm14, %v852_v13, %v1159_v20  ;;  %v11605_v24 = vrot.slane %v864_v14, 7  ;;  %v11607_v25 = vrot.slane %v872_v15, 7  ;;  %v1265_v30 = vld [vmem:[#allocation2 + $0x4] sm:$0xf]  ;;  %4656 = vmatpush1.bf16.msra.mxu1 %v10938_v21 }
  0x50   : > { %v1401_v17 = vrot.slane %v1399_v5, 5  ;;  %2105 = vrot.lane.b32.xlu1 %v1997_v16, %s11317_s20  ;;  %v875_v26 = vshll.u32 %v10576_v62, 16  ;;  %v862_v29 = vrot.slane %v11563_v56, 4  ;;  %1161 = vst [vmem:[#allocation2 + $0x18] sm:$0xf] %v1160_v22  ;;  %s11319_s29 = smov 48   ;;  %4657 = vmatprep.subr.bf16.mxu1 %v11316_v0 }
  0x51   : > { %v2233_v31 = vld [vmem:[#allocation2 + $0x10] sm:$0xf]  ;;  %v1156_v32 = vld [vmem:[#allocation2 + $0x14] sm:$0x1]  ;;  %1297 = vst.msk [vmem:[#allocation3 + $0x8] sm:$0xf] %vm625_vm0, %v1265_v30 }
  0x52   : > { %v1402_v28 = vsel %vm11585_vm15, %v1397_v46, %v1401_v17  ;;  %v11614_v33 = vld [vmem:[#allocation2 + $0x10] sm:$0xf]  ;;  %v877_v34 = vor.u32 %v875_v26, %v11607_v25  ;;  %v1157_v35 = vsel %vm11525_vm10, %v845_v10, %v1156_v32  ;;  %v1328_v36 = vld [vmem:[#allocation2] sm:$0xf]  ;;  %v870_v38 = vrot.slane %v11605_v24, 4  ;;  %v10939_v48 = vld [vmem:[%s17128_s1 + $0x28] sm:$0xff]  }
  0x53   : > { %1765 = vrot.lane.b32.xlu0 %v1402_v28, %s11318_s23  ;;  %v11620_v37 = vld [vmem:[#allocation2 + $0x10] sm:$0xf]  ;;  %1158 = vst [vmem:[#allocation2 + $0x14] sm:$0x1] %v1157_v35  ;;  %v3084_v39 = vrot.slane %v11614_v33, 5  ;;  %v1380_v40 = vshrl.u32 %v1328_v36, 16  ;;  %4658 = vmatpush1.bf16.msra.mxu1 %v10939_v48 }
  0x54   : > { %2298 = vrot.lane.b32.xlu1 %v2233_v31, %s11319_s29  ;;  %v1383_v41 = vshll.u32 %v1328_v36, 16  ;;  %v2426_v42 = vld [vmem:[#allocation2 + $0x10] sm:$0xf]  ;;  %v2000_v43 = vrot.slane %v11620_v37, 5  ;;  %v1163_v46 = vld [vmem:[#allocation2 + $0x20] sm:$0x1]  ;;  %v878_v47 = vsel %vm11542_vm13, %v870_v38, %v877_v34  ;;  %4659 = vmatprep.subr.bf16.mxu1 %v11316_v0 }
  0x55   : > { %v2483_v44 = vshll.u32 %v2426_v42, 16  ;;  %v2487_v45 = vshrl.u32 %v2426_v42, 16  ;;  %v1382_v49 = vrot.slane %v1380_v40, 4  ;;  %v1164_v51 = vsel %vm11525_vm10, %v862_v29, %v1163_v46  ;;  %1169 = vst.msk [vmem:[#allocation2 + $0x28] sm:$0xf] %vm625_vm0, %v878_v47  ;;  %v10940_v52 = vld [vmem:[%s17128_s1 + $0x20] sm:$0xff]  }
  0x56   : > { %v1385_v50 = vrot.slane %v1383_v41, 5  ;;  %v2232_v53 = vld [vmem:[#allocation2 + $0xc] sm:$0xf]  ;;  %v3325_v54 = vld [vmem:[#allocation2 + $0x1c] sm:$0xf]  ;;  %s11320_s28 = smov 96  }
  0x57   : > { %v2986_v55 = vld [vmem:[#allocation2 + $0xc] sm:$0xe]  ;;  %1165 = vst [vmem:[#allocation2 + $0x20] sm:$0x1] %v1164_v51  ;;  %2296 = vrot.lane.b32.xlu0 %v2232_v53, %s11319_s29  ;;  %v11640_v57 = vrot.slane %v2483_v44, 5  ;;  %v2489_v60 = vrot.slane %v2487_v45, 4  ;;  %4660 = vmatpush1.bf16.msra.mxu1 %v10940_v52 }
  0x58   : > { %3390 = vrot.lane.b32.xlu1 %v3325_v54, %s11320_s28  ;;  %v1386_v56 = vor.u32 %v1385_v50, %v1382_v49  ;;  %v867_v61 = vshll.u32 %v11567_v58, 16  ;;  %v3324_v62 = vld [vmem:[#allocation2 + $0x18] sm:$0xf]  ;;  %v3086_v63 = vrot.slane %v3084_v39, 4  ;;  %v2002_v3 = vrot.slane %v2000_v43, 4  ;;  %4661 = vmatprep.subr.bf16.mxu1 %v11316_v0  ;;  %s11321_s17 = smov 80  }
  0x59   : > { %v1895_v4 = vld [vmem:[#allocation2 + $0xc] sm:$0xe]  ;;  %v10310_v6 = vrot.slane %v2986_v55, 9  ;;  %v2490_v7 = vor.u32 %v2489_v60, %v11640_v57  ;;  %v3518_v8 = vld [vmem:[#allocation2 + $0x1c] sm:$0xf]  ;;  %v10942_v42 = vld [vmem:[%s17128_s1 + $0x10] sm:$0xff]  }
  0x5a   : > { %v1387_v5 = vrot.slane %v1386_v56, 4  ;;  %v2425_v10 = vld [vmem:[#allocation2 + $0xc] sm:$0xf]  ;;  %v2988_v11 = vld [vmem:[#allocation2 + $0x14] sm:$0x1]  ;;  %v10295_v18 = vrot.slane %v1895_v4, 9 }
  0x5b   : > { %v1897_v13 = vld [vmem:[#allocation2 + $0x14] sm:$0x1]  ;;  %3388 = vrot.lane.b32.xlu0 %v3324_v62, %s11320_s28  ;;  %v3087_v15 = vrot.slane %v2988_v11, 5  ;;  %v1332_v19 = vld [vmem:[#allocation2 + $0x10] sm:$0xf]  ;;  %v10941_v20 = vld [vmem:[%s17128_s1 + $0x18] sm:$0xff]   ;;  %v3085_v49 = vsel %vm11511_vm6, %v10310_v6, %v3084_v39 }
  0x5c   : > { %v2427_v14 = vld [vmem:[#allocation2 + $0x14] sm:$0x1]  ;;  %v1392_v16 = vsel %vm11585_vm15, %v1387_v5, %v11535_v23  ;;  %v2003_v17 = vrot.slane %v1897_v13, 5  ;;  %v2491_v21 = vrot.slane %v2490_v7, 4  ;;  %v3575_v26 = vshll.u32 %v3518_v8, 16  ;;  %4662 = vmatpush1.bf16.msra.mxu1 %v10941_v20  ;;  %v10943_v37 = vld [vmem:[%s17128_s1 + $0x8] sm:$0xff]  }
  0x5d   : > { %v2493_v22 = vshll.u32 %v2427_v14, 16  ;;  %v3579_v28 = vshrl.u32 %v3518_v8, 16  ;;  %v3517_v29 = vld [vmem:[#allocation2 + $0x18] sm:$0xf]  ;;  %v3088_v30 = vsel %vm11511_vm6, %v3086_v63, %v3087_v15  ;;  %v2474_v32 = vshrl.u32 %v2425_v10, 16  ;;  %4663 = vmatprep.subr.bf16.mxu1 %v11316_v0  ;;  %s11322_s14 = smov 64  }
  0x5e   : > { %v2004_v23 = vsel %vm11511_vm6, %v2002_v3, %v2003_v17  ;;  %v3519_v31 = vld [vmem:[#allocation2 + $0x20] sm:$0x1]  ;;  %v2477_v34 = vshll.u32 %v2425_v10, 16  ;;  %v1333_v35 = vld [vmem:[#allocation2 + $0x14] sm:$0x1]  ;;  %3196 = vrot.lane.b32.xlu1 %v3088_v30, %s11321_s17  ;;  %v11662_v38 = vrot.slane %v3575_v26, 5  ;;  %v2001_v50 = vsel %vm11511_vm6, %v10295_v18, %v2000_v43 }
  0x5f   : > { %v2495_v36 = vrot.slane %v2493_v22, 5  ;;  %v3581_v40 = vrot.slane %v3579_v28, 4  ;;  %v3585_v41 = vshll.u32 %v3519_v31, 16  ;;  %1763 = vrot.lane.b32.xlu0 %v1392_v16, %s11318_s23  ;;  %v2476_v44 = vrot.slane %v2474_v32, 4  ;;  %v1331_v48 = vld [vmem:[#allocation2 + $0xc] sm:$0xf] }
  0x60   : > { %v2479_v45 = vrot.slane %v2477_v34, 5  ;;  %v1413_v46 = vshll.u32 %v1332_v19, 16  ;;  %v1417_v47 = vshrl.u32 %v1332_v19, 16  ;;  %v3566_v56 = vshrl.u32 %v3517_v29, 16  ;;  %v2429_v60 = vld [vmem:[#allocation2 + $0x1c] sm:$0xf]  ;;  %4664 = vmatpush1.bf16.msra.mxu1 %v10942_v42 }
  0x61   : > { %v3582_v51 = vor.u32 %v3581_v40, %v11662_v38  ;;  %v3587_v52 = vrot.slane %v3585_v41, 5  ;;  %v1423_v62 = vshll.u32 %v1333_v35, 16  ;;  %v3569_v63 = vshll.u32 %v3517_v29, 16  ;;  %4665 = vmatprep.subr.bf16.mxu1 %v11316_v0  ;;  %v2428_v14 = vld [vmem:[#allocation2 + $0x18] sm:$0xf]  ;;  %v10944_v19 = vld [vmem:[%s17128_s1] sm:$0xff]  }
  0x62   : > { %v2480_v53 = vor.u32 %v2479_v45, %v2476_v44  ;;  %v11678_v54 = vrot.slane %v1413_v46, 5  ;;  %v1419_v55 = vrot.slane %v1417_v47, 4  ;;  %2109 = vrot.lane.b32.xlu1 %v2004_v23, %s11317_s20  ;;  %v1404_v39 = vshrl.u32 %v1331_v48, 16  ;;  %v1170_v28 = vld [vmem:[#allocation2 + $0x2c] sm:$0x1]  ;;  %s11323_s18 = smov 112  }
  0x63   : > { %v3583_v33 = vrot.slane %v3582_v51, 4  ;;  %3194 = vrot.lane.b32.xlu0 %v3085_v49, %s11321_s17  ;;  %v2496_v43 = vsel %vm11585_vm15, %v2491_v21, %v2495_v36  ;;  %v3568_v4 = vrot.slane %v3566_v56, 4  ;;  %v1407_v5 = vshll.u32 %v1331_v48, 16  ;;  %v2430_v30 = vld [vmem:[#allocation2 + $0x20] sm:$0x1]  ;;  %s16979_s16 = scalar_lea.vmem [#allocation9], %s10242_s25 }
  0x64   : > { %v1420_v3 = vor.u32 %v1419_v55, %v11678_v54  ;;  %v2481_v6 = vrot.slane %v2480_v53, 4  ;;  %v3571_v7 = vrot.slane %v3569_v63, 5  ;;  %v1406_v8 = vrot.slane %v1404_v39, 4  ;;  %4666 = vmatpush1.bf16.msra.mxu1 %v10943_v37  ;;  %v1166_v34 = vld [vmem:[#allocation2 + $0x24] sm:$0xf]  ;;  %s10635_s25 = sshll.u32 %s11401_s13, 12 }
  0x65   : > { %v2507_v10 = vshll.u32 %v2429_v60, 16  ;;  %v1409_v11 = vrot.slane %v1407_v5, 5  ;;  %v2511_v13 = vshrl.u32 %v2429_v60, 16  ;;  %v3588_v15 = vsel %vm11585_vm15, %v3583_v33, %v3587_v52  ;;  %4667 = vmatprep.subr.bf16.mxu1 %v11316_v0  ;;  %v11716_v40 = vld [vmem:[#allocation2 + $0x1c] sm:$0xf]  ;;  %v358_v51 = vld [vmem:[%s11483_s27 + $0x30] sm:$0xff] }
  0x66   : > { %2859 = vrot.lane.b32.xlu1 %v2496_v43, %s11322_s14  ;;  %v1425_v16 = vrot.slane %v1423_v62, 5  ;;  %v3572_v17 = vor.u32 %v3571_v7, %v3568_v4  ;;  %v879_v18 = vrot.slane %v11607_v25, 4  ;;  %v1421_v20 = vrot.slane %v1420_v3, 4  ;;  %v3521_v41 = vld [vmem:[#allocation2 + $0x28] sm:$0xf]  ;;  %s10149_s24 = scalar_lea.sflag [#allocation8], %s11477_s11 }
  0x67   : > { %2107 = vrot.lane.b32.xlu0 %v2001_v50, %s11317_s20  ;;  %v1410_v21 = vor.u32 %v1409_v11, %v1406_v8  ;;  %v11697_v22 = vrot.slane %v2507_v10, 5  ;;  %v2513_v26 = vrot.slane %v2511_v13, 4  ;;  %v2486_v29 = vsel %vm11585_vm15, %v2481_v6, %v11640_v57  ;;  %v10945_v57 = vld [vmem:[%s17128_s1 + $0x40] sm:$0xff]   ;;  %v2235_v47 = vld [vmem:[#allocation2 + $0x1c] sm:$0xf]  ;;  %v359_v3 = vld [vmem:[%s11483_s27 + $0x38] sm:$0xff] }
  0x68   : > { %v3573_v25 = vrot.slane %v3572_v17, 4  ;;  %v2498_v23 = vshrl.u32 %v2428_v14, 16  ;;  %v869_v31 = vor.u32 %v867_v61, %v11605_v24  ;;  %v2501_v32 = vshll.u32 %v2428_v14, 16  ;;  %4668 = vmatpush1.bf16.msra.mxu1 %v10944_v19  ;;  %v1335_v53 = vld [vmem:[#allocation2 + $0x1c] sm:$0xf]  ;;  %p17534_p12 = scmp.ne.s32.totalorder %s17196_s21, 0 }
  0x69   : > { %v1171_v35 = vsel %vm11525_vm10, %v879_v18, %v1170_v28  ;;  %v1426_v36 = vsel %vm11585_vm15, %v1421_v20, %v1425_v16  ;;  %v1411_v58 = vrot.slane %v1410_v21, 4  ;;  %v2514_v24 = vor.u32 %v2513_v26, %v11697_v22  ;;  %4683 = vmatprep.subr.bf16.mxu1 %v11316_v0  ;;  %v2991_v56 = vld [vmem:[#allocation2 + $0x20] sm:$0x1]  ;;  %v2234_v4 = vld [vmem:[#allocation2 + $0x18] sm:$0xf]  ;;  %s11327_s19 = smov [#allocation9]  }
  0x6a   : > { %3951 = vrot.lane.b32.xlu1 %v3588_v15, %s11323_s18  ;;  %v2517_v61 = vshll.u32 %v2430_v30, 16  ;;  %1172 = vst [vmem:[#allocation2 + $0x2c] sm:$0x1] %v1171_v35  ;;  %v3578_v42 = vsel %vm11585_vm15, %v3573_v25, %v11662_v38  ;;  %v2500_v44 = vrot.slane %v2498_v23, 4  ;;  %v2503_v45 = vrot.slane %v2501_v32, 5 }
  0x6b   : > { %2857 = vrot.lane.b32.xlu0 %v2486_v29, %s11322_s14  ;;  %v1167_v46 = vsel %vm11571_vm14, %v869_v31, %v1166_v34  ;;  %v3091_v48 = vrot.slane %v11716_v40, 5  ;;  %v3599_v49 = vshll.u32 %v3521_v41, 16  ;;  %v3603_v50 = vshrl.u32 %v3521_v41, 16  ;;  %v1264_v62 = vld [vmem:[#allocation2] sm:$0xf] }
  0x6c   : > { %1168 = vst [vmem:[#allocation2 + $0x24] sm:$0xf] %v1167_v46  ;;  %4684 = vmatpush2.bf16.msra.mxu1 %v10945_v57  ;;  %v2515_v52 = vrot.slane %v2514_v24, 4  ;;  %v2519_v38 = vrot.slane %v2517_v61, 5  ;;  %v1416_v55 = vsel %vm11585_vm15, %v1411_v58, %v11678_v54  ;;  %v2504_v60 = vor.u32 %v2503_v45, %v2500_v44  ;;  %1296 = vst.msk [vmem:[#allocation3] sm:$0xf] %vm625_vm0, %v1264_v62 }
  0x6d   : > { %v11731_v33 = vpack.c.bf16 %v358_v51, %v358_v51  ;;  %v11734_v63 = vrot.slane %v3599_v49, 5  ;;  %v3605_v39 = vrot.slane %v3603_v50, 4  ;;  %v1437_v37 = vshll.u32 %v1335_v53, 16  ;;  %v1334_v7 = vld [vmem:[#allocation2 + $0x18] sm:$0xf]  ;;  %v360_v61 = vld [vmem:[%s11483_s27 + $0x40] sm:$0xff] }
  0x6e   : > { %1769 = vrot.lane.b32.xlu1 %v1426_v36, %s11318_s23  ;;  %v1441_v43 = vshrl.u32 %v1335_v53, 16  ;;  %v2520_v54 = vsel %vm11585_vm15, %v2515_v52, %v2519_v38  ;;  %v3093_v5 = vrot.slane %v3091_v48, 4  ;;  %v3094_v6 = vrot.slane %v2991_v56, 5  ;;  %v2989_v13 = vld [vmem:[#allocation2 + $0x18] sm:$0xe] }
  0x6f   : > { %3949 = vrot.lane.b32.xlu0 %v3578_v42, %s11323_s18  ;;  %v2505_v8 = vrot.slane %v2504_v60, 4  ;;  %v10578_v16 = vpack.c.bf16 %v359_v3, %v359_v3  ;;  %v881_v17 = vshrl.u32 %v11731_v33, 16  ;;  %v3606_v18 = vor.u32 %v3605_v39, %v11734_v63  ;;  %v1336_v19 = vld [vmem:[#allocation2 + $0x20] sm:$0x1]  ;;  %v705_v30 = vld [vmem:[#allocation2 + $0x38] sm:$0x1] }
  0x70   : > { %v11746_v20 = vrot.slane %v1437_v37, 5  ;;  %v1443_v21 = vrot.slane %v1441_v43, 4  ;;  %v1428_v26 = vshrl.u32 %v1334_v7, 16  ;;  %v3095_v28 = vsel %vm11511_vm6, %v3093_v5, %v3094_v6  ;;  %v649_v35 = vld [vmem:[#allocation2 + $0x30] sm:$0x1] }
  0x71   : > { %v3522_v10 = vld [vmem:[#allocation2 + $0x2c] sm:$0x1]  ;;  %v1431_v25 = vshll.u32 %v1334_v7, 16  ;;  %v2510_v23 = vsel %vm11585_vm15, %v2505_v8, %v11697_v22  ;;  %v10311_v31 = vrot.slane %v2989_v13, 9  ;;  %v3327_v57 = vld [vmem:[#allocation2 + $0x28] sm:$0xf]  ;;  %v11770_v37 = vpack.c.bf16 %v360_v61, %v360_v61 }
  0x72   : > { %2302 = vrot.lane.b32.xlu1 %v2235_v47, %s11319_s29  ;;  %v3609_v29 = vshll.u32 %v3522_v10, 16  ;;  %v1447_v36 = vshll.u32 %v1336_v19, 16  ;;  %v883_v58 = vrot.slane %v881_v17, 7  ;;  %v889_v24 = vshrl.u32 %v10578_v16, 16  ;;  %v11757_v44 = vld [vmem:[#allocation2 + $0x1c] sm:$0xf] }
  0x73   : > { %1767 = vrot.lane.b32.xlu0 %v1416_v55, %s11318_s23  ;;  %v3520_v11 = vld [vmem:[#allocation2 + $0x24] sm:$0xf]  ;;  %v3607_v41 = vrot.slane %v3606_v18, 4  ;;  %v1444_v42 = vor.u32 %v1443_v21, %v11746_v20  ;;  %v1430_v45 = vrot.slane %v1428_v26, 4  ;;  %v892_v46 = vshll.u32 %v10578_v16, 16  ;;  %v361_v22 = vld [vmem:[%s11483_s27 + $0x48] sm:$0xff] }
  0x74   : > { %v3590_v14 = vshrl.u32 %v3520_v11, 16  ;;  %v3593_v15 = vshll.u32 %v3520_v11, 16  ;;  %v3611_v47 = vrot.slane %v3609_v29, 5  ;;  %v1433_v49 = vrot.slane %v1431_v25, 5  ;;  %v2432_v50 = vld [vmem:[#allocation2 + $0x28] sm:$0xf] }
  0x75   : > { %v887_v51 = vrot.slane %v883_v58, 4  ;;  %v891_v52 = vrot.slane %v889_v24, 7  ;;  %v3092_v38 = vsel %vm11511_vm6, %v10311_v31, %v3091_v48  ;;  %v706_v55 = vsel %vm11517_vm8, 0, %v705_v30  ;;  %v1900_v60 = vld [vmem:[#allocation2 + $0x20] sm:$0x1] }
  0x76   : > { %2863 = vrot.lane.b32.xlu1 %v2520_v54, %s11322_s14  ;;  %v3592_v32 = vrot.slane %v3590_v14, 4  ;;  %v3595_v34 = vrot.slane %v3593_v15, 5  ;;  %v650_v56 = vsel %vm11525_vm10, 0, %v649_v35  ;;  %v2007_v62 = vrot.slane %v11757_v44, 5  ;;  %707 = vst [vmem:[#allocation2 + $0x38] sm:$0x1] %v706_v55 }
  0x77   : > { %2300 = vrot.lane.b32.xlu0 %v2234_v4, %s11319_s29  ;;  %v894_v39 = vor.u32 %v892_v46, %v891_v52  ;;  %651 = vst [vmem:[#allocation2 + $0x30] sm:$0x1] %v650_v56  ;;  %v10580_v43 = vpack.c.bf16 %v361_v22, %v361_v22  ;;  %v1445_v40 = vrot.slane %v1444_v42, 4  ;;  %v1449_v48 = vrot.slane %v1447_v36, 5  ;;  %v2433_v6 = vld [vmem:[#allocation2 + $0x2c] sm:$0x1] }
  0x78   : > { %v3596_v53 = vor.u32 %v3595_v34, %v3592_v32  ;;  %v2531_v3 = vshll.u32 %v2432_v50, 16  ;;  %v884_v54 = vshll.u32 %v11731_v33, 16  ;;  %v3612_v4 = vsel %vm11585_vm15, %v3607_v41, %v3611_v47  ;;  %v3326_v10 = vld [vmem:[#allocation2 + $0x24] sm:$0xf]  ;;  %v652_v18 = vld [vmem:[#allocation2 + $0x3c] sm:$0x1] }
  0x79   : > { %v1434_v5 = vor.u32 %v1433_v49, %v1430_v45  ;;  %v2535_v7 = vshrl.u32 %v2432_v50, 16  ;;  %v895_v8 = vsel %vm11542_vm13, %v887_v51, %v894_v39  ;;  %v2010_v13 = vrot.slane %v1900_v60, 5  ;;  %v2431_v33 = vld [vmem:[#allocation2 + $0x24] sm:$0xf]  ;;  %v1898_v21 = vld [vmem:[#allocation2 + $0x18] sm:$0xe] }
  0x7a   : > { %3200 = vrot.lane.b32.xlu1 %v3095_v28, %s11321_s17  ;;  %v3597_v11 = vrot.slane %v3596_v53, 4  ;;  %1176 = vst.msk [vmem:[#allocation2 + $0x34] sm:$0xf] %vm625_vm0, %v895_v8  ;;  %v2009_v14 = vrot.slane %v2007_v62, 4  ;;  %v896_v15 = vrot.slane %v891_v52, 4  ;;  %v886_v16 = vor.u32 %v884_v54, %v883_v58 }
  0x7b   : > { %2861 = vrot.lane.b32.xlu0 %v2510_v23, %s11322_s14  ;;  %v708_v17 = vld [vmem:[#allocation2 + $0x44] sm:$0x1]  ;;  %v1450_v19 = vsel %vm11585_vm15, %v1445_v40, %v1449_v48  ;;  %v11785_v26 = vrot.slane %v2531_v3, 5  ;;  %v2541_v28 = vshll.u32 %v2433_v6, 16  ;;  %v898_v29 = vshrl.u32 %v11770_v37, 16 }
  0x7c   : > { %v1435_v25 = vrot.slane %v1434_v5, 4  ;;  %v2537_v30 = vrot.slane %v2535_v7, 4  ;;  %v906_v23 = vshrl.u32 %v10580_v43, 16  ;;  %v909_v31 = vshll.u32 %v10580_v43, 16  ;;  %v1267_v42 = vld [vmem:[#allocation2 + $0x10] sm:$0xf] }
  0x7d   : > { %v3602_v32 = vsel %vm11585_vm15, %v3597_v11, %v11734_v63  ;;  %v2522_v34 = vshrl.u32 %v2431_v33, 16  ;;  %v2525_v35 = vshll.u32 %v2431_v33, 16  ;;  %v900_v61 = vrot.slane %v898_v29, 7  ;;  %1299 = vst.msk [vmem:[#allocation3 + $0x18] sm:$0xf] %vm625_vm0, %v1267_v42 }
  0x7e   : > { %3394 = vrot.lane.b32.xlu1 %v3327_v57, %s11320_s28  ;;  %v1177_v57 = vld [vmem:[#allocation2 + $0x38] sm:$0x1]  ;;  %v1173_v36 = vld [vmem:[#allocation2 + $0x30] sm:$0xf]  ;;  %v11796_v41 = vrot.slane %v906_v23, 7  ;;  %v709_v63 = vsel %vm11517_vm8, 0, %v708_v17  ;;  %v2011_v22 = vsel %vm11511_vm6, %v2009_v14, %v2010_v13  ;;  %v2538_v49 = vor.u32 %v2537_v30, %v11785_v26 }
  0x7f   : > { %3198 = vrot.lane.b32.xlu0 %v3092_v38, %s11321_s17  ;;  %v1178_v58 = vsel %vm11525_vm10, %v896_v15, %v1177_v57  ;;  %v1174_v24 = vsel %vm11571_vm14, %v886_v16, %v1173_v36  ;;  %v653_v45 = vsel %vm11525_vm10, 0, %v652_v18  ;;  %v1266_v46 = vld [vmem:[#allocation2 + $0xc] sm:$0xf]  ;;  %v10296_v47 = vrot.slane %v1898_v21, 9  ;;  %v11808_v50 = vld [vmem:[#allocation2 + $0x28] sm:$0xf] }
  0x80   : > { %1179 = vst [vmem:[#allocation2 + $0x38] sm:$0x1] %v1178_v58  ;;  %1175 = vst [vmem:[#allocation2 + $0x30] sm:$0xf] %v1174_v24  ;;  %v911_v51 = vor.u32 %v909_v31, %v11796_v41  ;;  %v1440_v52 = vsel %vm11585_vm15, %v1435_v25, %v11746_v20  ;;  %v2524_v38 = vrot.slane %v2522_v34, 4  ;;  %v2527_v53 = vrot.slane %v2525_v35, 5 }
  0x81   : > { %710 = vst [vmem:[#allocation2 + $0x44] sm:$0x1] %v709_v63  ;;  %654 = vst [vmem:[#allocation2 + $0x3c] sm:$0x1] %v653_v45  ;;  %v3524_v55 = vld [vmem:[#allocation2 + $0x34] sm:$0xf]  ;;  %v2008_v5 = vsel %vm11511_vm6, %v10296_v47, %v2007_v62 }
  0x82   : > { %3955 = vrot.lane.b32.xlu1 %v3612_v4, %s11323_s18  ;;  %1298 = vst.msk [vmem:[#allocation3 + $0x10] sm:$0xf] %vm625_vm0, %v1266_v46  ;;  %v904_v56 = vrot.slane %v900_v61, 4  ;;  %v2237_v60 = vld [vmem:[#allocation2 + $0x28] sm:$0xf]  ;;  %v2543_v39 = vrot.slane %v2541_v28, 5  ;;  %v2528_v6 = vor.u32 %v2527_v53, %v2524_v38 }
  0x83   : > { %3392 = vrot.lane.b32.xlu0 %v3326_v10, %s11320_s28  ;;  %v2994_v43 = vld [vmem:[#allocation2 + $0x2c] sm:$0x1]  ;;  %v3098_v40 = vrot.slane %v11808_v50, 5  ;;  %v1338_v48 = vld [vmem:[#allocation2 + $0x28] sm:$0xf]  ;;  %v2539_v3 = vrot.slane %v2538_v49, 4 }
  0x84   : > { %v3623_v54 = vshll.u32 %v3524_v55, 16  ;;  %v3627_v4 = vshrl.u32 %v3524_v55, 16  ;;  %v912_v20 = vsel %vm11542_vm13, %v904_v56, %v911_v51  ;;  %v1461_v7 = vshll.u32 %v1338_v48, 16  ;;  %v2236_v13 = vld [vmem:[#allocation2 + $0x24] sm:$0xf] }
  0x85   : > { %1183 = vst.msk [vmem:[#allocation2 + $0x40] sm:$0xf] %vm625_vm0, %v912_v20  ;;  %v1465_v8 = vshrl.u32 %v1338_v48, 16  ;;  %v901_v11 = vshll.u32 %v11770_v37, 16  ;;  %v3100_v14 = vrot.slane %v3098_v40, 4  ;;  %v3101_v33 = vrot.slane %v2994_v43, 5 }
  0x86   : > { %1773 = vrot.lane.b32.xlu1 %v1450_v19, %s11318_s23  ;;  %v2544_v44 = vsel %vm11585_vm15, %v2539_v3, %v2543_v39  ;;  %v11830_v15 = vrot.slane %v3623_v54, 5  ;;  %v3629_v62 = vrot.slane %v3627_v4, 4  ;;  %v1337_v16 = vld [vmem:[#allocation2 + $0x24] sm:$0xf]  ;;  %v913_v17 = vrot.slane %v11796_v41, 4 }
  0x87   : > { %3953 = vrot.lane.b32.xlu0 %v3602_v32, %s11323_s18  ;;  %v3523_v10 = vld [vmem:[#allocation2 + $0x30] sm:$0xf]  ;;  %v2529_v18 = vrot.slane %v2528_v6, 4  ;;  %v3525_v19 = vld [vmem:[#allocation2 + $0x38] sm:$0x1]  ;;  %v11833_v29 = vrot.slane %v1461_v7, 5  ;;  %v903_v30 = vor.u32 %v901_v11, %v900_v61  ;;  %v3102_v35 = vsel %vm11511_vm6, %v3100_v14, %v3101_v33 }
  0x88   : > { %v3614_v21 = vshrl.u32 %v3523_v10, 16  ;;  %v3617_v37 = vshll.u32 %v3523_v10, 16  ;;  %v2992_v28 = vld [vmem:[#allocation2 + $0x24] sm:$0xe]  ;;  %v1467_v25 = vrot.slane %v1465_v8, 4  ;;  %v1452_v23 = vshrl.u32 %v1337_v16, 16 }
  0x89   : > { %v1455_v31 = vshll.u32 %v1337_v16, 16  ;;  %v1184_v32 = vld [vmem:[#allocation2 + $0x44] sm:$0x1]  ;;  %v1180_v34 = vld [vmem:[#allocation2 + $0x3c] sm:$0xf]  ;;  %v3630_v57 = vor.u32 %v3629_v62, %v11830_v15  ;;  %v3633_v36 = vshll.u32 %v3525_v19, 16  ;;  %v2534_v61 = vsel %vm11585_vm15, %v2529_v18, %v11785_v26 }
  0x8a   : > { %2113 = vrot.lane.b32.xlu1 %v2011_v22, %s11317_s20  ;;  %v1339_v58 = vld [vmem:[#allocation2 + $0x2c] sm:$0x1]  ;;  %v1185_v24 = vsel %vm11525_vm10, %v913_v17, %v1184_v32  ;;  %v10312_v41 = vrot.slane %v2992_v28, 9  ;;  %v3616_v42 = vrot.slane %v3614_v21, 4  ;;  %v3619_v63 = vrot.slane %v3617_v37, 5  ;;  %v362_v20 = vld [vmem:[%s11483_s27 + $0x50] sm:$0xff] }
  0x8b   : > { %1771 = vrot.lane.b32.xlu0 %v1440_v52, %s11318_s23  ;;  %1186 = vst [vmem:[#allocation2 + $0x44] sm:$0x1] %v1185_v24  ;;  %v1181_v45 = vsel %vm11571_vm14, %v903_v30, %v1180_v34  ;;  %v1468_v46 = vor.u32 %v1467_v25, %v11833_v29  ;;  %v1471_v22 = vshll.u32 %v1339_v58, 16  ;;  %v11849_v47 = vld [vmem:[#allocation2 + $0x28] sm:$0xf]  ;;  %v1454_v49 = vrot.slane %v1452_v23, 4 }
  0x8c   : > { %v1457_v50 = vrot.slane %v1455_v31, 5  ;;  %1182 = vst [vmem:[#allocation2 + $0x3c] sm:$0xf] %v1181_v45  ;;  %v3329_v26 = vld [vmem:[#allocation2 + $0x34] sm:$0xf]  ;;  %v3631_v51 = vrot.slane %v3630_v57, 4  ;;  %v3099_v38 = vsel %vm11511_vm6, %v10312_v41, %v3098_v40  ;;  %v3620_v53 = vor.u32 %v3619_v63, %v3616_v42 }
  0x8d   : > { %v3635_v52 = vrot.slane %v3633_v36, 5  ;;  %v2435_v55 = vld [vmem:[#allocation2 + $0x34] sm:$0xf]  ;;  %v2014_v56 = vrot.slane %v11849_v47, 5  ;;  %v1473_v39 = vrot.slane %v1471_v22, 5  ;;  %v11864_v33 = vpack.c.bf16 %v362_v20, %v362_v20 }
  0x8e   : > { %2306 = vrot.lane.b32.xlu1 %v2237_v60, %s11319_s29  ;;  %v1469_v60 = vrot.slane %v1468_v46, 4  ;;  %v1903_v43 = vld [vmem:[#allocation2 + $0x2c] sm:$0x1]  ;;  %v1458_v48 = vor.u32 %v1457_v50, %v1454_v49  ;;  %v2555_v54 = vshll.u32 %v2435_v55, 16  ;;  %v2559_v4 = vshrl.u32 %v2435_v55, 16 }
  0x8f   : > { %2111 = vrot.lane.b32.xlu0 %v2008_v5, %s11317_s20  ;;  %v3636_v3 = vsel %vm11585_vm15, %v3631_v51, %v3635_v52  ;;  %v363_v5 = vld [vmem:[%s11483_s27 + $0x58] sm:$0xff]  ;;  %v3328_v40 = vld [vmem:[#allocation2 + $0x30] sm:$0xf]  ;;  %v3621_v6 = vrot.slane %v3620_v53, 4  ;;  %v2016_v8 = vrot.slane %v2014_v56, 4  ;;  %v2017_v10 = vrot.slane %v1903_v43, 5 }
  0x90   : > { %v2434_v7 = vld [vmem:[#allocation2 + $0x30] sm:$0xf]  ;;  %v1474_v11 = vsel %vm11585_vm15, %v1469_v60, %v1473_v39  ;;  %v1901_v14 = vld [vmem:[#allocation2 + $0x24] sm:$0xe]  ;;  %v11867_v62 = vrot.slane %v2555_v54, 5  ;;  %v2561_v16 = vrot.slane %v2559_v4, 4 }
  0x91   : > { %v2546_v17 = vshrl.u32 %v2434_v7, 16  ;;  %v2549_v18 = vshll.u32 %v2434_v7, 16  ;;  %v3626_v19 = vsel %vm11585_vm15, %v3621_v6, %v11830_v15  ;;  %v2436_v21 = vld [vmem:[#allocation2 + $0x38] sm:$0x1]  ;;  %v711_v37 = vld [vmem:[#allocation2 + $0x50] sm:$0x1]  ;;  %v2018_v28 = vsel %vm11511_vm6, %v2016_v8, %v2017_v10 }
  0x92   : > { %2867 = vrot.lane.b32.xlu1 %v2544_v44, %s11322_s14  ;;  %v10582_v44 = vpack.c.bf16 %v363_v5, %v363_v5  ;;  %v10297_v25 = vrot.slane %v1901_v14, 9  ;;  %v11874_v30 = vld [vmem:[#allocation2 + $0x34] sm:$0xf]  ;;  %v3527_v23 = vld [vmem:[#allocation2 + $0x40] sm:$0xf]  ;;  %v915_v32 = vshrl.u32 %v11864_v33, 16  ;;  %v2562_v57 = vor.u32 %v2561_v16, %v11867_v62 }
  0x93   : > { %2304 = vrot.lane.b32.xlu0 %v2236_v13, %s11319_s29  ;;  %v1459_v13 = vrot.slane %v1458_v48, 4  ;;  %v655_v15 = vld [vmem:[#allocation2 + $0x48] sm:$0x1]  ;;  %v2565_v36 = vshll.u32 %v2436_v21, 16  ;;  %v2548_v58 = vrot.slane %v2546_v17, 4  ;;  %v2551_v24 = vrot.slane %v2549_v18, 5 }
  0x94   : > { %v923_v34 = vshrl.u32 %v10582_v44, 16  ;;  %v2997_v41 = vld [vmem:[#allocation2 + $0x38] sm:$0x1]  ;;  %v3105_v42 = vrot.slane %v11874_v30, 5  ;;  %v3647_v63 = vshll.u32 %v3527_v23, 16  ;;  %v917_v45 = vrot.slane %v915_v32, 7 }
  0x95   : > { %v1464_v31 = vsel %vm11585_vm15, %v1459_v13, %v11833_v29  ;;  %v3651_v46 = vshrl.u32 %v3527_v23, 16  ;;  %v712_v22 = vsel %vm11517_vm8, 0, %v711_v37  ;;  %v2015_v47 = vsel %vm11511_vm6, %v10297_v25, %v2014_v56  ;;  %v2239_v51 = vld [vmem:[#allocation2 + $0x34] sm:$0xf]  ;;  %v2995_v56 = vld [vmem:[#allocation2 + $0x30] sm:$0xe] }
  0x96   : > { %3204 = vrot.lane.b32.xlu1 %v3102_v35, %s11321_s17  ;;  %v926_v35 = vshll.u32 %v10582_v44, 16  ;;  %v925_v29 = vrot.slane %v923_v34, 7  ;;  %v921_v50 = vrot.slane %v917_v45, 4  ;;  %713 = vst [vmem:[#allocation2 + $0x50] sm:$0x1] %v712_v22  ;;  %v2563_v52 = vrot.slane %v2562_v57, 4 }
  0x97   : > { %2865 = vrot.lane.b32.xlu0 %v2534_v61, %s11322_s14  ;;  %v1341_v61 = vld [vmem:[#allocation2 + $0x34] sm:$0xf]  ;;  %v2552_v53 = vor.u32 %v2551_v24, %v2548_v58  ;;  %v656_v55 = vsel %vm11525_vm10, 0, %v655_v15  ;;  %v3107_v39 = vrot.slane %v3105_v42, 4  ;;  %v3108_v43 = vrot.slane %v2997_v41, 5  ;;  %v365_v54 = vld [vmem:[%s11483_s27 + $0x68] sm:$0xff] }
  0x98   : > { %v1485_v49 = vshll.u32 %v1341_v61, 16  ;;  %v364_v60 = vld [vmem:[%s11483_s27 + $0x60] sm:$0xff]  ;;  %657 = vst [vmem:[#allocation2 + $0x48] sm:$0x1] %v656_v55  ;;  %v11899_v4 = vrot.slane %v3647_v63, 5  ;;  %v3653_v20 = vrot.slane %v3651_v46, 4  ;;  %v11910_v17 = vpack.c.bf16 %v365_v54, %v365_v54 }
  0x99   : > { %v1489_v5 = vshrl.u32 %v1341_v61, 16  ;;  %v930_v6 = vrot.slane %v925_v29, 4  ;;  %v2238_v7 = vld [vmem:[#allocation2 + $0x30] sm:$0xf]  ;;  %v4078_v8 = vld [vmem:[#allocation2 + $0x18] sm:$0xe] }
  0x9a   : > { %3398 = vrot.lane.b32.xlu1 %v3329_v26, %s11320_s28  ;;  %v928_v26 = vor.u32 %v926_v35, %v925_v29  ;;  %v4079_v10 = vld [vmem:[#allocation2 + $0x1c] sm:$0xf]  ;;  %v11908_v44 = vrot.slane %v1485_v49, 5  ;;  %v1340_v16 = vld [vmem:[#allocation2 + $0x30] sm:$0xf]  ;;  %v10326_v35 = vrot.slane %v4078_v8, 9  ;;  %v3654_v57 = vor.u32 %v3653_v20, %v11899_v4 }
  0x9b   : > { %3202 = vrot.lane.b32.xlu0 %v3099_v38, %s11321_s17  ;;  %v2567_v38 = vrot.slane %v2565_v36, 5  ;;  %v1269_v13 = vld [vmem:[#allocation2 + $0x1c] sm:$0xf]  ;;  %v1268_v18 = vld [vmem:[#allocation2 + $0x18] sm:$0xf]  ;;  %v1491_v32 = vrot.slane %v1489_v5, 4 }
  0x9c   : > { %v929_v48 = vsel %vm11542_vm13, %v921_v50, %v928_v26  ;;  %1301 = vst.msk [vmem:[#allocation3 + $0x28] sm:$0xf] %vm625_vm0, %v1269_v13  ;;  %v3528_v21 = vld [vmem:[#allocation2 + $0x44] sm:$0x1]  ;;  %v4080_v23 = vld [vmem:[#allocation2 + $0x20] sm:$0x1] }
  0x9d   : > { %1190 = vst.msk [vmem:[#allocation2 + $0x4c] sm:$0xf] %vm625_vm0, %v929_v48  ;;  %v2568_v14 = vsel %vm11585_vm15, %v2563_v52, %v2567_v38  ;;  %1300 = vst.msk [vmem:[#allocation3 + $0x20] sm:$0xf] %vm625_vm0, %v1268_v18  ;;  %v1191_v34 = vld [vmem:[#allocation2 + $0x50] sm:$0x1] }
  0x9e   : > { %3959 = vrot.lane.b32.xlu1 %v3636_v3, %s11323_s18  ;;  %v918_v3 = vshll.u32 %v11864_v33, 16  ;;  %v2553_v33 = vrot.slane %v2552_v53, 4  ;;  %v4176_v15 = vrot.slane %v4079_v10, 5  ;;  %v1342_v36 = vld [vmem:[#allocation2 + $0x38] sm:$0x1]  ;;  %v1476_v58 = vshrl.u32 %v1340_v16, 16 }
  0x9f   : > { %3396 = vrot.lane.b32.xlu0 %v3328_v40, %s11320_s28  ;;  %v3526_v40 = vld [vmem:[#allocation2 + $0x3c] sm:$0xf]  ;;  %v1479_v24 = vshll.u32 %v1340_v16, 16  ;;  %v1192_v61 = vsel %vm11525_vm10, %v930_v6, %v1191_v34  ;;  %v3657_v41 = vshll.u32 %v3528_v21, 16  ;;  %v1187_v63 = vld [vmem:[#allocation2 + $0x48] sm:$0xf] }
  0xa0   : > { %v3638_v37 = vshrl.u32 %v3526_v40, 16  ;;  %v920_v25 = vor.u32 %v918_v3, %v917_v45  ;;  %1193 = vst [vmem:[#allocation2 + $0x50] sm:$0x1] %v1192_v61  ;;  %v4177_v45 = vsel %vm11511_vm6, %v10326_v35, %v4176_v15  ;;  %v4178_v29 = vrot.slane %v4176_v15, 4  ;;  %v11929_v26 = vld [vmem:[#allocation2 + $0x34] sm:$0xf] }
  0xa1   : > { %v4179_v46 = vrot.slane %v4080_v23, 5  ;;  %v2558_v22 = vsel %vm11585_vm15, %v2553_v33, %v11867_v62  ;;  %4318 = vst.msk [vmem:[#allocation3 + $0x4] sm:$0xf] %vm625_vm0, %v4177_v45  ;;  %v1495_v52 = vshll.u32 %v1342_v36, 16  ;;  %v940_v53 = vshrl.u32 %v11910_v17, 16 }
  0xa2   : > { %1777 = vrot.lane.b32.xlu1 %v1474_v11, %s11318_s23  ;;  %v11903_v11 = vpack.c.bf16 %v364_v60, %v364_v60  ;;  %v1188_v50 = vsel %vm11571_vm14, %v920_v25, %v1187_v63  ;;  %v714_v55 = vld [vmem:[#allocation2 + $0x5c] sm:$0x1]  ;;  %v3331_v60 = vld [vmem:[#allocation2 + $0x40] sm:$0xf]  ;;  %v1478_v48 = vrot.slane %v1476_v58, 4  ;;  %v1481_v3 = vrot.slane %v1479_v24, 5 }
  0xa3   : > { %3957 = vrot.lane.b32.xlu0 %v3626_v19, %s11323_s18  ;;  %v3109_v19 = vsel %vm11511_vm6, %v3107_v39, %v3108_v43  ;;  %1189 = vst [vmem:[#allocation2 + $0x48] sm:$0xf] %v1188_v50  ;;  %v3655_v39 = vrot.slane %v3654_v57, 4  ;;  %v3659_v43 = vrot.slane %v3657_v41, 5  ;;  %v2438_v54 = vld [vmem:[#allocation2 + $0x40] sm:$0xf] }
  0xa4   : > { %v932_v38 = vshrl.u32 %v11903_v11, 16  ;;  %v942_v20 = vrot.slane %v940_v53, 7  ;;  %v943_v5 = vshll.u32 %v11910_v17, 16  ;;  %v1497_v6 = vrot.slane %v1495_v52, 5  ;;  %v2437_v10 = vld [vmem:[#allocation2 + $0x3c] sm:$0xf] }
  0xa5   : > { %v2021_v8 = vrot.slane %v11929_v26, 5  ;;  %v3660_v13 = vsel %vm11585_vm15, %v3655_v39, %v3659_v43  ;;  %v2579_v33 = vshll.u32 %v2438_v54, 16  ;;  %v2583_v16 = vshrl.u32 %v2438_v54, 16  ;;  %v658_v17 = vld [vmem:[#allocation2 + $0x54] sm:$0x1]  ;;  %v366_v54 = vld [vmem:[%s11483_s27 + $0x70] sm:$0xff] }
  0xa6   : > { %2117 = vrot.lane.b32.xlu1 %v2018_v28, %s11317_s20  ;;  %v3641_v28 = vshll.u32 %v3526_v40, 16  ;;  %v715_v40 = vsel %vm11517_vm8, 0, %v714_v55  ;;  %v3330_v18 = vld [vmem:[#allocation2 + $0x3c] sm:$0xf]  ;;  %v1482_v21 = vor.u32 %v1481_v3, %v1478_v48  ;;  %v2570_v23 = vshrl.u32 %v2437_v10, 16 }
  0xa7   : > { %1775 = vrot.lane.b32.xlu0 %v1464_v31, %s11318_s23  ;;  %v10313_v31 = vrot.slane %v2995_v56, 9  ;;  %v1492_v56 = vor.u32 %v1491_v32, %v11908_v44  ;;  %716 = vst [vmem:[#allocation2 + $0x5c] sm:$0x1] %v715_v40  ;;  %v947_v34 = vrot.slane %v942_v20, 4  ;;  %v659_v35 = vsel %vm11525_vm10, 0, %v658_v17 }
  0xa8   : > { %v3643_v49 = vrot.slane %v3641_v28, 5  ;;  %v945_v28 = vor.u32 %v943_v5, %v942_v20  ;;  %v2023_v36 = vrot.slane %v2021_v8, 4  ;;  %v11963_v58 = vrot.slane %v2579_v33, 5  ;;  %660 = vst [vmem:[#allocation2 + $0x54] sm:$0x1] %v659_v35  ;;  %v367_v33 = vld [vmem:[%s11483_s27 + $0x78] sm:$0xff] }
  0xa9   : > { %v3106_v62 = vsel %vm11511_vm6, %v10313_v31, %v3105_v42  ;;  %v934_v42 = vrot.slane %v932_v38, 7  ;;  %v2573_v31 = vshll.u32 %v2437_v10, 16  ;;  %v2585_v24 = vrot.slane %v2583_v16, 4  ;;  %v2439_v63 = vld [vmem:[#allocation2 + $0x44] sm:$0x1] }
  0xaa   : > { %2310 = vrot.lane.b32.xlu1 %v2239_v51, %s11319_s29  ;;  %v4180_v51 = vsel %vm11511_vm6, %v4178_v29, %v4179_v46  ;;  %v1483_v41 = vrot.slane %v1482_v21, 4  ;;  %v935_v45 = vshll.u32 %v11903_v11, 16  ;;  %v1904_v29 = vld [vmem:[#allocation2 + $0x30] sm:$0xe]  ;;  %v11970_v46 = vld [vmem:[#allocation2 + $0x40] sm:$0xf]  ;;  %v12008_v35 = vpack.c.bf16 %v366_v54, %v366_v54 }
  0xab   : > { %2115 = vrot.lane.b32.xlu0 %v2015_v47, %s11317_s20  ;;  %v3640_v47 = vrot.slane %v3638_v37, 4  ;;  %4319 = vst.msk [vmem:[#allocation3 + $0xc] sm:$0xf] %vm625_vm0, %v4180_v51  ;;  %v938_v37 = vrot.slane %v934_v42, 4  ;;  %v1271_v51 = vld [vmem:[#allocation2 + $0x28] sm:$0xf]  ;;  %v2586_v11 = vor.u32 %v2585_v24, %v11963_v58 }
  0xac   : > { %v2589_v52 = vshll.u32 %v2439_v63, 16  ;;  %1303 = vst.msk [vmem:[#allocation3 + $0x38] sm:$0xf] %vm625_vm0, %v1271_v51  ;;  %v1488_v38 = vsel %vm11585_vm15, %v1483_v41, %v11908_v44  ;;  %v10298_v53 = vrot.slane %v1904_v29, 9  ;;  %v3530_v55 = vld [vmem:[#allocation2 + $0x4c] sm:$0xf]  ;;  %v12010_v41 = vpack.c.bf16 %v367_v33, %v367_v33 }
  0xad   : > { %v3644_v30 = vor.u32 %v3643_v49, %v3640_v47  ;;  %v946_v32 = vsel %vm11542_vm13, %v938_v37, %v945_v28  ;;  %v2572_v47 = vrot.slane %v2570_v23, 4  ;;  %v2575_v49 = vrot.slane %v2573_v31, 5  ;;  %v2241_v43 = vld [vmem:[#allocation2 + $0x40] sm:$0xf]  ;;  %v3000_v48 = vld [vmem:[#allocation2 + $0x44] sm:$0x1] }
  0xae   : > { %2871 = vrot.lane.b32.xlu1 %v2568_v14, %s11322_s14  ;;  %v1493_v14 = vrot.slane %v1492_v56, 4  ;;  %1197 = vst.msk [vmem:[#allocation2 + $0x58] sm:$0xf] %vm625_vm0, %v946_v32  ;;  %vm1859_vm1 = vcmask 257152   ;;  %v3112_v56 = vrot.slane %v11970_v46, 5  ;;  %vm2199_vm3 = vcmask 388352  }
  0xaf   : > { %2308 = vrot.lane.b32.xlu0 %v2238_v7, %s11319_s29  ;;  %v1906_v7 = vld [vmem:[#allocation2 + $0x38] sm:$0x1]  ;;  %vm2392_vm4 = vcmask 519552   ;;  %v1344_v3 = vld [vmem:[#allocation2 + $0x40] sm:$0xf]  ;;  %v2587_v20 = vrot.slane %v2586_v11, 4 }
  0xb0   : > { %v2024_v25 = vrot.slane %v1906_v7, 5  ;;  %v1498_v15 = vsel %vm11585_vm15, %v1493_v14, %v1497_v6  ;;  %v2591_v5 = vrot.slane %v2589_v52, 5  ;;  %v3675_v40 = vshrl.u32 %v3530_v55, 16  ;;  %v1194_v6 = vld [vmem:[#allocation2 + $0x54] sm:$0xf] }
  0xb1   : > { %v2022_v7 = vsel %vm11511_vm6, %v10298_v53, %v2021_v8  ;;  %v11993_v10 = vld [vmem:[#allocation2 + $0x3c] sm:$0xe]  ;;  %v3114_v17 = vrot.slane %v3112_v56, 4  ;;  %v4081_v26 = vld [vmem:[#allocation2 + $0x24] sm:$0xe]  ;;  %v1509_v21 = vshll.u32 %v1344_v3, 16 }
  0xb2   : > { %3208 = vrot.lane.b32.xlu1 %v3109_v19, %s11321_s17  ;;  %v3645_v19 = vrot.slane %v3644_v30, 4  ;;  %v2576_v30 = vor.u32 %v2575_v49, %v2572_v47  ;;  %v1513_v37 = vshrl.u32 %v1344_v3, 16  ;;  %v4082_v28 = vld [vmem:[#allocation2 + $0x28] sm:$0xf]  ;;  %v2240_v23 = vld [vmem:[#allocation2 + $0x3c] sm:$0xf] }
  0xb3   : > { %2869 = vrot.lane.b32.xlu0 %v2558_v22, %s11322_s14  ;;  %v1198_v22 = vld [vmem:[#allocation2 + $0x5c] sm:$0x1]  ;;  %v3677_v32 = vrot.slane %v3675_v40, 4  ;;  %v10314_v29 = vrot.slane %v11993_v10, 9  ;;  %v4183_v49 = vrot.slane %v4082_v28, 5  ;;  %vm2953_vm9 = vcmask 650752  }
  0xb4   : > { %v3650_v61 = vsel %vm11585_vm15, %v3645_v19, %v11899_v4  ;;  %v1199_v50 = vsel %vm11525_vm10, %v947_v34, %v1198_v22  ;;  %v2025_v4 = vsel %vm11511_vm6, %v2023_v36, %v2024_v25  ;;  %v3529_v19 = vld [vmem:[#allocation2 + $0x48] sm:$0xf]  ;;  %v2577_v8 = vrot.slane %v2576_v30, 4  ;;  %v4083_v34 = vld [vmem:[#allocation2 + $0x2c] sm:$0x1] }
  0xb5   : > { %1200 = vst [vmem:[#allocation2 + $0x5c] sm:$0x1] %v1199_v50  ;;  %v2592_v25 = vsel %vm11585_vm15, %v2587_v20, %v2591_v5  ;;  %v3662_v36 = vshrl.u32 %v3529_v19, 16  ;;  %v3665_v24 = vshll.u32 %v3529_v19, 16  ;;  %v1343_v47 = vld [vmem:[#allocation2 + $0x3c] sm:$0xf] }
  0xb6   : > { %3402 = vrot.lane.b32.xlu1 %v3331_v60, %s11320_s28  ;;  %v937_v60 = vor.u32 %v935_v45, %v934_v42  ;;  %v3671_v42 = vshll.u32 %v3530_v55, 16  ;;  %v2582_v51 = vsel %vm11585_vm15, %v2577_v8, %v11963_v58  ;;  %v12025_v11 = vld [vmem:[#allocation2 + $0x40] sm:$0xf]  ;;  %v4186_v52 = vrot.slane %v4083_v34, 5  ;;  %v12038_v20 = vld [vmem:[#allocation2 + $0x44] sm:$0x1] }
  0xb7   : > { %3206 = vrot.lane.b32.xlu0 %v3106_v62, %s11321_s17  ;;  %v11959_v57 = vpop.permute.xlu1 %2103  ;;  %v1270_v62 = vld [vmem:[#allocation2 + $0x24] sm:$0xf]  ;;  %v3667_v30 = vrot.slane %v3665_v24, 5  ;;  %v1500_v58 = vshrl.u32 %v1343_v47, 16  ;;  %v1503_v3 = vshll.u32 %v1343_v47, 16  ;;  %v2028_v5 = vrot.slane %v12025_v11, 5 }
  0xb8   : > { %1302 = vst.msk [vmem:[#allocation3 + $0x30] sm:$0xf] %vm625_vm0, %v1270_v62  ;;  %v1195_v14 = vsel %vm11571_vm14, %v937_v60, %v1194_v6  ;;  %v12006_v31 = vrot.slane %v3671_v42, 5  ;;  %v12023_v62 = vrot.slane %v1509_v21, 5  ;;  %v4185_v60 = vrot.slane %v4183_v49, 4  ;;  %v368_v24 = vld [vmem:[%s11483_s27 + $0x80] sm:$0xff] }
  0xb9   : > { %1196 = vst [vmem:[#allocation2 + $0x54] sm:$0xf] %v1195_v14  ;;  %v3333_v40 = vld [vmem:[#allocation2 + $0x4c] sm:$0xf]  ;;  %v3113_v6 = vsel %vm11511_vm6, %v10314_v29, %v3112_v56  ;;  %vm17144_vm11 = vcmask 781952   ;;  %v957_v46 = vshrl.u32 %v12010_v41, 16 }
  0xba   : > { %3963 = vrot.lane.b32.xlu1 %v3660_v13, %s11323_s18  ;;  %v1345_v13 = vld [vmem:[#allocation2 + $0x44] sm:$0x1]  ;;  %v4187_v42 = vsel %vm11511_vm6, %v4185_v60, %v4186_v52  ;;  %v12049_v10 = vld [vmem:[#allocation2 + $0x4c] sm:$0xf]  ;;  %vm17142_vm12 = vcmask 913152   ;;  %v1502_v19 = vrot.slane %v1500_v58, 4 }
  0xbb   : > { %3400 = vrot.lane.b32.xlu0 %v3330_v18, %s11320_s28  ;;  %v3115_v18 = vrot.slane %v3000_v48, 5  ;;  %v1519_v22 = vshll.u32 %v1345_v13, 16  ;;  %v3664_v48 = vrot.slane %v3662_v36, 4  ;;  %4321 = vst.msk [vmem:[#allocation3 + $0x1c] sm:$0xf] %vm625_vm0, %v4187_v42  ;;  %v960_v8 = vshll.u32 %v12010_v41, 16 }
  0xbc   : > { %v717_v13 = vld [vmem:[#allocation2 + $0x68] sm:$0x1]  ;;  %vm17143_vm2 = vcmask 1044352   ;;  %v2603_v34 = vshll.u32 %v12049_v10, 16  ;;  %v2030_v52 = vrot.slane %v2028_v5, 4  ;;  %vm415_vm5 = vcmask 130048  }
  0xbd   : > { %v3116_v45 = vsel %vm11511_vm6, %v3114_v17, %v3115_v18  ;;  %v661_v17 = vld [vmem:[#allocation2 + $0x60] sm:$0x1]  ;;  %v3668_v56 = vor.u32 %v3667_v30, %v3664_v48  ;;  %v2440_v29 = vld [vmem:[#allocation2 + $0x48] sm:$0xf]  ;;  %v12092_v48 = vpack.c.bf16 %v368_v24, %v368_v24  ;;  %v1274_v30 = vld [vmem:[#allocation2 + $0x3c] sm:$0xf] }
  0xbe   : > { %1781 = vrot.lane.b32.xlu1 %v1498_v15, %s11318_s23  ;;  %v3531_v15 = vld [vmem:[#allocation2 + $0x50] sm:$0x1]  ;;  %v662_v36 = vsel %vm11525_vm10, 0, %v661_v17  ;;  %1306 = vst.msk [vmem:[#allocation3 + $0x50] sm:$0xf] %vm625_vm0, %v1274_v30 }
  0xbf   : > { %3961 = vrot.lane.b32.xlu0 %v3650_v61, %s11323_s18  ;;  %v10327_v61 = vrot.slane %v4081_v26, 9  ;;  %v3681_v53 = vshll.u32 %v3531_v15, 16  ;;  %v1505_v26 = vrot.slane %v1503_v3, 5  ;;  %v2607_v15 = vshrl.u32 %v12049_v10, 16  ;;  %663 = vst [vmem:[#allocation2 + $0x60] sm:$0x1] %v662_v36 }
  0xc0   : > { %v2594_v3 = vshrl.u32 %v2440_v29, 16  ;;  %v966_v36 = vshrl.u32 %v12092_v48, 16 }
  0xc1   : > { %v4184_v55 = vsel %vm11511_vm6, %v10327_v61, %v4183_v49  ;;  %v3683_v33 = vrot.slane %v3681_v53, 5  ;;  %v369_v61 = vld [vmem:[%s11483_s27 + $0x88] sm:$0xff]  ;;  %v952_v49 = vshll.u32 %v12008_v35, 16  ;;  %v12086_v53 = vld [vmem:[#allocation2 + $0x50] sm:$0x1]  ;;  %v2609_v10 = vrot.slane %v2607_v15, 4 }
  0xc2   : > { %v2106_v39 = vpop.permute.xlu1 %2105  ;;  %2121 = vrot.lane.b32.xlu1 %v2025_v4, %s11317_s20  ;;  %v1515_v4 = vrot.slane %v1513_v37, 4  ;;  %4320 = vst.msk [vmem:[#allocation3 + $0x14] sm:$0xf] %vm625_vm0, %v4184_v55  ;;  %v2031_v37 = vrot.slane %v12038_v20, 5  ;;  %v1275_v55 = vld [vmem:[#allocation2 + $0x40] sm:$0xf] }
  0xc3   : > { %1779 = vrot.lane.b32.xlu0 %v1488_v38, %s11318_s23  ;;  %v3678_v38 = vor.u32 %v3677_v32, %v12006_v31  ;;  %1307 = vst.msk [vmem:[#allocation3 + $0x58] sm:$0xf] %vm625_vm0, %v1275_v55  ;;  %v2597_v20 = vshll.u32 %v2440_v29, 16 }
  0xc5   : > { %v1766_v44 = vpop.permute.xlu0 %1765  ;;  %v3679_v14 = vrot.slane %v3678_v38, 4  ;;  %v1506_v38 = vor.u32 %v1505_v26, %v1502_v19  ;;  %v2032_v19 = vsel %vm11511_vm6, %v2030_v52, %v2031_v37 }
  0xc6   : > { %1861 = vst.msk [vmem:[#allocation3 + $0x8] sm:$0xf] %vm1859_vm1, %v1766_v44  ;;  %v2299_v16 = vpop.permute.xlu1 %2298  ;;  %2314 = vrot.lane.b32.xlu1 %v2241_v43, %s11319_s29  ;;  %v1272_v43 = vld [vmem:[#allocation2 + $0x30] sm:$0xf]  ;;  %v12036_v44 = vrot.slane %v1519_v22, 5 }
  0xc7   : > { %2201 = vst.msk [vmem:[#allocation3 + $0x8] sm:$0xf] %vm2199_vm3, %v2106_v39  ;;  %2119 = vrot.lane.b32.xlu0 %v2022_v7, %s11317_s20  ;;  %v1273_v39 = vld [vmem:[#allocation2 + $0x34] sm:$0xf]  ;;  %v1516_v7 = vor.u32 %v1515_v4, %v12023_v62  ;;  %v3684_v41 = vsel %vm11585_vm15, %v3679_v14, %v3683_v33  ;;  %v3669_v4 = vrot.slane %v3668_v56, 4 }
  0xc8   : > { %2394 = vst.msk [vmem:[#allocation3 + $0x8] sm:$0xf] %vm2392_vm4, %v2299_v16  ;;  %v949_v16 = vshrl.u32 %v12008_v35, 16  ;;  %v4084_v35 = vld [vmem:[#allocation2 + $0x30] sm:$0xe] }
  0xc9   : > { %v12012_v63 = vpop.permute.xlu0 %2296  ;;  %1305 = vst.msk [vmem:[#allocation3 + $0x48] sm:$0xf] %vm625_vm0, %v1273_v39  ;;  %1304 = vst.msk [vmem:[#allocation3 + $0x40] sm:$0xf] %vm625_vm0, %v1272_v43  ;;  %v1517_v32 = vrot.slane %v1516_v7, 4  ;;  %v12106_v7 = vrot.slane %v2603_v34, 5  ;;  %v3674_v33 = vsel %vm11585_vm15, %v3669_v4, %v12006_v31 }
  0xca   : > { %2875 = vrot.lane.b32.xlu1 %v2592_v25, %s11322_s14  ;;  %v12018_v50 = vpop.permute.xlu1 %3390  ;;  %v951_v28 = vrot.slane %v949_v16, 7  ;;  %v12059_v25 = vrot.slane %v957_v46, 7  ;;  %v4085_v43 = vld [vmem:[#allocation2 + $0x34] sm:$0xf]  ;;  %v1507_v16 = vrot.slane %v1506_v38, 4  ;;  %v10328_v46 = vrot.slane %v4084_v35, 9 }
  0xcb   : > { %2312 = vrot.lane.b32.xlu0 %v2240_v23, %s11319_s29  ;;  %v718_v23 = vsel %vm11517_vm8, 0, %v717_v13  ;;  %v4190_v17 = vrot.slane %v4085_v43, 5  ;;  %v12120_v31 = vld [vmem:[#allocation2 + $0x4c] sm:$0xf]  ;;  %v1201_v37 = vld [vmem:[#allocation2 + $0x60] sm:$0xf] }
  0xcc   : > { %719 = vst [vmem:[#allocation2 + $0x68] sm:$0x1] %v718_v23  ;;  %v955_v22 = vrot.slane %v951_v28, 4  ;;  %v962_v47 = vor.u32 %v960_v8, %v12059_v25  ;;  %v964_v42 = vrot.slane %v12059_v25, 4  ;;  %v954_v13 = vor.u32 %v952_v49, %v951_v28  ;;  %v664_v38 = vld [vmem:[#allocation2 + $0x6c] sm:$0x1] }
  0xcd   : > { %v12034_v54 = vpop.permute.xlu0 %3388  ;;  %v12122_v28 = vrot.slane %v2594_v3, 4  ;;  %v12124_v25 = vrot.slane %v2597_v20, 5  ;;  %v4192_v15 = vrot.slane %v4190_v17, 4  ;;  %v3119_v49 = vrot.slane %v12120_v31, 5  ;;  %v1347_v43 = vld [vmem:[#allocation2 + $0x4c] sm:$0xf] }
  0xce   : > { %3212 = vrot.lane.b32.xlu1 %v3116_v45, %s11321_s17  ;;  %v12076_v45 = vld [vmem:[#allocation2 + $0x3c] sm:$0xe]  ;;  %v963_v39 = vsel %vm11542_vm13, %v955_v22, %v962_v47  ;;  %v1202_v34 = vsel %vm11571_vm14, %v954_v13, %v1201_v37  ;;  %v2243_v47 = vld [vmem:[#allocation2 + $0x4c] sm:$0xf]  ;;  %v12148_v4 = vrot.slane %v966_v36, 7  ;;  %v665_v11 = vsel %vm11525_vm10, 0, %v664_v38 }
  0xcf   : > { %2873 = vrot.lane.b32.xlu0 %v2582_v51, %s11322_s14  ;;  %v10299_v58 = vrot.slane %v12076_v45, 9  ;;  %1204 = vst.msk [vmem:[#allocation2 + $0x64] sm:$0xf] %vm625_vm0, %v963_v39  ;;  %1203 = vst [vmem:[#allocation2 + $0x60] sm:$0xf] %v1202_v34 }
  0xd0   : > { %v12055_v18 = vpop.permute.xlu1 %3196  ;;  %v972_v3 = vrot.slane %v12148_v4, 4  ;;  %v12177_v45 = vld [vmem:[#allocation2 + $0x48] sm:$0xe]  ;;  %666 = vst [vmem:[#allocation2 + $0x6c] sm:$0x1] %v665_v11 }
  0xd1   : > { %v1764_v21 = vpop.permute.xlu0 %1763 }
  0xd2   : > { %3406 = vrot.lane.b32.xlu1 %v3333_v40, %s11320_s28  ;;  %1860 = vst.msk [vmem:[#allocation3] sm:$0xf] %vm1859_vm1, %v1764_v21  ;;  %v4086_v40 = vld [vmem:[#allocation2 + $0x38] sm:$0x1]  ;;  %v720_v21 = vld [vmem:[#allocation2 + $0x74] sm:$0x1] }
  0xd3   : > { %2200 = vst.msk [vmem:[#allocation3] sm:$0xf] %vm2199_vm3, %v11959_v57  ;;  %3210 = vrot.lane.b32.xlu0 %v3113_v6, %s11321_s17  ;;  %v3332_v57 = vld [vmem:[#allocation2 + $0x48] sm:$0xf]  ;;  %v1522_v6 = vsel %vm11585_vm15, %v1517_v32, %v12036_v44  ;;  %v2613_v44 = vshll.u32 %v12086_v53, 16  ;;  %v4193_v8 = vrot.slane %v4086_v40, 5  ;;  %v4191_v32 = vsel %vm11511_vm6, %v10328_v46, %v4190_v17 }
  0xd4   : > { %2393 = vst.msk [vmem:[#allocation3] sm:$0xf] %vm2392_vm4, %v12012_v63  ;;  %v12082_v51 = vpop.permute.xlu1 %2109  ;;  %v12094_v63 = vpack.c.bf16 %v369_v61, %v369_v61  ;;  %v1205_v26 = vld [vmem:[#allocation2 + $0x68] sm:$0x1]  ;;  %v1512_v61 = vsel %vm11585_vm15, %v1507_v16, %v12023_v62  ;;  %v721_v29 = vsel %vm11517_vm8, 0, %v720_v21  ;;  %v969_v46 = vshll.u32 %v12092_v48, 16 }
  0xd5   : > { %v12088_v60 = vpop.permute.xlu0 %3194  ;;  %v1206_v23 = vsel %vm11525_vm10, %v964_v42, %v1205_v26  ;;  %4322 = vst.msk [vmem:[#allocation3 + $0x24] sm:$0xf] %vm625_vm0, %v4191_v32  ;;  %722 = vst [vmem:[#allocation2 + $0x74] sm:$0x1] %v721_v29  ;;  %v3003_v62 = vld [vmem:[#allocation2 + $0x50] sm:$0x1] }
  0xd6   : > { %3967 = vrot.lane.b32.xlu1 %v3684_v41, %s11323_s18  ;;  %1207 = vst [vmem:[#allocation2 + $0x68] sm:$0x1] %v1206_v23  ;;  %v3533_v41 = vld [vmem:[#allocation2 + $0x58] sm:$0xf]  ;;  %v977_v52 = vshll.u32 %v12094_v63, 16  ;;  %v2615_v55 = vrot.slane %v2613_v44, 5 }
  0xd7   : > { %3404 = vrot.lane.b32.xlu0 %v3332_v57, %s11320_s28  ;;  %v4194_v57 = vsel %vm11511_vm6, %v4192_v15, %v4193_v8  ;;  %v3695_v39 = vshll.u32 %v3533_v41, 16  ;;  %v3699_v35 = vshrl.u32 %v3533_v41, 16  ;;  %v3122_v40 = vrot.slane %v3003_v62, 5  ;;  %v3534_v44 = vld [vmem:[#allocation2 + $0x5c] sm:$0x1] }
  0xd8   : > { %v2860_v14 = vpop.permute.xlu1 %2859  ;;  %4323 = vst.msk [vmem:[#allocation3 + $0x2c] sm:$0xf] %vm625_vm0, %v4194_v57  ;;  %v10315_v48 = vrot.slane %v12177_v45, 9  ;;  %v3705_v34 = vshll.u32 %v3534_v44, 16  ;;  %v1348_v15 = vld [vmem:[#allocation2 + $0x50] sm:$0x1] }
  0xd9   : > { %2955 = vst.msk [vmem:[#allocation3 + $0x8] sm:$0xf] %vm2953_vm9, %v2860_v14  ;;  %v12112_v56 = vpop.permute.xlu0 %2107  ;;  %v3701_v16 = vrot.slane %v3699_v35, 4  ;;  %v10948_v62 = vld [vmem:[#allocation3 + $0x4] ss:$8 sps:$4 sm:$0xff]  }
  0xda   : > { %3292 = vst.msk [vmem:[#allocation3 + $0x8] sm:$0xf] %vm17144_vm11, %v12055_v18  ;;  %1785 = vrot.lane.b32.xlu1 %v1522_v6, %s11318_s23  ;;  %v2610_v18 = vor.u32 %v2609_v10, %v12106_v7  ;;  %v3532_v6 = vld [vmem:[#allocation2 + $0x54] sm:$0xf]  ;;  %v1537_v10 = vshrl.u32 %v1347_v43, 16  ;;  %10384 = vmatprep.mubr.msk.bf16.mxu1 %vm415_vm5, %v10948_v62 }
  0xdb   : > { %3486 = vst.msk [vmem:[#allocation3 + $0x8] sm:$0xf] %vm17142_vm12, %v12018_v50  ;;  %3965 = vrot.lane.b32.xlu0 %v3674_v33, %s11323_s18  ;;  %v974_v50 = vshrl.u32 %v12094_v63, 16  ;;  %v2029_v63 = vsel %vm11511_vm6, %v10299_v58, %v2028_v5  ;;  %v2242_v5 = vld [vmem:[#allocation2 + $0x48] sm:$0xf]  ;;  %v1533_v58 = vshll.u32 %v1347_v43, 16 }
  0xdc   : > { %v3952_v24 = vpop.permute.xlu1 %3951  ;;  %v2611_v53 = vrot.slane %v2610_v18, 4  ;;  %v12182_v33 = vrot.slane %v3695_v39, 5  ;;  %v3686_v26 = vshrl.u32 %v3532_v6, 16  ;;  %v3689_v8 = vshll.u32 %v3532_v6, 16  ;;  %v2444_v43 = vld [vmem:[#allocation2 + $0x58] sm:$0xf] }
  0xdd   : > { %4047 = vst.msk [vmem:[#allocation3 + $0x8] sm:$0xf] %vm17143_vm2, %v3952_v24  ;;  %v2858_v22 = vpop.permute.xlu0 %2857  ;;  %v976_v20 = vrot.slane %v974_v50, 7  ;;  %v12194_v23 = vrot.slane %v1533_v58, 5  ;;  %v1539_v37 = vrot.slane %v1537_v10, 4  ;;  %v3707_v39 = vrot.slane %v3705_v34, 5 }
  0xde   : > { %2125 = vrot.lane.b32.xlu1 %v2032_v19, %s11317_s20  ;;  %2954 = vst.msk [vmem:[#allocation3] sm:$0xf] %vm2953_vm9, %v2858_v22  ;;  %v2616_v14 = vsel %vm11585_vm15, %v2611_v53, %v2615_v55  ;;  %v3702_v18 = vor.u32 %v3701_v16, %v12182_v33  ;;  %v1212_v24 = vld [vmem:[#allocation2 + $0x74] sm:$0x1]  ;;  %v3688_v29 = vrot.slane %v3686_v26, 4  ;;  %v3691_v22 = vrot.slane %v3689_v8, 5 }
  0xdf   : > { %3291 = vst.msk [vmem:[#allocation3] sm:$0xf] %vm17144_vm11, %v12088_v60  ;;  %1783 = vrot.lane.b32.xlu0 %v1512_v61, %s11318_s23  ;;  %v2600_v60 = vor.u32 %v12124_v25, %v12122_v28  ;;  %v979_v13 = vor.u32 %v977_v52, %v976_v20  ;;  %v981_v36 = vrot.slane %v976_v20, 4  ;;  %v971_v61 = vor.u32 %v969_v46, %v12148_v4  ;;  %v12205_v52 = vld [vmem:[#allocation2 + $0x4c] sm:$0xf] }
  0xe0   : > { %3485 = vst.msk [vmem:[#allocation3] sm:$0xf] %vm17142_vm12, %v12034_v54  ;;  %v1770_v30 = vpop.permute.xlu1 %1769  ;;  %v3121_v54 = vrot.slane %v3119_v49, 4  ;;  %v3335_v4 = vld [vmem:[#allocation2 + $0x58] sm:$0xf]  ;;  %v1543_v53 = vshll.u32 %v1348_v15, 16  ;;  %v1540_v35 = vor.u32 %v1539_v37, %v12194_v23  ;;  %v3692_v20 = vor.u32 %v3691_v22, %v3688_v29 }
  0xe1   : > { %1863 = vst.msk [vmem:[#allocation3 + $0x18] sm:$0xf] %vm1859_vm1, %v1770_v30  ;;  %v3950_v42 = vpop.permute.xlu0 %3949  ;;  %v2601_v19 = vrot.slane %v2600_v60, 4  ;;  %v980_v21 = vsel %vm11542_vm13, %v972_v3, %v979_v13  ;;  %v1213_v38 = vsel %vm11525_vm10, %v981_v36, %v1212_v24  ;;  %v3703_v55 = vrot.slane %v3702_v18, 4  ;;  %v1910_v26 = vld [vmem:[#allocation2 + $0x48] sm:$0xe] }
  0xe2   : > { %2203 = vst.msk [vmem:[#allocation3 + $0x18] sm:$0xf] %vm2199_vm3, %v12082_v51  ;;  %2318 = vrot.lane.b32.xlu1 %v2243_v47, %s11319_s29  ;;  %v1346_v51 = vld [vmem:[#allocation2 + $0x48] sm:$0xf]  ;;  %v3123_v25 = vsel %vm11511_vm6, %v3121_v54, %v3122_v40  ;;  %1214 = vst [vmem:[#allocation2 + $0x74] sm:$0x1] %v1213_v38  ;;  %v3120_v3 = vsel %vm11511_vm6, %v10315_v48, %v3119_v49 }
  0xe3   : > { %4046 = vst.msk [vmem:[#allocation3] sm:$0xf] %vm17143_vm2, %v3950_v42  ;;  %2123 = vrot.lane.b32.xlu0 %v2029_v63, %s11317_s20  ;;  %v1524_v32 = vshrl.u32 %v1346_v51, 16  ;;  %v2606_v50 = vsel %vm11585_vm15, %v2601_v19, %v12106_v7  ;;  %v1527_v47 = vshll.u32 %v1346_v51, 16  ;;  %v1208_v7 = vld [vmem:[#allocation2 + $0x6c] sm:$0xf]  ;;  %v3708_v58 = vsel %vm11585_vm15, %v3703_v55, %v3707_v39 }
  0xe4   : > { %v2303_v17 = vpop.permute.xlu1 %2302  ;;  %1211 = vst.msk [vmem:[#allocation2 + $0x70] sm:$0xf] %vm625_vm0, %v980_v21  ;;  %v1209_v30 = vsel %vm11571_vm14, %v971_v61, %v1208_v7  ;;  %v1277_v63 = vld [vmem:[#allocation2 + $0x4c] sm:$0xf]  ;;  %v2443_v40 = vld [vmem:[#allocation2 + $0x54] sm:$0xf] }
  0xe5   : > { %2396 = vst.msk [vmem:[#allocation3 + $0x18] sm:$0xf] %vm2392_vm4, %v2303_v17  ;;  %v1768_v28 = vpop.permute.xlu0 %1767  ;;  %v1526_v42 = vrot.slane %v1524_v32, 4  ;;  %v1529_v54 = vrot.slane %v1527_v47, 5  ;;  %1210 = vst [vmem:[#allocation2 + $0x6c] sm:$0xf] %v1209_v30 }
  0xe6   : > { %2879 = vrot.lane.b32.xlu1 %v2616_v14, %s11322_s14  ;;  %1862 = vst.msk [vmem:[#allocation3 + $0x10] sm:$0xf] %vm1859_vm1, %v1768_v28  ;;  %v1545_v11 = vrot.slane %v1543_v53, 5  ;;  %v2035_v31 = vrot.slane %v12205_v52, 5  ;;  %v2627_v45 = vshll.u32 %v2444_v43, 16  ;;  %v2631_v49 = vshrl.u32 %v2444_v43, 16 }
  0xe7   : > { %2202 = vst.msk [vmem:[#allocation3 + $0x10] sm:$0xf] %vm2199_vm3, %v12112_v56  ;;  %2316 = vrot.lane.b32.xlu0 %v2242_v5, %s11319_s29  ;;  %v1912_v5 = vld [vmem:[#allocation2 + $0x50] sm:$0x1]  ;;  %v1541_v10 = vrot.slane %v1540_v35, 4  ;;  %v2618_v13 = vshrl.u32 %v2443_v40, 16  ;;  %v1530_v17 = vor.u32 %v1529_v54, %v1526_v42 }
  0xe8   : > { %v2864_v41 = vpop.permute.xlu1 %2863  ;;  %1309 = vst.msk [vmem:[#allocation3 + $0x68] sm:$0xf] %vm625_vm0, %v1277_v63  ;;  %v2621_v14 = vshll.u32 %v2443_v40, 16  ;;  %v3334_v51 = vld [vmem:[#allocation2 + $0x54] sm:$0xf]  ;;  %v3693_v46 = vrot.slane %v3692_v20, 4 }
  0xe9   : > { %2957 = vst.msk [vmem:[#allocation3 + $0x18] sm:$0xf] %vm2953_vm9, %v2864_v41  ;;  %v2301_v56 = vpop.permute.xlu0 %2300  ;;  %v2038_v44 = vrot.slane %v1912_v5, 5  ;;  %v2445_v8 = vld [vmem:[#allocation2 + $0x5c] sm:$0x1]  ;;  %v370_v21 = vld [vmem:[%s11483_s27 + $0x90] sm:$0xff]  ;;  %v1546_v32 = vsel %vm11585_vm15, %v1541_v10, %v1545_v11 }
  0xea   : > { %v10946_v57 = vld [vmem:[#allocation3] ss:$8 sps:$4 sm:$0xff]   ;;  %3216 = vrot.lane.b32.xlu1 %v3123_v25, %s11321_s17  ;;  %2395 = vst.msk [vmem:[#allocation3 + $0x10] sm:$0xf] %vm2392_vm4, %v2301_v56  ;;  %v12232_v28 = vrot.slane %v2627_v45, 5  ;;  %v2633_v25 = vrot.slane %v2631_v49, 4  ;;  %v3698_v41 = vsel %vm11585_vm15, %v3693_v46, %v12182_v33  ;;  %v12244_v38 = vpack.c.bf16 %v370_v21, %v370_v21 }
  0xeb   : > { %2877 = vrot.lane.b32.xlu0 %v2606_v50, %s11322_s14  ;;  %4686 = vmatmul.mubr.bf16.vlgmr.msra.gmra.mxu1 %v10946_v57  ;;  %v4087_v48 = vld [vmem:[#allocation2 + $0x3c] sm:$0xe]  ;;  %v4088_v37 = vld [vmem:[#allocation2 + $0x40] sm:$0xf]  ;;  %v2037_v18 = vrot.slane %v2035_v31, 4  ;;  %v2620_v15 = vrot.slane %v2618_v13, 4 }
  0xec   : > { %v3201_v60 = vpop.permute.xlu1 %3200  ;;  %v12237_v34 = vld [vmem:[#allocation2 + $0x58] sm:$0xf]  ;;  %v2623_v36 = vrot.slane %v2621_v14, 5  ;;  %v371_v24 = vld [vmem:[%s11483_s27 + $0x98] sm:$0xff]  ;;  %v1531_v50 = vrot.slane %v1530_v17, 4  ;;  %v10300_v29 = vrot.slane %v1910_v26, 9 }
  0xed   : > { %3294 = vst.msk [vmem:[#allocation3 + $0x18] sm:$0xf] %vm17144_vm11, %v3201_v60  ;;  %v2862_v6 = vpop.permute.xlu0 %2861  ;;  %v2637_v22 = vshll.u32 %v2445_v8, 16  ;;  %v3536_v56 = vld [vmem:[#allocation2 + $0x64] sm:$0xf]  ;;  %v10329_v62 = vrot.slane %v4087_v48, 9  ;;  %v12252_v7 = vpack.c.bf16 %v371_v24, %v371_v24  ;;  %v2039_v55 = vsel %vm11511_vm6, %v2037_v18, %v2038_v44 }
  0xee   : > { %3410 = vrot.lane.b32.xlu1 %v3335_v4, %s11320_s28  ;;  %2956 = vst.msk [vmem:[#allocation3 + $0x10] sm:$0xf] %vm2953_vm9, %v2862_v6  ;;  %v4089_v57 = vld [vmem:[#allocation2 + $0x44] sm:$0x1]  ;;  %v4197_v52 = vrot.slane %v4088_v37, 5  ;;  %v2634_v4 = vor.u32 %v2633_v25, %v12232_v28  ;;  %v3126_v33 = vrot.slane %v12237_v34, 5  ;;  %v2624_v39 = vor.u32 %v2623_v36, %v2620_v15 }
  0xef   : > { %3214 = vrot.lane.b32.xlu0 %v3120_v3, %s11321_s17  ;;  %v12249_v53 = vld [vmem:[#allocation2 + $0x5c] sm:$0x1]  ;;  %v12257_v35 = vld [vmem:[#allocation2 + $0x58] sm:$0xf]  ;;  %v1536_v60 = vsel %vm11585_vm15, %v1531_v50, %v12194_v23  ;;  %v2036_v3 = vsel %vm11511_vm6, %v10300_v29, %v2035_v31  ;;  %v12266_v20 = vld [vmem:[#allocation2 + $0x54] sm:$0xe] }
  0xf0   : > { %v3395_v16 = vpop.permute.xlu1 %3394  ;;  %v4198_v43 = vsel %vm11511_vm6, %v10329_v62, %v4197_v52  ;;  %v4199_v30 = vrot.slane %v4197_v52, 4  ;;  %v3719_v42 = vshll.u32 %v3536_v56, 16  ;;  %v12268_v54 = vld [vmem:[#allocation2 + $0x5c] sm:$0x1]  ;;  %v4200_v40 = vrot.slane %v4089_v57, 5 }
  0xf1   : > { %3488 = vst.msk [vmem:[#allocation3 + $0x18] sm:$0xf] %vm17142_vm12, %v3395_v16  ;;  %v3199_v19 = vpop.permute.xlu0 %3198  ;;  %v2245_v11 = vld [vmem:[#allocation2 + $0x58] sm:$0xf]  ;;  %v12272_v5 = vrot.slane %v2637_v22, 5  ;;  %v3129_v45 = vrot.slane %v12249_v53, 5 }
  0xf2   : > { %3971 = vrot.lane.b32.xlu1 %v3708_v58, %s11323_s18  ;;  %3293 = vst.msk [vmem:[#allocation3 + $0x10] sm:$0xf] %vm17144_vm11, %v3199_v19  ;;  %v3723_v23 = vshrl.u32 %v3536_v56, 16  ;;  %v983_v49 = vshrl.u32 %v12244_v38, 16  ;;  %v1276_v31 = vld [vmem:[#allocation2 + $0x48] sm:$0xf]  ;;  %v4201_v14 = vsel %vm11511_vm6, %v4199_v30, %v4200_v40 }
  0xf3   : > { %3408 = vrot.lane.b32.xlu0 %v3334_v51, %s11320_s28  ;;  %4324 = vst.msk [vmem:[#allocation3 + $0x34] sm:$0xf] %vm625_vm0, %v4198_v43  ;;  %v2635_v58 = vrot.slane %v2634_v4, 4  ;;  %v3128_v10 = vrot.slane %v3126_v33, 4  ;;  %v1557_v13 = vshll.u32 %v12257_v35, 16  ;;  %v12285_v51 = vrot.slane %v2624_v39, 4 }
  0xf4   : > { %v3956_v61 = vpop.permute.xlu1 %3955  ;;  %v723_v16 = vld [vmem:[#allocation2 + $0x80] sm:$0x1]  ;;  %1308 = vst.msk [vmem:[#allocation3 + $0x60] sm:$0xf] %vm625_vm0, %v1276_v31  ;;  %v10316_v46 = vrot.slane %v12266_v20, 9  ;;  %v985_v19 = vrot.slane %v983_v49, 7 }
  0xf5   : > { %4049 = vst.msk [vmem:[#allocation3 + $0x18] sm:$0xf] %vm17143_vm2, %v3956_v61  ;;  %v3393_v47 = vpop.permute.xlu0 %3392  ;;  %v12288_v17 = vld [vmem:[#allocation2 + $0x54] sm:$0xf]  ;;  %v991_v44 = vshrl.u32 %v12252_v7, 16  ;;  %v12292_v21 = vrot.slane %v3719_v42, 5  ;;  %v2640_v29 = vsel %vm11585_vm15, %v2635_v58, %v12272_v5 }
  0xf6   : > { %1789 = vrot.lane.b32.xlu1 %v1546_v32, %s11318_s23  ;;  %3487 = vst.msk [vmem:[#allocation3 + $0x10] sm:$0xf] %vm17142_vm12, %v3393_v47  ;;  %v667_v26 = vld [vmem:[#allocation2 + $0x78] sm:$0x1]  ;;  %v1561_v25 = vshrl.u32 %v12257_v35, 16  ;;  %v1567_v48 = vshll.u32 %v12268_v54, 16  ;;  %v3130_v35 = vsel %vm11511_vm6, %v3128_v10, %v3129_v45  ;;  %v12322_v43 = vsel %vm11511_vm6, %v10316_v46, %v3126_v33 }
  0xf7   : > { %3969 = vrot.lane.b32.xlu0 %v3698_v41, %s11323_s18  ;;  %4325 = vst.msk [vmem:[#allocation3 + $0x3c] sm:$0xf] %vm625_vm0, %v4201_v14  ;;  %v3535_v37 = vld [vmem:[#allocation2 + $0x60] sm:$0xf]  ;;  %v994_v32 = vshll.u32 %v12252_v7, 16  ;;  %v3725_v15 = vrot.slane %v3723_v23, 4 }
  0xf8   : > { %v1774_v63 = vpop.permute.xlu1 %1773  ;;  %v989_v36 = vrot.slane %v985_v19, 4  ;;  %v12298_v24 = vrot.slane %v991_v44, 7  ;;  %v724_v61 = vsel %vm11517_vm8, 0, %v723_v16  ;;  %v372_v41 = vld [vmem:[%s11483_s27 + $0xa0] sm:$0xff]  ;;  %v373_v50 = vld [vmem:[%s11483_s27 + $0xa8] sm:$0xff]  ;;  %v12309_v47 = vrot.slane %v1557_v13, 5 }
  0xf9   : > { %1865 = vst.msk [vmem:[#allocation3 + $0x28] sm:$0xf] %vm1859_vm1, %v1774_v63  ;;  %v3954_v6 = vpop.permute.xlu0 %3953  ;;  %v2244_v22 = vld [vmem:[#allocation2 + $0x54] sm:$0xf]  ;;  %725 = vst [vmem:[#allocation2 + $0x80] sm:$0x1] %v724_v61  ;;  %v3726_v42 = vor.u32 %v3725_v15, %v12292_v21  ;;  %v12332_v33 = vpack.c.bf16 %v372_v41, %v372_v41  ;;  %v10592_v23 = vpack.c.bf16 %v373_v50, %v373_v50 }
  0xfa   : > { %2129 = vrot.lane.b32.xlu1 %v2039_v55, %s11317_s20  ;;  %4048 = vst.msk [vmem:[#allocation3 + $0x10] sm:$0xf] %vm17143_vm2, %v3954_v6  ;;  %v668_v56 = vsel %vm11525_vm10, 0, %v667_v26  ;;  %v4090_v57 = vld [vmem:[#allocation2 + $0x48] sm:$0xe]  ;;  %v3710_v4 = vshrl.u32 %v3535_v37, 16  ;;  %v996_v7 = vor.u32 %v994_v32, %v12298_v24  ;;  %v2630_v16 = vsel %vm11585_vm15, %v12285_v51, %v12232_v28 }
  0xfb   : > { %1787 = vrot.lane.b32.xlu0 %v1536_v60, %s11318_s23  ;;  %v3537_v52 = vld [vmem:[#allocation2 + $0x68] sm:$0x1]  ;;  %v3713_v53 = vshll.u32 %v3535_v37, 16  ;;  %669 = vst [vmem:[#allocation2 + $0x78] sm:$0x1] %v668_v56  ;;  %v986_v55 = vshll.u32 %v12244_v38, 16 }
  0xfc   : > { %v2114_v8 = vpop.permute.xlu1 %2113  ;;  %v4353_v62 = vld [vmem:[#allocation3 + $0x18] sm:$0xff]  ;;  %v12324_v30 = vrot.slane %v1561_v25, 4  ;;  %v1548_v63 = vshrl.u32 %v12288_v17, 16  ;;  %v4091_v60 = vld [vmem:[#allocation2 + $0x4c] sm:$0xf]  ;;  %v1551_v40 = vshll.u32 %v12288_v17, 16  ;;  %v997_v34 = vsel %vm11542_vm13, %v989_v36, %v996_v7 }
  0xfd   : > { %2205 = vst.msk [vmem:[#allocation3 + $0x28] sm:$0xf] %vm2199_vm3, %v2114_v8  ;;  %v1772_v18 = vpop.permute.xlu0 %1771  ;;  %v10949_v38 = vld [vmem:[#allocation3 + $0x14] ss:$8 sps:$4 sm:$0xff]   ;;  %v4092_v6 = vld [vmem:[#allocation2 + $0x50] sm:$0x1]  ;;  %v988_v10 = vor.u32 %v986_v55, %v985_v19 }
  0xfe   : > { %2322 = vrot.lane.b32.xlu1 %v2245_v11, %s11319_s29  ;;  %1864 = vst.msk [vmem:[#allocation3 + $0x20] sm:$0xf] %vm1859_vm1, %v1772_v18  ;;  %v3729_v5 = vshll.u32 %v3537_v52, 16  ;;  %v998_v45 = vrot.slane %v12298_v24, 4  ;;  %v1279_v49 = vld [vmem:[#allocation2 + $0x58] sm:$0xf]  ;;  %10385 = vmatprep.mubr.msk.bf16.mxu1 %vm415_vm5, %v10949_v38  ;;  %v1564_v46 = vor.u32 %v12324_v30, %v12309_v47 }
  0xff   : > { %2127 = vrot.lane.b32.xlu0 %v2036_v3, %s11317_s20  ;;  %1218 = vst.msk [vmem:[#allocation2 + $0x7c] sm:$0xf] %vm625_vm0, %v997_v34  ;;  %v3712_v31 = vrot.slane %v3710_v4, 4  ;;  %v3715_v58 = vrot.slane %v3713_v53, 5  ;;  %v10330_v13 = vrot.slane %v4090_v57, 9  ;;  %v4204_v17 = vrot.slane %v4091_v60, 5 }
 0x100   : > { %v2307_v39 = vpop.permute.xlu1 %2306  ;;  %1311 = vst.msk [vmem:[#allocation3 + $0x78] sm:$0xf] %vm625_vm0, %v1279_v49  ;;  %v4207_v44 = vrot.slane %v4092_v6, 5  ;;  %v726_v26 = vld [vmem:[#allocation2 + $0x8c] sm:$0x1]  ;;  %v3727_v19 = vrot.slane %v3726_v42, 4 }
 0x101   : > { %2398 = vst.msk [vmem:[#allocation3 + $0x28] sm:$0xf] %vm2392_vm4, %v2307_v39  ;;  %v2112_v3 = vpop.permute.xlu0 %2111  ;;  %v4352_v20 = vld [vmem:[#allocation3 + $0x10] sm:$0xff]  ;;  %v12348_v25 = vrot.slane %v1548_v63, 4  ;;  %v12350_v37 = vrot.slane %v1551_v40, 5  ;;  %v1000_v18 = vshrl.u32 %v12332_v33, 16  ;;  %v4205_v36 = vsel %vm11511_vm6, %v10330_v13, %v4204_v17 }
 0x102   : > { %2883 = vrot.lane.b32.xlu1 %v2640_v29, %s11322_s14  ;;  %2204 = vst.msk [vmem:[#allocation3 + $0x20] sm:$0xf] %vm2199_vm3, %v2112_v3  ;;  %v10345_v11 = vcombine.low %v4352_v20, %v4353_v62  ;;  %v1219_v32 = vld [vmem:[#allocation2 + $0x80] sm:$0x1]  ;;  %v2447_v28 = vld [vmem:[#allocation2 + $0x64] sm:$0xf]  ;;  %v3716_v29 = vor.u32 %v3715_v58, %v3712_v31 }
 0x103   : > { %2320 = vrot.lane.b32.xlu0 %v2244_v22, %s11319_s29  ;;  %v1220_v51 = vsel %vm11525_vm10, %v998_v45, %v1219_v32  ;;  %v1215_v15 = vld [vmem:[#allocation2 + $0x78] sm:$0xf]  ;;  %v4206_v24 = vrot.slane %v4204_v17, 4  ;;  %v1008_v61 = vshrl.u32 %v10592_v23, 16  ;;  %v3337_v41 = vld [vmem:[#allocation2 + $0x64] sm:$0xf] }
 0x104   : > { %v2868_v14 = vpop.permute.xlu1 %2867  ;;  %4694 = vmatmul.mubr.bf16.gmra.mxu1 %v10345_v11  ;;  %v3731_v50 = vrot.slane %v3729_v5, 5  ;;  %v12360_v22 = vld [vmem:[#allocation2 + $0x58] sm:$0xf]  ;;  %1221 = vst [vmem:[#allocation2 + $0x80] sm:$0x1] %v1220_v51  ;;  %v1216_v56 = vsel %vm11571_vm14, %v988_v10, %v1215_v15  ;;  %v1002_v57 = vrot.slane %v1000_v18, 7  ;;  %v1554_v5 = vor.u32 %v12350_v37, %v12348_v25 }
 0x105   : > { %2959 = vst.msk [vmem:[#allocation3 + $0x28] sm:$0xf] %vm2953_vm9, %v2868_v14  ;;  %v2305_v8 = vpop.permute.xlu0 %2304  ;;  %1217 = vst [vmem:[#allocation2 + $0x78] sm:$0xf] %v1216_v56  ;;  %v4208_v52 = vsel %vm11511_vm6, %v4206_v24, %v4207_v44  ;;  %v12367_v4 = vrot.slane %v1008_v61, 7  ;;  %v1011_v53 = vshll.u32 %v10592_v23, 16 }
 0x106   : > { %3220 = vrot.lane.b32.xlu1 %v3130_v35, %s11321_s17  ;;  %2397 = vst.msk [vmem:[#allocation3 + $0x20] sm:$0xf] %vm2392_vm4, %v2305_v8  ;;  %v727_v7 = vsel %vm11517_vm8, 0, %v726_v26  ;;  %v2651_v39 = vshll.u32 %v2447_v28, 16  ;;  %v2655_v35 = vshrl.u32 %v2447_v28, 16  ;;  %v1006_v30 = vrot.slane %v1002_v57, 4 }
 0x107   : > { %2881 = vrot.lane.b32.xlu0 %v2630_v16, %s11322_s14  ;;  %4326 = vst.msk [vmem:[#allocation3 + $0x44] sm:$0xf] %vm625_vm0, %v4205_v36  ;;  %4327 = vst.msk [vmem:[#allocation3 + $0x4c] sm:$0xf] %vm625_vm0, %v4208_v52  ;;  %v1013_v63 = vor.u32 %v1011_v53, %v12367_v4  ;;  %v670_v60 = vld [vmem:[#allocation2 + $0x84] sm:$0x1]  ;;  %v3732_v3 = vsel %vm11585_vm15, %v3727_v19, %v3731_v50 }
 0x108   : > { %v3205_v62 = vpop.permute.xlu1 %3204  ;;  %728 = vst [vmem:[#allocation2 + $0x8c] sm:$0x1] %v727_v7  ;;  %v1565_v20 = vrot.slane %v1564_v46, 4  ;;  %v1569_v38 = vrot.slane %v1567_v48, 5  ;;  %v1915_v42 = vld [vmem:[#allocation2 + $0x5c] sm:$0x1] }
 0x109   : > { %3296 = vst.msk [vmem:[#allocation3 + $0x28] sm:$0xf] %vm17144_vm11, %v3205_v62  ;;  %v2866_v55 = vpop.permute.xlu0 %2865  ;;  %v2042_v40 = vrot.slane %v12360_v22, 5  ;;  %v3336_v6 = vld [vmem:[#allocation2 + $0x60] sm:$0xf]  ;;  %v3717_v11 = vrot.slane %v3716_v29, 4 }
 0x10a   : > { %3414 = vrot.lane.b32.xlu1 %v3337_v41, %s11320_s28  ;;  %2958 = vst.msk [vmem:[#allocation3 + $0x20] sm:$0xf] %vm2953_vm9, %v2866_v55  ;;  %v2446_v45 = vld [vmem:[#allocation2 + $0x60] sm:$0xf]  ;;  %v12388_v49 = vrot.slane %v2651_v39, 5  ;;  %v2657_v54 = vrot.slane %v2655_v35, 4  ;;  %v1570_v13 = vsel %vm11585_vm15, %v1565_v20, %v1569_v38 }
 0x10b   : > { %3218 = vrot.lane.b32.xlu0 %v12322_v43, %s11321_s17  ;;  %v1014_v43 = vsel %vm11542_vm13, %v1006_v30, %v1013_v63  ;;  %v671_v48 = vsel %vm11525_vm10, 0, %v670_v60  ;;  %v2045_v31 = vrot.slane %v1915_v42, 5  ;;  %v2448_v58 = vld [vmem:[#allocation2 + $0x68] sm:$0x1]  ;;  %v1003_v10 = vshll.u32 %v12332_v33, 16 }
 0x10c   : > { %v3399_v34 = vpop.permute.xlu1 %3398  ;;  %1225 = vst.msk [vmem:[#allocation2 + $0x88] sm:$0xf] %vm625_vm0, %v1014_v43  ;;  %672 = vst [vmem:[#allocation2 + $0x84] sm:$0x1] %v671_v48  ;;  %v2044_v14 = vrot.slane %v2042_v40, 4  ;;  %v2642_v16 = vshrl.u32 %v2446_v45, 16  ;;  %v3722_v44 = vsel %vm11585_vm15, %v3717_v11, %v12292_v21  ;;  %v2658_v25 = vor.u32 %v2657_v54, %v12388_v49 }
 0x10d   : > { %3490 = vst.msk [vmem:[#allocation3 + $0x28] sm:$0xf] %vm17142_vm12, %v3399_v34  ;;  %v3203_v23 = vpop.permute.xlu0 %3202  ;;  %v2645_v46 = vshll.u32 %v2446_v45, 16  ;;  %v1555_v26 = vrot.slane %v1554_v5, 4  ;;  %v1015_v8 = vrot.slane %v12367_v4, 4  ;;  %v2661_v37 = vshll.u32 %v2448_v58, 16 }
 0x10e   : > { %3975 = vrot.lane.b32.xlu1 %v3732_v3, %s11323_s18  ;;  %3295 = vst.msk [vmem:[#allocation3 + $0x20] sm:$0xf] %vm17144_vm11, %v3203_v23  ;;  %v1913_v19 = vld [vmem:[#allocation2 + $0x54] sm:$0xe]  ;;  %v12409_v32 = vld [vmem:[#allocation2 + $0x64] sm:$0xf]  ;;  %v1005_v18 = vor.u32 %v1003_v10, %v1002_v57  ;;  %v2046_v21 = vsel %vm11511_vm6, %v2044_v14, %v2045_v31 }
 0x10f   : > { %3412 = vrot.lane.b32.xlu0 %v3336_v6, %s11320_s28  ;;  %v2644_v28 = vrot.slane %v2642_v16, 4  ;;  %v2647_v51 = vrot.slane %v2645_v46, 5  ;;  %v1353_v15 = vld [vmem:[#allocation2 + $0x64] sm:$0xf]  ;;  %v1226_v36 = vld [vmem:[#allocation2 + $0x8c] sm:$0x1]  ;;  %v1560_v61 = vsel %vm11585_vm15, %v1555_v26, %v12309_v47 }
 0x110   : > { %v3960_v17 = vpop.permute.xlu1 %3959  ;;  %v10301_v41 = vrot.slane %v1913_v19, 9  ;;  %v3539_v50 = vld [vmem:[#allocation2 + $0x70] sm:$0xf]  ;;  %v1227_v29 = vsel %vm11525_vm10, %v1015_v8, %v1226_v36  ;;  %v2659_v57 = vrot.slane %v2658_v25, 4  ;;  %v2663_v62 = vrot.slane %v2661_v37, 5  ;;  %v374_v16 = vld [vmem:[%s11483_s27 + $0xb0] sm:$0xff] }
 0x111   : > { %4051 = vst.msk [vmem:[#allocation3 + $0x28] sm:$0xf] %vm17143_vm2, %v3960_v17  ;;  %v3397_v33 = vpop.permute.xlu0 %3396  ;;  %v3133_v52 = vrot.slane %v12409_v32, 5  ;;  %1228 = vst [vmem:[#allocation2 + $0x8c] sm:$0x1] %v1227_v29  ;;  %v1581_v7 = vshll.u32 %v1353_v15, 16  ;;  %v2648_v35 = vor.u32 %v2647_v51, %v2644_v28  ;;  %v12454_v36 = vpack.c.bf16 %v374_v16, %v374_v16 }
 0x112   : > { %1793 = vrot.lane.b32.xlu1 %v1570_v13, %s11318_s23  ;;  %3489 = vst.msk [vmem:[#allocation3 + $0x20] sm:$0xf] %vm17142_vm12, %v3397_v33  ;;  %v2247_v53 = vld [vmem:[#allocation2 + $0x64] sm:$0xf]  ;;  %v3009_v47 = vld [vmem:[#allocation2 + $0x68] sm:$0x1]  ;;  %v2043_v38 = vsel %vm11511_vm6, %v10301_v41, %v2042_v40  ;;  %v2664_v6 = vsel %vm11585_vm15, %v2659_v57, %v2663_v62 }
 0x113   : > { %3973 = vrot.lane.b32.xlu0 %v3722_v44, %s11323_s18  ;;  %v1222_v4 = vld [vmem:[#allocation2 + $0x84] sm:$0xf]  ;;  %v1585_v55 = vshrl.u32 %v1353_v15, 16  ;;  %v3007_v30 = vld [vmem:[#allocation2 + $0x60] sm:$0xe]  ;;  %v3743_v63 = vshll.u32 %v3539_v50, 16 }
 0x114   : > { %v1778_v24 = vpop.permute.xlu1 %1777  ;;  %v1223_v39 = vsel %vm11571_vm14, %v1005_v18, %v1222_v4  ;;  %v3747_v60 = vshrl.u32 %v3539_v50, 16  ;;  %v1354_v3 = vld [vmem:[#allocation2 + $0x68] sm:$0x1]  ;;  %v1352_v42 = vld [vmem:[#allocation2 + $0x60] sm:$0xf]  ;;  %v3135_v11 = vrot.slane %v3133_v52, 4 }
 0x115   : > { %1867 = vst.msk [vmem:[#allocation3 + $0x38] sm:$0xf] %vm1859_vm1, %v1778_v24  ;;  %v3958_v56 = vpop.permute.xlu0 %3957  ;;  %1224 = vst [vmem:[#allocation2 + $0x84] sm:$0xf] %v1223_v39  ;;  %v3136_v5 = vrot.slane %v3009_v47, 5  ;;  %v10317_v23 = vrot.slane %v3007_v30, 9 }
 0x116   : > { %2133 = vrot.lane.b32.xlu1 %v2046_v21, %s11317_s20  ;;  %4050 = vst.msk [vmem:[#allocation3 + $0x20] sm:$0xf] %vm17143_vm2, %v3958_v56  ;;  %v3538_v45 = vld [vmem:[#allocation2 + $0x6c] sm:$0xf]  ;;  %v12433_v43 = vld [vmem:[#allocation2 + $0x64] sm:$0xf] }
 0x117   : > { %1791 = vrot.lane.b32.xlu0 %v1560_v61, %s11318_s23  ;;  %v2246_v22 = vld [vmem:[#allocation2 + $0x60] sm:$0xf]  ;;  %v12437_v40 = vrot.slane %v1581_v7, 5  ;;  %v12439_v54 = vrot.slane %v1585_v55, 4  ;;  %v1591_v48 = vshll.u32 %v1354_v3, 16  ;;  %v2649_v58 = vrot.slane %v2648_v35, 4 }
 0x118   : > { %v2118_v20 = vpop.permute.xlu1 %2117  ;;  %v4355_v31 = vld [vmem:[#allocation3 + $0x28] sm:$0xff]  ;;  %v12442_v10 = vrot.slane %v3743_v63, 5  ;;  %v3749_v13 = vrot.slane %v3747_v60, 4  ;;  %v1572_v14 = vshrl.u32 %v1352_v42, 16  ;;  %v3540_v17 = vld [vmem:[#allocation2 + $0x74] sm:$0x1]  ;;  %v3137_v37 = vsel %vm11511_vm6, %v3135_v11, %v3136_v5 }
 0x119   : > { %2207 = vst.msk [vmem:[#allocation3 + $0x38] sm:$0xf] %vm2199_vm3, %v2118_v20  ;;  %v1776_v34 = vpop.permute.xlu0 %1775  ;;  %v3734_v44 = vshrl.u32 %v3538_v45, 16  ;;  %v3737_v26 = vshll.u32 %v3538_v45, 16  ;;  %v4093_v8 = vld [vmem:[#allocation2 + $0x54] sm:$0xe]  ;;  %v3134_v28 = vsel %vm11511_vm6, %v10317_v23, %v3133_v52  ;;  %v2654_v24 = vsel %vm11585_vm15, %v2649_v58, %v12388_v49 }
 0x11a   : > { %2326 = vrot.lane.b32.xlu1 %v2247_v53, %s11319_s29  ;;  %1866 = vst.msk [vmem:[#allocation3 + $0x30] sm:$0xf] %vm1859_vm1, %v1776_v34  ;;  %v10951_v25 = vld [vmem:[#allocation3 + $0x24] ss:$8 sps:$4 sm:$0xff]   ;;  %v1575_v32 = vshll.u32 %v1352_v42, 16  ;;  %v2049_v51 = vrot.slane %v12433_v43, 5  ;;  %v3750_v61 = vor.u32 %v3749_v13, %v12442_v10  ;;  %v1588_v7 = vor.u32 %v12439_v54, %v12437_v40 }
 0x11b   : > { %2131 = vrot.lane.b32.xlu0 %v2043_v38, %s11317_s20  ;;  %v4094_v18 = vld [vmem:[#allocation2 + $0x58] sm:$0xf]  ;;  %v375_v15 = vld [vmem:[%s11483_s27 + $0xb8] sm:$0xff]  ;;  %10386 = vmatprep.mubr.msk.bf16.mxu1 %vm415_vm5, %v10951_v25  ;;  %v3753_v41 = vshll.u32 %v3540_v17, 16  ;;  %v12462_v50 = vrot.slane %v1591_v48, 5  ;;  %v3736_v62 = vrot.slane %v3734_v44, 4 }
 0x11c   : > { %v2311_v46 = vpop.permute.xlu1 %2310  ;;  %v2450_v29 = vld [vmem:[#allocation2 + $0x70] sm:$0xf]  ;;  %v4095_v56 = vld [vmem:[#allocation2 + $0x5c] sm:$0x1]  ;;  %v3739_v52 = vrot.slane %v3737_v26, 5  ;;  %v10331_v4 = vrot.slane %v4093_v8, 9  ;;  %v10594_v35 = vpack.c.bf16 %v375_v15, %v375_v15 }
 0x11d   : > { %2400 = vst.msk [vmem:[#allocation3 + $0x38] sm:$0xf] %vm2392_vm4, %v2311_v46  ;;  %v2116_v33 = vpop.permute.xlu0 %2115  ;;  %v4354_v19 = vld [vmem:[#allocation3 + $0x20] sm:$0xff]  ;;  %v4211_v53 = vrot.slane %v4094_v18, 5  ;;  %v12467_v49 = vld [vmem:[#allocation2 + $0x68] sm:$0x1] }
 0x11e   : > { %2887 = vrot.lane.b32.xlu1 %v2664_v6, %s11322_s14  ;;  %2206 = vst.msk [vmem:[#allocation3 + $0x30] sm:$0xf] %vm2199_vm3, %v2116_v33  ;;  %v10347_v21 = vcombine.low %v4354_v19, %v4355_v31  ;;  %v12469_v55 = vrot.slane %v1572_v14, 4  ;;  %v12471_v39 = vrot.slane %v1575_v32, 5  ;;  %v2675_v30 = vshll.u32 %v2450_v29, 16 }
 0x11f   : > { %2324 = vrot.lane.b32.xlu0 %v2246_v22, %s11319_s29  ;;  %v4212_v63 = vsel %vm11511_vm6, %v10331_v4, %v4211_v53  ;;  %v4213_v60 = vrot.slane %v4211_v53, 4  ;;  %v4214_v3 = vrot.slane %v4095_v56, 5  ;;  %v3339_v20 = vld [vmem:[#allocation2 + $0x70] sm:$0xf]  ;;  %v3751_v38 = vrot.slane %v3750_v61, 4 }
 0x120   : > { %v2872_v57 = vpop.permute.xlu1 %2871  ;;  %4702 = vmatmul.mubr.bf16.gmra.mxu1 %v10347_v21  ;;  %v3755_v42 = vrot.slane %v3753_v41, 5  ;;  %v12480_v34 = vrot.slane %v2049_v51, 4  ;;  %v2679_v6 = vshrl.u32 %v2450_v29, 16  ;;  %4328 = vst.msk [vmem:[#allocation3 + $0x54] sm:$0xf] %vm625_vm0, %v4212_v63  ;;  %v3740_v5 = vor.u32 %v3739_v52, %v3736_v62  ;;  %v376_v53 = vld [vmem:[%s11483_s27 + $0xc0] sm:$0xff] }
 0x121   : > { %2961 = vst.msk [vmem:[#allocation3 + $0x38] sm:$0xf] %vm2953_vm9, %v2872_v57  ;;  %v2309_v47 = vpop.permute.xlu0 %2308  ;;  %v2052_v45 = vrot.slane %v12467_v49, 5  ;;  %v12484_v22 = vld [vmem:[#allocation2 + $0x60] sm:$0xe]  ;;  %v4215_v54 = vsel %vm11511_vm6, %v4213_v60, %v4214_v3  ;;  %v1017_v48 = vshrl.u32 %v12454_v36, 16  ;;  %v1578_v17 = vor.u32 %v12471_v39, %v12469_v55 }
 0x122   : > { %3224 = vrot.lane.b32.xlu1 %v3137_v37, %s11321_s17  ;;  %2399 = vst.msk [vmem:[#allocation3 + $0x30] sm:$0xf] %vm2392_vm4, %v2309_v47  ;;  %v2449_v23 = vld [vmem:[#allocation2 + $0x6c] sm:$0xf]  ;;  %v1278_v31 = vld [vmem:[#allocation2 + $0x54] sm:$0xf]  ;;  %v3756_v19 = vsel %vm11585_vm15, %v3751_v38, %v3755_v42 }
 0x123   : > { %2885 = vrot.lane.b32.xlu0 %v2654_v24, %s11322_s14  ;;  %v1589_v13 = vrot.slane %v1588_v7, 4  ;;  %4329 = vst.msk [vmem:[#allocation3 + $0x5c] sm:$0xf] %vm625_vm0, %v4215_v54  ;;  %v1025_v14 = vshrl.u32 %v10594_v35, 16  ;;  %v729_v16 = vld [vmem:[#allocation2 + $0x98] sm:$0x1] }
 0x124   : > { %v3209_v11 = vpop.permute.xlu1 %3208  ;;  %v673_v46 = vld [vmem:[#allocation2 + $0x90] sm:$0x1]  ;;  %1310 = vst.msk [vmem:[#allocation3 + $0x70] sm:$0xf] %vm625_vm0, %v1278_v31  ;;  %v12496_v44 = vrot.slane %v2675_v30, 5  ;;  %v1019_v26 = vrot.slane %v1017_v48, 7 }
 0x125   : > { %3298 = vst.msk [vmem:[#allocation3 + $0x38] sm:$0xf] %vm17144_vm11, %v3209_v11  ;;  %v2870_v58 = vpop.permute.xlu0 %2869  ;;  %v1028_v8 = vshll.u32 %v10594_v35, 16  ;;  %v1281_v33 = vld [vmem:[#allocation2 + $0x64] sm:$0xf]  ;;  %v12501_v25 = vrot.slane %v2679_v6, 4  ;;  %v1594_v35 = vsel %vm11585_vm15, %v1589_v13, %v12462_v50 }
 0x126   : > { %3418 = vrot.lane.b32.xlu1 %v3339_v20, %s11320_s28  ;;  %2960 = vst.msk [vmem:[#allocation3 + $0x30] sm:$0xf] %vm2953_vm9, %v2870_v58  ;;  %v2666_v37 = vshrl.u32 %v2449_v23, 16  ;;  %v12503_v32 = vrot.slane %v1025_v14, 7  ;;  %v1280_v18 = vld [vmem:[#allocation2 + $0x60] sm:$0xf]  ;;  %v2053_v58 = vsel %vm11511_vm6, %v12480_v34, %v2052_v45 }
 0x127   : > { %3222 = vrot.lane.b32.xlu0 %v3134_v28, %s11321_s17  ;;  %1313 = vst.msk [vmem:[#allocation3 + $0x88] sm:$0xf] %vm625_vm0, %v1281_v33  ;;  %v3338_v15 = vld [vmem:[#allocation2 + $0x6c] sm:$0xf]  ;;  %v3741_v24 = vrot.slane %v3740_v5, 4  ;;  %v1023_v61 = vrot.slane %v1019_v26, 4  ;;  %v2682_v3 = vor.u32 %v12501_v25, %v12496_v44 }
 0x128   : > { %v3403_v21 = vpop.permute.xlu1 %3402  ;;  %v730_v41 = vsel %vm11517_vm8, 0, %v729_v16  ;;  %v674_v28 = vsel %vm11525_vm10, 0, %v673_v46  ;;  %1312 = vst.msk [vmem:[#allocation3 + $0x80] sm:$0xf] %vm625_vm0, %v1280_v18  ;;  %v10302_v56 = vrot.slane %v12484_v22, 9  ;;  %v2669_v62 = vshll.u32 %v2449_v23, 16 }
 0x129   : > { %3492 = vst.msk [vmem:[#allocation3 + $0x38] sm:$0xf] %vm17142_vm12, %v3403_v21  ;;  %v3207_v29 = vpop.permute.xlu0 %3206  ;;  %v2451_v57 = vld [vmem:[#allocation2 + $0x74] sm:$0x1]  ;;  %v1030_v52 = vor.u32 %v1028_v8, %v12503_v32  ;;  %731 = vst [vmem:[#allocation2 + $0x98] sm:$0x1] %v730_v41  ;;  %v3746_v60 = vsel %vm11585_vm15, %v3741_v24, %v12442_v10  ;;  %v12537_v23 = vpack.c.bf16 %v376_v53, %v376_v53 }
 0x12a   : > { %675 = vst [vmem:[#allocation2 + $0x90] sm:$0x1] %v674_v28  ;;  %v1020_v4 = vshll.u32 %v12454_v36, 16  ;;  %3979 = vrot.lane.b32.xlu1 %v3756_v19, %s11323_s18  ;;  %3297 = vst.msk [vmem:[#allocation3 + $0x30] sm:$0xf] %vm17144_vm11, %v3207_v29  ;;  %v1579_v47 = vrot.slane %v1578_v17, 4 }
 0x12b   : > { %v4096_v7 = vld [vmem:[#allocation2 + $0x60] sm:$0xe]  ;;  %v4097_v55 = vld [vmem:[#allocation2 + $0x64] sm:$0xf]  ;;  %v377_v39 = vld [vmem:[%s11483_s27 + $0xc8] sm:$0xff]  ;;  %3416 = vrot.lane.b32.xlu0 %v3338_v15, %s11320_s28  ;;  %v1031_v30 = vsel %vm11542_vm13, %v1023_v61, %v1030_v52  ;;  %v2685_v20 = vshll.u32 %v2451_v57, 16  ;;  %v2050_v52 = vsel %vm11511_vm6, %v10302_v56, %v2049_v51 }
 0x12c   : > { %v4098_v63 = vld [vmem:[#allocation2 + $0x68] sm:$0x1]  ;;  %v3964_v36 = vpop.permute.xlu1 %3963  ;;  %v12530_v38 = vrot.slane %v2666_v37, 4  ;;  %1232 = vst.msk [vmem:[#allocation2 + $0x94] sm:$0xf] %vm625_vm0, %v1031_v30  ;;  %v2671_v6 = vrot.slane %v2669_v62, 5  ;;  %v1022_v5 = vor.u32 %v1020_v4, %v1019_v26  ;;  %v10596_v31 = vpack.c.bf16 %v377_v39, %v377_v39 }
 0x12d   : > { %4053 = vst.msk [vmem:[#allocation3 + $0x38] sm:$0xf] %vm17143_vm2, %v3964_v36  ;;  %v3401_v50 = vpop.permute.xlu0 %3400  ;;  %v12534_v42 = vld [vmem:[#allocation2 + $0x70] sm:$0xf]  ;;  %v1032_v11 = vrot.slane %v12503_v32, 4  ;;  %v10332_v10 = vrot.slane %v4096_v7, 9  ;;  %v1584_v16 = vsel %vm11585_vm15, %v1579_v47, %v12437_v40 }
 0x12e   : > { %1797 = vrot.lane.b32.xlu1 %v1594_v35, %s11318_s23  ;;  %3491 = vst.msk [vmem:[#allocation3 + $0x30] sm:$0xf] %vm17142_vm12, %v3401_v50  ;;  %v4218_v54 = vrot.slane %v4097_v55, 5  ;;  %v4221_v48 = vrot.slane %v4098_v63, 5  ;;  %v3542_v13 = vld [vmem:[#allocation2 + $0x7c] sm:$0xf]  ;;  %v2672_v21 = vor.u32 %v2671_v6, %v12530_v38 }
 0x12f   : > { %3977 = vrot.lane.b32.xlu0 %v3746_v60, %s11323_s18  ;;  %v12550_v46 = vrot.slane %v2685_v20, 5  ;;  %v12552_v17 = vld [vmem:[#allocation2 + $0x74] sm:$0x1]  ;;  %v732_v19 = vld [vmem:[#allocation2 + $0xa4] sm:$0x1]  ;;  %v3140_v25 = vrot.slane %v12534_v42, 5 }
 0x130   : > { %v1782_v14 = vpop.permute.xlu1 %1781  ;;  %v1233_v26 = vld [vmem:[#allocation2 + $0x98] sm:$0x1]  ;;  %v4219_v33 = vsel %vm11511_vm6, %v10332_v10, %v4218_v54  ;;  %v4220_v49 = vrot.slane %v4218_v54, 4  ;;  %v2249_v45 = vld [vmem:[#allocation2 + $0x70] sm:$0xf]  ;;  %v1034_v32 = vshrl.u32 %v12537_v23, 16 }
 0x131   : > { %v1229_v8 = vld [vmem:[#allocation2 + $0x90] sm:$0xf]  ;;  %1869 = vst.msk [vmem:[#allocation3 + $0x48] sm:$0xf] %vm1859_vm1, %v1782_v14  ;;  %v3962_v34 = vpop.permute.xlu0 %3961  ;;  %v1234_v40 = vsel %vm11525_vm10, %v1032_v11, %v1233_v26  ;;  %v2683_v18 = vrot.slane %v2682_v3, 4  ;;  %v1042_v24 = vshrl.u32 %v10596_v31, 16 }
 0x132   : > { %v1230_v37 = vsel %vm11571_vm14, %v1022_v5, %v1229_v8  ;;  %4330 = vst.msk [vmem:[#allocation3 + $0x64] sm:$0xf] %vm625_vm0, %v4219_v33  ;;  %2137 = vrot.lane.b32.xlu1 %v2053_v58, %s11317_s20  ;;  %1235 = vst [vmem:[#allocation2 + $0x98] sm:$0x1] %v1234_v40  ;;  %v4222_v15 = vsel %vm11511_vm6, %v4220_v49, %v4221_v48  ;;  %v3767_v61 = vshll.u32 %v3542_v13, 16  ;;  %v3771_v41 = vshrl.u32 %v3542_v13, 16 }
 0x133   : > { %4052 = vst.msk [vmem:[#allocation3 + $0x30] sm:$0xf] %vm17143_vm2, %v3962_v34  ;;  %1231 = vst [vmem:[#allocation2 + $0x90] sm:$0xf] %v1230_v37  ;;  %1795 = vrot.lane.b32.xlu0 %v1584_v16, %s11318_s23  ;;  %v1356_v28 = vld [vmem:[#allocation2 + $0x70] sm:$0xf]  ;;  %v2688_v51 = vsel %vm11585_vm15, %v2683_v18, %v12550_v46 }
 0x134   : > { %4331 = vst.msk [vmem:[#allocation3 + $0x6c] sm:$0xf] %vm625_vm0, %v4222_v15  ;;  %v12571_v29 = vrot.slane %v1034_v32, 7  ;;  %v1045_v57 = vshll.u32 %v10596_v31, 16  ;;  %v2122_v62 = vpop.permute.xlu1 %2121  ;;  %v12579_v4 = vrot.slane %v1042_v24, 7  ;;  %v3142_v7 = vrot.slane %v3140_v25, 4 }
 0x135   : > { %v676_v53 = vld [vmem:[#allocation2 + $0x9c] sm:$0x1]  ;;  %2209 = vst.msk [vmem:[#allocation3 + $0x48] sm:$0xf] %vm2199_vm3, %v2122_v62  ;;  %v1780_v47 = vpop.permute.xlu0 %1779  ;;  %v3143_v55 = vrot.slane %v12552_v17, 5  ;;  %v733_v43 = vsel %vm11517_vm8, 0, %v732_v19 }
 0x136   : > { %v3541_v39 = vld [vmem:[#allocation2 + $0x78] sm:$0xf]  ;;  %v1040_v35 = vrot.slane %v12571_v29, 4  ;;  %2330 = vrot.lane.b32.xlu1 %v2249_v45, %s11319_s29  ;;  %1868 = vst.msk [vmem:[#allocation3 + $0x40] sm:$0xf] %vm1859_vm1, %v1780_v47  ;;  %v2673_v56 = vrot.slane %v2672_v21, 4  ;;  %v1047_v50 = vor.u32 %v1045_v57, %v12579_v4 }
 0x137   : > { %v2248_v22 = vld [vmem:[#allocation2 + $0x6c] sm:$0xf]  ;;  %v1605_v63 = vshll.u32 %v1356_v28, 16  ;;  %v1609_v36 = vshrl.u32 %v1356_v28, 16  ;;  %734 = vst [vmem:[#allocation2 + $0xa4] sm:$0x1] %v733_v43  ;;  %2135 = vrot.lane.b32.xlu0 %v2050_v52, %s11317_s20  ;;  %v3144_v13 = vsel %vm11511_vm6, %v3142_v7, %v3143_v55 }
 0x138   : > { %v3010_v30 = vld [vmem:[#allocation2 + $0x6c] sm:$0xe]  ;;  %v4357_v60 = vld [vmem:[#allocation3 + $0x38] sm:$0xff]  ;;  %v12594_v3 = vrot.slane %v3767_v61, 5  ;;  %v3773_v20 = vrot.slane %v3771_v41, 4  ;;  %v677_v6 = vsel %vm11525_vm10, 0, %v676_v53  ;;  %v2315_v11 = vpop.permute.xlu1 %2314  ;;  %v1048_v14 = vsel %vm11542_vm13, %v1040_v35, %v1047_v50 }
 0x139   : > { %v1355_v38 = vld [vmem:[#allocation2 + $0x6c] sm:$0xf]  ;;  %v3543_v5 = vld [vmem:[#allocation2 + $0x80] sm:$0x1]  ;;  %v3758_v10 = vshrl.u32 %v3541_v39, 16  ;;  %v3761_v54 = vshll.u32 %v3541_v39, 16  ;;  %v2120_v48 = vpop.permute.xlu0 %2119  ;;  %v2678_v40 = vsel %vm11585_vm15, %v2673_v56, %v12496_v44 }
 0x13a   : > { %678 = vst [vmem:[#allocation2 + $0x9c] sm:$0x1] %v677_v6  ;;  %2402 = vst.msk [vmem:[#allocation3 + $0x48] sm:$0xf] %vm2392_vm4, %v2315_v11  ;;  %v4356_v31 = vld [vmem:[#allocation3 + $0x30] sm:$0xff]  ;;  %v1037_v16 = vshll.u32 %v12537_v23, 16  ;;  %2891 = vrot.lane.b32.xlu1 %v2688_v51, %s11322_s14  ;;  %v3774_v33 = vor.u32 %v3773_v20, %v12594_v3 }
 0x13b   : > { %v10953_v58 = vld [vmem:[#allocation3 + $0x34] ss:$8 sps:$4 sm:$0xff]   ;;  %2208 = vst.msk [vmem:[#allocation3 + $0x40] sm:$0xf] %vm2199_vm3, %v2120_v48  ;;  %v10349_v46 = vcombine.low %v4356_v31, %v4357_v60  ;;  %v10318_v17 = vrot.slane %v3010_v30, 9  ;;  %v1596_v26 = vshrl.u32 %v1355_v38, 16  ;;  %2328 = vrot.lane.b32.xlu0 %v2248_v22, %s11319_s29 }
 0x13c   : > { %v1599_v8 = vshll.u32 %v1355_v38, 16  ;;  %1239 = vst.msk [vmem:[#allocation2 + $0xa0] sm:$0xf] %vm625_vm0, %v1048_v14  ;;  %10387 = vmatprep.mubr.msk.bf16.mxu1 %vm415_vm5, %v10953_v58  ;;  %v3777_v49 = vshll.u32 %v3543_v5, 16  ;;  %v1357_v19 = vld [vmem:[#allocation2 + $0x74] sm:$0x1]  ;;  %v2876_v45 = vpop.permute.xlu1 %2875  ;;  %v1039_v61 = vor.u32 %v1037_v16, %v12571_v29 }
 0x13d   : > { %v12611_v34 = vrot.slane %v1605_v63, 5  ;;  %v1611_v23 = vrot.slane %v1609_v36, 4  ;;  %4710 = vmatmul.mubr.bf16.gmra.mxu1 %v10349_v46  ;;  %v3760_v37 = vrot.slane %v3758_v10, 4  ;;  %v3763_v32 = vrot.slane %v3761_v54, 5  ;;  %2963 = vst.msk [vmem:[#allocation3 + $0x48] sm:$0xf] %vm2953_vm9, %v2876_v45  ;;  %v2313_v21 = vpop.permute.xlu0 %2312 }
 0x13e   : > { %v1049_v18 = vrot.slane %v12579_v4, 4  ;;  %v12618_v15 = vld [vmem:[#allocation2 + $0x70] sm:$0xf]  ;;  %v2453_v24 = vld [vmem:[#allocation2 + $0x7c] sm:$0xf]  ;;  %3228 = vrot.lane.b32.xlu1 %v3144_v13, %s11321_s17  ;;  %v1615_v28 = vshll.u32 %v1357_v19, 16  ;;  %v3141_v62 = vsel %vm11511_vm6, %v10318_v17, %v3140_v25 }
 0x13f   : > { %2401 = vst.msk [vmem:[#allocation3 + $0x40] sm:$0xf] %vm2392_vm4, %v2313_v21  ;;  %v3341_v41 = vld [vmem:[#allocation2 + $0x7c] sm:$0xf]  ;;  %v1598_v57 = vrot.slane %v1596_v26, 4  ;;  %v1601_v44 = vrot.slane %v1599_v8, 5  ;;  %2889 = vrot.lane.b32.xlu0 %v2678_v40, %s11322_s14  ;;  %v1612_v53 = vor.u32 %v1611_v23, %v12611_v34  ;;  %v3764_v55 = vor.u32 %v3763_v32, %v3760_v37 }
 0x140   : > { %v3775_v52 = vrot.slane %v3774_v33, 4  ;;  %v3779_v4 = vrot.slane %v3777_v49, 5  ;;  %v1240_v29 = vld [vmem:[#allocation2 + $0xa4] sm:$0x1]  ;;  %v3213_v7 = vpop.permute.xlu1 %3212  ;;  %v2699_v39 = vshll.u32 %v2453_v24, 16  ;;  %v2703_v35 = vshrl.u32 %v2453_v24, 16 }
 0x141   : > { %v1236_v47 = vld [vmem:[#allocation2 + $0x9c] sm:$0xf]  ;;  %v1241_v43 = vsel %vm11525_vm10, %v1049_v18, %v1240_v29  ;;  %3300 = vst.msk [vmem:[#allocation3 + $0x48] sm:$0xf] %vm17144_vm11, %v3213_v7  ;;  %v2874_v51 = vpop.permute.xlu0 %2873  ;;  %v1921_v25 = vld [vmem:[#allocation2 + $0x74] sm:$0x1]  ;;  %v1602_v56 = vor.u32 %v1601_v44, %v1598_v57 }
 0x142   : > { %1242 = vst [vmem:[#allocation2 + $0xa4] sm:$0x1] %v1241_v43  ;;  %v1237_v42 = vsel %vm11571_vm14, %v1039_v61, %v1236_v47  ;;  %3422 = vrot.lane.b32.xlu1 %v3341_v41, %s11320_s28  ;;  %2962 = vst.msk [vmem:[#allocation3 + $0x40] sm:$0xf] %vm2953_vm9, %v2874_v51  ;;  %v2056_v22 = vrot.slane %v12618_v15, 5  ;;  %v3780_v63 = vsel %vm11585_vm15, %v3775_v52, %v3779_v4  ;;  %v1613_v36 = vrot.slane %v1612_v53, 4 }
 0x143   : > { %v2452_v30 = vld [vmem:[#allocation2 + $0x78] sm:$0xf]  ;;  %1238 = vst [vmem:[#allocation2 + $0x9c] sm:$0xf] %v1237_v42  ;;  %3226 = vrot.lane.b32.xlu0 %v3141_v62, %s11321_s17  ;;  %v1617_v60 = vrot.slane %v1615_v28, 5  ;;  %v3765_v50 = vrot.slane %v3764_v55, 4 }
 0x144   : > { %v3407_v20 = vpop.permute.xlu1 %3406  ;;  %v3340_v38 = vld [vmem:[#allocation2 + $0x78] sm:$0xf]  ;;  %v12640_v6 = vrot.slane %v2699_v39, 5  ;;  %v2705_v11 = vrot.slane %v2703_v35, 4  ;;  %v2059_v10 = vrot.slane %v1921_v25, 5  ;;  %v2690_v48 = vshrl.u32 %v2452_v30, 16 }
 0x145   : > { %3494 = vst.msk [vmem:[#allocation3 + $0x48] sm:$0xf] %vm17142_vm12, %v3407_v20  ;;  %v3211_v5 = vpop.permute.xlu0 %3210  ;;  %v12643_v54 = vld [vmem:[#allocation2 + $0x6c] sm:$0xe]  ;;  %v2693_v31 = vshll.u32 %v2452_v30, 16  ;;  %v2058_v58 = vrot.slane %v2056_v22, 4  ;;  %v1618_v46 = vsel %vm11585_vm15, %v1613_v36, %v1617_v60  ;;  %v3770_v49 = vsel %vm11585_vm15, %v3765_v50, %v12594_v3 }
 0x146   : > { %3983 = vrot.lane.b32.xlu1 %v3780_v63, %s11323_s18  ;;  %3299 = vst.msk [vmem:[#allocation3 + $0x40] sm:$0xf] %vm17144_vm11, %v3211_v5  ;;  %v1603_v13 = vrot.slane %v1602_v56, 4  ;;  %v2454_v14 = vld [vmem:[#allocation2 + $0x80] sm:$0x1]  ;;  %v2706_v19 = vor.u32 %v2705_v11, %v12640_v6  ;;  %v2692_v18 = vrot.slane %v2690_v48, 4 }
 0x147   : > { %v1283_v16 = vld [vmem:[#allocation2 + $0x70] sm:$0xf]  ;;  %3420 = vrot.lane.b32.xlu0 %v3340_v38, %s11320_s28  ;;  %v3545_v17 = vld [vmem:[#allocation2 + $0x88] sm:$0xf]  ;;  %v4099_v26 = vld [vmem:[#allocation2 + $0x6c] sm:$0xe]  ;;  %v2060_v44 = vsel %vm11511_vm6, %v2058_v58, %v2059_v10 }
 0x148   : > { %1315 = vst.msk [vmem:[#allocation3 + $0x98] sm:$0xf] %vm625_vm0, %v1283_v16  ;;  %v1282_v8 = vld [vmem:[#allocation2 + $0x6c] sm:$0xf]  ;;  %v3968_v33 = vpop.permute.xlu1 %3967  ;;  %v12657_v23 = vld [vmem:[#allocation2 + $0x7c] sm:$0xf]  ;;  %v1608_v62 = vsel %vm11585_vm15, %v1603_v13, %v12611_v34 }
 0x149   : > { %v12659_v45 = vld [vmem:[#allocation2 + $0x7c] sm:$0xf]  ;;  %v4100_v40 = vld [vmem:[#allocation2 + $0x70] sm:$0xf]  ;;  %1314 = vst.msk [vmem:[#allocation3 + $0x90] sm:$0xf] %vm625_vm0, %v1282_v8  ;;  %v3405_v37 = vpop.permute.xlu0 %3404 }
 0x14a   : > { %4055 = vst.msk [vmem:[#allocation3 + $0x48] sm:$0xf] %vm17143_vm2, %v3968_v33  ;;  %v2709_v32 = vshll.u32 %v2454_v14, 16  ;;  %v2695_v21 = vrot.slane %v2693_v31, 5  ;;  %v4101_v24 = vld [vmem:[#allocation2 + $0x74] sm:$0x1]  ;;  %1801 = vrot.lane.b32.xlu1 %v1618_v46, %s11318_s23 }
 0x14b   : > { %v378_v61 = vld [vmem:[%s11483_s27 + $0xd0] sm:$0xff]  ;;  %3493 = vst.msk [vmem:[#allocation3 + $0x40] sm:$0xf] %vm17142_vm12, %v3405_v37  ;;  %v10303_v3 = vrot.slane %v12643_v54, 9  ;;  %v3791_v41 = vshll.u32 %v3545_v17, 16  ;;  %v3795_v28 = vshrl.u32 %v3545_v17, 16  ;;  %3981 = vrot.lane.b32.xlu0 %v3770_v49, %s11323_s18 }
 0x14c   : > { %v10333_v57 = vrot.slane %v4099_v26, 9  ;;  %v3147_v52 = vrot.slane %v12657_v23, 5  ;;  %v4225_v4 = vrot.slane %v4100_v40, 5  ;;  %v379_v53 = vld [vmem:[%s11483_s27 + $0xd8] sm:$0xff]  ;;  %v1786_v29 = vpop.permute.xlu1 %1785  ;;  %v12675_v47 = vrot.slane %v2706_v19, 4 }
 0x14d   : > { %v12677_v7 = vld [vmem:[#allocation2 + $0x80] sm:$0x1]  ;;  %v1629_v55 = vshll.u32 %v12659_v45, 16  ;;  %v4228_v39 = vrot.slane %v4101_v24, 5  ;;  %v12680_v35 = vpack.c.bf16 %v378_v61, %v378_v61  ;;  %1871 = vst.msk [vmem:[#allocation3 + $0x58] sm:$0xf] %vm1859_vm1, %v1786_v29  ;;  %v3966_v43 = vpop.permute.xlu0 %3965  ;;  %v2696_v34 = vor.u32 %v2695_v21, %v2692_v18 }
 0x14e   : > { %v12683_v51 = vrot.slane %v2709_v32, 5  ;;  %v1633_v42 = vshrl.u32 %v12659_v45, 16  ;;  %v4226_v25 = vsel %vm11511_vm6, %v10333_v57, %v4225_v4  ;;  %2141 = vrot.lane.b32.xlu1 %v2060_v44, %s11317_s20  ;;  %4054 = vst.msk [vmem:[#allocation3 + $0x40] sm:$0xf] %vm17143_vm2, %v3966_v43  ;;  %v12690_v56 = vrot.slane %v3791_v41, 5 }
 0x14f   : > { %v12692_v30 = vrot.slane %v3795_v28, 4  ;;  %v4227_v63 = vrot.slane %v4225_v4, 4  ;;  %4332 = vst.msk [vmem:[#allocation3 + $0x74] sm:$0xf] %vm625_vm0, %v4226_v25  ;;  %v5116_v36 = vld [vmem:[#allocation4 + $0xc] sm:$0x1]  ;;  %v12695_v60 = vpack.c.bf16 %v379_v53, %v379_v53  ;;  %1799 = vrot.lane.b32.xlu0 %v1608_v62, %s11318_s23  ;;  %v2057_v5 = vsel %vm11511_vm6, %v10303_v3, %v2056_v22 }
 0x150   : > { %v2251_v20 = vld [vmem:[#allocation2 + $0x7c] sm:$0xf]  ;;  %v3149_v38 = vrot.slane %v3147_v52, 4  ;;  %v3150_v50 = vrot.slane %v12677_v7, 5  ;;  %vm5105_vm12 = vcmask 253952   ;;  %v2126_v11 = vpop.permute.xlu1 %2125  ;;  %v12707_v54 = vrot.slane %v1629_v55, 5 }
 0x151   : > { %v12705_v10 = vld [vmem:[#allocation2 + $0x78] sm:$0xe]  ;;  %v12709_v48 = vld [vmem:[#allocation2 + $0x84] sm:$0xf]  ;;  %v4229_v58 = vsel %vm11511_vm6, %v4227_v63, %v4228_v39  ;;  %vm12717_vm2 = vmand %vm5105_vm12, %vm635_vm7  ;;  %5106 = vst.msk [vmem:[#allocation4 + $0x8] sm:$0x1] %vm5105_vm12, %v11316_v0  ;;  %v1784_v14 = vpop.permute.xlu0 %1783  ;;  %v2712_v16 = vsel %vm11585_vm15, %v12675_v47, %v12683_v51  ;;  %v3798_v19 = vor.u32 %v12692_v30, %v12690_v56 }
 0x152   : > { %v12711_v31 = vld [vmem:[#allocation2 + $0x78] sm:$0xf]  ;;  %5110 = vst.msk [vmem:[#allocation4 + $0xd4] sm:$0x1] %vm5105_vm12, %v11316_v0  ;;  %v1051_v15 = vshrl.u32 %v12680_v35, 16  ;;  %v12731_v46 = vrot.slane %v2696_v34, 4  ;;  %2334 = vrot.lane.b32.xlu1 %v2251_v20, %s11319_s29  ;;  %v3151_v7 = vsel %vm11511_vm6, %v3149_v38, %v3150_v50 }
 0x153   : > { %v5171_v22 = vld [vmem:[#allocation4 + $0x14] sm:$0x1]  ;;  %2211 = vst.msk [vmem:[#allocation3 + $0x58] sm:$0xf] %vm2199_vm3, %v2126_v11  ;;  %v5117_v17 = vsel %vm12717_vm2, 0, %v5116_v36  ;;  %v12748_v45 = vrot.slane %v1633_v42, 4  ;;  %2139 = vrot.lane.b32.xlu0 %v2057_v5, %s11317_s20 }
 0x154   : > { %4333 = vst.msk [vmem:[#allocation3 + $0x7c] sm:$0xf] %vm625_vm0, %v4229_v58  ;;  %vm17214_vm7 = vsmask.f32 7938  ;;  %v735_v26 = vld [vmem:[#allocation2 + $0xb0] sm:$0x1]  ;;  %v2319_v41 = vpop.permute.xlu1 %2318 }
 0x155   : > { %vm12738_vm11 = vmand %vm5105_vm12, %vm17214_vm7  ;;  %v679_v8 = vld [vmem:[#allocation2 + $0xa8] sm:$0x1]  ;;  %1870 = vst.msk [vmem:[#allocation3 + $0x50] sm:$0xf] %vm1859_vm1, %v1784_v14  ;;  %v2250_v33 = vld [vmem:[#allocation2 + $0x78] sm:$0xf]  ;;  %v2124_v53 = vpop.permute.xlu0 %2123  ;;  %v1636_v63 = vor.u32 %v12748_v45, %v12707_v54 }
 0x156   : > { %v12744_v49 = vld [vmem:[#allocation2 + $0x8c] sm:$0x1]  ;;  %v12750_v40 = vld [vmem:[#allocation2 + $0x7c] sm:$0xf]  ;;  %5118 = vst [vmem:[#allocation4 + $0xc] sm:$0x1] %v5117_v17  ;;  %2895 = vrot.lane.b32.xlu1 %v2712_v16, %s11322_s14 }
 0x157   : > { %v1053_v37 = vrot.slane %v1051_v15, 7  ;;  %v1059_v32 = vshrl.u32 %v12695_v60, 16  ;;  %v4359_v18 = vld [vmem:[#allocation3 + $0x48] sm:$0xff]  ;;  %v3782_v21 = vshrl.u32 %v12709_v48, 16  ;;  %v3785_v24 = vshll.u32 %v12709_v48, 16  ;;  %v4358_v29 = vld [vmem:[#allocation3 + $0x40] sm:$0xff]  ;;  %2332 = vrot.lane.b32.xlu0 %v2250_v33, %s11319_s29 }
 0x158   : > { %v1062_v61 = vshll.u32 %v12695_v60, 16  ;;  %v5172_v3 = vsel %vm12738_vm11, 0, %v5171_v22  ;;  %v1360_v28 = vld [vmem:[#allocation2 + $0x80] sm:$0x1]  ;;  %v736_v62 = vsel %vm11517_vm8, 0, %v735_v26  ;;  %v680_v4 = vsel %vm11525_vm10, 0, %v679_v8  ;;  %v2880_v50 = vpop.permute.xlu1 %2879 }
 0x159   : > { %v1057_v57 = vrot.slane %v1053_v37, 4  ;;  %v12759_v44 = vrot.slane %v1059_v32, 7  ;;  %5173 = vst [vmem:[#allocation4 + $0x14] sm:$0x1] %v5172_v3  ;;  %2404 = vst.msk [vmem:[#allocation3 + $0x58] sm:$0xf] %vm2392_vm4, %v2319_v41  ;;  %v10351_v51 = vcombine.low %v4358_v29, %v4359_v18 }
 0x15a   : > { %v10955_v47 = vld [vmem:[#allocation3 + $0x44] ss:$8 sps:$4 sm:$0xff]   ;;  %v10319_v55 = vrot.slane %v12705_v10, 9  ;;  %v1620_v39 = vshrl.u32 %v12711_v31, 16  ;;  %737 = vst [vmem:[#allocation2 + $0xb0] sm:$0x1] %v736_v62  ;;  %3232 = vrot.lane.b32.xlu1 %v3151_v7, %s11321_s17 }
 0x15b   : > { %681 = vst [vmem:[#allocation2 + $0xa8] sm:$0x1] %v680_v4  ;;  %v1054_v43 = vshll.u32 %v12680_v35, 16  ;;  %2210 = vst.msk [vmem:[#allocation3 + $0x50] sm:$0xf] %vm2199_vm3, %v2124_v53  ;;  %v3801_v34 = vshll.u32 %v12744_v49, 16  ;;  %v1064_v25 = vor.u32 %v1062_v61, %v12759_v44  ;;  %10388 = vmatprep.mubr.msk.bf16.mxu1 %vm415_vm5, %v10955_v47  ;;  %v2702_v35 = vsel %vm11585_vm15, %v12731_v46, %v12640_v6  ;;  %v2317_v6 = vpop.permute.xlu0 %2316 }
 0x15c   : > { %v1623_v42 = vshll.u32 %v12711_v31, 16  ;;  %v380_v30 = vld [vmem:[%s11483_s27 + $0xe0] sm:$0xff]  ;;  %v1639_v36 = vshll.u32 %v1360_v28, 16  ;;  %v2063_v60 = vrot.slane %v12750_v40, 5  ;;  %v4102_v20 = vld [vmem:[#allocation2 + $0x78] sm:$0xe]  ;;  %4718 = vmatmul.mubr.bf16.gmra.mxu1 %v10351_v51  ;;  %2893 = vrot.lane.b32.xlu0 %v2702_v35, %s11322_s14 }
 0x15d   : > { %v4103_v38 = vld [vmem:[#allocation2 + $0x7c] sm:$0xf]  ;;  %v12786_v11 = vrot.slane %v3798_v19, 4  ;;  %v3784_v5 = vrot.slane %v3782_v21, 4  ;;  %v3787_v10 = vrot.slane %v3785_v24, 5  ;;  %v1065_v48 = vsel %vm11542_vm13, %v1057_v57, %v1064_v25  ;;  %v3217_v24 = vpop.permute.xlu1 %3216 }
 0x15e   : > { %v4104_v31 = vld [vmem:[#allocation2 + $0x80] sm:$0x1]  ;;  %v381_v58 = vld [vmem:[%s11483_s27 + $0xe8] sm:$0xff]  ;;  %2965 = vst.msk [vmem:[#allocation3 + $0x58] sm:$0xf] %vm2953_vm9, %v2880_v50  ;;  %v12792_v15 = vrot.slane %v1620_v39, 4  ;;  %v1056_v16 = vor.u32 %v1054_v43, %v1053_v37  ;;  %v12798_v46 = vpack.c.bf16 %v380_v30, %v380_v30  ;;  %v3148_v19 = vsel %vm11511_vm6, %v10319_v55, %v3147_v52 }
 0x15f   : > { %v12794_v22 = vld [vmem:[#allocation2 + $0x88] sm:$0xf]  ;;  %v1066_v14 = vrot.slane %v12759_v44, 4  ;;  %1246 = vst.msk [vmem:[#allocation2 + $0xac] sm:$0xf] %vm625_vm0, %v1065_v48  ;;  %v3803_v26 = vrot.slane %v3801_v34, 5  ;;  %v12809_v32 = vpack.c.bf16 %v381_v58, %v381_v58  ;;  %v3788_v61 = vor.u32 %v3787_v10, %v3784_v5  ;;  %v2878_v52 = vpop.permute.xlu0 %2877 }
 0x160   : > { %2403 = vst.msk [vmem:[#allocation3 + $0x50] sm:$0xf] %vm2392_vm4, %v2317_v6  ;;  %v3343_v17 = vld [vmem:[#allocation2 + $0x88] sm:$0xf]  ;;  %v1625_v8 = vrot.slane %v1623_v42, 5  ;;  %v10334_v33 = vrot.slane %v4102_v20, 9  ;;  %3230 = vrot.lane.b32.xlu0 %v3148_v19, %s11321_s17 }
 0x161   : > { %v4232_v49 = vrot.slane %v4103_v38, 5  ;;  %v12807_v45 = vrot.slane %v1639_v36, 5  ;;  %v4235_v37 = vrot.slane %v4104_v31, 5  ;;  %v738_v18 = vld [vmem:[#allocation2 + $0xbc] sm:$0x1]  ;;  %v2723_v41 = vshll.u32 %v12794_v22, 16  ;;  %3426 = vrot.lane.b32.xlu1 %v3343_v17, %s11320_s28  ;;  %v3411_v35 = vpop.permute.xlu1 %3410 }
 0x162   : > { %v682_v21 = vld [vmem:[#allocation2 + $0xb4] sm:$0x1]  ;;  %v12811_v3 = vld [vmem:[#allocation2 + $0x80] sm:$0x1]  ;;  %v1247_v28 = vld [vmem:[#allocation2 + $0xb0] sm:$0x1]  ;;  %v3804_v55 = vsel %vm11585_vm15, %v12786_v11, %v3803_v26  ;;  %v1626_v39 = vor.u32 %v1625_v8, %v12792_v15 }
 0x163   : > { %v1243_v57 = vld [vmem:[#allocation2 + $0xa8] sm:$0xf]  ;;  %v4233_v23 = vsel %vm11511_vm6, %v10334_v33, %v4232_v49  ;;  %v4234_v44 = vrot.slane %v4232_v49, 4  ;;  %vm17217_vm12 = vcmask 781952   ;;  %v1637_v62 = vrot.slane %v1636_v63, 4  ;;  %v3215_v20 = vpop.permute.xlu0 %3214 }
 0x164   : > { %3302 = vst.msk [vmem:[#allocation3 + $0x58] sm:$0xf] %vm17217_vm12, %v3217_v24  ;;  %v1248_v4 = vsel %vm11525_vm10, %v1066_v14, %v1247_v28  ;;  %v1244_v53 = vsel %vm11571_vm14, %v1056_v16, %v1243_v57  ;;  %v1068_v29 = vshrl.u32 %v12798_v46, 16  ;;  %v1285_v47 = vld [vmem:[#allocation2 + $0x7c] sm:$0xf]  ;;  %v2727_v43 = vshrl.u32 %v12794_v22, 16 }
 0x165   : > { %4334 = vst.msk [vmem:[#allocation3 + $0x84] sm:$0xf] %vm625_vm0, %v4233_v23  ;;  %v1284_v7 = vld [vmem:[#allocation2 + $0x78] sm:$0xf]  ;;  %1249 = vst [vmem:[#allocation2 + $0xb0] sm:$0x1] %v1248_v4  ;;  %v4236_v51 = vsel %vm11511_vm6, %v4234_v44, %v4235_v37  ;;  %3987 = vrot.lane.b32.xlu1 %v3804_v55, %s11323_s18  ;;  %v1642_v5 = vsel %vm11585_vm15, %v1637_v62, %v12807_v45  ;;  %v3972_v17 = vpop.permute.xlu1 %3971 }
 0x166   : > { %2964 = vst.msk [vmem:[#allocation3 + $0x50] sm:$0xf] %vm2953_vm9, %v2878_v52  ;;  %1245 = vst [vmem:[#allocation2 + $0xa8] sm:$0xf] %v1244_v53  ;;  %v1070_v34 = vrot.slane %v1068_v29, 7  ;;  %v1076_v42 = vshrl.u32 %v12809_v32, 16 }
 0x167   : > { %1317 = vst.msk [vmem:[#allocation3 + $0xa8] sm:$0xf] %vm625_vm0, %v1285_v47  ;;  %1316 = vst.msk [vmem:[#allocation3 + $0xa0] sm:$0xf] %vm625_vm0, %v1284_v7  ;;  %v739_v25 = vsel %vm11517_vm8, 0, %v738_v18  ;;  %v683_v30 = vsel %vm11525_vm10, 0, %v682_v21  ;;  %v3409_v45 = vpop.permute.xlu0 %3408 }
 0x168   : > { %4335 = vst.msk [vmem:[#allocation3 + $0x8c] sm:$0xf] %vm625_vm0, %v4236_v51  ;;  %v3342_v63 = vld [vmem:[#allocation2 + $0x84] sm:$0xf]  ;;  %v3789_v36 = vrot.slane %v3788_v61, 4  ;;  %vm17218_vm7 = vcmask 913152  }
 0x169   : > { %740 = vst [vmem:[#allocation2 + $0xbc] sm:$0x1] %v739_v25  ;;  %684 = vst [vmem:[#allocation2 + $0xb4] sm:$0x1] %v683_v30  ;;  %v2066_v38 = vrot.slane %v12811_v3, 5  ;;  %v1079_v11 = vshll.u32 %v12809_v32, 16  ;;  %3424 = vrot.lane.b32.xlu0 %v3342_v63, %s11320_s28  ;;  %1805 = vrot.lane.b32.xlu1 %v1642_v5, %s11318_s23  ;;  %v1790_v61 = vpop.permute.xlu1 %1789 }
 0x16a   : > { %3496 = vst.msk [vmem:[#allocation3 + $0x58] sm:$0xf] %vm17218_vm7, %v3411_v35  ;;  %v2455_v50 = vld [vmem:[#allocation2 + $0x84] sm:$0xf]  ;;  %v2065_v10 = vrot.slane %v2063_v60, 4  ;;  %v12851_v48 = vrot.slane %v2723_v41, 5  ;;  %v3794_v26 = vsel %vm11585_vm15, %v3789_v36, %v12690_v56 }
 0x16b   : > { %3301 = vst.msk [vmem:[#allocation3 + $0x50] sm:$0xf] %vm17217_vm12, %v3215_v20  ;;  %v2729_v31 = vrot.slane %v2727_v43, 4  ;;  %v5119_v58 = vld [vmem:[#allocation4 + $0x18] sm:$0x1]  ;;  %v1627_v6 = vrot.slane %v1626_v39, 4  ;;  %v3970_v52 = vpop.permute.xlu0 %3969 }
 0x16c   : > { %v2457_v15 = vld [vmem:[#allocation2 + $0x8c] sm:$0x1]  ;;  %v5120_v22 = vsel %vm12717_vm2, 0, %v5119_v58  ;;  %v1074_v14 = vrot.slane %v1070_v34, 4  ;;  %v1078_v16 = vrot.slane %v1076_v42, 7  ;;  %v2714_v33 = vshrl.u32 %v2455_v50, 16 }
 0x16d   : > { %v1922_v8 = vld [vmem:[#allocation2 + $0x78] sm:$0xe]  ;;  %v2717_v49 = vshll.u32 %v2455_v50, 16  ;;  %5121 = vst [vmem:[#allocation4 + $0x18] sm:$0x1] %v5120_v22  ;;  %v1071_v19 = vshll.u32 %v12798_v46, 16  ;;  %v2730_v32 = vor.u32 %v2729_v31, %v12851_v48  ;;  %3985 = vrot.lane.b32.xlu0 %v3794_v26, %s11323_s18  ;;  %v2067_v56 = vsel %vm11511_vm6, %v2065_v10, %v2066_v38  ;;  %v2130_v25 = vpop.permute.xlu1 %2129 }
 0x16e   : > { %vm17219_vm7 = vcmask 1044352   ;;  %v1081_v37 = vor.u32 %v1079_v11, %v1078_v16  ;;  %vm17220_vm12 = vcmask 913152   ;;  %v2733_v18 = vshll.u32 %v2457_v15, 16  ;;  %v12867_v24 = vld [vmem:[#allocation2 + $0x88] sm:$0xf]  ;;  %2145 = vrot.lane.b32.xlu1 %v2067_v56, %s11317_s20 }
 0x16f   : > { %4057 = vst.msk [vmem:[#allocation3 + $0x58] sm:$0xf] %vm17219_vm7, %v3972_v17  ;;  %v10304_v21 = vrot.slane %v1922_v8, 9  ;;  %v1632_v3 = vsel %vm11585_vm15, %v1627_v6, %v12707_v54  ;;  %v2716_v41 = vrot.slane %v2714_v33, 4  ;;  %v2719_v28 = vrot.slane %v2717_v49, 5  ;;  %v1788_v20 = vpop.permute.xlu0 %1787 }
 0x170   : > { %3495 = vst.msk [vmem:[#allocation3 + $0x50] sm:$0xf] %vm17220_vm12, %v3409_v45  ;;  %v1082_v46 = vsel %vm11542_vm13, %v1074_v14, %v1081_v37  ;;  %v3548_v57 = vld [vmem:[#allocation2 + $0x94] sm:$0xf]  ;;  %v5174_v23 = vld [vmem:[#allocation4 + $0x20] sm:$0x1]  ;;  %v1073_v44 = vor.u32 %v1071_v19, %v1070_v34 }
 0x171   : > { %1253 = vst.msk [vmem:[#allocation2 + $0xb8] sm:$0xf] %vm625_vm0, %v1082_v46  ;;  %v2253_v62 = vld [vmem:[#allocation2 + $0x88] sm:$0xf]  ;;  %v5175_v53 = vsel %vm12738_vm11, 0, %v5174_v23  ;;  %v1083_v29 = vrot.slane %v1078_v16, 4  ;;  %1803 = vrot.lane.b32.xlu0 %v1632_v3, %s11318_s23  ;;  %v2064_v30 = vsel %vm11511_vm6, %v10304_v21, %v2063_v60  ;;  %v2720_v35 = vor.u32 %v2719_v28, %v2716_v41  ;;  %v2323_v22 = vpop.permute.xlu1 %2322 }
 0x172   : > { %1873 = vst.msk [vmem:[#allocation3 + $0x68] sm:$0xf] %vm1859_vm1, %v1790_v61  ;;  %v1362_v4 = vld [vmem:[#allocation2 + $0x88] sm:$0xf]  ;;  %v2731_v54 = vrot.slane %v2730_v32, 4  ;;  %v2735_v47 = vrot.slane %v2733_v18, 5  ;;  %2338 = vrot.lane.b32.xlu1 %v2253_v62, %s11319_s29 }
 0x173   : > { %4056 = vst.msk [vmem:[#allocation3 + $0x50] sm:$0xf] %vm17219_vm7, %v3970_v52  ;;  %v3018_v7 = vld [vmem:[#allocation2 + $0x8c] sm:$0x1]  ;;  %5176 = vst [vmem:[#allocation4 + $0x20] sm:$0x1] %v5175_v53  ;;  %v2128_v33 = vpop.permute.xlu0 %2127 }
 0x174   : > { %v1254_v55 = vld [vmem:[#allocation2 + $0xbc] sm:$0x1]  ;;  %v3154_v39 = vrot.slane %v12867_v24, 5  ;;  %v3815_v43 = vshll.u32 %v3548_v57, 16  ;;  %v3819_v51 = vshrl.u32 %v3548_v57, 16  ;;  %v1653_v63 = vshll.u32 %v1362_v4, 16 }
 0x175   : > { %v1255_v34 = vsel %vm11525_vm10, %v1083_v29, %v1254_v55  ;;  %v1250_v42 = vld [vmem:[#allocation2 + $0xb4] sm:$0xf]  ;;  %2213 = vst.msk [vmem:[#allocation3 + $0x68] sm:$0xf] %vm2199_vm3, %v2130_v25  ;;  %v1657_v38 = vshrl.u32 %v1362_v4, 16  ;;  %v3157_v11 = vrot.slane %v3018_v7, 5  ;;  %2143 = vrot.lane.b32.xlu0 %v2064_v30, %s11317_s20  ;;  %v2736_v60 = vsel %vm11585_vm15, %v2731_v54, %v2735_v47  ;;  %v2884_v28 = vpop.permute.xlu1 %2883 }
 0x176   : > { %1256 = vst [vmem:[#allocation2 + $0xbc] sm:$0x1] %v1255_v34  ;;  %v1251_v36 = vsel %vm11571_vm14, %v1073_v44, %v1250_v42  ;;  %v3547_v50 = vld [vmem:[#allocation2 + $0x90] sm:$0xf]  ;;  %1872 = vst.msk [vmem:[#allocation3 + $0x60] sm:$0xf] %vm1859_vm1, %v1788_v20  ;;  %2899 = vrot.lane.b32.xlu1 %v2736_v60, %s11322_s14 }
 0x177   : > { %1252 = vst [vmem:[#allocation2 + $0xb4] sm:$0xf] %v1251_v36  ;;  %v2252_v40 = vld [vmem:[#allocation2 + $0x84] sm:$0xf]  ;;  %v4361_v10 = vld [vmem:[#allocation3 + $0x58] sm:$0xff]  ;;  %v3156_v31 = vrot.slane %v3154_v39, 4  ;;  %v2321_v4 = vpop.permute.xlu0 %2320 }
 0x178   : > { %v1361_v5 = vld [vmem:[#allocation2 + $0x84] sm:$0xf]  ;;  %v12898_v6 = vrot.slane %v3815_v43, 5  ;;  %v3821_v15 = vrot.slane %v3819_v51, 4  ;;  %v2721_v14 = vrot.slane %v2720_v35, 4  ;;  %v12900_v17 = vrot.slane %v1653_v63, 5 }
 0x179   : > { %v3016_v58 = vld [vmem:[#allocation2 + $0x84] sm:$0xe]  ;;  %v3549_v16 = vld [vmem:[#allocation2 + $0x98] sm:$0x1]  ;;  %v3806_v26 = vshrl.u32 %v3547_v50, 16  ;;  %v3809_v8 = vshll.u32 %v3547_v50, 16  ;;  %2336 = vrot.lane.b32.xlu0 %v2252_v40, %s11319_s29  ;;  %v3158_v21 = vsel %vm11511_vm6, %v3156_v31, %v3157_v11  ;;  %v3221_v63 = vpop.permute.xlu1 %3220 }
 0x17a   : > { %2406 = vst.msk [vmem:[#allocation3 + $0x68] sm:$0xf] %vm2392_vm4, %v2323_v22  ;;  %v4360_v49 = vld [vmem:[#allocation3 + $0x50] sm:$0xff]  ;;  %v1659_v45 = vrot.slane %v1657_v38, 4  ;;  %v1644_v37 = vshrl.u32 %v1361_v5, 16  ;;  %v1647_v32 = vshll.u32 %v1361_v5, 16  ;;  %v3822_v61 = vor.u32 %v3821_v15, %v12898_v6  ;;  %3236 = vrot.lane.b32.xlu1 %v3158_v21, %s11321_s17 }
 0x17b   : > { %v10957_v19 = vld [vmem:[#allocation3 + $0x54] ss:$8 sps:$4 sm:$0xff]   ;;  %2212 = vst.msk [vmem:[#allocation3 + $0x60] sm:$0xf] %vm2199_vm3, %v2128_v33  ;;  %v10353_v18 = vcombine.low %v4360_v49, %v4361_v10  ;;  %v10320_v46 = vrot.slane %v3016_v58, 9  ;;  %v3825_v3 = vshll.u32 %v3549_v16, 16  ;;  %v2726_v57 = vsel %vm11585_vm15, %v2721_v14, %v12851_v48  ;;  %v2882_v11 = vpop.permute.xlu0 %2881 }
 0x17c   : > { %v1363_v56 = vld [vmem:[#allocation2 + $0x8c] sm:$0x1]  ;;  %10389 = vmatprep.mubr.msk.bf16.mxu1 %vm415_vm5, %v10957_v19  ;;  %v2459_v41 = vld [vmem:[#allocation2 + $0x94] sm:$0xf]  ;;  %v3808_v23 = vrot.slane %v3806_v26, 4  ;;  %v3811_v44 = vrot.slane %v3809_v8, 5  ;;  %v1660_v53 = vor.u32 %v1659_v45, %v12900_v17 }
 0x17d   : > { %4726 = vmatmul.mubr.bf16.gmra.mxu1 %v10353_v18  ;;  %v12913_v52 = vld [vmem:[#allocation2 + $0x88] sm:$0xf]  ;;  %v12915_v62 = vld [vmem:[#allocation2 + $0x8c] sm:$0x1]  ;;  %2967 = vst.msk [vmem:[#allocation3 + $0x68] sm:$0xf] %vm2953_vm9, %v2884_v28  ;;  %2897 = vrot.lane.b32.xlu0 %v2726_v57, %s11322_s14  ;;  %v3155_v34 = vsel %vm11511_vm6, %v10320_v46, %v3154_v39  ;;  %v3415_v19 = vpop.permute.xlu1 %3414 }
 0x17e   : > { %v1663_v29 = vshll.u32 %v1363_v56, 16  ;;  %v12919_v54 = vrot.slane %v1644_v37, 4  ;;  %v12921_v47 = vrot.slane %v1647_v32, 5  ;;  %v4105_v7 = vld [vmem:[#allocation2 + $0x84] sm:$0xe]  ;;  %v2747_v55 = vshll.u32 %v2459_v41, 16 }
 0x17f   : > { %2405 = vst.msk [vmem:[#allocation3 + $0x60] sm:$0xf] %vm2392_vm4, %v2321_v4  ;;  %v3345_v48 = vld [vmem:[#allocation2 + $0x94] sm:$0xf]  ;;  %v2751_v43 = vshrl.u32 %v2459_v41, 16  ;;  %v3823_v42 = vrot.slane %v3822_v61, 4  ;;  %v3812_v36 = vor.u32 %v3811_v44, %v3808_v23  ;;  %v3219_v21 = vpop.permute.xlu0 %3218 }
 0x180   : > { %v4106_v51 = vld [vmem:[#allocation2 + $0x88] sm:$0xf]  ;;  %v3827_v25 = vrot.slane %v3825_v3, 5  ;;  %v4107_v30 = vld [vmem:[#allocation2 + $0x8c] sm:$0x1]  ;;  %v382_v35 = vld [vmem:[%s11483_s27 + $0xf0] sm:$0xff]  ;;  %v1650_v39 = vor.u32 %v12921_v47, %v12919_v54  ;;  %3430 = vrot.lane.b32.xlu1 %v3345_v48, %s11320_s28 }
 0x181   : > { %v2070_v20 = vrot.slane %v12913_v52, 5  ;;  %v2073_v38 = vrot.slane %v12915_v62, 5  ;;  %v10335_v50 = vrot.slane %v4105_v7, 9  ;;  %v383_v40 = vld [vmem:[%s11483_s27 + $0xf8] sm:$0xff]  ;;  %vm17221_vm12 = vcmask 781952   ;;  %3234 = vrot.lane.b32.xlu0 %v3155_v34, %s11321_s17  ;;  %v3976_v48 = vpop.permute.xlu1 %3975 }
 0x182   : > { %3304 = vst.msk [vmem:[#allocation3 + $0x68] sm:$0xf] %vm17221_vm12, %v3221_v63  ;;  %v12935_v5 = vrot.slane %v1660_v53, 4  ;;  %v1665_v24 = vrot.slane %v1663_v29, 5  ;;  %v2458_v60 = vld [vmem:[#allocation2 + $0x90] sm:$0xf]  ;;  %v12943_v22 = vpack.c.bf16 %v382_v35, %v382_v35  ;;  %v3828_v14 = vsel %vm11585_vm15, %v3823_v42, %v3827_v25 }
 0x183   : > { %v4239_v10 = vrot.slane %v4106_v51, 5  ;;  %2966 = vst.msk [vmem:[#allocation3 + $0x60] sm:$0xf] %vm2953_vm9, %v2882_v11  ;;  %v12941_v31 = vrot.slane %v2747_v55, 5  ;;  %v2753_v58 = vrot.slane %v2751_v43, 4  ;;  %v4242_v15 = vrot.slane %v4107_v30, 5  ;;  %v3413_v25 = vpop.permute.xlu0 %3412 }
 0x184   : > { %v12948_v16 = vld [vmem:[#allocation2 + $0x94] sm:$0xf]  ;;  %v10602_v33 = vpack.c.bf16 %v383_v40, %v383_v40  ;;  %v1287_v49 = vld [vmem:[#allocation2 + $0x88] sm:$0xf]  ;;  %v3344_v45 = vld [vmem:[#allocation2 + $0x90] sm:$0xf]  ;;  %3991 = vrot.lane.b32.xlu1 %v3828_v14, %s11323_s18  ;;  %v1666_v53 = vsel %vm11585_vm15, %v12935_v5, %v1665_v24 }
 0x185   : > { %v4240_v26 = vsel %vm11511_vm6, %v10335_v50, %v4239_v10  ;;  %v4241_v8 = vrot.slane %v4239_v10, 4  ;;  %v3813_v37 = vrot.slane %v3812_v36, 4  ;;  %v2072_v32 = vrot.slane %v2070_v20, 4  ;;  %1319 = vst.msk [vmem:[#allocation3 + $0xb8] sm:$0xf] %vm625_vm0, %v1287_v49  ;;  %3428 = vrot.lane.b32.xlu0 %v3344_v45, %s11320_s28  ;;  %v1794_v14 = vpop.permute.xlu1 %1793 }
 0x186   : > { %v2738_v18 = vshrl.u32 %v2458_v60, 16  ;;  %v2741_v56 = vshll.u32 %v2458_v60, 16  ;;  %4336 = vst.msk [vmem:[#allocation3 + $0x94] sm:$0xf] %vm625_vm0, %v4240_v26  ;;  %vm17222_vm7 = vcmask 913152   ;;  %v2754_v28 = vor.u32 %v2753_v58, %v12941_v31 }
 0x187   : > { %3498 = vst.msk [vmem:[#allocation3 + $0x68] sm:$0xf] %vm17222_vm7, %v3415_v19  ;;  %v5122_v46 = vld [vmem:[#allocation4 + $0x24] sm:$0x1]  ;;  %v4243_v61 = vsel %vm11511_vm6, %v4241_v8, %v4242_v15  ;;  %v741_v3 = vld [vmem:[#allocation2 + $0xc8] sm:$0x1]  ;;  %v3818_v55 = vsel %vm11585_vm15, %v3813_v37, %v12898_v6 }
 0x188   : > { %v685_v41 = vld [vmem:[#allocation2 + $0xc0] sm:$0x1]  ;;  %3303 = vst.msk [vmem:[#allocation3 + $0x60] sm:$0xf] %vm17221_vm12, %v3219_v21  ;;  %v3161_v57 = vrot.slane %v12948_v16, 5  ;;  %v5123_v23 = vsel %vm12717_vm2, 0, %v5122_v46  ;;  %1809 = vrot.lane.b32.xlu1 %v1666_v53, %s11318_s23 }
 0x189   : > { %4337 = vst.msk [vmem:[#allocation3 + $0x9c] sm:$0xf] %vm625_vm0, %v4243_v61  ;;  %v1085_v44 = vshrl.u32 %v12943_v22, 16  ;;  %v1286_v4 = vld [vmem:[#allocation2 + $0x84] sm:$0xf]  ;;  %v1651_v29 = vrot.slane %v1650_v39, 4  ;;  %3989 = vrot.lane.b32.xlu0 %v3818_v55, %s11323_s18  ;;  %v2074_v39 = vsel %vm11511_vm6, %v2072_v32, %v2073_v38  ;;  %v3974_v38 = vpop.permute.xlu0 %3973 }
 0x18a   : > { %v12971_v54 = vld [vmem:[#allocation2 + $0x84] sm:$0xe]  ;;  %5124 = vst [vmem:[#allocation4 + $0x24] sm:$0x1] %v5123_v23  ;;  %v1093_v47 = vshrl.u32 %v10602_v33, 16  ;;  %v1096_v7 = vshll.u32 %v10602_v33, 16 }
 0x18b   : > { %1318 = vst.msk [vmem:[#allocation3 + $0xb0] sm:$0xf] %vm625_vm0, %v1286_v4  ;;  %v2460_v43 = vld [vmem:[#allocation2 + $0x98] sm:$0x1]  ;;  %v1087_v51 = vrot.slane %v1085_v44, 7  ;;  %v742_v34 = vsel %vm11517_vm8, 0, %v741_v3  ;;  %v1656_v26 = vsel %vm11585_vm15, %v1651_v29, %v12900_v17  ;;  %v2134_v44 = vpop.permute.xlu1 %2133 }
 0x18c   : > { %v686_v42 = vsel %vm11525_vm10, 0, %v685_v41  ;;  %vm17223_vm7 = vcmask 1044352   ;;  %v2740_v30 = vrot.slane %v2738_v18, 4  ;;  %v2743_v35 = vrot.slane %v2741_v56, 5  ;;  %v12982_v63 = vld [vmem:[#allocation2 + $0x94] sm:$0xf]  ;;  %2149 = vrot.lane.b32.xlu1 %v2074_v39, %s11317_s20 }
 0x18d   : > { %4059 = vst.msk [vmem:[#allocation3 + $0x68] sm:$0xf] %vm17223_vm7, %v3976_v48  ;;  %v1095_v36 = vrot.slane %v1093_v47, 7  ;;  %743 = vst [vmem:[#allocation2 + $0xc8] sm:$0x1] %v742_v34  ;;  %v1088_v6 = vshll.u32 %v12943_v22, 16  ;;  %1807 = vrot.lane.b32.xlu0 %v1656_v26, %s11318_s23  ;;  %v1792_v47 = vpop.permute.xlu0 %1791 }
 0x18e   : > { %687 = vst [vmem:[#allocation2 + $0xc0] sm:$0x1] %v686_v42  ;;  %vm17224_vm12 = vcmask 913152   ;;  %v10305_v50 = vrot.slane %v12971_v54, 9  ;;  %v12988_v40 = vrot.slane %v2754_v28, 4  ;;  %v12992_v11 = vrot.slane %v3161_v57, 4 }
 0x18f   : > { %3497 = vst.msk [vmem:[#allocation3 + $0x60] sm:$0xf] %vm17224_vm12, %v3413_v25  ;;  %v5177_v5 = vld [vmem:[#allocation4 + $0x2c] sm:$0x1]  ;;  %v1091_v24 = vrot.slane %v1087_v51, 4  ;;  %v2757_v60 = vshll.u32 %v2460_v43, 16  ;;  %v1098_v22 = vor.u32 %v1096_v7, %v1095_v36  ;;  %v2744_v19 = vor.u32 %v2743_v35, %v2740_v30 }
 0x190   : > { %v12999_v10 = vld [vmem:[#allocation2 + $0x98] sm:$0x1]  ;;  %v3551_v58 = vld [vmem:[#allocation2 + $0xa0] sm:$0xf]  ;;  %v5178_v15 = vsel %vm12738_vm11, 0, %v5177_v5  ;;  %v1100_v37 = vrot.slane %v1095_v36, 4  ;;  %v1090_v32 = vor.u32 %v1088_v6, %v1087_v51  ;;  %v2071_v4 = vsel %vm11511_vm6, %v10305_v50, %v2070_v20  ;;  %v2327_v5 = vpop.permute.xlu1 %2326 }
 0x191   : > { %5179 = vst [vmem:[#allocation4 + $0x2c] sm:$0x1] %v5178_v15  ;;  %v4108_v8 = vld [vmem:[#allocation2 + $0x90] sm:$0xe]  ;;  %v4109_v33 = vld [vmem:[#allocation2 + $0x94] sm:$0xf]  ;;  %v1099_v45 = vsel %vm11542_vm13, %v1091_v24, %v1098_v22  ;;  %2147 = vrot.lane.b32.xlu0 %v2071_v4, %s11317_s20 }
 0x192   : > { %v4110_v62 = vld [vmem:[#allocation2 + $0x98] sm:$0x1]  ;;  %1875 = vst.msk [vmem:[#allocation3 + $0x78] sm:$0xf] %vm1859_vm1, %v1794_v14  ;;  %v2255_v49 = vld [vmem:[#allocation2 + $0x94] sm:$0xf] }
 0x193   : > { %4058 = vst.msk [vmem:[#allocation3 + $0x60] sm:$0xf] %vm17223_vm7, %v3974_v38  ;;  %v3164_v17 = vrot.slane %v12999_v10, 5  ;;  %v3839_v18 = vshll.u32 %v3551_v58, 16  ;;  %v3843_v56 = vshrl.u32 %v3551_v58, 16  ;;  %v1677_v21 = vshll.u32 %v12982_v63, 16  ;;  %2342 = vrot.lane.b32.xlu1 %v2255_v49, %s11319_s29 }
 0x194   : > { %v13013_v46 = vld [vmem:[#allocation2 + $0x9c] sm:$0xf]  ;;  %1260 = vst.msk [vmem:[#allocation2 + $0xc4] sm:$0xf] %vm625_vm0, %v1099_v45  ;;  %v2759_v61 = vrot.slane %v2757_v60, 5  ;;  %v10336_v3 = vrot.slane %v4108_v8, 9  ;;  %v2132_v60 = vpop.permute.xlu0 %2131 }
 0x195   : > { %v4246_v41 = vrot.slane %v4109_v33, 5  ;;  %v4249_v28 = vrot.slane %v4110_v62, 5  ;;  %v744_v23 = vld [vmem:[#allocation2 + $0xd4] sm:$0x1]  ;;  %v1261_v53 = vld [vmem:[#allocation2 + $0xc8] sm:$0x1]  ;;  %v3165_v12 = vsel %vm11511_vm6, %v12992_v11, %v3164_v17 }
 0x196   : > { %v1257_v29 = vld [vmem:[#allocation2 + $0xc0] sm:$0xf]  ;;  %v688_v54 = vld [vmem:[#allocation2 + $0xcc] sm:$0x1]  ;;  %2215 = vst.msk [vmem:[#allocation3 + $0x78] sm:$0xf] %vm2199_vm3, %v2134_v44  ;;  %v1262_v55 = vsel %vm11525_vm10, %v1100_v37, %v1261_v53  ;;  %v2760_v59 = vsel %vm11585_vm15, %v12988_v40, %v2759_v61 }
 0x197   : > { %v13022_v7 = vrot.slane %v2744_v19, 4  ;;  %v1681_v48 = vshrl.u32 %v12982_v63, 16  ;;  %v1258_v43 = vsel %vm11571_vm14, %v1090_v32, %v1257_v29  ;;  %v5168_v52 = vld [vmem:[#allocation4 + $0x8] sm:$0x1]  ;;  %1874 = vst.msk [vmem:[#allocation3 + $0x70] sm:$0xf] %vm1859_vm1, %v1792_v47  ;;  %v4247_v25 = vsel %vm11511_vm6, %v10336_v3, %v4246_v41  ;;  %2903 = vrot.lane.b32.xlu1 %v2760_v59, %s11322_s14  ;;  %v2888_v19 = vpop.permute.xlu1 %2887 }
 0x198   : > { %v2254_v20 = vld [vmem:[#allocation2 + $0x90] sm:$0xf]  ;;  %v13031_v51 = vrot.slane %v3839_v18, 5  ;;  %v3845_v34 = vrot.slane %v3843_v56, 4  ;;  %1263 = vst [vmem:[#allocation2 + $0xc8] sm:$0x1] %v1262_v55  ;;  %v2325_v17 = vpop.permute.xlu0 %2324 }
 0x199   : > { %v1364_v42 = vld [vmem:[#allocation2 + $0x90] sm:$0xf]  ;;  %1259 = vst [vmem:[#allocation2 + $0xc0] sm:$0xf] %v1258_v43  ;;  %v4248_v30 = vrot.slane %v4246_v41, 4  ;;  %v4363_v35 = vld [vmem:[#allocation3 + $0x68] sm:$0xff]  ;;  %2340 = vrot.lane.b32.xlu0 %v2254_v20, %s11319_s29  ;;  %v2750_v11 = vsel %vm11585_vm15, %v13022_v7, %v12941_v31 }
 0x19a   : > { %v3552_v63 = vld [vmem:[#allocation2 + $0xa4] sm:$0x1]  ;;  %v3830_v36 = vshrl.u32 %v13013_v46, 16  ;;  %4338 = vst.msk [vmem:[#allocation3 + $0xa4] sm:$0xf] %vm625_vm0, %v4247_v25  ;;  %v745_v6 = vsel %vm11517_vm8, 0, %v744_v23  ;;  %v3846_v8 = vor.u32 %v3845_v34, %v13031_v51 }
 0x19b   : > { %v689_v50 = vsel %vm11525_vm10, 0, %v688_v54  ;;  %v3833_v24 = vshll.u32 %v13013_v46, 16  ;;  %v4250_v39 = vsel %vm11511_vm6, %v4248_v30, %v4249_v28  ;;  %746 = vst [vmem:[#allocation2 + $0xd4] sm:$0x1] %v745_v6  ;;  %v5169_v40 = vsel %vm12738_vm11, 0, %v5168_v52  ;;  %v4362_v10 = vld [vmem:[#allocation3 + $0x60] sm:$0xff]  ;;  %3240 = vrot.lane.b32.xlu1 %v3165_v12, %s11321_s17  ;;  %v3225_v44 = vpop.permute.xlu1 %3224  ;;  %vm17226_vm10 = vmmov %vm17224_vm12 }
 0x19c   : > { %690 = vst [vmem:[#allocation2 + $0xcc] sm:$0x1] %v689_v50  ;;  %2408 = vst.msk [vmem:[#allocation3 + $0x78] sm:$0xf] %vm2392_vm4, %v2327_v5  ;;  %v10959_v2 = vld [vmem:[#allocation3 + $0x64] ss:$8 sps:$4 sm:$0xff]   ;;  %v10355_v15 = vcombine.low %v4362_v10, %v4363_v35  ;;  %v2886_v29 = vpop.permute.xlu0 %2885 }
 0x19d   : > { %v3019_v58 = vld [vmem:[#allocation2 + $0x90] sm:$0xe]  ;;  %4339 = vst.msk [vmem:[#allocation3 + $0xac] sm:$0xf] %vm625_vm0, %v4250_v39  ;;  %5170 = vst [vmem:[#allocation4 + $0x8] sm:$0x1] %v5169_v40  ;;  %10390 = vmatprep.mubr.msk.bf16.mxu1 %vm415_vm5, %v10959_v2  ;;  %2901 = vrot.lane.b32.xlu0 %v2750_v11, %s11322_s14 }
 0x19e   : > { %2214 = vst.msk [vmem:[#allocation3 + $0x70] sm:$0xf] %vm2199_vm3, %v2132_v60  ;;  %v1366_v22 = vld [vmem:[#allocation2 + $0x98] sm:$0x1]  ;;  %v13057_v14 = vrot.slane %v1677_v21, 5  ;;  %v1683_v26 = vrot.slane %v1681_v48, 4  ;;  %4734 = vmatmul.mubr.bf16.gmra.mxu1 %v10355_v15  ;;  %vm17228_vm12 = vmmov %vm17223_vm7 }
 0x19f   : > { %v3849_v33 = vshll.u32 %v3552_v63, 16  ;;  %v1668_v62 = vshrl.u32 %v1364_v42, 16  ;;  %v1671_v38 = vshll.u32 %v1364_v42, 16  ;;  %v2462_v49 = vld [vmem:[#allocation2 + $0xa0] sm:$0xf]  ;;  %v10321_v45 = vrot.slane %v3019_v58, 9  ;;  %v3419_v34 = vpop.permute.xlu1 %3418  ;;  %vm17229_vm7 = vmmov %vm17226_vm10 }
 0x1a0   : > { %v3832_v37 = vrot.slane %v3830_v36, 4  ;;  %v3835_v32 = vrot.slane %v3833_v24, 5  ;;  %2969 = vst.msk [vmem:[#allocation3 + $0x78] sm:$0xf] %vm2953_vm9, %v2888_v19  ;;  %v1684_v18 = vor.u32 %v1683_v26, %v13057_v14  ;;  %v1687_v56 = vshll.u32 %v1366_v22, 16  ;;  %v3223_v35 = vpop.permute.xlu0 %3222 }
 0x1a1   : > { %2407 = vst.msk [vmem:[#allocation3 + $0x70] sm:$0xf] %vm2392_vm4, %v2325_v17  ;;  %v13070_v21 = vld [vmem:[#allocation2 + $0x94] sm:$0xf]  ;;  %v2771_v46 = vshll.u32 %v2462_v49, 16  ;;  %v2775_v61 = vshrl.u32 %v2462_v49, 16  ;;  %v3162_v4 = vsel %vm11511_vm6, %v10321_v45, %v3161_v57 }
 0x1a2   : > { %v3347_v31 = vld [vmem:[#allocation2 + $0xa0] sm:$0xf]  ;;  %v3847_v3 = vrot.slane %v3846_v8, 4  ;;  %v3851_v41 = vrot.slane %v3849_v33, 5  ;;  %v1670_v28 = vrot.slane %v1668_v62, 4  ;;  %v1673_v23 = vrot.slane %v1671_v38, 5  ;;  %3238 = vrot.lane.b32.xlu0 %v3162_v4, %s11321_s17 }
 0x1a3   : > { %v3836_v53 = vor.u32 %v3835_v32, %v3832_v37  ;;  %vm17225_vm8 = vcmask 781952   ;;  %v1930_v54 = vld [vmem:[#allocation2 + $0x98] sm:$0x1]  ;;  %3434 = vrot.lane.b32.xlu1 %v3347_v31, %s11320_s28  ;;  %2968 = vst.msk [vmem:[#allocation3 + $0x70] sm:$0xf] %vm2953_vm9, %v2886_v29  ;;  %v2077_v47 = vrot.slane %v13070_v21, 5  ;;  %v3980_v15 = vpop.permute.xlu1 %3979 }
 0x1a4   : > { %3306 = vst.msk [vmem:[#allocation3 + $0x78] sm:$0xf] %vm17225_vm8, %v3225_v44  ;;  %v2463_v7 = vld [vmem:[#allocation2 + $0xa4] sm:$0x1]  ;;  %v13081_v48 = vrot.slane %v2771_v46, 5  ;;  %v2777_v55 = vrot.slane %v2775_v61, 4  ;;  %v3852_v16 = vsel %vm11585_vm15, %v3847_v3, %v3851_v41  ;;  %v1674_v52 = vor.u32 %v1673_v23, %v1670_v28  ;;  %vm17227_vm14 = vmmov %vm17225_vm8  ;;  %v3417_v62 = vpop.permute.xlu0 %3416 }
 0x1a5   : > { %v1685_v57 = vrot.slane %v1684_v18, 4  ;;  %v1689_v43 = vrot.slane %v1687_v56, 5  ;;  %v13086_v20 = vld [vmem:[#allocation2 + $0xa0] sm:$0xf]  ;;  %v3346_v42 = vld [vmem:[#allocation2 + $0x9c] sm:$0xf]  ;;  %vm17230_vm8 = vmmov %vm17228_vm12 }
 0x1a6   : > { %v3837_v25 = vrot.slane %v3836_v53, 4  ;;  %v13088_v30 = vld [vmem:[#allocation2 + $0x90] sm:$0xe]  ;;  %v2461_v59 = vld [vmem:[#allocation2 + $0x9c] sm:$0xf]  ;;  %v2080_v63 = vrot.slane %v1930_v54, 5  ;;  %v2778_v24 = vor.u32 %v2777_v55, %v13081_v48  ;;  %3432 = vrot.lane.b32.xlu0 %v3346_v42, %s11320_s28 }
 0x1a7   : > { %3500 = vst.msk [vmem:[#allocation3 + $0x78] sm:$0xf] %vm17226_vm10, %v3419_v34  ;;  %v2781_v36 = vshll.u32 %v2463_v7, 16  ;;  %v13091_v6 = vld [vmem:[#allocation2 + $0xa4] sm:$0x1]  ;;  %3995 = vrot.lane.b32.xlu1 %v3852_v16, %s11323_s18  ;;  %v2079_v5 = vrot.slane %v2077_v47, 4  ;;  %v1690_v10 = vsel %vm11585_vm15, %v1685_v57, %v1689_v43  ;;  %v1798_v41 = vpop.permute.xlu1 %1797  ;;  %vm17231_vm10 = vmmov %vm17227_vm14 }
 0x1a8   : > { %v1289_v50 = vld [vmem:[#allocation2 + $0x94] sm:$0xf]  ;;  %3305 = vst.msk [vmem:[#allocation3 + $0x70] sm:$0xf] %vm17227_vm14, %v3223_v35  ;;  %v3168_v39 = vrot.slane %v13086_v20, 5  ;;  %v1675_v2 = vrot.slane %v1674_v52, 4  ;;  %v3842_v22 = vsel %vm11585_vm15, %v3837_v25, %v13031_v51  ;;  %v3978_v53 = vpop.permute.xlu0 %3977  ;;  %vm17232_vm14 = vmmov %vm17229_vm7 }
 0x1a9   : > { %v5125_v40 = vld [vmem:[#allocation4 + $0x30] sm:$0x1]  ;;  %1321 = vst.msk [vmem:[#allocation3 + $0xc8] sm:$0xf] %vm625_vm0, %v1289_v50  ;;  %v5113_v60 = vld [vmem:[#allocation4] sm:$0x1]  ;;  %v2081_v18 = vsel %vm11511_vm6, %v2079_v5, %v2080_v63 }
 0x1aa   : > { %v2762_v58 = vshrl.u32 %v2461_v59, 16  ;;  %v5126_v12 = vsel %vm12717_vm2, 0, %v5125_v40  ;;  %v2765_v26 = vshll.u32 %v2461_v59, 16  ;;  %v13108_v8 = vld [vmem:[#allocation2 + $0xa0] sm:$0xf]  ;;  %v10306_v38 = vrot.slane %v13088_v30, 9  ;;  %3993 = vrot.lane.b32.xlu0 %v3842_v22, %s11323_s18 }
 0x1ab   : > { %5127 = vst [vmem:[#allocation4 + $0x30] sm:$0x1] %v5126_v12  ;;  %v1288_v33 = vld [vmem:[#allocation2 + $0x90] sm:$0xf]  ;;  %4061 = vst.msk [vmem:[#allocation3 + $0x78] sm:$0xf] %vm17228_vm12, %v3980_v15  ;;  %1813 = vrot.lane.b32.xlu1 %v1690_v10, %s11318_s23  ;;  %v1680_v56 = vsel %vm11585_vm15, %v1675_v2, %v13057_v14  ;;  %v2138_v52 = vpop.permute.xlu1 %2137 }
 0x1ac   : > { %v13112_v49 = vrot.slane %v2781_v36, 5  ;;  %v3171_v19 = vrot.slane %v13091_v6, 5  ;;  %v3554_v11 = vld [vmem:[#allocation2 + $0xac] sm:$0xf]  ;;  %v5114_v45 = vsel %vm12717_vm2, 0, %v5113_v60  ;;  %v2779_v51 = vrot.slane %v2778_v24, 4  ;;  %v1796_v35 = vpop.permute.xlu0 %1795  ;;  %vm17233_vm12 = vmmov %vm17231_vm10 }
 0x1ad   : > { %1320 = vst.msk [vmem:[#allocation3 + $0xc0] sm:$0xf] %vm625_vm0, %v1288_v33  ;;  %v13122_v37 = vrot.slane %v3168_v39, 4  ;;  %v5180_v32 = vld [vmem:[#allocation4 + $0x38] sm:$0x1]  ;;  %v2764_v46 = vrot.slane %v2762_v58, 4  ;;  %v2078_v57 = vsel %vm11511_vm6, %v10306_v38, %v2077_v47 }
 0x1ae   : > { %3499 = vst.msk [vmem:[#allocation3 + $0x70] sm:$0xf] %vm17229_vm7, %v3417_v62  ;;  %5115 = vst [vmem:[#allocation4] sm:$0x1] %v5114_v45  ;;  %v4111_v17 = vld [vmem:[#allocation2 + $0x9c] sm:$0xe]  ;;  %1811 = vrot.lane.b32.xlu0 %v1680_v56, %s11318_s23  ;;  %v2784_v50 = vsel %vm11585_vm15, %v2779_v51, %v13112_v49  ;;  %v4687_v56 = vpop.f32.mrf.mxu1 }
 0x1af   : > { %v5181_v61 = vsel %vm12738_vm11, 0, %v5180_v32  ;;  %v4112_v31 = vld [vmem:[#allocation2 + $0xa0] sm:$0xf]  ;;  %v4113_v3 = vld [vmem:[#allocation2 + $0xa4] sm:$0x1]  ;;  %v2767_v28 = vrot.slane %v2765_v26, 5  ;;  %2153 = vrot.lane.b32.xlu1 %v2081_v18, %s11317_s20  ;;  %v2331_v40 = vpop.permute.xlu1 %2330  ;;  %v3172_v51 = vsel %vm11511_vm6, %v13122_v37, %v3171_v19  ;;  %vm17234_vm7 = vmmov %vm17230_vm8 }
 0x1b0   : > { %v3863_v23 = vshll.u32 %v3554_v11, 16  ;;  %5182 = vst [vmem:[#allocation4 + $0x38] sm:$0x1] %v5181_v61  ;;  %v10337_v44 = vrot.slane %v4111_v17, 9  ;;  %v4253_v4 = vrot.slane %v4112_v31, 5  ;;  %v1701_v54 = vshll.u32 %v13108_v8, 16  ;;  %v2136_v12 = vpop.permute.xlu0 %2135  ;;  %v4689_v37 = vpop.f32.mrf.mxu1 }
 0x1b1   : > { %1877 = vst.msk [vmem:[#allocation3 + $0x88] sm:$0xf] %vm1859_vm1, %v1798_v41  ;;  %v2257_v29 = vld [vmem:[#allocation2 + $0xa0] sm:$0xf]  ;;  %v4256_v7 = vrot.slane %v4113_v3, 5  ;;  %v3867_v14 = vshrl.u32 %v3554_v11, 16  ;;  %v2768_v34 = vor.u32 %v2767_v28, %v2764_v46 }
 0x1b2   : > { %4060 = vst.msk [vmem:[#allocation3 + $0x70] sm:$0xf] %vm17230_vm8, %v3978_v53  ;;  %v4254_v55 = vsel %vm11511_vm6, %v10337_v44, %v4253_v4  ;;  %v4255_v16 = vrot.slane %v4253_v4, 4  ;;  %v3553_v43 = vld [vmem:[#allocation2 + $0xa8] sm:$0xf]  ;;  %v13144_v42 = vrot.slane %v3863_v23, 5  ;;  %2151 = vrot.lane.b32.xlu0 %v2078_v57, %s11317_s20  ;;  %vm17235_vm8 = vmmov %vm17232_vm14 }
 0x1b3   : > { %4340 = vst.msk [vmem:[#allocation3 + $0xb4] sm:$0xf] %vm625_vm0, %v4254_v55  ;;  %v1705_v25 = vshrl.u32 %v13108_v8, 16  ;;  %v1367_v30 = vld [vmem:[#allocation2 + $0x9c] sm:$0xf]  ;;  %2346 = vrot.lane.b32.xlu1 %v2257_v29, %s11319_s29  ;;  %v3869_v63 = vrot.slane %v3867_v14, 4  ;;  %v2892_v18 = vpop.permute.xlu1 %2891  ;;  %v4690_v55 = vpop.f32.mrf.mxu1 }
 0x1b4   : > { %v4257_v59 = vsel %vm11511_vm6, %v4255_v16, %v4256_v7  ;;  %2217 = vst.msk [vmem:[#allocation3 + $0x88] sm:$0xf] %vm2199_vm3, %v2138_v52  ;;  %v3555_v21 = vld [vmem:[#allocation2 + $0xb0] sm:$0x1]  ;;  %v2256_v47 = vld [vmem:[#allocation2 + $0x9c] sm:$0xf]  ;;  %v2329_v41 = vpop.permute.xlu0 %2328 }
 0x1b5   : > { %4341 = vst.msk [vmem:[#allocation3 + $0xbc] sm:$0xf] %vm625_vm0, %v4257_v59  ;;  %v3854_v36 = vshrl.u32 %v3553_v43, 16  ;;  %v4365_v5 = vld [vmem:[#allocation3 + $0x78] sm:$0xff]  ;;  %v3857_v24 = vshll.u32 %v3553_v43, 16  ;;  %v2769_v60 = vrot.slane %v2768_v34, 4  ;;  %v3870_v38 = vor.u32 %v3869_v63, %v13144_v42 }
 0x1b6   : > { %1876 = vst.msk [vmem:[#allocation3 + $0x80] sm:$0xf] %vm1859_vm1, %v1796_v35  ;;  %v3022_v10 = vld [vmem:[#allocation2 + $0x9c] sm:$0xe]  ;;  %v13157_v2 = vrot.slane %v1701_v54, 5  ;;  %v1707_v58 = vrot.slane %v1705_v25, 4  ;;  %2344 = vrot.lane.b32.xlu0 %v2256_v47, %s11319_s29 }
 0x1b7   : > { %2410 = vst.msk [vmem:[#allocation3 + $0x88] sm:$0xf] %vm2392_vm4, %v2331_v40  ;;  %v10961_v22 = vld [vmem:[#allocation3 + $0x74] ss:$8 sps:$4 sm:$0xff]   ;;  %v1369_v26 = vld [vmem:[#allocation2 + $0xa4] sm:$0x1]  ;;  %2907 = vrot.lane.b32.xlu1 %v2784_v50, %s11322_s14  ;;  %v2774_v46 = vsel %vm11585_vm15, %v2769_v60, %v13081_v48  ;;  %v3229_v14 = vpop.permute.xlu1 %3228 }
 0x1b8   : > { %v1692_v8 = vshrl.u32 %v1367_v30, 16  ;;  %2216 = vst.msk [vmem:[#allocation3 + $0x80] sm:$0xf] %vm2199_vm3, %v2136_v12  ;;  %v13165_v33 = vld [vmem:[%s17129_s2] ss:$0 sm:$0xff]  ;;  %v3873_v49 = vshll.u32 %v3555_v21, 16  ;;  %10391 = vmatprep.mubr.msk.bf16.mxu1 %vm415_vm5, %v10961_v22  ;;  %v1708_v31 = vor.u32 %v1707_v58, %v13157_v2  ;;  %v2890_v25 = vpop.permute.xlu0 %2889 }
 0x1b9   : > { %v4364_v15 = vld [vmem:[#allocation3 + $0x70] sm:$0xff]  ;;  %v13168_v11 = vld [vmem:[#allocation2 + $0xa0] sm:$0xf]  ;;  %v1695_v45 = vshll.u32 %v1367_v30, 16  ;;  %v3856_v32 = vrot.slane %v3854_v36, 4  ;;  %v3859_v17 = vrot.slane %v3857_v24, 5  ;;  %v13183_v6 = vadd.f32 %v13165_v33, %v4687_v56 }
 0x1ba   : > { %v10357_v62 = vcombine.low %v4364_v15, %v4365_v5  ;;  %v10322_v61 = vrot.slane %v3022_v10, 9  ;;  %v1711_v3 = vshll.u32 %v1369_v26, 16  ;;  %2971 = vst.msk [vmem:[#allocation3 + $0x88] sm:$0xf] %vm2953_vm9, %v2892_v18  ;;  %v2084_v19 = vrot.slane %v13168_v11, 5  ;;  %2905 = vrot.lane.b32.xlu0 %v2774_v46, %s11322_s14 }
 0x1bb   : > { %3244 = vrot.lane.b32.xlu1 %v3172_v51, %s11321_s17  ;;  %2409 = vst.msk [vmem:[#allocation3 + $0x80] sm:$0xf] %vm2392_vm4, %v2329_v41  ;;  %v3871_v28 = vrot.slane %v3870_v38, 4  ;;  %v3875_v23 = vrot.slane %v3873_v49, 5  ;;  %v13188_v48 = vld [vmem:[#allocation2 + $0xa4] sm:$0x1]  ;;  %v3860_v54 = vor.u32 %v3859_v17, %v3856_v32  ;;  %v13203_v34 = vadd.f32 %v13165_v33, %v4690_v55  ;;  %v3423_v60 = vpop.permute.xlu1 %3422 }
 0x1bc   : > { %4742 = vmatmul.mubr.bf16.gmra.mxu1 %v10357_v62  ;;  %v1694_v44 = vrot.slane %v1692_v8, 4  ;;  %v1697_v4 = vrot.slane %v1695_v45, 5  ;;  %v4846_v53 = vmul.f32 0.044715, %v13183_v6  ;;  %v3349_v29 = vld [vmem:[#allocation2 + $0xac] sm:$0xf]  ;;  %v3169_v16 = vsel %vm11511_vm6, %v10322_v61, %v3168_v39  ;;  %v4692_v39 = vpop.f32.mrf.mxu1  ;;  %v3227_v8 = vpop.permute.xlu0 %3226 }
 0x1bd   : > { %v2465_v7 = vld [vmem:[#allocation2 + $0xac] sm:$0xf]  ;;  %v13196_v57 = vrot.slane %v1708_v31, 4  ;;  %v13198_v43 = vrot.slane %v1711_v3, 5  ;;  %3308 = vst.msk [vmem:[#allocation3 + $0x88] sm:$0xf] %vm17231_vm10, %v3229_v14  ;;  %v3876_v59 = vsel %vm11585_vm15, %v3871_v28, %v3875_v23  ;;  %vm17236_vm10 = vmmov %vm17234_vm7 }
 0x1be   : > { %v4878_v52 = vmul.f32 %v4846_v53, %v13183_v6  ;;  %v2086_v30 = vrot.slane %v2084_v19, 4  ;;  %v2087_v20 = vrot.slane %v13188_v48, 5  ;;  %2970 = vst.msk [vmem:[#allocation3 + $0x80] sm:$0xf] %vm2953_vm9, %v2890_v25  ;;  %v1698_v35 = vor.u32 %v1697_v4, %v1694_v44  ;;  %v4115_v63 = vld [vmem:[#allocation2 + $0xac] sm:$0xf]  ;;  %3242 = vrot.lane.b32.xlu0 %v3169_v16, %s11321_s17 }
 0x1bf   : > { %3438 = vrot.lane.b32.xlu1 %v3349_v29, %s11320_s28  ;;  %v2795_v21 = vshll.u32 %v2465_v7, 16  ;;  %v2799_v47 = vshrl.u32 %v2465_v7, 16  ;;  %v4847_v50 = vmul.f32 0.044715, %v13203_v34  ;;  %v3348_v5 = vld [vmem:[#allocation2 + $0xa8] sm:$0xf]  ;;  %v1714_v10 = vsel %vm11585_vm15, %v13196_v57, %v13198_v43  ;;  %v3984_v37 = vpop.permute.xlu1 %3983 }
 0x1c0   : > { %v4910_v36 = vmul.f32 %v4878_v52, %v13183_v6  ;;  %v3861_v24 = vrot.slane %v3860_v54, 4  ;;  %v4260_v40 = vrot.slane %v4115_v63, 5  ;;  %v1291_v58 = vld [vmem:[#allocation2 + $0xa0] sm:$0xf]  ;;  %v4114_v12 = vld [vmem:[#allocation2 + $0xa8] sm:$0xe]  ;;  %v3421_v29 = vpop.permute.xlu0 %3420 }
 0x1c1   : > { %v4116_v15 = vld [vmem:[#allocation2 + $0xb0] sm:$0x1]  ;;  %v4879_v26 = vmul.f32 %v4847_v50, %v13203_v34  ;;  %3502 = vst.msk [vmem:[#allocation3 + $0x88] sm:$0xf] %vm17232_vm14, %v3423_v60  ;;  %v2464_v62 = vld [vmem:[#allocation2 + $0xa8] sm:$0xf]  ;;  %vm17237_vm14 = vmmov %vm17233_vm12 }
 0x1c2   : > { %v4942_v22 = vadd.f32 %v4910_v36, %v13183_v6  ;;  %v5128_v38 = vld [vmem:[#allocation4 + $0x3c] sm:$0x1]  ;;  %1323 = vst.msk [vmem:[#allocation3 + $0xd8] sm:$0xf] %vm625_vm0, %v1291_v58  ;;  %v10338_v49 = vrot.slane %v4114_v12, 9  ;;  %v4262_v45 = vrot.slane %v4260_v40, 4  ;;  %3436 = vrot.lane.b32.xlu0 %v3348_v5, %s11320_s28  ;;  %v3866_v28 = vsel %vm11585_vm15, %v3861_v24, %v13144_v42 }
 0x1c3   : > { %3999 = vrot.lane.b32.xlu1 %v3876_v59, %s11323_s18  ;;  %3307 = vst.msk [vmem:[#allocation3 + $0x80] sm:$0xf] %vm17233_vm12, %v3227_v8  ;;  %v1699_v51 = vrot.slane %v1698_v35, 4  ;;  %v13225_v32 = vld [vmem:[#allocation2 + $0x9c] sm:$0xe]  ;;  %v13227_v17 = vrot.slane %v2795_v21, 5  ;;  %v4911_v61 = vmul.f32 %v4879_v26, %v13203_v34  ;;  %v2088_v42 = vsel %vm11511_vm6, %v2086_v30, %v2087_v20  ;;  %v1802_v20 = vpop.permute.xlu1 %1801 }
 0x1c4   : > { %v5129_v18 = vsel %vm12717_vm2, 0, %v5128_v38  ;;  %v4263_v56 = vrot.slane %v4116_v15, 5  ;;  %v4974_v46 = vmul.f32 0.7978846, %v4942_v22  ;;  %v2801_v31 = vrot.slane %v2799_v47, 4  ;;  %v3982_v36 = vpop.permute.xlu0 %3981 }
 0x1c5   : > { %v13233_v3 = vld [vmem:[#allocation2 + $0xac] sm:$0xf]  ;;  %5130 = vst [vmem:[#allocation4 + $0x3c] sm:$0x1] %v5129_v18  ;;  %v4261_v41 = vsel %vm11511_vm6, %v10338_v49, %v4260_v40  ;;  %v2466_v23 = vld [vmem:[#allocation2 + $0xb0] sm:$0x1]  ;;  %v4943_v53 = vadd.f32 %v4911_v61, %v13203_v34  ;;  %v1704_v14 = vsel %vm11585_vm15, %v1699_v51, %v13157_v2 }
 0x1c6   : > { %v2786_v48 = vshrl.u32 %v2464_v62, 16  ;;  %v2789_v44 = vshll.u32 %v2464_v62, 16  ;;  %v4264_v4 = vsel %vm11511_vm6, %v4262_v45, %v4263_v56  ;;  %4342 = vst.msk [vmem:[#allocation3 + $0xc4] sm:$0xf] %vm625_vm0, %v4261_v41  ;;  %11048 = vtanh.f32 %v4974_v46  ;;  %v1371_v54 = vld [vmem:[#allocation2 + $0xac] sm:$0xf]  ;;  %3997 = vrot.lane.b32.xlu0 %v3866_v28, %s11323_s18 }
 0x1c7   : > { %4063 = vst.msk [vmem:[#allocation3 + $0x88] sm:$0xf] %vm17234_vm7, %v3984_v37  ;;  %v1290_v7 = vld [vmem:[#allocation2 + $0x9c] sm:$0xf]  ;;  %1817 = vrot.lane.b32.xlu1 %v1714_v10, %s11318_s23  ;;  %v10307_v55 = vrot.slane %v13225_v32, 9  ;;  %v3175_v16 = vrot.slane %v13233_v3, 5  ;;  %v2802_v25 = vor.u32 %v2801_v31, %v13227_v17  ;;  %v2142_v22 = vpop.permute.xlu1 %2141 }
 0x1c8   : > { %4343 = vst.msk [vmem:[#allocation3 + $0xcc] sm:$0xf] %vm625_vm0, %v4264_v4  ;;  %v3557_v57 = vld [vmem:[#allocation2 + $0xb8] sm:$0xf]  ;;  %v5183_v43 = vld [vmem:[#allocation4 + $0x44] sm:$0x1]  ;;  %v1800_v49 = vpop.permute.xlu0 %1799 }
 0x1c9   : > { %3501 = vst.msk [vmem:[#allocation3 + $0x80] sm:$0xf] %vm17235_vm8, %v3421_v29  ;;  %v4975_v52 = vmul.f32 0.7978846, %v4943_v53  ;;  %v2805_v39 = vshll.u32 %v2466_v23, 16  ;;  %v5184_v30 = vsel %vm12738_vm11, 0, %v5183_v43  ;;  %v2085_v26 = vsel %vm11511_vm6, %v10307_v55, %v2084_v19  ;;  %v4695_v23 = vpop.f32.mrf.mxu1 }
 0x1ca   : > { %1322 = vst.msk [vmem:[#allocation3 + $0xd0] sm:$0xf] %vm625_vm0, %v1290_v7  ;;  %v3027_v59 = vld [vmem:[#allocation2 + $0xb0] sm:$0x1]  ;;  %v2788_v2 = vrot.slane %v2786_v48, 4  ;;  %v2791_v35 = vrot.slane %v2789_v44, 5  ;;  %1815 = vrot.lane.b32.xlu0 %v1704_v14, %s11318_s23  ;;  %v13291_v7 = vadd.f32 %v13165_v33, %v4695_v23 }
 0x1cb   : > { %v3025_v21 = vld [vmem:[#allocation2 + $0xa8] sm:$0xe]  ;;  %v1725_v47 = vshll.u32 %v1371_v54, 16  ;;  %v1729_v63 = vshrl.u32 %v1371_v54, 16  ;;  %5185 = vst [vmem:[#allocation4 + $0x44] sm:$0x1] %v5184_v30  ;;  %11050 = vtanh.f32 %v4975_v52  ;;  %2157 = vrot.lane.b32.xlu1 %v2088_v42, %s11317_s20  ;;  %v2335_v28 = vpop.permute.xlu1 %2334  ;;  %v4697_v52 = vpop.f32.mrf.mxu1 }
 0x1cc   : > { %1879 = vst.msk [vmem:[#allocation3 + $0x98] sm:$0xf] %vm1859_vm1, %v1802_v20  ;;  %v3887_v50 = vshll.u32 %v3557_v57, 16  ;;  %v3891_v5 = vshrl.u32 %v3557_v57, 16  ;;  %v2259_v24 = vld [vmem:[#allocation2 + $0xac] sm:$0xf]  ;;  %v2792_v8 = vor.u32 %v2791_v35, %v2788_v2  ;;  %v2140_v54 = vpop.permute.xlu0 %2139 }
 0x1cd   : > { %4062 = vst.msk [vmem:[#allocation3 + $0x80] sm:$0xf] %vm17236_vm10, %v3982_v36  ;;  %v3177_v40 = vrot.slane %v3175_v16, 4  ;;  %v2803_v60 = vrot.slane %v2802_v25, 4  ;;  %v2807_v10 = vrot.slane %v2805_v39, 5  ;;  %v3178_v58 = vrot.slane %v3027_v59, 5 }
 0x1ce   : > { %v10323_v12 = vrot.slane %v3025_v21, 9  ;;  %v3556_v15 = vld [vmem:[#allocation2 + $0xb4] sm:$0xf]  ;;  %v13268_v62 = vrot.slane %v1725_v47, 5  ;;  %v1731_v38 = vrot.slane %v1729_v63, 4  ;;  %v13271_v45 = vrot.slane %v3887_v50, 5  ;;  %2155 = vrot.lane.b32.xlu0 %v2085_v26, %s11317_s20  ;;  %v4698_v63 = vpop.f32.mrf.mxu1 }
 0x1cf   : > { %2219 = vst.msk [vmem:[#allocation3 + $0x98] sm:$0xf] %vm2199_vm3, %v2142_v22  ;;  %v3893_v51 = vrot.slane %v3891_v5, 4  ;;  %v1372_v32 = vld [vmem:[#allocation2 + $0xb0] sm:$0x1]  ;;  %2350 = vrot.lane.b32.xlu1 %v2259_v24, %s11319_s29  ;;  %v3878_v11 = vshrl.u32 %v3556_v15, 16  ;;  %v2808_v19 = vsel %vm11585_vm15, %v2803_v60, %v2807_v10  ;;  %v3179_v3 = vsel %vm11511_vm6, %v3177_v40, %v3178_v58  ;;  %v2896_v47 = vpop.permute.xlu1 %2895 }
 0x1d0   : > { %v1370_v18 = vld [vmem:[#allocation2 + $0xa8] sm:$0xf]  ;;  %1878 = vst.msk [vmem:[#allocation3 + $0x90] sm:$0xf] %vm1859_vm1, %v1800_v49  ;;  %v3881_v56 = vshll.u32 %v3556_v15, 16  ;;  %v4367_v31 = vld [vmem:[#allocation3 + $0x88] sm:$0xff]  ;;  %v13284_v41 = vsel %vm11511_vm6, %v10323_v12, %v3175_v16  ;;  %v1732_v44 = vor.u32 %v1731_v38, %v13268_v62  ;;  %v2333_v60 = vpop.permute.xlu0 %2332  ;;  %v13312_v10 = vadd.f32 %v13165_v33, %v4698_v63 }
 0x1d1   : > { %v13275_v46 = vld [vmem:[#allocation2 + $0xac] sm:$0xf]  ;;  %v2258_v61 = vld [vmem:[#allocation2 + $0xa8] sm:$0xf]  ;;  %v3558_v37 = vld [vmem:[#allocation2 + $0xbc] sm:$0x1]  ;;  %v3894_v55 = vor.u32 %v3893_v51, %v13271_v45 }
 0x1d2   : > { %v2793_v48 = vrot.slane %v2792_v8, 4  ;;  %v1735_v4 = vshll.u32 %v1372_v32, 16  ;;  %v13287_v53 = vld [vmem:[#allocation2 + $0xb0] sm:$0x1]  ;;  %v1716_v29 = vshrl.u32 %v1370_v18, 16  ;;  %v2091_v16 = vrot.slane %v13275_v46, 5  ;;  %2348 = vrot.lane.b32.xlu0 %v2258_v61, %s11319_s29 }
 0x1d3   : > { %2412 = vst.msk [vmem:[#allocation3 + $0x98] sm:$0xf] %vm2392_vm4, %v2335_v28  ;;  %v10963_v14 = vld [vmem:[#allocation3 + $0x84] ss:$8 sps:$4 sm:$0xff]   ;;  %v1719_v57 = vshll.u32 %v1370_v18, 16  ;;  %v11049_v43 = vpop.eup %11048  ;;  %2911 = vrot.lane.b32.xlu1 %v2808_v19, %s11322_s14  ;;  %v3897_v39 = vshll.u32 %v3558_v37, 16  ;;  %v3233_v61 = vpop.permute.xlu1 %3232 }
 0x1d4   : > { %v4366_v42 = vld [vmem:[#allocation3 + $0x80] sm:$0xff]  ;;  %2218 = vst.msk [vmem:[#allocation3 + $0x90] sm:$0xf] %vm2199_vm3, %v2140_v54  ;;  %v3880_v59 = vrot.slane %v3878_v11, 4  ;;  %v3883_v30 = vrot.slane %v3881_v56, 5  ;;  %v4814_v20 = vmul.f32 0.5, %v13183_v6  ;;  %10392 = vmatprep.mubr.msk.bf16.mxu1 %vm415_vm5, %v10963_v14  ;;  %v2798_v36 = vsel %vm11585_vm15, %v2793_v48, %v13227_v17  ;;  %v4700_v17 = vpop.f32.mrf.mxu1  ;;  %v2894_v48 = vpop.permute.xlu0 %2893 }
 0x1d5   : > { %v10359_v25 = vcombine.low %v4366_v42, %v4367_v31  ;;  %v5038_v2 = vadd.f32 1.0, %v11049_v43  ;;  %v4848_v35 = vmul.f32 0.044715, %v13291_v7  ;;  %v2094_v21 = vrot.slane %v13287_v53, 5  ;;  %2973 = vst.msk [vmem:[#allocation3 + $0x98] sm:$0xf] %vm2953_vm9, %v2896_v47 }
 0x1d6   : > { %v13305_v50 = vrot.slane %v1732_v44, 4  ;;  %v13307_v5 = vrot.slane %v1735_v4, 5  ;;  %v1718_v6 = vrot.slane %v1716_v29, 4  ;;  %v1721_v58 = vrot.slane %v1719_v57, 5  ;;  %v2468_v12 = vld [vmem:[#allocation2 + $0xb8] sm:$0xf]  ;;  %2909 = vrot.lane.b32.xlu0 %v2798_v36, %s11322_s14 }
 0x1d7   : > { %4750 = vmatmul.mubr.bf16.gmra.mxu1 %v10359_v25  ;;  %v5070_v24 = vmul.f32 %v5038_v2, %v4814_v20  ;;  %v4880_v40 = vmul.f32 %v4848_v35, %v13291_v7  ;;  %3248 = vrot.lane.b32.xlu1 %v3179_v3, %s11321_s17  ;;  %2411 = vst.msk [vmem:[#allocation3 + $0x90] sm:$0xf] %vm2392_vm4, %v2333_v60  ;;  %v3895_v22 = vrot.slane %v3894_v55, 4  ;;  %v3899_v26 = vrot.slane %v3897_v39, 5  ;;  %v3351_v11 = vld [vmem:[#allocation2 + $0xb8] sm:$0xf]  ;;  %v3427_v20 = vpop.permute.xlu1 %3426 }
 0x1d8   : > { %v11051_v15 = vpop.eup %11050  ;;  %v3884_v8 = vor.u32 %v3883_v30, %v3880_v59  ;;  %v13318_v38 = vrot.slane %v2091_v16, 4  ;;  %v4815_v51 = vmul.f32 0.5, %v13203_v34  ;;  %v13323_v56 = vld [vmem:[#allocation2 + $0xbc] sm:$0x1]  ;;  %v4849_v19 = vmul.f32 0.044715, %v13312_v10 }
 0x1d9   : > { %v10603_v49 = vpack.c.bf16 %v5070_v24, %v5070_v24  ;;  %v5039_v32 = vadd.f32 1.0, %v11051_v15  ;;  %v4912_v18 = vmul.f32 %v4880_v40, %v13291_v7  ;;  %v1738_v31 = vsel %vm11585_vm15, %v13305_v50, %v13307_v5  ;;  %3310 = vst.msk [vmem:[#allocation3 + $0x98] sm:$0xf] %vm17237_vm14, %v3233_v61  ;;  %v2467_v4 = vld [vmem:[#allocation2 + $0xb4] sm:$0xf] }
 0x1da   : > { %v2819_v3 = vshll.u32 %v2468_v12, 16  ;;  %v2823_v37 = vshrl.u32 %v2468_v12, 16  ;;  %v1722_v44 = vor.u32 %v1721_v58, %v1718_v6  ;;  %v5641_v29 = vld [vmem:[#allocation4 + $0xc] sm:$0xf]  ;;  %v4881_v54 = vmul.f32 %v4849_v19, %v13312_v10  ;;  %2972 = vst.msk [vmem:[#allocation3 + $0x90] sm:$0xf] %vm2953_vm9, %v2894_v48  ;;  %3246 = vrot.lane.b32.xlu0 %v13284_v41, %s11321_s17  ;;  %v3231_v41 = vpop.permute.xlu0 %3230 }
 0x1db   : > { %v5319_v28 = vshrl.u32 %v10603_v49, 16  ;;  %v5071_v34 = vmul.f32 %v5039_v32, %v4815_v51  ;;  %v4944_v23 = vadd.f32 %v4912_v18, %v13291_v7  ;;  %3442 = vrot.lane.b32.xlu1 %v3351_v11, %s11320_s28  ;;  %v3900_v42 = vsel %vm11585_vm15, %v3895_v22, %v3899_v26  ;;  %v13340_v39 = vld [vmem:[#allocation2 + $0xb8] sm:$0xf]  ;;  %v3350_v2 = vld [vmem:[#allocation2 + $0xb4] sm:$0xf]  ;;  %v3988_v11 = vpop.permute.xlu1 %3987 }
 0x1dc   : > { %v3885_v14 = vrot.slane %v3884_v8, 4  ;;  %v2829_v55 = vshll.u32 %v13323_v56, 16  ;;  %v5322_v43 = vshll.u32 %v10603_v49, 16  ;;  %vm17238_vm12 = vsmask.f32 7938 }
 0x1dd   : > { %v5321_v57 = vrot.slane %v5319_v28, 7  ;;  %v10604_v52 = vpack.c.bf16 %v5071_v34, %v5071_v34  ;;  %v4976_v25 = vmul.f32 0.7978846, %v4944_v23  ;;  %vm17239_vm7 = vcmask 257024   ;;  %v5645_v60 = vld [vmem:[#allocation4 + $0x14] sm:$0x1] }
 0x1de   : > { %vm13344_vm8 = vmand %vm17239_vm7, %vm17238_vm12  ;;  %v4913_v30 = vmul.f32 %v4881_v54, %v13312_v10  ;;  %v13349_v35 = vrot.slane %v2819_v3, 5  ;;  %v2810_v47 = vshrl.u32 %v2467_v4, 16  ;;  %v2813_v63 = vshll.u32 %v2467_v4, 16  ;;  %3309 = vst.msk [vmem:[#allocation3 + $0x90] sm:$0xf] %vm17237_vm14, %v3231_v41  ;;  %3440 = vrot.lane.b32.xlu0 %v3350_v2, %s11320_s28  ;;  %v3425_v34 = vpop.permute.xlu0 %3424 }
 0x1df   : > { %v5324_v36 = vor.u32 %v5322_v43, %v5321_v57  ;;  %v5327_v6 = vshrl.u32 %v10604_v52, 16  ;;  %vm17242_vm10 = vcmask 913152   ;;  %v13352_v24 = vrot.slane %v1722_v44, 4  ;;  %4003 = vrot.lane.b32.xlu1 %v3900_v42, %s11323_s18  ;;  %v13360_v15 = vld [vmem:[#allocation2 + $0xa8] sm:$0xe]  ;;  %v1806_v43 = vpop.permute.xlu1 %1805 }
 0x1e0   : > { %3504 = vst.msk [vmem:[#allocation3 + $0x98] sm:$0xf] %vm17242_vm10, %v3427_v20  ;;  %v2825_v40 = vrot.slane %v2823_v37, 4  ;;  %11052 = vtanh.f32 %v4976_v25  ;;  %v4945_v58 = vadd.f32 %v4913_v30, %v13312_v10  ;;  %v3890_v12 = vsel %vm11585_vm15, %v3885_v14, %v13271_v45  ;;  %v5131_v22 = vld [vmem:[#allocation4 + $0x48] sm:$0x1]  ;;  %vm17244_vm7 = vmmov %vm17242_vm10 }
 0x1e1   : > { %v3182_v17 = vrot.slane %v13340_v39, 5  ;;  %v5642_v26 = vsel %vm13344_vm8, %v5324_v36, %v5641_v29  ;;  %v5329_v8 = vrot.slane %v5327_v6, 7  ;;  %v5330_v49 = vshll.u32 %v10604_v52, 16  ;;  %v4118_v32 = vld [vmem:[#allocation2 + $0xb8] sm:$0xf] }
 0x1e2   : > { %v5132_v51 = vsel %vm12717_vm2, 0, %v5131_v22  ;;  %5643 = vst [vmem:[#allocation4 + $0xc] sm:$0xf] %v5642_v26  ;;  %v4977_v18 = vmul.f32 0.7978846, %v4945_v58  ;;  %v2812_v45 = vrot.slane %v2810_v47, 4  ;;  %v2826_v23 = vor.u32 %v2825_v40, %v13349_v35  ;;  %4001 = vrot.lane.b32.xlu0 %v3890_v12, %s11323_s18 }
 0x1e3   : > { %v2815_v19 = vrot.slane %v2813_v63, 5  ;;  %5133 = vst [vmem:[#allocation4 + $0x48] sm:$0x1] %v5132_v51  ;;  %v4267_v61 = vrot.slane %v4118_v32, 5  ;;  %v5325_v3 = vrot.slane %v5321_v57, 4  ;;  %v5332_v37 = vor.u32 %v5330_v49, %v5329_v8  ;;  %1821 = vrot.lane.b32.xlu1 %v1738_v31, %s11318_s23  ;;  %v2146_v58 = vpop.permute.xlu1 %2145 }
 0x1e4   : > { %v5334_v28 = vrot.slane %v5329_v8, 4  ;;  %vm17243_vm12 = vcmask 1044352   ;;  %v4117_v48 = vld [vmem:[#allocation2 + $0xb4] sm:$0xe]  ;;  %v4119_v44 = vld [vmem:[#allocation2 + $0xbc] sm:$0x1]  ;;  %11054 = vtanh.f32 %v4977_v18  ;;  %v2095_v50 = vsel %vm11511_vm6, %v13318_v38, %v2094_v21  ;;  %v3986_v38 = vpop.permute.xlu0 %3985 }
 0x1e5   : > { %4065 = vst.msk [vmem:[#allocation3 + $0x98] sm:$0xf] %vm17243_vm12, %v3988_v11  ;;  %v3030_v4 = vld [vmem:[#allocation2 + $0xbc] sm:$0x1]  ;;  %v10339_v29 = vrot.slane %v4117_v48, 9  ;;  %v4269_v54 = vrot.slane %v4267_v61, 4  ;;  %v5333_v14 = vsel %vm11542_vm13, %v5325_v3, %v5332_v37  ;;  %v1728_v52 = vsel %vm11585_vm15, %v13352_v24, %v13268_v62  ;;  %vm17246_vm14 = vmmov %vm17243_vm12 }
 0x1e6   : > { %3503 = vst.msk [vmem:[#allocation3 + $0x90] sm:$0xf] %vm17244_vm7, %v3425_v34  ;;  %v4270_v42 = vrot.slane %v4119_v44, 5  ;;  %v5646_v57 = vsel %vm12717_vm2, %v5334_v28, %v5645_v60  ;;  %v10308_v5 = vrot.slane %v13360_v15, 9  ;;  %v1374_v31 = vld [vmem:[#allocation2 + $0xb8] sm:$0xf]  ;;  %v2816_v25 = vor.u32 %v2815_v19, %v2812_v45  ;;  %1819 = vrot.lane.b32.xlu0 %v1728_v52, %s11318_s23 }
 0x1e7   : > { %vm17245_vm10 = vcmask 257024   ;;  %5647 = vst [vmem:[#allocation4 + $0x14] sm:$0x1] %v5646_v57  ;;  %v3560_v30 = vld [vmem:[#allocation2 + $0xc4] sm:$0xf]  ;;  %v4268_v53 = vsel %vm11511_vm6, %v10339_v29, %v4267_v61  ;;  %v2827_v2 = vrot.slane %v2826_v23, 4  ;;  %2161 = vrot.lane.b32.xlu1 %v2095_v50, %s11317_s20 }
 0x1e8   : > { %5644 = vst.msk [vmem:[#allocation4 + $0x10] sm:$0xf] %vm17245_vm10, %v5333_v14  ;;  %v1375_v20 = vld [vmem:[#allocation2 + $0xbc] sm:$0x1]  ;;  %v4271_v21 = vsel %vm11511_vm6, %v4269_v54, %v4270_v42  ;;  %v2831_v47 = vrot.slane %v2829_v55, 5  ;;  %v3184_v63 = vrot.slane %v3182_v17, 4  ;;  %v2092_v12 = vsel %vm11511_vm6, %v10308_v5, %v2091_v16  ;;  %v1804_v8 = vpop.permute.xlu0 %1803  ;;  %v2339_v54 = vpop.permute.xlu1 %2338  ;;  %vm17247_vm12 = vmmov %vm17245_vm10 }
 0x1e9   : > { %1881 = vst.msk [vmem:[#allocation3 + $0xa8] sm:$0xf] %vm1859_vm1, %v1806_v43  ;;  %v3185_v62 = vrot.slane %v3030_v4, 5  ;;  %v2261_v36 = vld [vmem:[#allocation2 + $0xb8] sm:$0xf]  ;;  %v1749_v41 = vshll.u32 %v1374_v31, 16  ;;  %v4703_v42 = vpop.f32.mrf.mxu1 }
 0x1ea   : > { %4344 = vst.msk [vmem:[#allocation3 + $0xd4] sm:$0xf] %vm625_vm0, %v4268_v53  ;;  %4345 = vst.msk [vmem:[#allocation3 + $0xdc] sm:$0xf] %vm625_vm0, %v4271_v21  ;;  %v13406_v6 = vld [vmem:[#allocation2 + $0xb4] sm:$0xe]  ;;  %v2832_v49 = vsel %vm11585_vm15, %v2827_v2, %v2831_v47  ;;  %2159 = vrot.lane.b32.xlu0 %v2092_v12, %s11317_s20 }
 0x1eb   : > { %4064 = vst.msk [vmem:[#allocation3 + $0x90] sm:$0xf] %vm17246_vm14, %v3986_v38  ;;  %v1753_v24 = vshrl.u32 %v1374_v31, 16  ;;  %v3911_v56 = vshll.u32 %v3560_v30, 16  ;;  %v3915_v55 = vshrl.u32 %v3560_v30, 16  ;;  %v1759_v40 = vshll.u32 %v1375_v20, 16  ;;  %2354 = vrot.lane.b32.xlu1 %v2261_v36, %s11319_s29 }
 0x1ec   : > { %v13409_v60 = vld [vmem:[#allocation2 + $0xb8] sm:$0xf]  ;;  %v13415_v15 = vrot.slane %v2816_v25, 4  ;;  %v3559_v22 = vld [vmem:[#allocation2 + $0xc0] sm:$0xf]  ;;  %v13424_v51 = vsel %vm11511_vm6, %v3184_v63, %v3185_v62  ;;  %v10324_v46 = vrot.slane %v13406_v6, 9  ;;  %v2144_v5 = vpop.permute.xlu0 %2143  ;;  %v13449_v31 = vadd.f32 %v13165_v33, %v4703_v42 }
 0x1ed   : > { %v13417_v26 = vld [vmem:[#allocation2 + $0xbc] sm:$0x1]  ;;  %2221 = vst.msk [vmem:[#allocation3 + $0xa8] sm:$0xf] %vm2199_vm3, %v2146_v58  ;;  %v1373_v32 = vld [vmem:[#allocation2 + $0xb4] sm:$0xf]  ;;  %v11053_v37 = vpop.eup %11052 }
 0x1ee   : > { %v5186_v18 = vld [vmem:[#allocation4 + $0x50] sm:$0x1]  ;;  %1880 = vst.msk [vmem:[#allocation3 + $0xa0] sm:$0xf] %vm1859_vm1, %v1804_v8  ;;  %v2260_v16 = vld [vmem:[#allocation2 + $0xb4] sm:$0xf]  ;;  %v2822_v14 = vsel %vm11585_vm15, %v13415_v15, %v13349_v35  ;;  %v4705_v35 = vpop.f32.mrf.mxu1 }
 0x1ef   : > { %v13429_v11 = vrot.slane %v1749_v41, 5  ;;  %v13431_v45 = vrot.slane %v1753_v24, 4  ;;  %v2098_v19 = vrot.slane %v13409_v60, 5  ;;  %v5187_v61 = vsel %vm12738_vm11, 0, %v5186_v18  ;;  %v1293_v3 = vld [vmem:[#allocation2 + $0xac] sm:$0xf]  ;;  %2915 = vrot.lane.b32.xlu1 %v2832_v49, %s11322_s14  ;;  %2352 = vrot.lane.b32.xlu0 %v2260_v16, %s11319_s29 }
 0x1f0   : > { %v4369_v28 = vld [vmem:[#allocation3 + $0x98] sm:$0xff]  ;;  %v13437_v34 = vrot.slane %v3911_v56, 5  ;;  %v3917_v23 = vrot.slane %v3915_v55, 4  ;;  %v13439_v48 = vrot.slane %v1759_v40, 5  ;;  %v3902_v44 = vshrl.u32 %v3559_v22, 16  ;;  %v2900_v55 = vpop.permute.xlu1 %2899  ;;  %v4706_v40 = vpop.f32.mrf.mxu1 }
 0x1f1   : > { %5188 = vst [vmem:[#allocation4 + $0x50] sm:$0x1] %v5187_v61  ;;  %1325 = vst.msk [vmem:[#allocation3 + $0xe8] sm:$0xf] %vm625_vm0, %v1293_v3  ;;  %v4816_v4 = vmul.f32 0.5, %v13291_v7  ;;  %v5040_v29 = vadd.f32 1.0, %v11053_v37  ;;  %v1756_v21 = vor.u32 %v13431_v45, %v13429_v11  ;;  %v11055_v2 = vpop.eup %11054  ;;  %v13470_v8 = vadd.f32 %v13165_v33, %v4706_v40 }
 0x1f2   : > { %v3561_v57 = vld [vmem:[#allocation2 + $0xc8] sm:$0x1]  ;;  %v3905_v50 = vshll.u32 %v3559_v22, 16  ;;  %2414 = vst.msk [vmem:[#allocation3 + $0xa8] sm:$0xf] %vm2392_vm4, %v2339_v54  ;;  %v2101_v7 = vrot.slane %v13417_v26, 5  ;;  %v3918_v63 = vor.u32 %v3917_v23, %v13437_v34  ;;  %v2337_v22 = vpop.permute.xlu0 %2336  ;;  %v4708_v45 = vpop.f32.mrf.mxu1  ;;  %v3183_v33 = vsel %vm11511_vm6, %v10324_v46, %v3182_v17 }
 0x1f3   : > { %v4368_v43 = vld [vmem:[#allocation3 + $0x90] sm:$0xff]  ;;  %v1740_v25 = vshrl.u32 %v1373_v32, 16  ;;  %v1743_v30 = vshll.u32 %v1373_v32, 16  ;;  %v5072_v20 = vmul.f32 %v5040_v29, %v4816_v4  ;;  %2220 = vst.msk [vmem:[#allocation3 + $0xa0] sm:$0xf] %vm2199_vm3, %v2144_v5  ;;  %v13458_v38 = vrot.slane %v2098_v19, 4  ;;  %3252 = vrot.lane.b32.xlu1 %v13424_v51, %s11321_s17  ;;  %2913 = vrot.lane.b32.xlu0 %v2822_v14, %s11322_s14 }
 0x1f4   : > { %v10965_v52 = vld [vmem:[#allocation3 + $0x94] ss:$8 sps:$4 sm:$0xff]   ;;  %v10361_v53 = vcombine.low %v4368_v43, %v4369_v28  ;;  %v4850_v47 = vmul.f32 0.044715, %v13449_v31  ;;  %v3921_v62 = vshll.u32 %v3561_v57, 16  ;;  %v13464_v36 = vrot.slane %v3902_v44, 4  ;;  %v3237_v42 = vpop.permute.xlu1 %3236 }
 0x1f5   : > { %10393 = vmatprep.mubr.msk.bf16.mxu1 %vm415_vm5, %v10965_v52  ;;  %v10605_v41 = vpack.c.bf16 %v5072_v20, %v5072_v20  ;;  %v4817_v24 = vmul.f32 0.5, %v13312_v10  ;;  %v5041_v56 = vadd.f32 1.0, %v11055_v2  ;;  %v3907_v58 = vrot.slane %v3905_v50, 5  ;;  %v1292_v12 = vld [vmem:[#allocation2 + $0xa8] sm:$0xf]  ;;  %v11181_v26 = vld [vmem:[%s11483_s27 + $0x8] sm:$0xff] }
 0x1f6   : > { %4758 = vmatmul.mubr.bf16.gmra.mxu1 %v10361_v53  ;;  %v4882_v15 = vmul.f32 %v4850_v47, %v13449_v31  ;;  %2975 = vst.msk [vmem:[#allocation3 + $0xa8] sm:$0xf] %vm2953_vm9, %v2900_v55  ;;  %v1742_v49 = vrot.slane %v1740_v25, 4  ;;  %v1745_v32 = vrot.slane %v1743_v30, 5  ;;  %v13472_v18 = vld [vmem:[#allocation2 + $0xd0] sm:$0xf]  ;;  %v2898_v14 = vpop.permute.xlu0 %2897 }
 0x1f7   : > { %1324 = vst.msk [vmem:[#allocation3 + $0xe0] sm:$0xf] %vm625_vm0, %v1292_v12  ;;  %v5336_v10 = vshrl.u32 %v10605_v41, 16  ;;  %v5073_v16 = vmul.f32 %v5041_v56, %v4817_v24  ;;  %v3353_v61 = vld [vmem:[#allocation2 + $0xc4] sm:$0xf]  ;;  %v13484_v3 = vrot.slane %v1756_v21, 4  ;;  %v3908_v6 = vor.u32 %v3907_v58, %v13464_v36  ;;  %3250 = vrot.lane.b32.xlu0 %v3183_v33, %s11321_s17 }
 0x1f8   : > { %2413 = vst.msk [vmem:[#allocation3 + $0xa0] sm:$0xf] %vm2392_vm4, %v2337_v22  ;;  %v2471_v37 = vld [vmem:[#allocation2 + $0xc4] sm:$0xf]  ;;  %v4914_v28 = vmul.f32 %v4882_v15, %v13449_v31  ;;  %v4851_v23 = vmul.f32 0.044715, %v13470_v8  ;;  %v1746_v5 = vor.u32 %v1745_v32, %v1742_v49  ;;  %3446 = vrot.lane.b32.xlu1 %v3353_v61, %s11320_s28  ;;  %v3431_v24 = vpop.permute.xlu1 %3430 }
 0x1f9   : > { %v3919_v51 = vrot.slane %v3918_v63, 4  ;;  %v3923_v44 = vrot.slane %v3921_v62, 5  ;;  %v5756_v4 = vld [vmem:[#allocation4 + $0x10] sm:$0xf]  ;;  %v5338_v29 = vrot.slane %v5336_v10, 7  ;;  %v5339_v54 = vshll.u32 %v10605_v41, 16 }
 0x1fa   : > { %v10606_v39 = vpack.c.bf16 %v5073_v16, %v5073_v16  ;;  %5788 = vst.msk [vmem:[#allocation5 + $0x24] sm:$0xf] %vm17247_vm12, %v5756_v4  ;;  %v5755_v17 = vld [vmem:[#allocation4 + $0xc] sm:$0xf]  ;;  %v5648_v46 = vld [vmem:[#allocation4 + $0x18] sm:$0xf]  ;;  %v4946_v57 = vadd.f32 %v4914_v28, %v13449_v31  ;;  %v4883_v50 = vmul.f32 %v4851_v23, %v13470_v8  ;;  %v3235_v58 = vpop.permute.xlu0 %3234  ;;  %v1762_v12 = vsel %vm11585_vm15, %v13484_v3, %v13439_v48 }
 0x1fb   : > { %vm17248_vm7 = vcmask 781952   ;;  %v3935_v43 = vshll.u32 %v13472_v18, 16  ;;  %5787 = vst.msk [vmem:[#allocation5 + $0x18] sm:$0xf] %vm17245_vm10, %v5755_v17  ;;  %v5341_v52 = vor.u32 %v5339_v54, %v5338_v29  ;;  %v2843_v30 = vshll.u32 %v2471_v37, 16  ;;  %v10975_v10 = vld [vmem:[%s17134_s7] sm:$0xff]  }
 0x1fc   : > { %3312 = vst.msk [vmem:[#allocation3 + $0xa8] sm:$0xf] %vm17248_vm7, %v3237_v42  ;;  %v5344_v25 = vshrl.u32 %v10606_v39, 16  ;;  %v3939_v20 = vshrl.u32 %v13472_v18, 16  ;;  %v5652_v35 = vld [vmem:[#allocation4 + $0x20] sm:$0x1]  ;;  %v4915_v21 = vmul.f32 %v4883_v50, %v13470_v8  ;;  %v3924_v2 = vsel %vm11585_vm15, %v3919_v51, %v3923_v44  ;;  %vm17250_vm12 = vmmov %vm17248_vm7  ;;  %10788 = vmatprep.subr.bf16.mxu0 %v10975_v10  ;;  %v3992_v4 = vpop.permute.xlu1 %3991 }
 0x1fd   : > { %2974 = vst.msk [vmem:[#allocation3 + $0xa0] sm:$0xf] %vm2953_vm9, %v2898_v14  ;;  %v4978_v53 = vmul.f32 0.7978846, %v4946_v57  ;;  %v3352_v47 = vld [vmem:[#allocation2 + $0xc0] sm:$0xf]  ;;  %v5649_v62 = vsel %vm13344_vm8, %v5341_v52, %v5648_v46  ;;  %4007 = vrot.lane.b32.xlu1 %v3924_v2, %s11323_s18  ;;  %10789 = vmatpush3.bf16.msra.mxu0 %v10975_v10  ;;  %vm17251_vm7 = vmmov %vm17245_vm10  ;;  %v2102_v14 = vsel %vm11511_vm6, %v13458_v38, %v2101_v7 }
 0x1fe   : > { %v2847_v63 = vshrl.u32 %v2471_v37, 16  ;;  %v5346_v36 = vrot.slane %v5344_v25, 7  ;;  %v5347_v41 = vshll.u32 %v10606_v39, 16  ;;  %v3909_v56 = vrot.slane %v3908_v6, 4  ;;  %v2470_v55 = vld [vmem:[#allocation2 + $0xc0] sm:$0xf]  ;;  %3444 = vrot.lane.b32.xlu0 %v3352_v47, %s11320_s28  ;;  %v3429_v42 = vpop.permute.xlu0 %3428 }
 0x1ff   : > { %5650 = vst [vmem:[#allocation4 + $0x18] sm:$0xf] %v5649_v62  ;;  %11056 = vtanh.f32 %v4978_v53  ;;  %v4947_v40 = vadd.f32 %v4915_v21, %v13470_v8  ;;  %vm17249_vm14 = vcmask 913152   ;;  %v13511_v15 = vrot.slane %v1746_v5, 4  ;;  %v13513_v22 = vld [vmem:[#allocation2 + $0xb4] sm:$0xe] }
 0x200   : > { %3506 = vst.msk [vmem:[#allocation3 + $0xa8] sm:$0xf] %vm17249_vm14, %v3431_v24  ;;  %v13515_v49 = vld [vmem:[#allocation2 + $0xc4] sm:$0xf]  ;;  %v5134_v32 = vld [vmem:[#allocation4 + $0x54] sm:$0x1]  ;;  %v5349_v45 = vor.u32 %v5347_v41, %v5346_v36 }
 0x201   : > { %v5342_v16 = vrot.slane %v5338_v29, 4  ;;  %v5351_v61 = vrot.slane %v5346_v36, 4  ;;  %3311 = vst.msk [vmem:[#allocation3 + $0xa0] sm:$0xf] %vm17250_vm12, %v3235_v58  ;;  %v2472_v33 = vld [vmem:[#allocation2 + $0xc8] sm:$0x1]  ;;  %v3914_v29 = vsel %vm11585_vm15, %v3909_v56, %v13437_v34  ;;  %1825 = vrot.lane.b32.xlu1 %v1762_v12, %s11318_s23  ;;  %v1752_v5 = vsel %vm11585_vm15, %v13511_v15, %v13429_v11 }
 0x202   : > { %v5135_v48 = vsel %vm12717_vm2, 0, %v5134_v32  ;;  %v4979_v3 = vmul.f32 0.7978846, %v4947_v40  ;;  %v13525_v37 = vrot.slane %v2843_v30, 5  ;;  %v2849_v28 = vrot.slane %v2847_v63, 4  ;;  %4005 = vrot.lane.b32.xlu0 %v3914_v29, %s11323_s18  ;;  %v3990_v7 = vpop.permute.xlu0 %3989  ;;  %v11182_v63 = vld [vmem:[%s11483_s27 + $0x10] sm:$0xff] }
 0x203   : > { %v2834_v23 = vshrl.u32 %v2470_v55, 16  ;;  %5136 = vst [vmem:[#allocation4 + $0x54] sm:$0x1] %v5135_v48  ;;  %v5350_v51 = vsel %vm11542_vm13, %v5342_v16, %v5349_v45  ;;  %v5653_v44 = vsel %vm12717_vm2, %v5351_v61, %v5652_v35  ;;  %v2837_v54 = vshll.u32 %v2470_v55, 16  ;;  %v5818_v39 = vld [vmem:[#allocation4 + $0x4] sm:$0xf] }
 0x204   : > { %5651 = vst.msk [vmem:[#allocation4 + $0x1c] sm:$0xf] %vm17251_vm7, %v5350_v51  ;;  %5654 = vst [vmem:[#allocation4 + $0x20] sm:$0x1] %v5653_v44  ;;  %11058 = vtanh.f32 %v4979_v3  ;;  %vm17252_vm10 = vcmask 1044352   ;;  %v2853_v6 = vshll.u32 %v2472_v33, 16  ;;  %v2850_v52 = vor.u32 %v2849_v28, %v13525_v37 }
 0x205   : > { %4067 = vst.msk [vmem:[#allocation3 + $0xa8] sm:$0xf] %vm17252_vm10, %v3992_v4  ;;  %v3189_v17 = vrot.slane %v13515_v49, 5  ;;  %v10309_v34 = vrot.slane %v13513_v22, 9  ;;  %v13540_v46 = vld [vmem:[#allocation2 + $0xc8] sm:$0x1]  ;;  %2165 = vrot.lane.b32.xlu1 %v2102_v14, %s11317_s20  ;;  %vm17253_vm12 = vmmov %vm17252_vm10 }
 0x206   : > { %3505 = vst.msk [vmem:[#allocation3 + $0xa0] sm:$0xf] %vm17249_vm14, %v3429_v42  ;;  %v13544_v57 = vrot.slane %v3935_v43, 5  ;;  %v3941_v50 = vrot.slane %v3939_v20, 4  ;;  %v5875_v18 = vshll.u32 %v5818_v39, 16  ;;  %v1810_v43 = vpop.permute.xlu1 %1809  ;;  %v2836_v25 = vrot.slane %v2834_v23, 4  ;;  %1823 = vrot.lane.b32.xlu0 %v1752_v5, %s11318_s23  ;;  %v1808_v60 = vpop.permute.xlu0 %1807  ;;  %vm17254_vm10 = vmmov %vm17251_vm7 }
 0x207   : > { %v2839_v30 = vrot.slane %v2837_v54, 5  ;;  %v5879_v20 = vshrl.u32 %v5818_v39, 16  ;;  %v11180_v35 = vld [vmem:[%s11483_s27] sm:$0xff]  ;;  %1883 = vst.msk [vmem:[#allocation3 + $0xb8] sm:$0xf] %vm1859_vm1, %v1810_v43  ;;  %v2855_v21 = vrot.slane %v2853_v6, 5  ;;  %v2099_v40 = vsel %vm11511_vm6, %v10309_v34, %v2098_v19  ;;  %v4711_v34 = vpop.f32.mrf.mxu1 }
 0x208   : > { %v384_v53 = vpack.c.bf16 %v11181_v26, %v11180_v35  ;;  %v2263_v38 = vld [vmem:[#allocation2 + $0xc4] sm:$0xf]  ;;  %v3191_v11 = vrot.slane %v3189_v17, 4  ;;  %v3192_v2 = vrot.slane %v13540_v46, 5  ;;  %v3562_v47 = vld [vmem:[#allocation2 + $0xcc] sm:$0xf]  ;;  %v3942_v56 = vor.u32 %v3941_v50, %v13544_v57 }
 0x209   : > { %v11183_v62 = vld [vmem:[%s11483_s27 + $0x18] sm:$0xff]  ;;  %4066 = vst.msk [vmem:[#allocation3 + $0xa0] sm:$0xf] %vm17253_vm12, %v3990_v7  ;;  %v3031_v41 = vld [vmem:[#allocation2 + $0xc0] sm:$0xe]  ;;  %v2851_v58 = vrot.slane %v2850_v52, 4  ;;  %v2840_v10 = vor.u32 %v2839_v30, %v2836_v25  ;;  %2358 = vrot.lane.b32.xlu1 %v2263_v38, %s11319_s29  ;;  %v4713_v7 = vpop.f32.mrf.mxu1 }
 0x20a   : > { %v385_v36 = vpack.c.bf16 %v11183_v62, %v11182_v63  ;;  %v3564_v24 = vld [vmem:[#allocation2 + $0xd4] sm:$0x1]  ;;  %v5817_v55 = vld [vmem:[#allocation4] sm:$0xf]  ;;  %10790 = vmatprep.mubr.msk.bf16.mxu0 %vm415_vm5, %v384_v53  ;;  %v5819_v12 = vld [vmem:[#allocation4 + $0x8] sm:$0x1]  ;;  %v2150_v32 = vpop.permute.xlu1 %2149  ;;  %2163 = vrot.lane.b32.xlu0 %v2099_v40, %s11317_s20  ;;  %v3193_v39 = vsel %vm11511_vm6, %v3191_v11, %v3192_v2 }
 0x20b   : > { %v13574_v15 = vrot.slane %v5875_v18, 5  ;;  %v1295_v22 = vld [vmem:[#allocation2 + $0xb8] sm:$0xf]  ;;  %v5881_v16 = vrot.slane %v5879_v20, 4  ;;  %v3926_v45 = vshrl.u32 %v3562_v47, 16  ;;  %v3929_v61 = vshll.u32 %v3562_v47, 16  ;;  %v2148_v18 = vpop.permute.xlu0 %2147 }
 0x20c   : > { %10791 = vmatmul.mubr.msk.bf16.vlgmr.msra.gmra.mxu0 %vm415_vm5, %v385_v36  ;;  %1327 = vst.msk [vmem:[#allocation3 + $0xf8] sm:$0xf] %vm625_vm0, %v1295_v22  ;;  %v5866_v33 = vshrl.u32 %v5817_v55, 16  ;;  %v5869_v48 = vshll.u32 %v5817_v55, 16  ;;  %v11057_v19 = vpop.eup %11056  ;;  %v10325_v3 = vrot.slane %v3031_v41, 9  ;;  %v13581_v28 = vrot.slane %v3942_v56, 4  ;;  %v4714_v56 = vpop.f32.mrf.mxu1 }
 0x20d   : > { %2223 = vst.msk [vmem:[#allocation3 + $0xb8] sm:$0xf] %vm2199_vm3, %v2150_v32  ;;  %v3945_v23 = vshll.u32 %v3564_v24, 16  ;;  %v5885_v51 = vshll.u32 %v5819_v12, 16  ;;  %v4818_v44 = vmul.f32 0.5, %v13449_v31  ;;  %v5042_v4 = vadd.f32 1.0, %v11057_v19 }
 0x20e   : > { %1882 = vst.msk [vmem:[#allocation3 + $0xb0] sm:$0xf] %vm1859_vm1, %v1808_v60  ;;  %v2856_v29 = vsel %vm11585_vm15, %v2851_v58, %v2855_v21  ;;  %v4371_v54 = vld [vmem:[#allocation3 + $0xa8] sm:$0xff]  ;;  %v13589_v42 = vld [vmem:[#allocation4 + $0x4] sm:$0xf]  ;;  %v2343_v6 = vpop.permute.xlu1 %2342  ;;  %v2841_v50 = vrot.slane %v2840_v10, 4  ;;  %v5882_v14 = vor.u32 %v5881_v16, %v13574_v15  ;;  %v13609_v21 = vsel %vm11511_vm6, %v10325_v3, %v3189_v17  ;;  %v4716_v60 = vpop.f32.mrf.mxu1 }
 0x20f   : > { %v2262_v46 = vld [vmem:[#allocation2 + $0xc0] sm:$0xf]  ;;  %v3928_v5 = vrot.slane %v3926_v45, 4  ;;  %v3931_v31 = vrot.slane %v3929_v61, 5  ;;  %v5074_v52 = vmul.f32 %v5042_v4, %v4818_v44  ;;  %2416 = vst.msk [vmem:[#allocation3 + $0xb8] sm:$0xf] %vm2392_vm4, %v2343_v6  ;;  %2919 = vrot.lane.b32.xlu1 %v2856_v29, %s11322_s14  ;;  %v2341_v10 = vpop.permute.xlu0 %2340 }
 0x210   : > { %v13596_v43 = vld [vmem:[%s17129_s2] ss:$0 sm:$0xff]  ;;  %v4370_v30 = vld [vmem:[#allocation3 + $0xa0] sm:$0xff]  ;;  %v13601_v35 = vrot.slane %v5866_v33, 4  ;;  %v5871_v26 = vrot.slane %v5869_v48, 5  ;;  %v13611_v11 = vrot.slane %v3945_v23, 5  ;;  %2356 = vrot.lane.b32.xlu0 %v2262_v46, %s11319_s29  ;;  %v2846_v55 = vsel %vm11585_vm15, %v2841_v50, %v13525_v37 }
 0x211   : > { %v13599_v25 = vadd.f32 %v13596_v43, %v4711_v34  ;;  %v10967_v20 = vld [vmem:[#allocation3 + $0xa4] ss:$8 sps:$4 sm:$0xff]   ;;  %v11059_v53 = vpop.eup %11058  ;;  %2222 = vst.msk [vmem:[#allocation3 + $0xb0] sm:$0xf] %vm2199_vm3, %v2148_v18  ;;  %v10363_v38 = vcombine.low %v4370_v30, %v4371_v54  ;;  %v13613_v2 = vrot.slane %v5885_v51, 5  ;;  %v10607_v62 = vpack.c.bf16 %v5074_v52, %v5074_v52  ;;  %v11185_v60 = vld [vmem:[%s11483_s27 + $0x20] sm:$0xff] }
 0x212   : > { %v13615_v47 = vld [vmem:[#allocation4 + $0x8] sm:$0x1]  ;;  %v5820_v63 = vld [vmem:[#allocation4 + $0xc] sm:$0xf]  ;;  %v4819_v36 = vmul.f32 0.5, %v13470_v8  ;;  %v5043_v41 = vadd.f32 1.0, %v11059_v53  ;;  %10394 = vmatprep.mubr.msk.bf16.mxu1 %vm415_vm5, %v10967_v20  ;;  %v2904_v17 = vpop.permute.xlu1 %2903  ;;  %v3932_v58 = vor.u32 %v3931_v31, %v3928_v5  ;;  %v5872_v45 = vor.u32 %v5871_v26, %v13601_v35 }
 0x213   : > { %v4852_v24 = vmul.f32 0.044715, %v13599_v25  ;;  %v1294_v49 = vld [vmem:[#allocation2 + $0xb4] sm:$0xf]  ;;  %4766 = vmatmul.mubr.bf16.gmra.mxu1 %v10363_v38  ;;  %v13624_v40 = vrot.slane %v5882_v14, 4  ;;  %v6476_v8 = vrot.slane %v13589_v42, 5  ;;  %3256 = vrot.lane.b32.xlu1 %v3193_v39, %s11321_s17  ;;  %v13634_v37 = vadd.f32 %v13596_v43, %v4714_v56  ;;  %v2902_v31 = vpop.permute.xlu0 %2901 }
 0x214   : > { %1326 = vst.msk [vmem:[#allocation3 + $0xf0] sm:$0xf] %vm625_vm0, %v1294_v49  ;;  %v5353_v12 = vshrl.u32 %v10607_v62, 16  ;;  %v5075_v22 = vmul.f32 %v5043_v41, %v4819_v36  ;;  %v3355_v16 = vld [vmem:[#allocation2 + $0xd0] sm:$0xf]  ;;  %v6479_v33 = vrot.slane %v13615_v47, 5  ;;  %2917 = vrot.lane.b32.xlu0 %v2846_v55, %s11322_s14  ;;  %v3948_v6 = vsel %vm11585_vm15, %v13581_v28, %v13611_v11 }
 0x215   : > { %v4884_v32 = vmul.f32 %v4852_v24, %v13599_v25  ;;  %2977 = vst.msk [vmem:[#allocation3 + $0xb8] sm:$0xf] %vm2953_vm9, %v2904_v17  ;;  %v5655_v61 = vld [vmem:[#allocation4 + $0x24] sm:$0xf]  ;;  %v5890_v48 = vshrl.u32 %v5820_v63, 16  ;;  %v5893_v19 = vshll.u32 %v5820_v63, 16  ;;  %v5888_v28 = vsel %vm11585_vm15, %v13624_v40, %v13613_v2 }
 0x216   : > { %2415 = vst.msk [vmem:[#allocation3 + $0xb0] sm:$0xf] %vm2392_vm4, %v2341_v10  ;;  %v13637_v3 = vrot.slane %v5353_v12, 7  ;;  %v5356_v23 = vshll.u32 %v10607_v62, 16  ;;  %v10608_v51 = vpack.c.bf16 %v5075_v22, %v5075_v22  ;;  %v5758_v4 = vld [vmem:[#allocation4 + $0x1c] sm:$0xf]  ;;  %v3241_v39 = vpop.permute.xlu1 %3240 }
 0x217   : > { %v4916_v44 = vmul.f32 %v4884_v32, %v13599_v25  ;;  %v5757_v29 = vld [vmem:[#allocation4 + $0x18] sm:$0xf]  ;;  %v4853_v54 = vmul.f32 0.044715, %v13634_v37  ;;  %v13646_v34 = vrot.slane %v3932_v58, 4  ;;  %v13652_v50 = vrot.slane %v6476_v8, 4  ;;  %3450 = vrot.lane.b32.xlu1 %v3355_v16, %s11320_s28  ;;  %v3239_v22 = vpop.permute.xlu0 %3238 }
 0x218   : > { %v13648_v46 = vld [vmem:[#allocation4 + $0x10] sm:$0xf]  ;;  %5790 = vst.msk [vmem:[#allocation5 + $0x3c] sm:$0xf] %vm17251_vm7, %v5758_v4  ;;  %v5358_v14 = vor.u32 %v5356_v23, %v13637_v3  ;;  %v5361_v5 = vshrl.u32 %v10608_v51, 16  ;;  %vm17255_vm14 = vcmask 781952   ;;  %3254 = vrot.lane.b32.xlu0 %v13609_v21, %s11321_s17 }
 0x219   : > { %5789 = vst.msk [vmem:[#allocation5 + $0x30] sm:$0xf] %vm17254_vm10, %v5757_v29  ;;  %v13662_v52 = vrot.slane %v5872_v45, 4  ;;  %v13664_v18 = vld [vmem:[#allocation4 + $0x10] sm:$0xf]  ;;  %v4948_v35 = vadd.f32 %v4916_v44, %v13599_v25  ;;  %v4885_v26 = vmul.f32 %v4853_v54, %v13634_v37  ;;  %v13670_v53 = vrot.slane %v5890_v48, 4  ;;  %vm17257_vm7 = vmmov %vm17255_vm14 }
 0x21a   : > { %3314 = vst.msk [vmem:[#allocation3 + $0xb8] sm:$0xf] %vm17255_vm14, %v3241_v39  ;;  %v5189_v30 = vld [vmem:[#allocation4 + $0x5c] sm:$0x1]  ;;  %v5659_v20 = vld [vmem:[#allocation4 + $0x2c] sm:$0x1]  ;;  %v5656_v38 = vsel %vm13344_vm8, %v5358_v14, %v5655_v61  ;;  %v3435_v49 = vpop.permute.xlu1 %3434  ;;  %v3938_v32 = vsel %vm11585_vm15, %v13646_v34, %v13544_v57  ;;  %v6480_v2 = vsel %vm11511_vm6, %v13652_v50, %v6479_v33 }
 0x21b   : > { %2976 = vst.msk [vmem:[#allocation3 + $0xb0] sm:$0xf] %vm2953_vm9, %v2902_v31  ;;  %v13672_v7 = vrot.slane %v5893_v19, 5  ;;  %v5363_v11 = vrot.slane %v5361_v5, 7  ;;  %v5364_v63 = vshll.u32 %v10608_v51, 16  ;;  %v7502_v36 = vrot.slane %v13648_v46, 5  ;;  %4011 = vrot.lane.b32.xlu1 %v3948_v6, %s11323_s18  ;;  %v3433_v31 = vpop.permute.xlu0 %3432 }
 0x21c   : > { %v3354_v62 = vld [vmem:[#allocation2 + $0xcc] sm:$0xf]  ;;  %5657 = vst [vmem:[#allocation4 + $0x24] sm:$0xf] %v5656_v38  ;;  %v4980_v41 = vmul.f32 0.7978846, %v4948_v35  ;;  %v4917_v24 = vmul.f32 %v4885_v26, %v13634_v37 }
 0x21d   : > { %v13680_v17 = vld [vmem:[#allocation4 + $0x14] sm:$0x1]  ;;  %v5899_v56 = vshll.u32 %v13664_v18, 16  ;;  %v5190_v55 = vsel %vm12738_vm11, 0, %v5189_v30  ;;  %v5359_v58 = vrot.slane %v13637_v3, 4  ;;  %v5366_v21 = vor.u32 %v5364_v63, %v5363_v11  ;;  %v11186_v48 = vld [vmem:[%s11483_s27 + $0x28] sm:$0xff]  ;;  %3448 = vrot.lane.b32.xlu0 %v3354_v62, %s11320_s28 }
 0x21e   : > { %v5368_v12 = vrot.slane %v5363_v11, 4  ;;  %vm17256_vm12 = vcmask 913152   ;;  %5191 = vst [vmem:[#allocation4 + $0x5c] sm:$0x1] %v5190_v55  ;;  %v4120_v10 = vld [vmem:[#allocation2 + $0xc0] sm:$0xe]  ;;  %11060 = vtanh.f32 %v4980_v41  ;;  %v4949_v45 = vadd.f32 %v4917_v24, %v13634_v37  ;;  %v3996_v54 = vpop.permute.xlu1 %3995 }
 0x21f   : > { %3508 = vst.msk [vmem:[#allocation3 + $0xb8] sm:$0xf] %vm17256_vm12, %v3435_v49  ;;  %v4121_v16 = vld [vmem:[#allocation2 + $0xc4] sm:$0xf]  ;;  %v5903_v61 = vshrl.u32 %v13664_v18, 16  ;;  %v386_v19 = vpack.c.bf16 %v11186_v48, %v11185_v60  ;;  %v5367_v57 = vsel %vm11542_vm13, %v5359_v58, %v5366_v21  ;;  %v7504_v44 = vrot.slane %v7502_v36, 4  ;;  %6251 = vrot.lane.b32.xlu1 %v5888_v28, %s11317_s20  ;;  %v3994_v50 = vpop.permute.xlu0 %3993 }
 0x220   : > { %3313 = vst.msk [vmem:[#allocation3 + $0xb0] sm:$0xf] %vm17257_vm7, %v3239_v22  ;;  %v5137_v3 = vld [vmem:[#allocation4 + $0x60] sm:$0x1]  ;;  %v4122_v23 = vld [vmem:[#allocation2 + $0xc8] sm:$0x1]  ;;  %v5660_v51 = vsel %vm12717_vm2, %v5368_v12, %v5659_v20 }
 0x221   : > { %v5138_v4 = vsel %vm12717_vm2, 0, %v5137_v3  ;;  %5658 = vst.msk [vmem:[#allocation4 + $0x28] sm:$0xf] %vm17254_vm10, %v5367_v57  ;;  %5661 = vst [vmem:[#allocation4 + $0x2c] sm:$0x1] %v5660_v51  ;;  %10794 = vmatprep.mubr.msk.bf16.mxu0 %vm415_vm5, %v386_v19  ;;  %v11187_v39 = vld [vmem:[%s11483_s27 + $0x30] sm:$0xff]  ;;  %4009 = vrot.lane.b32.xlu0 %v3938_v32, %s11323_s18  ;;  %s17076_s18 = scalar_lea.hbm %s17136_s9, %s10635_s25 }
 0x222   : > { %v4981_v29 = vmul.f32 0.7978846, %v4949_v45  ;;  %5139 = vst [vmem:[#allocation4 + $0x60] sm:$0x1] %v5138_v4  ;;  %v11188_v6 = vld [vmem:[%s11483_s27 + $0x38] sm:$0xff]  ;;  %v10340_v14 = vrot.slane %v4120_v10, 9 }
 0x223   : > { %v387_v34 = vpack.c.bf16 %v11188_v6, %v11187_v39  ;;  %v4274_v5 = vrot.slane %v4121_v16, 5  ;;  %vm17258_vm14 = vcmask 1044352   ;;  %v7505_v18 = vrot.slane %v13680_v17, 5  ;;  %v7404_v30 = vld [vmem:[#allocation4 + $0xc] sm:$0xe]  ;;  %v11189_v26 = vld [vmem:[%s11483_s27 + $0x40] sm:$0xff] }
 0x224   : > { %4069 = vst.msk [vmem:[#allocation3 + $0xb8] sm:$0xf] %vm17258_vm14, %v3996_v54  ;;  %v13712_v20 = vrot.slane %v5899_v56, 5  ;;  %v4277_v35 = vrot.slane %v4122_v23, 5  ;;  %v11190_v38 = vld [vmem:[%s11483_s27 + $0x48] sm:$0xff]  ;;  %11062 = vtanh.f32 %v4981_v29  ;;  %v5905_v62 = vrot.slane %v5903_v61, 4  ;;  %v1814_v56 = vpop.permute.xlu1 %1813  ;;  %vm17259_vm7 = vmmov %vm17258_vm14 }
 0x225   : > { %v388_v11 = vpack.c.bf16 %v11190_v38, %v11189_v26  ;;  %3507 = vst.msk [vmem:[#allocation3 + $0xb0] sm:$0xf] %vm17256_vm12, %v3433_v31  ;;  %v7934_v63 = vld [vmem:[#allocation4 + $0x1c] sm:$0xf]  ;;  %v7933_v41 = vld [vmem:[#allocation4 + $0x18] sm:$0xf]  ;;  %10795 = vmatmul.mubr.msk.bf16.gmra.mxu0 %vm415_vm5, %v387_v34  ;;  %v4275_v24 = vsel %vm11511_vm6, %v10340_v14, %v4274_v5  ;;  %v5878_v17 = vsel %vm11585_vm15, %v13662_v52, %v13574_v15  ;;  %v1812_v34 = vpop.permute.xlu0 %1811  ;;  %vm17260_vm14 = vmmov %vm17254_vm10 }
 0x226   : > { %v4276_v49 = vrot.slane %v4274_v5, 4  ;;  %v5822_v40 = vld [vmem:[#allocation4 + $0x14] sm:$0x1]  ;;  %4346 = vst.msk [vmem:[#allocation3 + $0xe4] sm:$0xf] %vm625_vm0, %v4275_v24  ;;  %v7506_v55 = vsel %vm11511_vm6, %v7504_v44, %v7505_v18  ;;  %v10448_v58 = vrot.slane %v7404_v30, 9  ;;  %v5896_v15 = vor.u32 %v13672_v7, %v13670_v53  ;;  %6249 = vrot.lane.b32.xlu0 %v5878_v17, %s11317_s20  ;;  %vm17261_vm12 = vmmov %vm17254_vm10 }
 0x227   : > { %10798 = vmatprep.mubr.msk.bf16.mxu0 %vm415_vm5, %v388_v11  ;;  %v6909_v28 = vld [vmem:[#allocation4 + $0x10] sm:$0xf]  ;;  %v6378_v21 = vld [vmem:[#allocation4] sm:$0xe]  ;;  %v6908_v33 = vld [vmem:[#allocation4 + $0xc] sm:$0xf]  ;;  %7614 = vrot.lane.b32.xlu1 %v7506_v55, %s11317_s20  ;;  %v5906_v53 = vor.u32 %v5905_v62, %v13712_v20 }
 0x228   : > { %v4278_v47 = vsel %vm11511_vm6, %v4276_v49, %v4277_v35  ;;  %1885 = vst.msk [vmem:[#allocation3 + $0xc8] sm:$0xf] %vm1859_vm1, %v1814_v56  ;;  %v7991_v52 = vshll.u32 %v7934_v63, 16  ;;  %v7995_v12 = vshrl.u32 %v7934_v63, 16  ;;  %v7982_v22 = vshrl.u32 %v7933_v41, 16  ;;  %v11191_v16 = vld [vmem:[%s11483_s27 + $0x50] sm:$0xff]  ;;  %v2154_v4 = vpop.permute.xlu1 %2153 }
 0x229   : > { %v7985_v32 = vshll.u32 %v7933_v41, 16  ;;  %4347 = vst.msk [vmem:[#allocation3 + $0xec] sm:$0xf] %vm625_vm0, %v4278_v47  ;;  %v6910_v10 = vld [vmem:[#allocation4 + $0x14] sm:$0x1]  ;;  %v5909_v7 = vshll.u32 %v5822_v40, 16  ;;  %v7503_v29 = vsel %vm11511_vm6, %v10448_v58, %v7502_v36  ;;  %v2152_v55 = vpop.permute.xlu0 %2151 }
 0x22a   : > { %4068 = vst.msk [vmem:[#allocation3 + $0xb0] sm:$0xf] %vm17259_vm7, %v3994_v50  ;;  %v11192_v45 = vld [vmem:[%s11483_s27 + $0x58] sm:$0xff]  ;;  %v6966_v60 = vshll.u32 %v6909_v28, 16  ;;  %v11193_v19 = vld [vmem:[%s11483_s27 + $0x60] sm:$0xff]  ;;  %v11194_v3 = vld [vmem:[%s11483_s27 + $0x68] sm:$0xff]  ;;  %7612 = vrot.lane.b32.xlu0 %v7503_v29, %s11317_s20 }
 0x22b   : > { %v389_v61 = vpack.c.bf16 %v11192_v45, %v11191_v16  ;;  %v13752_v48 = vld [vmem:[#allocation4 + $0x10] sm:$0xf]  ;;  %v390_v23 = vpack.c.bf16 %v11194_v3, %v11193_v19  ;;  %v6970_v57 = vshrl.u32 %v6909_v28, 16  ;;  %v6957_v51 = vshrl.u32 %v6908_v33, 16  ;;  %2225 = vst.msk [vmem:[#allocation3 + $0xc8] sm:$0xf] %vm2199_vm3, %v2154_v4  ;;  %6588 = vrot.lane.b32.xlu1 %v6480_v2, %s11322_s14  ;;  %v11061_v26 = vpop.eup %11060  ;;  %v4719_v2 = vpop.f32.mrf.mxu1  ;;  %vm17262_vm7 = vmmov %vm17254_vm10 }
 0x22c   : > { %v6960_v44 = vshll.u32 %v6908_v33, 16  ;;  %v10432_v54 = vrot.slane %v6378_v21, 9  ;;  %v13760_v39 = vrot.slane %v5896_v15, 4  ;;  %v6976_v6 = vshll.u32 %v6910_v10, 16  ;;  %1884 = vst.msk [vmem:[#allocation3 + $0xc0] sm:$0xf] %vm1859_vm1, %v1812_v34  ;;  %v2347_v17 = vpop.permute.xlu1 %2346 }
 0x22d   : > { %v13763_v14 = vrot.slane %v7991_v52, 5  ;;  %v13765_v5 = vrot.slane %v7995_v12, 4  ;;  %v13767_v31 = vrot.slane %v7982_v22, 4  ;;  %v13769_v18 = vrot.slane %v7985_v32, 5  ;;  %10799 = vmatmul.mubr.msk.bf16.gmra.mxu0 %vm415_vm5, %v389_v61  ;;  %v4373_v38 = vld [vmem:[#allocation3 + $0xb8] sm:$0xff]  ;;  %v4721_v50 = vpop.f32.mrf.mxu1  ;;  %v11195_v32 = vld [vmem:[%s11483_s27 + $0x70] sm:$0xff] }
 0x22e   : > { %v13773_v46 = vrot.slane %v5906_v53, 4  ;;  %v13775_v36 = vrot.slane %v5909_v7, 5  ;;  %v6483_v30 = vrot.slane %v13752_v48, 5  ;;  %v13779_v35 = vrot.slane %v6966_v60, 5  ;;  %v13782_v11 = vld [vmem:[#allocation4 + $0x20] sm:$0x1]  ;;  %10802 = vmatprep.mubr.msk.bf16.mxu0 %vm415_vm5, %v390_v23 }
 0x22f   : > { %v13785_v63 = vrot.slane %v6970_v57, 4  ;;  %v13787_v62 = vrot.slane %v6957_v51, 4  ;;  %v13789_v41 = vrot.slane %v6960_v44, 5  ;;  %v4820_v24 = vmul.f32 0.5, %v13599_v25  ;;  %v7742_v40 = vld [vmem:[#allocation4 + $0x1c] sm:$0xf]  ;;  %v4722_v29 = vpop.f32.mrf.mxu1 }
 0x230   : > { %v5044_v49 = vadd.f32 1.0, %v11061_v26  ;;  %v6477_v28 = vsel %vm11511_vm6, %v10432_v54, %v6476_v8  ;;  %v13796_v56 = vld [vmem:[#allocation4 + $0x18] sm:$0xf]  ;;  %2418 = vst.msk [vmem:[#allocation3 + $0xc8] sm:$0xf] %vm2392_vm4, %v2347_v17  ;;  %v13800_v58 = vadd.f32 %v13596_v43, %v4719_v2  ;;  %v7998_v15 = vor.u32 %v13765_v5, %v13763_v14  ;;  %v10978_v8 = vld [vmem:[%s17130_s3 + $0x78] sm:$0xff]   ;;  %7807 = vrot.lane.b32.xlu1 %v7742_v40, %s11322_s14  ;;  %v2908_v4 = vpop.permute.xlu1 %2907 }
 0x231   : > { %v4372_v25 = vld [vmem:[#allocation3 + $0xb0] sm:$0xff]  ;;  %v7988_v42 = vor.u32 %v13769_v18, %v13767_v31  ;;  %v13806_v47 = vrot.slane %v6976_v6, 5  ;;  %2224 = vst.msk [vmem:[#allocation3 + $0xc0] sm:$0xf] %vm2199_vm3, %v2152_v55  ;;  %v8001_v12 = vshll.u32 %v13782_v11, 16  ;;  %v11063_v7 = vpop.eup %11062  ;;  %6586 = vrot.lane.b32.xlu0 %v6477_v28, %s11322_s14  ;;  %v5912_v61 = vsel %vm11585_vm15, %v13773_v46, %v13775_v36  ;;  %v10979_v23 = vld [vmem:[%s17130_s3 + $0x38] sm:$0xff]   ;;  %10653 = vmatprep.subr.bf16.mxu0 %v10978_v8  ;;  %v2345_v31 = vpop.permute.xlu0 %2344 }
 0x232   : > { %v10969_v21 = vld [vmem:[#allocation3 + $0xb4] ss:$8 sps:$4 sm:$0xff]   ;;  %v5076_v33 = vmul.f32 %v5044_v49, %v4820_v24  ;;  %v10365_v52 = vcombine.low %v4372_v25, %v4373_v38  ;;  %v4854_v16 = vmul.f32 0.044715, %v13800_v58  ;;  %v6716_v45 = vld [vmem:[#allocation4 + $0x10] sm:$0xf]  ;;  %v6973_v3 = vor.u32 %v13785_v63, %v13779_v35  ;;  %10654 = vmatpush3.bf16.msra.mxu0 %v10979_v23  ;;  %v4724_v17 = vpop.f32.mrf.mxu1 }
 0x233   : > { %v13814_v22 = vld [vmem:[#allocation4 + $0x1c] sm:$0xf]  ;;  %v11196_v10 = vld [vmem:[%s11483_s27 + $0x78] sm:$0xff]  ;;  %10395 = vmatprep.mubr.msk.bf16.mxu1 %vm415_vm5, %v10969_v21  ;;  %v5914_v19 = vshrl.u32 %v13796_v56, 16  ;;  %v4821_v51 = vmul.f32 0.5, %v13634_v37  ;;  %v5045_v44 = vadd.f32 1.0, %v11063_v7  ;;  %v6963_v34 = vor.u32 %v13789_v41, %v13787_v62 }
 0x234   : > { %v391_v53 = vpack.c.bf16 %v11196_v10, %v11195_v32  ;;  %v13825_v60 = vld [vmem:[#allocation4 + $0x1c] sm:$0xf]  ;;  %v10609_v57 = vpack.c.bf16 %v5076_v33, %v5076_v33  ;;  %4774 = vmatmul.mubr.bf16.gmra.mxu1 %v10365_v52  ;;  %v5754_v54 = vld [vmem:[#allocation4 + $0x4] sm:$0xf]  ;;  %v5753_v6 = vld [vmem:[#allocation4] sm:$0xf]  ;;  %v4886_v5 = vmul.f32 %v4854_v16, %v13800_v58  ;;  %v13839_v18 = vadd.f32 %v13596_v43, %v4722_v29  ;;  %v3245_v52 = vpop.permute.xlu1 %3244 }
 0x235   : > { %2979 = vst.msk [vmem:[#allocation3 + $0xc8] sm:$0xf] %vm2953_vm9, %v2908_v4  ;;  %v7741_v26 = vld [vmem:[#allocation4 + $0x18] sm:$0xf]  ;;  %v7999_v37 = vrot.slane %v7998_v15, 4  ;;  %v7509_v11 = vrot.slane %v13814_v22, 5  ;;  %v5077_v49 = vmul.f32 %v5045_v44, %v4821_v51  ;;  %6781 = vrot.lane.b32.xlu1 %v6716_v45, %s11320_s28  ;;  %v2906_v7 = vpop.permute.xlu0 %2905 }
 0x236   : > { %v13841_v38 = vld [vmem:[#allocation4 + $0x20] sm:$0x1]  ;;  %5786 = vst.msk [vmem:[#allocation5 + $0xc] sm:$0xf] %vm17254_vm10, %v5754_v54  ;;  %v5370_v24 = vshrl.u32 %v10609_v57, 16  ;;  %v8003_v2 = vrot.slane %v8001_v12, 5  ;;  %10803 = vmatmul.mubr.msk.bf16.gmra.mxu0 %vm415_vm5, %v391_v53  ;;  %v4918_v55 = vmul.f32 %v4886_v5, %v13800_v58  ;;  %7805 = vrot.lane.b32.xlu0 %v7741_v26, %s11322_s14 }
 0x237   : > { %5785 = vst.msk [vmem:[#allocation5] sm:$0xf] %vm17260_vm14, %v5753_v6  ;;  %v13848_v40 = vrot.slane %v7988_v42, 4  ;;  %v5760_v28 = vld [vmem:[#allocation4 + $0x28] sm:$0xf]  ;;  %v5923_v21 = vshll.u32 %v13825_v60, 16  ;;  %v10610_v42 = vpack.c.bf16 %v5077_v49, %v5077_v49 }
 0x238   : > { %2417 = vst.msk [vmem:[#allocation3 + $0xc0] sm:$0xf] %vm2392_vm4, %v2345_v31  ;;  %v4855_v25 = vmul.f32 0.044715, %v13839_v18  ;;  %v5927_v15 = vshrl.u32 %v13825_v60, 16  ;;  %v5372_v33 = vrot.slane %v5370_v24, 7  ;;  %v4950_v10 = vadd.f32 %v4918_v55, %v13800_v58  ;;  %v3439_v24 = vpop.permute.xlu1 %3438 }
 0x239   : > { %5792 = vst.msk [vmem:[#allocation5 + $0x54] sm:$0xf] %vm17261_vm12, %v5760_v28  ;;  %v5759_v8 = vld [vmem:[#allocation4 + $0x24] sm:$0xf]  ;;  %v5373_v50 = vshll.u32 %v10609_v57, 16  ;;  %v5917_v12 = vshll.u32 %v13796_v56, 16  ;;  %v8004_v16 = vsel %vm11585_vm15, %v7999_v37, %v8003_v2  ;;  %v7994_v44 = vsel %vm11585_vm15, %v13848_v40, %v13763_v14  ;;  %v3243_v40 = vpop.permute.xlu0 %3242 }
 0x23a   : > { %5791 = vst.msk [vmem:[#allocation5 + $0x48] sm:$0xf] %vm17262_vm7, %v5759_v8  ;;  %v5662_v32 = vld [vmem:[#allocation4 + $0x30] sm:$0xf]  ;;  %v4887_v53 = vmul.f32 %v4855_v25, %v13839_v18  ;;  %vm17263_vm10 = vcmask 781952   ;;  %v7511_v45 = vrot.slane %v7509_v11, 4  ;;  %8367 = vrot.lane.b32.xlu1 %v8004_v16, %s11320_s28 }
 0x23b   : > { %3316 = vst.msk [vmem:[#allocation3 + $0xc8] sm:$0xf] %vm17263_vm10, %v3245_v52  ;;  %v5192_v60 = vld [vmem:[#allocation4 + $0x68] sm:$0x1]  ;;  %v5375_v23 = vor.u32 %v5373_v50, %v5372_v33  ;;  %v5378_v57 = vshrl.u32 %v10610_v42, 16  ;;  %v7512_v4 = vrot.slane %v13841_v38, 5  ;;  %vm17265_vm12 = vmmov %vm17263_vm10 }
 0x23c   : > { %2978 = vst.msk [vmem:[#allocation3 + $0xc0] sm:$0xf] %vm2953_vm9, %v2906_v7  ;;  %v6715_v51 = vld [vmem:[#allocation4 + $0xc] sm:$0xf]  ;;  %v4982_v29 = vmul.f32 0.7978846, %v4950_v10  ;;  %v4919_v54 = vmul.f32 %v4887_v53, %v13839_v18  ;;  %v4000_v53 = vpop.permute.xlu1 %3999  ;;  %vm17266_vm10 = vmmov %vm17262_vm7 }
 0x23d   : > { %6779 = vrot.lane.b32.xlu0 %v6715_v51, %s11320_s28  ;;  %v13875_v6 = vrot.slane %v5923_v21, 5  ;;  %v13877_v5 = vrot.slane %v5927_v15, 4  ;;  %v5663_v31 = vsel %vm13344_vm8, %v5375_v23, %v5662_v32  ;;  %v5380_v26 = vrot.slane %v5378_v57, 7  ;;  %v13881_v49 = vld [vmem:[#allocation4 + $0x28] sm:$0xf]  ;;  %v11197_v15 = vld [vmem:[%s11483_s27 + $0x80] sm:$0xff]  ;;  %v3437_v62 = vpop.permute.xlu0 %3436 }
 0x23e   : > { %v5381_v37 = vshll.u32 %v10610_v42, 16  ;;  %v5193_v14 = vsel %vm12738_vm11, 0, %v5192_v60  ;;  %v5376_v38 = vrot.slane %v5372_v33, 4  ;;  %5664 = vst [vmem:[#allocation4 + $0x30] sm:$0xf] %v5663_v31  ;;  %11064 = vtanh.f32 %v4982_v29  ;;  %6255 = vrot.lane.b32.xlu1 %v5912_v61, %s11317_s20  ;;  %v11198_v8 = vld [vmem:[%s11483_s27 + $0x88] sm:$0xff] }
 0x23f   : > { %v5666_v17 = vld [vmem:[#allocation4 + $0x38] sm:$0x1]  ;;  %v4951_v2 = vadd.f32 %v4919_v54, %v13839_v18  ;;  %vm17264_vm14 = vcmask 913152   ;;  %5194 = vst [vmem:[#allocation4 + $0x68] sm:$0x1] %v5193_v14  ;;  %v6974_v28 = vrot.slane %v6973_v3, 4  ;;  %v392_v33 = vpack.c.bf16 %v11198_v8, %v11197_v15 }
 0x240   : > { %3510 = vst.msk [vmem:[#allocation3 + $0xc8] sm:$0xf] %vm17264_vm14, %v3439_v24  ;;  %v5140_v55 = vld [vmem:[#allocation4 + $0x6c] sm:$0x1]  ;;  %v5383_v25 = vor.u32 %v5381_v37, %v5380_v26  ;;  %v5385_v21 = vrot.slane %v5380_v26, 4  ;;  %v11200_v42 = vld [vmem:[%s11483_s27 + $0x98] sm:$0xff]  ;;  %v7513_v41 = vsel %vm11511_vm6, %v7511_v45, %v7512_v4  ;;  %v5902_v45 = vsel %vm11585_vm15, %v13760_v39, %v13712_v20  ;;  %v1818_v20 = vpop.permute.xlu1 %1817 }
 0x241   : > { %3315 = vst.msk [vmem:[#allocation3 + $0xc0] sm:$0xf] %vm17265_vm12, %v3243_v40  ;;  %v11199_v50 = vld [vmem:[%s11483_s27 + $0x90] sm:$0xff]  ;;  %v4983_v63 = vmul.f32 0.7978846, %v4951_v2  ;;  %8365 = vrot.lane.b32.xlu0 %v7994_v44, %s11320_s28  ;;  %v8015_v32 = vshll.u32 %v13881_v49, 16  ;;  %v6979_v10 = vsel %vm11585_vm15, %v6974_v28, %v13806_v47  ;;  %10806 = vmatprep.mubr.msk.bf16.mxu0 %vm415_vm5, %v392_v33  ;;  %v5930_v44 = vor.u32 %v13877_v5, %v13875_v6  ;;  %v3998_v56 = vpop.permute.xlu0 %3997 }
 0x242   : > { %v393_v52 = vpack.c.bf16 %v11200_v42, %v11199_v50  ;;  %v6383_v3 = vld [vmem:[#allocation4 + $0x14] sm:$0x1]  ;;  %v6964_v46 = vrot.slane %v6963_v34, 4  ;;  %v5384_v36 = vsel %vm11542_vm13, %v5376_v38, %v5383_v25  ;;  %v5667_v61 = vsel %vm12717_vm2, %v5385_v21, %v5666_v17  ;;  %v5825_v16 = vld [vmem:[#allocation4 + $0x20] sm:$0x1]  ;;  %7618 = vrot.lane.b32.xlu1 %v7513_v41, %s11317_s20  ;;  %s10162_s29 = sshll.u32 %s16979_s16, 4  ;;  %s17078_s29 = int_to_ptr.vmem [resolvable:$true] %s10162_s29 }
 0x243   : > { %v8019_v7 = vshrl.u32 %v13881_v49, 16  ;;  %v7936_v60 = vld [vmem:[#allocation4 + $0x24] sm:$0xf]  ;;  %7373 = vst.msk [vmem:[#allocation5 + $0x10] sm:$0xf] %vm17262_vm7, %v6979_v10  ;;  %v5141_v47 = vsel %vm12717_vm2, 0, %v5140_v55  ;;  %11066 = vtanh.f32 %v4983_v63 }
 0x244   : > { %5665 = vst.msk [vmem:[#allocation4 + $0x34] sm:$0xf] %vm17266_vm10, %v5384_v36  ;;  %5668 = vst [vmem:[#allocation4 + $0x38] sm:$0x1] %v5667_v61  ;;  %vm17267_vm14 = vcmask 1044352   ;;  %v6485_v34 = vrot.slane %v6483_v30, 4  ;;  %10807 = vmatmul.mubr.msk.bf16.gmra.mxu0 %vm415_vm5, %v393_v52  ;;  %v6969_v57 = vsel %vm11585_vm15, %v6964_v46, %v13779_v35  ;;  %v2158_v8 = vpop.permute.xlu1 %2157 }
 0x245   : > { %4071 = vst.msk [vmem:[#allocation3 + $0xc8] sm:$0xf] %vm17267_vm14, %v4000_v53  ;;  %v7407_v23 = vld [vmem:[#allocation4 + $0x18] sm:$0xe]  ;;  %5142 = vst [vmem:[#allocation4 + $0x6c] sm:$0x1] %v5141_v47  ;;  %6253 = vrot.lane.b32.xlu0 %v5902_v45, %s11317_s20 }
 0x246   : > { %vm17268_vm12 = vcmask 913152   ;;  %v6381_v51 = vld [vmem:[#allocation4 + $0xc] sm:$0xe]  ;;  %v5916_v4 = vrot.slane %v5914_v19, 4  ;;  %v5919_v35 = vrot.slane %v5917_v12, 5  ;;  %v6486_v29 = vrot.slane %v6383_v3, 5  ;;  %vm17269_vm10 = vmmov %vm17267_vm14 }
 0x247   : > { %3509 = vst.msk [vmem:[#allocation3 + $0xc0] sm:$0xf] %vm17268_vm12, %v3437_v62  ;;  %v5933_v54 = vshll.u32 %v5825_v16, 16  ;;  %v8006_v31 = vshrl.u32 %v7936_v60, 16  ;;  %v8009_v26 = vshll.u32 %v7936_v60, 16  ;;  %v10449_v39 = vrot.slane %v7407_v23, 9 }
 0x248   : > { %7372 = vst.msk [vmem:[#allocation5 + $0x4] sm:$0xf] %vm17262_vm7, %v6969_v57  ;;  %v13942_v37 = vld [vmem:[#allocation4 + $0x18] sm:$0xe]  ;;  %v13944_v24 = vrot.slane %v8015_v32, 5  ;;  %v8021_v5 = vrot.slane %v8019_v7, 4  ;;  %v6487_v19 = vsel %vm11511_vm6, %v6485_v34, %v6486_v29  ;;  %v5920_v2 = vor.u32 %v5919_v35, %v5916_v4  ;;  %v1816_v32 = vpop.permute.xlu0 %1815 }
 0x249   : > { %v13946_v49 = vld [vmem:[#allocation4 + $0x1c] sm:$0xf]  ;;  %1887 = vst.msk [vmem:[#allocation3 + $0xd8] sm:$0xf] %vm1859_vm1, %v1818_v20  ;;  %v10433_v12 = vrot.slane %v6381_v51, 9  ;;  %6592 = vrot.lane.b32.xlu1 %v6487_v19, %s11322_s14  ;;  %v7510_v38 = vsel %vm11511_vm6, %v10449_v39, %v7509_v11  ;;  %v13957_v17 = vrot.slane %v5930_v44, 4  ;;  %v2351_v51 = vpop.permute.xlu1 %2350  ;;  %v4727_v44 = vpop.f32.mrf.mxu1 }
 0x24a   : > { %v5827_v14 = vld [vmem:[#allocation4 + $0x28] sm:$0xf]  ;;  %4070 = vst.msk [vmem:[#allocation3 + $0xc0] sm:$0xf] %vm17269_vm10, %v3998_v56  ;;  %v13959_v40 = vld [vmem:[#allocation4 + $0x20] sm:$0x1]  ;;  %7616 = vrot.lane.b32.xlu0 %v7510_v38, %s11317_s20  ;;  %v8022_v33 = vor.u32 %v8021_v5, %v13944_v24  ;;  %v14010_v39 = vadd.f32 %v13596_v43, %v4727_v44 }
 0x24b   : > { %v10434_v28 = vrot.slane %v13942_v37, 9  ;;  %v5826_v55 = vld [vmem:[#allocation4 + $0x24] sm:$0xf]  ;;  %v7938_v25 = vld [vmem:[#allocation4 + $0x2c] sm:$0x1]  ;;  %v13963_v21 = vrot.slane %v5933_v54, 5  ;;  %v6484_v46 = vsel %vm11511_vm6, %v10433_v12, %v6483_v30  ;;  %v11065_v7 = vpop.eup %11064 }
 0x24c   : > { %v13965_v15 = vrot.slane %v8006_v31, 4  ;;  %v13967_v22 = vrot.slane %v8009_v26, 5  ;;  %v6490_v11 = vrot.slane %v13946_v49, 5  ;;  %v5947_v50 = vshll.u32 %v5827_v14, 16  ;;  %v11201_v52 = vld [vmem:[%s11483_s27 + $0xa0] sm:$0xff]  ;;  %v11202_v63 = vld [vmem:[%s11483_s27 + $0xa8] sm:$0xff]  ;;  %v2156_v20 = vpop.permute.xlu0 %2155 }
 0x24d   : > { %v5951_v42 = vshrl.u32 %v5827_v14, 16  ;;  %v394_v3 = vpack.c.bf16 %v11202_v63, %v11201_v52  ;;  %2227 = vst.msk [vmem:[#allocation3 + $0xd8] sm:$0xf] %vm2199_vm3, %v2158_v8  ;;  %v7744_v10 = vld [vmem:[#allocation4 + $0x28] sm:$0xf]  ;;  %v5938_v61 = vshrl.u32 %v5826_v55, 16  ;;  %v5936_v60 = vsel %vm11585_vm15, %v13957_v17, %v13963_v21 }
 0x24e   : > { %v13978_v36 = vld [vmem:[#allocation4 + $0x28] sm:$0xf]  ;;  %v5941_v53 = vshll.u32 %v5826_v55, 16  ;;  %1886 = vst.msk [vmem:[#allocation3 + $0xd0] sm:$0xf] %vm1859_vm1, %v1816_v32  ;;  %7811 = vrot.lane.b32.xlu1 %v7744_v10, %s11322_s14  ;;  %v8025_v16 = vshll.u32 %v7938_v25, 16  ;;  %6590 = vrot.lane.b32.xlu0 %v6484_v46, %s11322_s14  ;;  %v8012_v23 = vor.u32 %v13967_v22, %v13965_v15  ;;  %v2912_v10 = vpop.permute.xlu1 %2911 }
 0x24f   : > { %v13986_v47 = vrot.slane %v5920_v2, 4  ;;  %v6493_v48 = vrot.slane %v13959_v40, 5  ;;  %10810 = vmatprep.mubr.msk.bf16.mxu0 %vm415_vm5, %v394_v3  ;;  %v4822_v30 = vmul.f32 0.5, %v13800_v58  ;;  %v5046_v62 = vadd.f32 1.0, %v11065_v7  ;;  %v6718_v41 = vld [vmem:[#allocation4 + $0x1c] sm:$0xf]  ;;  %v4729_v2 = vpop.f32.mrf.mxu1 }
 0x250   : > { %v4375_v34 = vld [vmem:[#allocation3 + $0xc8] sm:$0xff]  ;;  %v13996_v57 = vrot.slane %v6490_v11, 4  ;;  %v13998_v45 = vld [vmem:[#allocation4 + $0x24] sm:$0xe]  ;;  %v8023_v35 = vrot.slane %v8022_v33, 4  ;;  %v7516_v58 = vrot.slane %v13978_v36, 5  ;;  %v11067_v38 = vpop.eup %11066 }
 0x251   : > { %v7743_v4 = vld [vmem:[#allocation4 + $0x24] sm:$0xf]  ;;  %v14001_v29 = vrot.slane %v5947_v50, 5  ;;  %v14003_v54 = vrot.slane %v5951_v42, 4  ;;  %v10980_v31 = vld [vmem:[%s17130_s3 + $0x70] sm:$0xff]   ;;  %v5078_v26 = vmul.f32 %v5046_v62, %v4822_v30  ;;  %v14014_v12 = vrot.slane %v5938_v61, 4  ;;  %v4730_v46 = vpop.f32.mrf.mxu1 }
 0x252   : > { %2420 = vst.msk [vmem:[#allocation3 + $0xd8] sm:$0xf] %vm2392_vm4, %v2351_v51  ;;  %v4374_v5 = vld [vmem:[#allocation3 + $0xc0] sm:$0xff]  ;;  %v14012_v19 = vld [vmem:[#allocation4 + $0x2c] sm:$0x1]  ;;  %v14016_v14 = vrot.slane %v5941_v53, 5  ;;  %6785 = vrot.lane.b32.xlu1 %v6718_v41, %s11320_s28  ;;  %v5926_v15 = vsel %vm11585_vm15, %v13986_v47, %v13875_v6  ;;  %10655 = vmatprep.subr.bf16.mxu0 %v10980_v31  ;;  %v2349_v41 = vpop.permute.xlu0 %2348  ;;  %v14054_v44 = vadd.f32 %v13596_v43, %v4730_v46  ;;  %v3249_v2 = vpop.permute.xlu1 %3248 }
 0x253   : > { %v10971_v56 = vld [vmem:[#allocation3 + $0xc4] ss:$8 sps:$4 sm:$0xff]   ;;  %2226 = vst.msk [vmem:[#allocation3 + $0xd0] sm:$0xf] %vm2199_vm3, %v2156_v20  ;;  %v10367_v55 = vcombine.low %v4374_v5, %v4375_v34  ;;  %v8027_v25 = vrot.slane %v8025_v16, 5  ;;  %v10450_v22 = vrot.slane %v13998_v45, 9  ;;  %v10611_v50 = vpack.c.bf16 %v5078_v26, %v5078_v26  ;;  %7809 = vrot.lane.b32.xlu0 %v7743_v4, %s11322_s14  ;;  %v4732_v4 = vpop.f32.mrf.mxu1 }
 0x254   : > { %v14025_v8 = vld [vmem:[#allocation4 + $0x2c] sm:$0x1]  ;;  %v14027_v33 = vld [vmem:[#allocation4 + $0x28] sm:$0xf]  ;;  %v4823_v42 = vmul.f32 0.5, %v13839_v18  ;;  %v5047_v52 = vadd.f32 1.0, %v11067_v38  ;;  %10396 = vmatprep.mubr.msk.bf16.mxu1 %vm415_vm5, %v10971_v56  ;;  %v5954_v7 = vor.u32 %v14003_v54, %v14001_v29  ;;  %v5944_v51 = vor.u32 %v14016_v14, %v14014_v12 }
 0x255   : > { %v4856_v63 = vmul.f32 0.044715, %v14010_v39  ;;  %v10981_v3 = vld [vmem:[%s17130_s3 + $0x30] sm:$0xff]   ;;  %v14039_v32 = vld [vmem:[%s17130_s3 + $0x88] sm:$0xff]   ;;  %4782 = vmatmul.mubr.bf16.gmra.mxu1 %v10367_v55  ;;  %v8028_v18 = vsel %vm11585_vm15, %v8023_v35, %v8027_v25  ;;  %v8013_v61 = vrot.slane %v8012_v23, 4  ;;  %v7518_v53 = vrot.slane %v7516_v58, 4 }
 0x256   : > { %v5387_v16 = vshrl.u32 %v10611_v50, 16  ;;  %v5079_v30 = vmul.f32 %v5047_v52, %v4823_v42  ;;  %2981 = vst.msk [vmem:[#allocation3 + $0xd8] sm:$0xf] %vm2953_vm9, %v2912_v10  ;;  %v6717_v34 = vld [vmem:[#allocation4 + $0x18] sm:$0xf]  ;;  %10656 = vmatpush3.bf16.msra.mxu0 %v10981_v3  ;;  %10869 = vmatprep.subr.bf16.mxu1 %v14039_v32  ;;  %v7519_v35 = vrot.slane %v14012_v19, 5  ;;  %v14084_v25 = vsel %vm11511_vm6, %v13996_v57, %v6493_v48 }
 0x257   : > { %v4888_v62 = vmul.f32 %v4856_v63, %v14010_v39  ;;  %v5669_v23 = vld [vmem:[#allocation4 + $0x3c] sm:$0xf]  ;;  %2419 = vst.msk [vmem:[#allocation3 + $0xd0] sm:$0xf] %vm2392_vm4, %v2349_v41  ;;  %8371 = vrot.lane.b32.xlu1 %v8028_v18, %s11320_s28  ;;  %v5957_v54 = vshll.u32 %v14025_v8, 16  ;;  %v6497_v31 = vrot.slane %v14027_v33, 5  ;;  %10871 = vmatpush3.bf16.msra.mxu1 %v14039_v32  ;;  %v8018_v55 = vsel %vm11585_vm15, %v8013_v61, %v13944_v24  ;;  %v2910_v24 = vpop.permute.xlu0 %2909 }
 0x258   : > { %v10985_v26 = vld [vmem:[%s17130_s3 + $0x68] sm:$0xff]   ;;  %v14067_v43 = vrot.slane %v5387_v16, 7  ;;  %v5390_v5 = vshll.u32 %v10611_v50, 16  ;;  %v10612_v56 = vpack.c.bf16 %v5079_v30, %v5079_v30  ;;  %6783 = vrot.lane.b32.xlu0 %v6717_v34, %s11320_s28  ;;  %v14073_v14 = vld [vmem:[#allocation4 + $0x1c] sm:$0xf]  ;;  %v14088_v42 = vrot.slane %v5954_v7, 4 }
 0x259   : > { %v10986_v20 = vld [vmem:[%s17130_s3 + $0x28] sm:$0xff]   ;;  %v4920_v19 = vmul.f32 %v4888_v62, %v14010_v39  ;;  %v4857_v38 = vmul.f32 0.044715, %v14054_v44  ;;  %10657 = vmatprep.subr.bf16.mxu0 %v10985_v26  ;;  %v10988_v52 = vld [vmem:[%s17130_s3 + $0x80] sm:$0xff]   ;;  %vm17270_vm14 = vcmask 781952   ;;  %v7520_v40 = vsel %vm11511_vm6, %v7518_v53, %v7519_v35  ;;  %v10992_v16 = vld [vmem:[%s17130_s3 + $0x58] sm:$0xff]  }
 0x25a   : > { %v14071_v12 = vld [vmem:[#allocation4 + $0x30] sm:$0xf]  ;;  %v14086_v50 = vld [vmem:[#allocation4 + $0x34] sm:$0xf]  ;;  %v5392_v63 = vor.u32 %v5390_v5, %v14067_v43  ;;  %v5395_v3 = vshrl.u32 %v10612_v56, 16  ;;  %v14097_v48 = vrot.slane %v5944_v51, 4  ;;  %10658 = vmatpush3.bf16.msra.mxu0 %v10986_v20  ;;  %10870 = vmatprep.subr.bf16.mxu1 %v10988_v52  ;;  %vm17271_vm7 = vmmov %vm17270_vm14  ;;  %v6491_v8 = vsel %vm11511_vm6, %v10434_v28, %v6490_v11 }
 0x25b   : > { %3318 = vst.msk [vmem:[#allocation3 + $0xd8] sm:$0xf] %vm17270_vm14, %v3249_v2  ;;  %v4123_v57 = vld [vmem:[#allocation2 + $0xcc] sm:$0xe]  ;;  %v10989_v10 = vld [vmem:[%s17130_s3 + $0x60] sm:$0xff]   ;;  %v4952_v61 = vadd.f32 %v4920_v19, %v14010_v39  ;;  %v4889_v7 = vmul.f32 %v4857_v38, %v14054_v44  ;;  %6259 = vrot.lane.b32.xlu1 %v5936_v60, %s11317_s20  ;;  %v8030_v53 = vshrl.u32 %v14071_v12, 16  ;;  %v3443_v60 = vpop.permute.xlu1 %3442  ;;  %10872 = vmatpush3.bf16.msra.mxu1 %v10988_v52  ;;  %v3247_v19 = vpop.permute.xlu0 %3246 }
 0x25c   : > { %v10990_v46 = vld [vmem:[%s17130_s3 + $0x20] sm:$0xff]   ;;  %v5673_v18 = vld [vmem:[#allocation4 + $0x44] sm:$0x1]  ;;  %2980 = vst.msk [vmem:[#allocation3 + $0xd0] sm:$0xf] %vm2953_vm9, %v2910_v24  ;;  %v6990_v30 = vshll.u32 %v14073_v14, 16  ;;  %v5670_v62 = vsel %vm13344_vm8, %v5392_v63, %v5669_v23  ;;  %8369 = vrot.lane.b32.xlu0 %v8018_v55, %s11320_s28  ;;  %10659 = vmatprep.subr.bf16.mxu0 %v10989_v10  ;;  %v5950_v11 = vsel %vm11585_vm15, %v14097_v48, %v14001_v29 }
 0x25d   : > { %v5397_v41 = vrot.slane %v5395_v3, 7  ;;  %v5398_v34 = vshll.u32 %v10612_v56, 16  ;;  %v8039_v51 = vshll.u32 %v14086_v50, 16  ;;  %v4124_v4 = vld [vmem:[#allocation2 + $0xd0] sm:$0xf]  ;;  %v4921_v21 = vmul.f32 %v4889_v7, %v14054_v44  ;;  %v10993_v55 = vld [vmem:[%s17130_s3 + $0x18] sm:$0xff]  }
 0x25e   : > { %5671 = vst [vmem:[#allocation4 + $0x3c] sm:$0xf] %v5670_v62  ;;  %v4984_v17 = vmul.f32 0.7978846, %v4952_v61  ;;  %v8033_v35 = vshll.u32 %v14071_v12, 16  ;;  %v10341_v20 = vrot.slane %v4123_v57, 9  ;;  %10660 = vmatpush3.bf16.msra.mxu0 %v10990_v46 }
 0x25f   : > { %v4125_v26 = vld [vmem:[#allocation2 + $0xd4] sm:$0x1]  ;;  %v5393_v23 = vrot.slane %v14067_v43, 4  ;;  %v5400_v5 = vor.u32 %v5398_v34, %v5397_v41  ;;  %v5402_v56 = vrot.slane %v5397_v41, 4  ;;  %3512 = vst.msk [vmem:[#allocation3 + $0xd8] sm:$0xf] %vm17268_vm12, %v3443_v60  ;;  %v4953_v63 = vadd.f32 %v4921_v21, %v14054_v44  ;;  %7622 = vrot.lane.b32.xlu1 %v7520_v40, %s11317_s20  ;;  %10661 = vmatprep.subr.bf16.mxu0 %v10992_v16  ;;  %v4004_v46 = vpop.permute.xlu1 %4003  ;;  %v3441_v47 = vpop.permute.xlu0 %3440 }
 0x260   : > { %v8043_v38 = vshrl.u32 %v14086_v50, 16  ;;  %v5195_v2 = vld [vmem:[#allocation4 + $0x74] sm:$0x1]  ;;  %11068 = vtanh.f32 %v4984_v17  ;;  %3317 = vst.msk [vmem:[#allocation3 + $0xd0] sm:$0xf] %vm17271_vm7, %v3247_v19  ;;  %v7517_v43 = vsel %vm11511_vm6, %v10450_v22, %v7516_v58  ;;  %v4281_v50 = vrot.slane %v4124_v4, 5  ;;  %6257 = vrot.lane.b32.xlu0 %v5926_v15, %s11317_s20 }
 0x261   : > { %v8499_v52 = vld [vmem:[#allocation4 + $0x30] sm:$0xe]  ;;  %v8500_v3 = vld [vmem:[#allocation4 + $0x34] sm:$0xf]  ;;  %v10995_v24 = vld [vmem:[%s17130_s3 + $0x50] sm:$0xff]   ;;  %v5401_v57 = vsel %vm11542_vm13, %v5393_v23, %v5400_v5  ;;  %v5674_v40 = vsel %vm12717_vm2, %v5402_v56, %v5673_v18  ;;  %v14153_v36 = vrot.slane %v8039_v51, 5 }
 0x262   : > { %v4284_v45 = vrot.slane %v4125_v26, 5  ;;  %v5762_v58 = vld [vmem:[#allocation4 + $0x34] sm:$0xf]  ;;  %v5761_v22 = vld [vmem:[#allocation4 + $0x30] sm:$0xf]  ;;  %vm17272_vm10 = vcmask 257024   ;;  %v4282_v18 = vsel %vm11511_vm6, %v10341_v20, %v4281_v50  ;;  %10662 = vmatpush3.bf16.msra.mxu0 %v10993_v55 }
 0x263   : > { %5672 = vst.msk [vmem:[#allocation4 + $0x40] sm:$0xf] %vm17272_vm10, %v5401_v57  ;;  %5675 = vst [vmem:[#allocation4 + $0x44] sm:$0x1] %v5674_v40  ;;  %v4985_v10 = vmul.f32 0.7978846, %v4953_v63  ;;  %6596 = vrot.lane.b32.xlu1 %v14084_v25, %s11322_s14  ;;  %10663 = vmatprep.subr.bf16.mxu0 %v10995_v24 }
 0x264   : > { %v4283_v61 = vrot.slane %v4281_v50, 4  ;;  %v5196_v6 = vsel %vm12738_vm11, 0, %v5195_v2  ;;  %vm17273_vm14 = vmmov %vm17272_vm10  ;;  %vm17275_vm7 = vcmask 1044352   ;;  %v14163_v15 = vrot.slane %v8043_v38, 4  ;;  %4348 = vst.msk [vmem:[#allocation3 + $0xf4] sm:$0xf] %vm625_vm0, %v4282_v18  ;;  %7620 = vrot.lane.b32.xlu0 %v7517_v43, %s11317_s20  ;;  %v1822_v38 = vpop.permute.xlu1 %1821  ;;  %v4002_v43 = vpop.permute.xlu0 %4001 }
 0x265   : > { %5794 = vst.msk [vmem:[#allocation5 + $0x6c] sm:$0xf] %vm17273_vm14, %v5762_v58  ;;  %vm17274_vm12 = vmmov %vm17272_vm10  ;;  %v11203_v7 = vld [vmem:[%s11483_s27 + $0xb0] sm:$0xff]  ;;  %v11204_v16 = vld [vmem:[%s11483_s27 + $0xb8] sm:$0xff]  ;;  %v10466_v41 = vrot.slane %v8499_v52, 9  ;;  %v8605_v34 = vrot.slane %v8500_v3, 5  ;;  %11070 = vtanh.f32 %v4985_v10 }
 0x266   : > { %5793 = vst.msk [vmem:[#allocation5 + $0x60] sm:$0xf] %vm17274_vm12, %v5761_v22  ;;  %5197 = vst [vmem:[#allocation4 + $0x74] sm:$0x1] %v5196_v6  ;;  %v395_v62 = vpack.c.bf16 %v11204_v16, %v11203_v7  ;;  %v10996_v51 = vld [vmem:[%s17130_s3 + $0x10] sm:$0xff]   ;;  %vm17276_vm10 = vcmask 913152   ;;  %v4285_v60 = vsel %vm11511_vm6, %v4283_v61, %v4284_v45  ;;  %v8046_v37 = vor.u32 %v14163_v15, %v14153_v36 }
 0x267   : > { %4073 = vst.msk [vmem:[#allocation3 + $0xd8] sm:$0xf] %vm17275_vm7, %v4004_v46  ;;  %v14171_v4 = vld [vmem:[#allocation4 + $0x20] sm:$0x1]  ;;  %v14178_v17 = vrot.slane %v8030_v53, 4  ;;  %v14180_v21 = vrot.slane %v8033_v35, 5  ;;  %v8606_v35 = vsel %vm11511_vm6, %v10466_v41, %v8605_v34  ;;  %10664 = vmatpush3.bf16.msra.mxu0 %v10996_v51  ;;  %vm17278_vm14 = vmmov %vm17275_vm7 }
 0x268   : > { %3511 = vst.msk [vmem:[#allocation3 + $0xd0] sm:$0xf] %vm17276_vm10, %v3441_v47  ;;  %v8501_v26 = vld [vmem:[#allocation4 + $0x38] sm:$0x1]  ;;  %v10998_v20 = vld [vmem:[%s17130_s3 + $0x48] sm:$0xff]   ;;  %v14190_v25 = vrot.slane %v5957_v54, 5  ;;  %10811 = vmatmul.mubr.msk.bf16.gmra.mxu0 %vm415_vm5, %v395_v62  ;;  %6594 = vrot.lane.b32.xlu0 %v6491_v8, %s11322_s14  ;;  %v2162_v15 = vpop.permute.xlu1 %2161 }
 0x269   : > { %v6389_v12 = vld [vmem:[#allocation4 + $0x2c] sm:$0x1]  ;;  %v6387_v53 = vld [vmem:[#allocation4 + $0x24] sm:$0xe]  ;;  %4349 = vst.msk [vmem:[#allocation3 + $0xfc] sm:$0xf] %vm625_vm0, %v4285_v60  ;;  %vm17277_vm0 = vmmov %vm17274_vm12  ;;  %v8036_v24 = vor.u32 %v14180_v21, %v14178_v17  ;;  %10665 = vmatprep.subr.bf16.mxu0 %v10998_v20  ;;  %v1820_v21 = vpop.permute.xlu0 %1819 }
 0x26a   : > { %v11205_v23 = vld [vmem:[%s11483_s27 + $0xc0] sm:$0xff]  ;;  %v11206_v5 = vld [vmem:[%s11483_s27 + $0xc8] sm:$0xff]  ;;  %v6994_v19 = vshrl.u32 %v14073_v14, 16  ;;  %v6499_v2 = vrot.slane %v6497_v31, 4  ;;  %v8607_v55 = vrot.slane %v8605_v34, 4  ;;  %v7000_v63 = vshll.u32 %v14171_v4, 16  ;;  %vm17279_vm12 = vmmov %vm17277_vm0 }
 0x26b   : > { %v396_v56 = vpack.c.bf16 %v11206_v5, %v11205_v23  ;;  %v14205_v54 = vld [vmem:[#allocation4 + $0x38] sm:$0x1]  ;;  %8737 = vst.msk [vmem:[#allocation5 + $0x38] sm:$0xf] %vm17277_vm0, %v8606_v35  ;;  %v7746_v50 = vld [vmem:[#allocation4 + $0x34] sm:$0xf]  ;;  %v5960_v49 = vsel %vm11585_vm15, %v14088_v42, %v14190_v25  ;;  %vm17281_vm10 = vmmov %vm17277_vm0 }
 0x26c   : > { %1889 = vst.msk [vmem:[#allocation3 + $0xe8] sm:$0xf] %vm1859_vm1, %v1822_v38  ;;  %v14218_v28 = vld [vmem:[#allocation4 + $0x34] sm:$0xf]  ;;  %v8608_v52 = vrot.slane %v8501_v26, 5  ;;  %7815 = vrot.lane.b32.xlu1 %v7746_v50, %s11322_s14  ;;  %v6500_v57 = vrot.slane %v6389_v12, 5 }
 0x26d   : > { %10814 = vmatprep.mubr.msk.bf16.mxu0 %vm415_vm5, %v396_v56  ;;  %v10999_v3 = vld [vmem:[%s17130_s3 + $0x8] sm:$0xff]   ;;  %4072 = vst.msk [vmem:[#allocation3 + $0xd0] sm:$0xf] %vm17278_vm14, %v4002_v43  ;;  %v10435_v40 = vrot.slane %v6387_v53, 9  ;;  %v14234_v45 = vrot.slane %v6990_v30, 5  ;;  %v11000_v22 = vld [vmem:[%s17130_s3 + $0x40] sm:$0xff]  }
 0x26e   : > { %v14236_v58 = vld [vmem:[#allocation4 + $0x18] sm:$0xf]  ;;  %v8049_v10 = vshll.u32 %v14205_v54, 16  ;;  %v7413_v46 = vld [vmem:[#allocation4 + $0x30] sm:$0xe]  ;;  %v8609_v18 = vsel %vm11511_vm6, %v8607_v55, %v8608_v52  ;;  %v11207_v14 = vld [vmem:[%s11483_s27 + $0xd0] sm:$0xff]  ;;  %v14254_v62 = vsel %vm11511_vm6, %v6499_v2, %v6500_v57  ;;  %10666 = vmatpush3.bf16.msra.mxu0 %v10999_v3  ;;  %v2160_v57 = vpop.permute.xlu0 %2159 }
 0x26f   : > { %v11208_v30 = vld [vmem:[%s11483_s27 + $0xd8] sm:$0xff]  ;;  %v14247_v6 = vrot.slane %v6994_v19, 4  ;;  %v14249_v47 = vld [vmem:[#allocation4 + $0x28] sm:$0xf]  ;;  %v7523_v16 = vrot.slane %v14218_v28, 5  ;;  %v14259_v34 = vrot.slane %v7000_v63, 5  ;;  %v14268_v26 = vsel %vm11511_vm6, %v10435_v40, %v6497_v31  ;;  %10667 = vmatprep.subr.bf16.mxu0 %v11000_v22  ;;  %v11069_v19 = vpop.eup %11068  ;;  %v4735_v28 = vpop.f32.mrf.mxu1 }
 0x270   : > { %v397_v61 = vpack.c.bf16 %v11208_v30, %v11207_v14  ;;  %v6720_v7 = vld [vmem:[#allocation4 + $0x28] sm:$0xf]  ;;  %v14256_v41 = vld [vmem:[#allocation4 + $0x30] sm:$0xf]  ;;  %8738 = vst.msk [vmem:[#allocation5 + $0x44] sm:$0xf] %vm17279_vm12, %v8609_v18 }
 0x271   : > { %v11209_v51 = vld [vmem:[%s11483_s27 + $0xe0] sm:$0xff]  ;;  %v11210_v4 = vld [vmem:[%s11483_s27 + $0xe8] sm:$0xff]  ;;  %2229 = vst.msk [vmem:[#allocation3 + $0xe8] sm:$0xf] %vm2199_vm3, %v2162_v15  ;;  %v8047_v60 = vrot.slane %v8046_v37, 4  ;;  %v6981_v12 = vshrl.u32 %v14236_v58, 16  ;;  %6789 = vrot.lane.b32.xlu1 %v6720_v7, %s11320_s28  ;;  %v6997_v63 = vor.u32 %v14247_v6, %v14234_v45  ;;  %v2355_v37 = vpop.permute.xlu1 %2354 }
 0x272   : > { %v398_v17 = vpack.c.bf16 %v11210_v4, %v11209_v51  ;;  %v14270_v20 = vld [vmem:[#allocation4 + $0x34] sm:$0xf]  ;;  %v6984_v53 = vshll.u32 %v14236_v58, 16  ;;  %v11001_v35 = vld [vmem:[%s17130_s3] sm:$0xff]   ;;  %1888 = vst.msk [vmem:[#allocation3 + $0xe0] sm:$0xf] %vm1859_vm1, %v1820_v21  ;;  %10815 = vmatmul.mubr.msk.bf16.gmra.mxu0 %vm415_vm5, %v397_v61  ;;  %v4737_v61 = vpop.f32.mrf.mxu1  ;;  %v11071_v4 = vpop.eup %11070 }
 0x273   : > { %v7745_v33 = vld [vmem:[#allocation4 + $0x30] sm:$0xf]  ;;  %v14279_v23 = vrot.slane %v8036_v24, 4  ;;  %v10451_v31 = vrot.slane %v7413_v46, 9  ;;  %v7014_v5 = vshll.u32 %v14249_v47, 16  ;;  %v7018_v56 = vshrl.u32 %v14249_v47, 16  ;;  %10668 = vmatpush3.bf16.msra.mxu0 %v11001_v35 }
 0x274   : > { %7813 = vrot.lane.b32.xlu0 %v7745_v33, %s11322_s14  ;;  %v8051_v38 = vrot.slane %v8049_v10, 5  ;;  %v4377_v8 = vld [vmem:[#allocation3 + $0xd8] sm:$0xff]  ;;  %v5962_v2 = vshrl.u32 %v14256_v41, 16  ;;  %v5965_v55 = vshll.u32 %v14256_v41, 16  ;;  %v4824_v43 = vmul.f32 0.5, %v14010_v39  ;;  %10818 = vmatprep.mubr.msk.bf16.mxu0 %vm415_vm5, %v398_v17  ;;  %v4376_v10 = vld [vmem:[#allocation3 + $0xd0] sm:$0xff] }
 0x275   : > { %v14284_v54 = vld [vmem:[#allocation4 + $0x38] sm:$0x1]  ;;  %v5048_v50 = vadd.f32 1.0, %v11069_v19  ;;  %v14292_v52 = vrot.slane %v7523_v16, 4  ;;  %v7943_v3 = vld [vmem:[#allocation4 + $0x40] sm:$0xf]  ;;  %v14309_v18 = vsel %vm11511_vm6, %v10451_v31, %v7523_v16  ;;  %v10369_v7 = vcombine.low %v4376_v10, %v4377_v8  ;;  %10822 = vmatprep.subr.bf16.mxu0 %v14039_v32  ;;  %v4738_v8 = vpop.f32.mrf.mxu1 }
 0x276   : > { %v5971_v24 = vshll.u32 %v14270_v20, 16  ;;  %2422 = vst.msk [vmem:[#allocation3 + $0xe8] sm:$0xf] %vm2392_vm4, %v2355_v37  ;;  %v14300_v40 = vld [vmem:[%s17129_s2] ss:$0 sm:$0xff]  ;;  %v8052_v22 = vsel %vm11585_vm15, %v8047_v60, %v8051_v38  ;;  %v5975_v14 = vshrl.u32 %v14270_v20, 16  ;;  %v8042_v51 = vsel %vm11585_vm15, %v14279_v23, %v14153_v36  ;;  %v2916_v38 = vpop.permute.xlu1 %2915 }
 0x277   : > { %v14303_v39 = vadd.f32 %v14300_v40, %v4735_v28  ;;  %v10973_v46 = vld [vmem:[#allocation3 + $0xd4] ss:$8 sps:$4 sm:$0xff]   ;;  %v5080_v30 = vmul.f32 %v5048_v50, %v4824_v43  ;;  %2228 = vst.msk [vmem:[#allocation3 + $0xe0] sm:$0xf] %vm2199_vm3, %v2160_v57  ;;  %8375 = vrot.lane.b32.xlu1 %v8052_v22, %s11320_s28  ;;  %v6719_v15 = vld [vmem:[#allocation4 + $0x24] sm:$0xf]  ;;  %v2353_v43 = vpop.permute.xlu0 %2352  ;;  %v14331_v50 = vadd.f32 %v14300_v40, %v4738_v8 }
 0x278   : > { %v7526_v16 = vrot.slane %v14284_v54, 5  ;;  %6787 = vrot.lane.b32.xlu0 %v6719_v15, %s11320_s28  ;;  %10397 = vmatprep.mubr.msk.bf16.mxu1 %vm415_vm5, %v10973_v46  ;;  %v8063_v21 = vshll.u32 %v7943_v3, 16  ;;  %v8067_v60 = vshrl.u32 %v7943_v3, 16  ;;  %v7942_v20 = vld [vmem:[#allocation4 + $0x3c] sm:$0xf]  ;;  %v11212_v35 = vld [vmem:[%s11483_s27 + $0xf0] sm:$0xff] }
 0x279   : > { %v4858_v17 = vmul.f32 0.044715, %v14303_v39  ;;  %v11213_v33 = vld [vmem:[%s11483_s27 + $0xf8] sm:$0xff]  ;;  %v10613_v19 = vpack.c.bf16 %v5080_v30, %v5080_v30  ;;  %v4825_v36 = vmul.f32 0.5, %v14054_v44  ;;  %v5049_v23 = vadd.f32 1.0, %v11071_v4  ;;  %4790 = vmatmul.mubr.bf16.gmra.mxu1 %v10369_v7  ;;  %s11247_s26 = scalar_lea.vmem %s17078_s29, 4096 }
 0x27a   : > { %v399_v31 = vpack.c.bf16 %v11213_v33, %v11212_v35  ;;  %v14326_v32 = vrot.slane %v5971_v24, 5  ;;  %2983 = vst.msk [vmem:[#allocation3 + $0xe8] sm:$0xf] %vm2953_vm9, %v2916_v38  ;;  %v14333_v37 = vrot.slane %v5975_v14, 4  ;;  %v14335_v28 = vrot.slane %v5962_v2, 4  ;;  %v4740_v24 = vpop.f32.mrf.mxu1  ;;  %v3253_v25 = vpop.permute.xlu1 %3252  ;;  %p11248_p11 = scmp.ne.s32.totalorder %s17078_s29, %s11247_s26  ;;  %s11251_s27 = sshll.u32 %s11327_s19, 4  ;;  %s11252_s27 = int_to_ptr.vmem [resolvable:$false] %s11251_s27 }
 0x27b   : > { %v4890_v54 = vmul.f32 %v4858_v17, %v14303_v39  ;;  %v5404_v3 = vshrl.u32 %v10613_v19, 16  ;;  %v5081_v44 = vmul.f32 %v5049_v23, %v4825_v36  ;;  %2421 = vst.msk [vmem:[#allocation3 + $0xe0] sm:$0xf] %vm2392_vm4, %v2353_v43  ;;  %6263 = vrot.lane.b32.xlu1 %v5960_v49, %s11317_s20  ;;  %v8054_v57 = vshrl.u32 %v7942_v20, 16  ;;  %v5676_v10 = vld [vmem:[#allocation4 + $0x48] sm:$0xf]  ;;  %p11254_p5 = scmp.lt.s32.totalorder %s17078_s29, %s11252_s27 }
 0x27c   : > { %v8057_v22 = vshll.u32 %v7942_v20, 16  ;;  %v4859_v2 = vmul.f32 0.044715, %v14331_v50  ;;  %8373 = vrot.lane.b32.xlu0 %v8042_v51, %s11320_s28  ;;  %v14347_v14 = vrot.slane %v8063_v21, 5  ;;  %v14349_v30 = vrot.slane %v8067_v60, 4  ;;  %10819 = vmatmul.mubr.msk.bf16.gmra.mxu0 %vm415_vm5, %v399_v31  ;;  %v2914_v51 = vpop.permute.xlu0 %2913  ;;  %p11249_p13 = pnand %p11248_p11, %p17534_p12 }
 0x27d   : > { %v4922_v46 = vmul.f32 %v4890_v54, %v14303_v39  ;;  %v5406_v61 = vrot.slane %v5404_v3, 7  ;;  %v5407_v15 = vshll.u32 %v10613_v19, 16  ;;  %v10614_v42 = vpack.c.bf16 %v5081_v44, %v5081_v44  ;;  %v5764_v7 = vld [vmem:[#allocation4 + $0x40] sm:$0xf]  ;;  %v8502_v20 = vld [vmem:[#allocation4 + $0x3c] sm:$0xe] }
 0x27e   : > { %v14354_v49 = vrot.slane %v5965_v55, 5  ;;  %v4891_v17 = vmul.f32 %v4859_v2, %v14331_v50  ;;  %vm17280_vm7 = vcmask 781952   ;;  %v7527_v21 = vsel %vm11511_vm6, %v14292_v52, %v7526_v16  ;;  %v8503_v35 = vld [vmem:[#allocation4 + $0x40] sm:$0xf]  ;;  %5796 = vst.msk [vmem:[#allocation5 + $0x84] sm:$0xf] %vm17281_vm10, %v5764_v7  ;;  %v3447_v3 = vpop.permute.xlu1 %3446  ;;  %vm17285_vm10 = vmmov %vm17277_vm0  ;;  %p11250_p4 = pneg %p11249_p13 }
 0x27f   : > { %v4954_v4 = vadd.f32 %v4922_v46, %v14303_v39  ;;  %3320 = vst.msk [vmem:[#allocation3 + $0xe8] sm:$0xf] %vm17280_vm7, %v3253_v25  ;;  %v5978_v60 = vor.u32 %v14333_v37, %v14326_v32  ;;  %v5763_v41 = vld [vmem:[#allocation4 + $0x3c] sm:$0xf]  ;;  %v5409_v55 = vor.u32 %v5407_v15, %v5406_v61  ;;  %v5412_v33 = vshrl.u32 %v10614_v42, 16  ;;  %7626 = vrot.lane.b32.xlu1 %v7527_v21, %s11317_s20  ;;  %vm17283_vm12 = vmmov %vm17280_vm7 }
 0x280   : > { %2982 = vst.msk [vmem:[#allocation3 + $0xe0] sm:$0xf] %vm2953_vm9, %v2914_v51  ;;  %v14367_v31 = vrot.slane %v8054_v57, 4  ;;  %v14369_v19 = vrot.slane %v8057_v22, 5  ;;  %v8504_v36 = vld [vmem:[#allocation4 + $0x44] sm:$0x1]  ;;  %v4923_v23 = vmul.f32 %v4891_v17, %v14331_v50  ;;  %6261 = vrot.lane.b32.xlu0 %v5950_v11, %s11317_s20  ;;  %v8070_v38 = vor.u32 %v14349_v30, %v14347_v14  ;;  %v3251_v29 = vpop.permute.xlu0 %3250  ;;  %vm17284_vm7 = vmmov %vm17277_vm0 }
 0x281   : > { %5795 = vst.msk [vmem:[#allocation5 + $0x78] sm:$0xf] %vm17277_vm0, %v5763_v41  ;;  %v5415_v52 = vshll.u32 %v10614_v42, 16  ;;  %v4986_v16 = vmul.f32 0.7978846, %v4954_v4  ;;  %v5677_v8 = vsel %vm13344_vm8, %v5409_v55, %v5676_v10  ;;  %v5414_v54 = vrot.slane %v5412_v33, 7 }
 0x282   : > { %v5680_v43 = vld [vmem:[#allocation4 + $0x50] sm:$0x1]  ;;  %v10467_v44 = vrot.slane %v8502_v20, 9  ;;  %v8612_v24 = vrot.slane %v8503_v35, 5  ;;  %v5410_v57 = vrot.slane %v5406_v61, 4  ;;  %v4955_v22 = vadd.f32 %v4923_v23, %v14331_v50  ;;  %v4008_v20 = vpop.permute.xlu1 %4007 }
 0x283   : > { %5678 = vst [vmem:[#allocation4 + $0x48] sm:$0xf] %v5677_v8  ;;  %11072 = vtanh.f32 %v4986_v16  ;;  %vm17282_vm14 = vcmask 913152   ;;  %v8615_v48 = vrot.slane %v8504_v36, 5  ;;  %v5143_v11 = vld [vmem:[#allocation4 + $0x78] sm:$0x1]  ;;  %v5417_v2 = vor.u32 %v5415_v52, %v5414_v54  ;;  %6600 = vrot.lane.b32.xlu1 %v14254_v62, %s11322_s14 }
 0x284   : > { %3514 = vst.msk [vmem:[#allocation3 + $0xe8] sm:$0xf] %vm17282_vm14, %v3447_v3  ;;  %v14385_v46 = vld [vmem:[#allocation4 + $0x2c] sm:$0x1]  ;;  %v5419_v15 = vrot.slane %v5414_v54, 4  ;;  %v8613_v61 = vsel %vm11511_vm6, %v10467_v44, %v8612_v24  ;;  %v8614_v42 = vrot.slane %v8612_v24, 4  ;;  %7624 = vrot.lane.b32.xlu0 %v14309_v18, %s11317_s20  ;;  %v3445_v58 = vpop.permute.xlu0 %3444  ;;  %vm17287_vm14 = vmmov %vm17284_vm7  ;;  %v5968_v36 = vor.u32 %v14354_v49, %v14335_v28 }
 0x285   : > { %3319 = vst.msk [vmem:[#allocation3 + $0xe0] sm:$0xf] %vm17283_vm12, %v3251_v29  ;;  %v14390_v10 = vld [vmem:[#allocation4 + $0x34] sm:$0xf]  ;;  %v5198_v25 = vld [vmem:[#allocation4 + $0x80] sm:$0x1]  ;;  %v5418_v51 = vsel %vm11542_vm13, %v5410_v57, %v5417_v2  ;;  %v8060_v29 = vor.u32 %v14369_v19, %v14367_v31 }
 0x286   : > { %v4987_v7 = vmul.f32 0.7978846, %v4955_v22  ;;  %8739 = vst.msk [vmem:[#allocation5 + $0x50] sm:$0xf] %vm17284_vm7, %v8613_v61  ;;  %v6998_v4 = vrot.slane %v6997_v63, 4  ;;  %v6983_v62 = vrot.slane %v6981_v12, 4  ;;  %v5681_v21 = vsel %vm12717_vm2, %v5419_v15, %v5680_v43 }
 0x287   : > { %v6986_v17 = vrot.slane %v6984_v53, 5  ;;  %v7944_v18 = vld [vmem:[#allocation4 + $0x44] sm:$0x1]  ;;  %v8616_v35 = vsel %vm11511_vm6, %v8614_v42, %v8615_v48  ;;  %v5144_v6 = vsel %vm12717_vm2, 0, %v5143_v11  ;;  %5679 = vst.msk [vmem:[#allocation4 + $0x4c] sm:$0xf] %vm17285_vm10, %v5418_v51 }
 0x288   : > { %v5146_v63 = vld [vmem:[#allocation4 + $0x84] sm:$0x1]  ;;  %5682 = vst [vmem:[#allocation4 + $0x50] sm:$0x1] %v5681_v21  ;;  %11074 = vtanh.f32 %v4987_v7  ;;  %vm17286_vm0 = vcmask 1044352   ;;  %v7003_v41 = vsel %vm11585_vm15, %v6998_v4, %v14259_v34  ;;  %v5199_v33 = vsel %vm12738_vm11, 0, %v5198_v25  ;;  %6598 = vrot.lane.b32.xlu0 %v14268_v26, %s11322_s14  ;;  %v4006_v26 = vpop.permute.xlu0 %4005 }
 0x289   : > { %4075 = vst.msk [vmem:[#allocation3 + $0xe8] sm:$0xf] %vm17286_vm0, %v4008_v20  ;;  %v7748_v12 = vld [vmem:[#allocation4 + $0x40] sm:$0xf]  ;;  %v5831_v53 = vld [vmem:[#allocation4 + $0x38] sm:$0x1]  ;;  %v6987_v55 = vor.u32 %v6986_v17, %v6983_v62  ;;  %vm17289_vm10 = vmmov %vm17286_vm0 }
 0x28a   : > { %8740 = vst.msk [vmem:[#allocation5 + $0x5c] sm:$0xf] %vm17287_vm14, %v8616_v35  ;;  %5145 = vst [vmem:[#allocation4 + $0x78] sm:$0x1] %v5144_v6  ;;  %vm17288_vm12 = vcmask 913152   ;;  %7819 = vrot.lane.b32.xlu1 %v7748_v12, %s11322_s14  ;;  %v14427_v52 = vrot.slane %v7014_v5, 5  ;;  %v1826_v5 = vpop.permute.xlu1 %1825 }
 0x28b   : > { %3513 = vst.msk [vmem:[#allocation3 + $0xe0] sm:$0xf] %vm17288_vm12, %v3445_v58  ;;  %5200 = vst [vmem:[#allocation4 + $0x80] sm:$0x1] %v5199_v33  ;;  %v7020_v34 = vrot.slane %v7018_v56, 4  ;;  %v7024_v16 = vshll.u32 %v14385_v46, 16 }
 0x28c   : > { %7375 = vst.msk [vmem:[#allocation5 + $0x28] sm:$0xf] %vm17284_vm7, %v7003_v41  ;;  %v8073_v23 = vshll.u32 %v7944_v18, 16  ;;  %v14434_v8 = vld [vmem:[#allocation4 + $0x40] sm:$0xf]  ;;  %v6504_v28 = vrot.slane %v14390_v10, 5  ;;  %vm17290_vm0 = vmmov %vm17284_vm7  ;;  %v1824_v42 = vpop.permute.xlu0 %1823 }
 0x28d   : > { %v6390_v49 = vld [vmem:[#allocation4 + $0x30] sm:$0xe]  ;;  %v6988_v54 = vrot.slane %v6987_v55, 4  ;;  %v5147_v43 = vsel %vm12717_vm2, 0, %v5146_v63  ;;  %v6722_v3 = vld [vmem:[#allocation4 + $0x34] sm:$0xf]  ;;  %v7021_v56 = vor.u32 %v7020_v34, %v14427_v52  ;;  %vm17291_vm14 = vmmov %vm17290_vm0 }
 0x28e   : > { %v5981_v44 = vshll.u32 %v5831_v53, 16  ;;  %v6392_v47 = vld [vmem:[#allocation4 + $0x38] sm:$0x1]  ;;  %5148 = vst [vmem:[#allocation4 + $0x84] sm:$0x1] %v5147_v43  ;;  %v8071_v57 = vrot.slane %v8070_v38, 4  ;;  %6793 = vrot.lane.b32.xlu1 %v6722_v3, %s11320_s28  ;;  %v2166_v46 = vpop.permute.xlu1 %2165  ;;  %vm17295_vm12 = vmmov %vm17290_vm0 }
 0x28f   : > { %1891 = vst.msk [vmem:[#allocation3 + $0xf8] sm:$0xf] %vm1859_vm1, %v1826_v5  ;;  %v7747_v24 = vld [vmem:[#allocation4 + $0x3c] sm:$0xf]  ;;  %v5979_v22 = vrot.slane %v5978_v60, 4  ;;  %v6993_v11 = vsel %vm11585_vm15, %v6988_v54, %v14234_v45  ;;  %v7530_v30 = vrot.slane %v14434_v8, 5 }
 0x290   : > { %v14449_v48 = vld [vmem:[#allocation4 + $0x3c] sm:$0xf]  ;;  %4074 = vst.msk [vmem:[#allocation3 + $0xe0] sm:$0xf] %vm17289_vm10, %v4006_v26  ;;  %v14457_v38 = vrot.slane %v5968_v36, 4  ;;  %v7022_v37 = vrot.slane %v7021_v56, 4  ;;  %7817 = vrot.lane.b32.xlu0 %v7747_v24, %s11322_s14  ;;  %v11073_v51 = vpop.eup %11072  ;;  %v4743_v36 = vpop.f32.mrf.mxu1 }
 0x291   : > { %7374 = vst.msk [vmem:[#allocation5 + $0x1c] sm:$0xf] %vm17290_vm0, %v6993_v11  ;;  %v7026_v60 = vrot.slane %v7024_v16, 5  ;;  %v8075_v31 = vrot.slane %v8073_v23, 5  ;;  %v6506_v19 = vrot.slane %v6504_v28, 4  ;;  %v5983_v2 = vrot.slane %v5981_v44, 5  ;;  %v2164_v54 = vpop.permute.xlu0 %2163 }
 0x292   : > { %v14461_v15 = vld [vmem:[#allocation4 + $0x3c] sm:$0xe]  ;;  %v10436_v45 = vrot.slane %v6390_v49, 9  ;;  %v5986_v10 = vshrl.u32 %v14449_v48, 16  ;;  %2231 = vst.msk [vmem:[#allocation3 + $0xf8] sm:$0xf] %vm2199_vm3, %v2166_v46  ;;  %v5974_v35 = vsel %vm11585_vm15, %v14457_v38, %v14326_v32  ;;  %v2359_v33 = vpop.permute.xlu1 %2358  ;;  %v14501_v43 = vadd.f32 %v14300_v40, %v4743_v36  ;;  %v4745_v24 = vpop.f32.mrf.mxu1 }
 0x293   : > { %v7027_v61 = vsel %vm11585_vm15, %v7022_v37, %v7026_v60  ;;  %v8076_v25 = vsel %vm11585_vm15, %v8071_v57, %v8075_v31  ;;  %v8061_v7 = vrot.slane %v8060_v29, 4  ;;  %v7418_v4 = vld [vmem:[#allocation4 + $0x44] sm:$0x1]  ;;  %v6507_v62 = vrot.slane %v6392_v47, 5  ;;  %v14469_v17 = vld [vmem:[#allocation4 + $0x40] sm:$0xf] }
 0x294   : > { %7377 = vst.msk [vmem:[#allocation5 + $0x40] sm:$0xf] %vm17291_vm14, %v7027_v61  ;;  %8379 = vrot.lane.b32.xlu1 %v8076_v25, %s11320_s28  ;;  %v6721_v21 = vld [vmem:[#allocation4 + $0x30] sm:$0xf]  ;;  %v5984_v20 = vsel %vm11585_vm15, %v5979_v22, %v5983_v2  ;;  %v7532_v18 = vrot.slane %v7530_v30, 4  ;;  %v14484_v6 = vsel %vm11511_vm6, %v10436_v45, %v6504_v28  ;;  %v4826_v63 = vmul.f32 0.5, %v14303_v39  ;;  %v4746_v46 = vpop.f32.mrf.mxu1 }
 0x295   : > { %1890 = vst.msk [vmem:[#allocation3 + $0xf0] sm:$0xf] %vm1859_vm1, %v1824_v42  ;;  %v5050_v58 = vadd.f32 1.0, %v11073_v51  ;;  %6791 = vrot.lane.b32.xlu0 %v6721_v21, %s11320_s28  ;;  %v4379_v12 = vld [vmem:[#allocation3 + $0xe8] sm:$0xff]  ;;  %v14490_v53 = vsel %vm11511_vm6, %v6506_v19, %v6507_v62  ;;  %v10452_v41 = vrot.slane %v14461_v15, 9  ;;  %v7533_v34 = vrot.slane %v7418_v4, 5  ;;  %v11075_v26 = vpop.eup %11074  ;;  %v2357_v25 = vpop.permute.xlu0 %2356  ;;  %vm17292_vm1 = vmmov %vm17290_vm0 }
 0x296   : > { %v8505_v55 = vld [vmem:[#allocation4 + $0x48] sm:$0xe]  ;;  %v14493_v16 = vld [vmem:[#allocation4 + $0x4c] sm:$0xf]  ;;  %v5995_v23 = vshll.u32 %v14469_v17, 16  ;;  %v14496_v28 = vrot.slane %v5986_v10, 4  ;;  %v8066_v5 = vsel %vm11585_vm15, %v8061_v7, %v14347_v14  ;;  %v2920_v19 = vpop.permute.xlu1 %2919  ;;  %v14526_v62 = vadd.f32 %v14300_v40, %v4746_v46 }
 0x297   : > { %v5989_v39 = vshll.u32 %v14449_v48, 16  ;;  %v5082_v49 = vmul.f32 %v5050_v58, %v4826_v63  ;;  %2424 = vst.msk [vmem:[#allocation3 + $0xf8] sm:$0xf] %vm2392_vm4, %v2359_v33  ;;  %v4378_v3 = vld [vmem:[#allocation3 + $0xe0] sm:$0xff]  ;;  %v5999_v47 = vshrl.u32 %v14469_v17, 16  ;;  %v7534_v22 = vsel %vm11511_vm6, %v7532_v18, %v7533_v34  ;;  %v4748_v17 = vpop.f32.mrf.mxu1 }
 0x298   : > { %v10976_v44 = vld [vmem:[#allocation3 + $0xe4] ss:$8 sps:$4 sm:$0xff]   ;;  %2230 = vst.msk [vmem:[#allocation3 + $0xf0] sm:$0xf] %vm2199_vm3, %v2164_v54  ;;  %6267 = vrot.lane.b32.xlu1 %v5984_v20, %s11317_s20  ;;  %v10371_v57 = vcombine.low %v4378_v3, %v4379_v12  ;;  %v8507_v29 = vld [vmem:[#allocation4 + $0x50] sm:$0x1]  ;;  %v7531_v51 = vsel %vm11511_vm6, %v10452_v41, %v7530_v30  ;;  %vm17293_vm3 = vmmov %vm17290_vm0 }
 0x299   : > { %v8506_v56 = vld [vmem:[#allocation4 + $0x4c] sm:$0xf]  ;;  %v10468_v48 = vrot.slane %v8505_v55, 9  ;;  %v10615_v37 = vpack.c.bf16 %v5082_v49, %v5082_v49  ;;  %v4827_v14 = vmul.f32 0.5, %v14331_v50  ;;  %v5051_v60 = vadd.f32 1.0, %v11075_v26  ;;  %8377 = vrot.lane.b32.xlu0 %v8066_v5, %s11320_s28  ;;  %10398 = vmatprep.mubr.msk.bf16.mxu1 %vm415_vm5, %v10976_v44  ;;  %v2918_v49 = vpop.permute.xlu0 %2917 }
 0x29a   : > { %v8619_v11 = vrot.slane %v8506_v56, 5  ;;  %v4860_v31 = vmul.f32 0.044715, %v14501_v43  ;;  %4798 = vmatmul.mubr.bf16.gmra.mxu1 %v10371_v57  ;;  %v8087_v2 = vshll.u32 %v14493_v16, 16  ;;  %v8622_v10 = vrot.slane %v8507_v29, 5  ;;  %v3257_v41 = vpop.permute.xlu1 %3256 }
 0x29b   : > { %v5421_v61 = vshrl.u32 %v10615_v37, 16  ;;  %v5083_v42 = vmul.f32 %v5051_v60, %v4827_v14  ;;  %2985 = vst.msk [vmem:[#allocation3 + $0xf8] sm:$0xf] %vm2953_vm9, %v2920_v19  ;;  %v8091_v7 = vshrl.u32 %v14493_v16, 16  ;;  %v14522_v4 = vld [vmem:[#allocation4 + $0x24] sm:$0xf] }
 0x29c   : > { %v8620_v15 = vsel %vm11511_vm6, %v10468_v48, %v8619_v11  ;;  %v8621_v45 = vrot.slane %v8619_v11, 4  ;;  %v4892_v50 = vmul.f32 %v4860_v31, %v14501_v43  ;;  %2423 = vst.msk [vmem:[#allocation3 + $0xf0] sm:$0xf] %vm2392_vm4, %v2357_v25  ;;  %7630 = vrot.lane.b32.xlu1 %v7534_v22, %s11317_s20  ;;  %v14533_v21 = vrot.slane %v5995_v23, 5  ;;  %v5683_v58 = vld [vmem:[#allocation4 + $0x54] sm:$0xf] }
 0x29d   : > { %8741 = vst.msk [vmem:[#allocation5 + $0x68] sm:$0xf] %vm17292_vm1, %v8620_v15  ;;  %v5423_v18 = vrot.slane %v5421_v61, 7  ;;  %v5424_v63 = vshll.u32 %v10615_v37, 16  ;;  %v10616_v12 = vpack.c.bf16 %v5083_v42, %v5083_v42  ;;  %6265 = vrot.lane.b32.xlu0 %v5974_v35, %s11317_s20  ;;  %v7945_v8 = vld [vmem:[#allocation4 + $0x48] sm:$0xf]  ;;  %v3255_v46 = vpop.permute.xlu0 %3254 }
 0x29e   : > { %v8623_v20 = vsel %vm11511_vm6, %v8621_v45, %v8622_v10  ;;  %v4924_v55 = vmul.f32 %v4892_v50, %v14501_v43  ;;  %v4861_v30 = vmul.f32 0.044715, %v14526_v62  ;;  %v14546_v33 = vrot.slane %v5999_v47, 4  ;;  %v5687_v38 = vld [vmem:[#allocation4 + $0x5c] sm:$0x1]  ;;  %v3451_v48 = vpop.permute.xlu1 %3450 }
 0x29f   : > { %8742 = vst.msk [vmem:[#allocation5 + $0x74] sm:$0xf] %vm17293_vm3, %v8623_v20  ;;  %v14548_v36 = vrot.slane %v5989_v39, 5  ;;  %v7005_v34 = vshrl.u32 %v14522_v4, 16  ;;  %v5426_v16 = vor.u32 %v5424_v63, %v5423_v18  ;;  %v5429_v23 = vshrl.u32 %v10616_v12, 16 }
 0x2a0   : > { %vm17294_vm4 = vcmask 781952   ;;  %v14552_v54 = vrot.slane %v8087_v2, 5  ;;  %v8093_v32 = vrot.slane %v8091_v7, 4  ;;  %v4956_v35 = vadd.f32 %v4924_v55, %v14501_v43  ;;  %2984 = vst.msk [vmem:[#allocation3 + $0xf0] sm:$0xf] %vm2953_vm9, %v2918_v49  ;;  %6604 = vrot.lane.b32.xlu1 %v14490_v53, %s11322_s14  ;;  %vm17296_vm9 = vmmov %vm17290_vm0 }
 0x2a1   : > { %3322 = vst.msk [vmem:[#allocation3 + $0xf8] sm:$0xf] %vm17294_vm4, %v3257_v41  ;;  %v4893_v5 = vmul.f32 %v4861_v30, %v14526_v62  ;;  %v8078_v39 = vshrl.u32 %v7945_v8, 16  ;;  %v8081_v3 = vshll.u32 %v7945_v8, 16  ;;  %v14559_v44 = vld [vmem:[#allocation4 + $0x40] sm:$0xf]  ;;  %v5684_v56 = vsel %vm13344_vm8, %v5426_v16, %v5683_v58  ;;  %7628 = vrot.lane.b32.xlu0 %v7531_v51, %s11317_s20  ;;  %vm17298_vm10 = vmmov %vm17294_vm4 }
 0x2a2   : > { %v5766_v47 = vld [vmem:[#allocation4 + $0x4c] sm:$0xf]  ;;  %v5431_v26 = vrot.slane %v5429_v23, 7  ;;  %v5432_v24 = vshll.u32 %v10616_v12, 16  ;;  %v7008_v57 = vshll.u32 %v14522_v4, 16  ;;  %v6002_v37 = vor.u32 %v14546_v33, %v14533_v21  ;;  %v4012_v20 = vpop.permute.xlu1 %4011  ;;  %v3449_v12 = vpop.permute.xlu0 %3448 }
 0x2a3   : > { %5798 = vst.msk [vmem:[#allocation5 + $0x9c] sm:$0xf] %vm17295_vm12, %v5766_v47  ;;  %v5765_v22 = vld [vmem:[#allocation4 + $0x48] sm:$0xf]  ;;  %5685 = vst [vmem:[#allocation4 + $0x54] sm:$0xf] %v5684_v56  ;;  %v4925_v53 = vmul.f32 %v4893_v5, %v14526_v62  ;;  %v5992_v14 = vor.u32 %v14548_v36, %v14496_v28  ;;  %v8094_v15 = vor.u32 %v8093_v32, %v14552_v54 }
 0x2a4   : > { %v4988_v29 = vmul.f32 0.7978846, %v4956_v35  ;;  %v7947_v11 = vld [vmem:[#allocation4 + $0x50] sm:$0x1]  ;;  %5797 = vst.msk [vmem:[#allocation5 + $0x90] sm:$0xf] %vm17296_vm9, %v5765_v22  ;;  %v5434_v31 = vor.u32 %v5432_v24, %v5431_v26 }
 0x2a5   : > { %v5427_v60 = vrot.slane %v5423_v18, 4  ;;  %v5436_v19 = vrot.slane %v5431_v26, 4  ;;  %vm17297_vm7 = vcmask 913152   ;;  %v7750_v2 = vld [vmem:[#allocation4 + $0x4c] sm:$0xf]  ;;  %v4957_v10 = vadd.f32 %v4925_v53, %v14526_v62  ;;  %6602 = vrot.lane.b32.xlu0 %v14484_v6, %s11322_s14 }
 0x2a6   : > { %3516 = vst.msk [vmem:[#allocation3 + $0xf8] sm:$0xf] %vm17297_vm7, %v3451_v48  ;;  %v5834_v45 = vld [vmem:[#allocation4 + $0x44] sm:$0x1]  ;;  %11076 = vtanh.f32 %v4988_v29  ;;  %7823 = vrot.lane.b32.xlu1 %v7750_v2, %s11322_s14  ;;  %v8080_v28 = vrot.slane %v8078_v39, 4  ;;  %v8083_v61 = vrot.slane %v8081_v3, 5  ;;  %vm17300_vm3 = vmmov %vm17297_vm7  ;;  %v6252_v39 = vpop.permute.xlu1 %6251  ;;  %v4010_v26 = vpop.permute.xlu0 %4009 }
 0x2a7   : > { %3321 = vst.msk [vmem:[#allocation3 + $0xf0] sm:$0xf] %vm17298_vm10, %v3255_v46  ;;  %v5201_v42 = vld [vmem:[#allocation4 + $0x8c] sm:$0x1]  ;;  %v5435_v50 = vsel %vm11542_vm13, %v5427_v60, %v5434_v31  ;;  %v5688_v25 = vsel %vm12717_vm2, %v5436_v19, %v5687_v38  ;;  %v8097_v7 = vshll.u32 %v7947_v11, 16  ;;  %v6511_v17 = vrot.slane %v14559_v44, 5  ;;  %vm17302_vm7 = vmmov %vm17290_vm0 }
 0x2a8   : > { %v14583_v4 = vld [vmem:[#allocation4 + $0x4c] sm:$0xf]  ;;  %5686 = vst.msk [vmem:[#allocation4 + $0x58] sm:$0xf] %vm17290_vm0, %v5435_v50  ;;  %5689 = vst [vmem:[#allocation4 + $0x5c] sm:$0x1] %v5688_v25  ;;  %v8084_v36 = vor.u32 %v8083_v61, %v8080_v28 }
 0x2a9   : > { %v4989_v51 = vmul.f32 0.7978846, %v4957_v10  ;;  %v6724_v18 = vld [vmem:[#allocation4 + $0x40] sm:$0xf]  ;;  %v6005_v63 = vshll.u32 %v5834_v45, 16  ;;  %v7007_v58 = vrot.slane %v7005_v34, 4 }
 0x2aa   : > { %vm17299_vm14 = vcmask 1044352   ;;  %vm6345_vm1 = vcmask 519424   ;;  %v8095_v55 = vrot.slane %v8094_v15, 4  ;;  %v6395_v8 = vld [vmem:[#allocation4 + $0x44] sm:$0x1]  ;;  %v7010_v6 = vrot.slane %v7008_v57, 5  ;;  %6797 = vrot.lane.b32.xlu1 %v6724_v18, %s11320_s28  ;;  %v7615_v45 = vpop.permute.xlu1 %7614  ;;  %v6250_v50 = vpop.permute.xlu0 %6249 }
 0x2ab   : > { %4077 = vst.msk [vmem:[#allocation3 + $0xf8] sm:$0xf] %vm17299_vm14, %v4012_v20  ;;  %v5202_v30 = vsel %vm12738_vm11, 0, %v5201_v42  ;;  %11078 = vtanh.f32 %v4989_v51  ;;  %v7749_v41 = vld [vmem:[#allocation4 + $0x48] sm:$0xf]  ;;  %v6003_v33 = vrot.slane %v6002_v37, 4  ;;  %vm17301_vm12 = vmmov %vm17299_vm14 }
 0x2ac   : > { %3515 = vst.msk [vmem:[#allocation3 + $0xf0] sm:$0xf] %vm17300_vm3, %v3449_v12  ;;  %v7537_v34 = vrot.slane %v14583_v4, 5  ;;  %v5836_v16 = vld [vmem:[#allocation4 + $0x4c] sm:$0xf]  ;;  %7821 = vrot.lane.b32.xlu0 %v7749_v41, %s11322_s14  ;;  %v8099_v23 = vrot.slane %v8097_v7, 5  ;;  %v7011_v35 = vor.u32 %v7010_v6, %v7007_v58  ;;  %vm17303_vm14 = vmmov %vm17290_vm0 }
 0x2ad   : > { %5203 = vst [vmem:[#allocation4 + $0x8c] sm:$0x1] %v5202_v30  ;;  %v14594_v49 = vrot.slane %v5992_v14, 4  ;;  %v6513_v32 = vrot.slane %v6511_v17, 4  ;;  %v6393_v38 = vld [vmem:[#allocation4 + $0x3c] sm:$0xe]  ;;  %vm17305_vm3 = vmmov %vm17290_vm0 }
 0x2ae   : > { %v14596_v5 = vld [vmem:[#allocation4 + $0x34] sm:$0xf]  ;;  %v6723_v3 = vld [vmem:[#allocation4 + $0x3c] sm:$0xf]  ;;  %v6007_v44 = vrot.slane %v6005_v63, 5  ;;  %vm6682_vm4 = vcmask 781824   ;;  %v8100_v24 = vsel %vm11585_vm15, %v8095_v55, %v8099_v23  ;;  %v6589_v23 = vpop.permute.xlu1 %6588 }
 0x2af   : > { %v6514_v47 = vrot.slane %v6395_v8, 5  ;;  %v14598_v56 = vld [vmem:[#allocation4 + $0x48] sm:$0xf]  ;;  %6347 = vst.msk [vmem:[#allocation5 + $0xc] sm:$0xf] %vm6345_vm1, %v6252_v39  ;;  %v6019_v22 = vshll.u32 %v5836_v16, 16  ;;  %8383 = vrot.lane.b32.xlu1 %v8100_v24, %s11320_s28  ;;  %v5998_v31 = vsel %vm11585_vm15, %v14594_v49, %v14533_v21  ;;  %v4751_v49 = vpop.f32.mrf.mxu1  ;;  %v7613_v39 = vpop.permute.xlu0 %7612 }
 0x2b0   : > { %v7421_v57 = vld [vmem:[#allocation4 + $0x50] sm:$0x1]  ;;  %v6023_v29 = vshrl.u32 %v5836_v16, 16  ;;  %v7012_v53 = vrot.slane %v7011_v35, 4  ;;  %4076 = vst.msk [vmem:[#allocation3 + $0xf0] sm:$0xf] %vm17301_vm12, %v4010_v26  ;;  %6795 = vrot.lane.b32.xlu0 %v6723_v3, %s11320_s28  ;;  %v6008_v60 = vsel %vm11585_vm15, %v6003_v33, %v6007_v44  ;;  %v14656_v3 = vadd.f32 %v14300_v40, %v4751_v49  ;;  %vm17306_vm12 = vmmov %vm17290_vm0 }
 0x2b1   : > { %v8085_v48 = vrot.slane %v8084_v36, 4  ;;  %v7539_v11 = vrot.slane %v7537_v34, 4  ;;  %vm9220_vm9 = vcmask 261120   ;;  %v10437_v37 = vrot.slane %v6393_v38, 9  ;;  %v8508_v14 = vld [vmem:[#allocation4 + $0x54] sm:$0xe] }
 0x2b2   : > { %v14616_v19 = vsel %vm11511_vm6, %v6513_v32, %v6514_v47  ;;  %v14618_v46 = vld [vmem:[#allocation4 + $0x48] sm:$0xe]  ;;  %v7949_v2 = vld [vmem:[#allocation4 + $0x58] sm:$0xf]  ;;  %v7017_v15 = vsel %vm11585_vm15, %v7012_v53, %v14427_v52  ;;  %v7540_v10 = vrot.slane %v7421_v57, 5  ;;  %v6010_v21 = vshrl.u32 %v14598_v56, 16 }
 0x2b3   : > { %v14625_v28 = vsel %vm11511_vm6, %v10437_v37, %v6511_v17  ;;  %v8509_v61 = vld [vmem:[#allocation4 + $0x58] sm:$0xf]  ;;  %7376 = vst.msk [vmem:[#allocation5 + $0x34] sm:$0xf] %vm17302_vm7, %v7017_v15  ;;  %v7038_v42 = vshll.u32 %v14596_v5, 16  ;;  %v10469_v7 = vrot.slane %v8508_v14, 9  ;;  %6271 = vrot.lane.b32.xlu1 %v6008_v60, %s11317_s20  ;;  %v8090_v17 = vsel %vm11585_vm15, %v8085_v48, %v14552_v54  ;;  %v11077_v55 = vpop.eup %11076  ;;  %vm17307_vm7 = vmmov %vm17290_vm0 }
 0x2b4   : > { %7709 = vst.msk [vmem:[#allocation5 + $0x10] sm:$0xf] %vm6345_vm1, %v7615_v45  ;;  %v8510_v25 = vld [vmem:[#allocation4 + $0x5c] sm:$0x1]  ;;  %v8626_v51 = vrot.slane %v8509_v61, 5  ;;  %v14631_v52 = vrot.slane %v6019_v22, 5  ;;  %v7541_v18 = vsel %vm11511_vm6, %v7539_v11, %v7540_v10  ;;  %8381 = vrot.lane.b32.xlu0 %v8090_v17, %s11320_s28  ;;  %v7808_v45 = vpop.permute.xlu1 %7807 }
 0x2b5   : > { %v6025_v20 = vrot.slane %v6023_v29, 4  ;;  %6346 = vst.msk [vmem:[#allocation5] sm:$0xf] %vm6345_vm1, %v6250_v50  ;;  %vm6875_vm10 = vcmask 1044224   ;;  %v10453_v63 = vrot.slane %v14618_v46, 9  ;;  %v8111_v58 = vshll.u32 %v7949_v2, 16 }
 0x2b6   : > { %v14641_v12 = vld [vmem:[#allocation4 + $0x50] sm:$0x1]  ;;  %v4381_v8 = vld [vmem:[#allocation3 + $0xf8] sm:$0xff]  ;;  %v8115_v6 = vshrl.u32 %v7949_v2, 16  ;;  %v8627_v30 = vsel %vm11511_vm6, %v10469_v7, %v8626_v51  ;;  %v8628_v41 = vrot.slane %v8626_v51, 4  ;;  %v8629_v33 = vrot.slane %v8510_v25, 5 }
 0x2b7   : > { %v14646_v54 = vld [vmem:[#allocation4 + $0x4c] sm:$0xf]  ;;  %v4828_v36 = vmul.f32 0.5, %v14501_v43  ;;  %v5052_v16 = vadd.f32 1.0, %v11077_v55  ;;  %8743 = vst.msk [vmem:[#allocation5 + $0x80] sm:$0xf] %vm17290_vm0, %v8627_v30  ;;  %v6026_v26 = vor.u32 %v6025_v20, %v14631_v52  ;;  %7634 = vrot.lane.b32.xlu1 %v7541_v18, %s11317_s20 }
 0x2b8   : > { %v14650_v32 = vrot.slane %v6010_v21, 4  ;;  %v6013_v38 = vshll.u32 %v14598_v56, 16  ;;  %v4829_v35 = vmul.f32 0.5, %v14526_v62  ;;  %6684 = vst.msk [vmem:[#allocation5 + $0xc] sm:$0xf] %vm6682_vm4, %v6589_v23  ;;  %v4380_v44 = vld [vmem:[#allocation3 + $0xf0] sm:$0xff]  ;;  %v8630_v43 = vsel %vm11511_vm6, %v8628_v41, %v8629_v33  ;;  %v4753_v62 = vpop.f32.mrf.mxu1  ;;  %v11079_v48 = vpop.eup %11078  ;;  %6269 = vrot.lane.b32.xlu0 %v5998_v31, %s11317_s20 }
 0x2b9   : > { %v10982_v47 = vld [vmem:[#allocation3 + $0xf4] ss:$8 sps:$4 sm:$0xff]   ;;  %v5084_v57 = vmul.f32 %v5052_v16, %v4828_v36  ;;  %7708 = vst.msk [vmem:[#allocation5 + $0x4] sm:$0xf] %vm6345_vm1, %v7613_v39  ;;  %v10373_v56 = vcombine.low %v4380_v44, %v4381_v8  ;;  %v6029_v29 = vshll.u32 %v14641_v12, 16  ;;  %v6518_v53 = vrot.slane %v14646_v54, 5  ;;  %v6587_v31 = vpop.permute.xlu0 %6586 }
 0x2ba   : > { %v7948_v24 = vld [vmem:[#allocation4 + $0x54] sm:$0xf]  ;;  %v10987_v22 = vld [vmem:[#allocation5 + $0x38] ss:$12 sps:$4 sm:$0xff]   ;;  %8744 = vst.msk [vmem:[#allocation5 + $0x8c] sm:$0xf] %vm17303_vm14, %v8630_v43  ;;  %10399 = vmatprep.mubr.msk.bf16.mxu1 %vm415_vm5, %v10982_v47  ;;  %v4754_v10 = vpop.f32.mrf.mxu1  ;;  %vm17304_vm5 = vmmov %vm17290_vm0 }
 0x2bb   : > { %v4862_v11 = vmul.f32 0.044715, %v14656_v3  ;;  %v14669_v37 = vrot.slane %v8111_v58, 5  ;;  %v8117_v14 = vrot.slane %v8115_v6, 4  ;;  %v7042_v60 = vshrl.u32 %v14596_v5, 16  ;;  %4806 = vmatmul.mubr.bf16.gmra.mxu1 %v10373_v56  ;;  %6608 = vrot.lane.b32.xlu1 %v14616_v19, %s11322_s14  ;;  %vm17308_vm14 = vmmov %vm17290_vm0 }
 0x2bc   : > { %v10617_v2 = vpack.c.bf16 %v5084_v57, %v5084_v57  ;;  %v5053_v15 = vadd.f32 1.0, %v11079_v48  ;;  %v8102_v61 = vshrl.u32 %v7948_v24, 16  ;;  %v14672_v21 = vrot.slane %v6013_v38, 5  ;;  %7902 = vst.msk [vmem:[#allocation5 + $0x10] sm:$0xf] %vm6682_vm4, %v7808_v45  ;;  %10830 = vmatprep.mubr.msk.bf16.mxu1 %vm9220_vm9, %v10987_v22  ;;  %v4756_v55 = vpop.f32.mrf.mxu1 }
 0x2bd   : > { %v4894_v50 = vmul.f32 %v4862_v11, %v14656_v3  ;;  %v14677_v25 = vadd.f32 %v14300_v40, %v4754_v10  ;;  %v14680_v7 = vrot.slane %v6026_v26, 4  ;;  %v8105_v51 = vshll.u32 %v7948_v24, 16  ;;  %v14682_v20 = vld [vmem:[#allocation4 + $0x38] sm:$0x1]  ;;  %6683 = vst.msk [vmem:[#allocation5] sm:$0xf] %vm6682_vm4, %v6587_v31 }
 0x2be   : > { %v5768_v17 = vld [vmem:[#allocation4 + $0x58] sm:$0xf]  ;;  %v5438_v18 = vshrl.u32 %v10617_v2, 16  ;;  %v5085_v58 = vmul.f32 %v5053_v15, %v4829_v35  ;;  %v7538_v40 = vsel %vm11511_vm6, %v10453_v63, %v7537_v34  ;;  %v7950_v8 = vld [vmem:[#allocation4 + $0x5c] sm:$0x1]  ;;  %v14695_v6 = vrot.slane %v7038_v42, 5  ;;  %v6782_v42 = vpop.permute.xlu1 %6781  ;;  %v7806_v35 = vpop.permute.xlu0 %7805 }
 0x2bf   : > { %5800 = vst.msk [vmem:[#allocation5 + $0xb4] sm:$0xf] %vm17304_vm5, %v5768_v17  ;;  %v5767_v30 = vld [vmem:[#allocation4 + $0x54] sm:$0xf]  ;;  %v5690_v41 = vld [vmem:[#allocation4 + $0x60] sm:$0xf]  ;;  %v4926_v33 = vmul.f32 %v4894_v50, %v14656_v3  ;;  %7632 = vrot.lane.b32.xlu0 %v7538_v40, %s11317_s20  ;;  %v8118_v4 = vor.u32 %v8117_v14, %v14669_v37  ;;  %v6016_v57 = vor.u32 %v14672_v21, %v14650_v32  ;;  %vm17309_vm5 = vmmov %vm17290_vm0 }
 0x2c0   : > { %v4863_v19 = vmul.f32 0.044715, %v14677_v25  ;;  %v7044_v46 = vrot.slane %v7042_v60, 4  ;;  %5799 = vst.msk [vmem:[#allocation5 + $0xa8] sm:$0xf] %vm17305_vm3, %v5767_v30  ;;  %v5440_v34 = vrot.slane %v5438_v18, 7  ;;  %v10618_v5 = vpack.c.bf16 %v5085_v58, %v5085_v58  ;;  %vm17310_vm3 = vmmov %vm17290_vm0 }
 0x2c1   : > { %v5441_v63 = vshll.u32 %v10617_v2, 16  ;;  %v14703_v36 = vrot.slane %v8102_v61, 4  ;;  %v14705_v16 = vld [vmem:[#allocation4 + $0x30] sm:$0xf]  ;;  %v4958_v23 = vadd.f32 %v4926_v33, %v14656_v3  ;;  %6877 = vst.msk [vmem:[#allocation5 + $0xc] sm:$0xf] %vm6875_vm10, %v6782_v42 }
 0x2c2   : > { %v4895_v49 = vmul.f32 %v4863_v19, %v14677_v25  ;;  %v7752_v38 = vld [vmem:[#allocation4 + $0x58] sm:$0xf]  ;;  %v8121_v39 = vshll.u32 %v7950_v8, 16  ;;  %v14710_v44 = vrot.slane %v8105_v51, 5  ;;  %v5446_v43 = vshrl.u32 %v10618_v5, 16  ;;  %v8368_v10 = vpop.permute.xlu1 %8367  ;;  %v6780_v31 = vpop.permute.xlu0 %6779 }
 0x2c3   : > { %v5443_v47 = vor.u32 %v5441_v63, %v5440_v34  ;;  %7827 = vrot.lane.b32.xlu1 %v7752_v38, %s11322_s14  ;;  %7901 = vst.msk [vmem:[#allocation5 + $0x4] sm:$0xf] %vm6682_vm4, %v7806_v35  ;;  %v10991_v26 = vld [vmem:[#allocation5 + $0x50] ss:$12 sps:$4 sm:$0xff]   ;;  %v10994_v24 = vld [vmem:[#allocation5 + $0x68] ss:$12 sps:$4 sm:$0xff]   ;;  %6606 = vrot.lane.b32.xlu0 %v14625_v28, %s11322_s14  ;;  %v7045_v60 = vor.u32 %v7044_v46, %v14695_v6 }
 0x2c4   : > { %v7048_v62 = vshll.u32 %v14682_v20, 16  ;;  %v5694_v56 = vld [vmem:[#allocation4 + $0x68] sm:$0x1]  ;;  %v4990_v22 = vmul.f32 0.7978846, %v4958_v23  ;;  %v4927_v48 = vmul.f32 %v4895_v49, %v14677_v25  ;;  %v8119_v11 = vrot.slane %v8118_v4, 4  ;;  %10831 = vmatmul.mubr.msk.bf16.vlgmr.msra.gmra.mxu1 %vm9220_vm9, %v10991_v26 }
 0x2c5   : > { %v14720_v14 = vld [vmem:[#allocation4 + $0x58] sm:$0xf]  ;;  %v5691_v2 = vsel %vm13344_vm8, %v5443_v47, %v5690_v41  ;;  %v5448_v15 = vrot.slane %v5446_v43, 7  ;;  %v5449_v45 = vshll.u32 %v10618_v5, 16  ;;  %v6726_v61 = vld [vmem:[#allocation4 + $0x4c] sm:$0xf]  ;;  %10834 = vmatprep.mubr.msk.bf16.mxu1 %vm9220_vm9, %v10994_v24  ;;  %v8108_v17 = vor.u32 %v14710_v44, %v14703_v36 }
 0x2c6   : > { %v7029_v50 = vshrl.u32 %v14705_v16, 16  ;;  %5692 = vst [vmem:[#allocation4 + $0x60] sm:$0xf] %v5691_v2  ;;  %11080 = vtanh.f32 %v4990_v22  ;;  %v4959_v28 = vadd.f32 %v4927_v48, %v14677_v25  ;;  %8462 = vst.msk [vmem:[#allocation5 + $0x10] sm:$0xf] %vm6875_vm10, %v8368_v10  ;;  %v8123_v20 = vrot.slane %v8121_v39, 5  ;;  %v6256_v5 = vpop.permute.xlu1 %6255  ;;  %v8366_v38 = vpop.permute.xlu0 %8365 }
 0x2c7   : > { %v7751_v51 = vld [vmem:[#allocation4 + $0x54] sm:$0xf]  ;;  %v5149_v18 = vld [vmem:[#allocation4 + $0x90] sm:$0x1]  ;;  %v5444_v58 = vrot.slane %v5440_v34, 4  ;;  %v5451_v55 = vor.u32 %v5449_v45, %v5448_v15  ;;  %v5453_v40 = vrot.slane %v5448_v15, 4  ;;  %6801 = vrot.lane.b32.xlu1 %v6726_v61, %s11320_s28 }
 0x2c8   : > { %6876 = vst.msk [vmem:[#allocation5] sm:$0xf] %vm6875_vm10, %v6780_v31  ;;  %v7544_v8 = vrot.slane %v14720_v14, 5  ;;  %v5204_v30 = vld [vmem:[#allocation4 + $0x98] sm:$0x1]  ;;  %7825 = vrot.lane.b32.xlu0 %v7751_v51, %s11322_s14  ;;  %v8124_v33 = vsel %vm11585_vm15, %v8119_v11, %v8123_v20  ;;  %v7046_v4 = vrot.slane %v7045_v60, 4 }
 0x2c9   : > { %v4991_v41 = vmul.f32 0.7978846, %v4959_v28  ;;  %v5839_v19 = vld [vmem:[#allocation4 + $0x58] sm:$0xf]  ;;  %v7050_v46 = vrot.slane %v7048_v62, 5  ;;  %v5452_v34 = vsel %vm11542_vm13, %v5444_v58, %v5451_v55  ;;  %v5695_v63 = vsel %vm12717_vm2, %v5453_v40, %v5694_v56 }
 0x2ca   : > { %v6398_v42 = vld [vmem:[#allocation4 + $0x50] sm:$0x1]  ;;  %v7031_v36 = vrot.slane %v7029_v50, 4  ;;  %v7032_v23 = vshll.u32 %v14705_v16, 16  ;;  %v5152_v49 = vld [vmem:[#allocation4 + $0x9c] sm:$0x1]  ;;  %v7619_v2 = vpop.permute.xlu1 %7618 }
 0x2cb   : > { %5693 = vst.msk [vmem:[#allocation4 + $0x64] sm:$0xf] %vm17306_vm12, %v5452_v34  ;;  %5696 = vst [vmem:[#allocation4 + $0x68] sm:$0x1] %v5695_v63  ;;  %11082 = vtanh.f32 %v4991_v41  ;;  %v6725_v35 = vld [vmem:[#allocation4 + $0x48] sm:$0xf]  ;;  %v7051_v44 = vsel %vm11585_vm15, %v7046_v4, %v7050_v46  ;;  %8387 = vrot.lane.b32.xlu1 %v8124_v33, %s11320_s28 }
 0x2cc   : > { %6349 = vst.msk [vmem:[#allocation5 + $0x24] sm:$0xf] %vm6345_vm1, %v6256_v5  ;;  %v14745_v39 = vld [vmem:[#allocation4 + $0x54] sm:$0xf]  ;;  %v5150_v47 = vsel %vm12717_vm2, 0, %v5149_v18  ;;  %v5205_v16 = vsel %vm12738_vm11, 0, %v5204_v30  ;;  %6799 = vrot.lane.b32.xlu0 %v6725_v35, %s11320_s28  ;;  %vm17311_vm12 = vmmov %vm17290_vm0 }
 0x2cd   : > { %8461 = vst.msk [vmem:[#allocation5 + $0x4] sm:$0xf] %vm6875_vm10, %v8366_v38  ;;  %v10997_v43 = vld [vmem:[#allocation5 + $0x80] ss:$12 sps:$4 sm:$0xff]   ;;  %v8109_v26 = vrot.slane %v8108_v17, 4  ;;  %v6043_v24 = vshll.u32 %v5839_v19, 16 }
 0x2ce   : > { %v6047_v62 = vshrl.u32 %v5839_v19, 16  ;;  %7379 = vst.msk [vmem:[#allocation5 + $0x58] sm:$0xf] %vm17307_vm7, %v7051_v44  ;;  %v7034_v56 = vrot.slane %v7032_v23, 5  ;;  %5151 = vst [vmem:[#allocation4 + $0x90] sm:$0x1] %v5150_v47  ;;  %10835 = vmatmul.mubr.msk.bf16.gmra.mxu1 %vm9220_vm9, %v10997_v43  ;;  %v6593_v55 = vpop.permute.xlu1 %6592  ;;  %v4759_v43 = vpop.f32.mrf.mxu1 }
 0x2cf   : > { %5206 = vst [vmem:[#allocation4 + $0x98] sm:$0x1] %v5205_v16  ;;  %v6031_v22 = vrot.slane %v6029_v29, 5  ;;  %v6521_v48 = vrot.slane %v6398_v42, 5  ;;  %v6396_v11 = vld [vmem:[#allocation4 + $0x48] sm:$0xe]  ;;  %v6254_v29 = vpop.permute.xlu0 %6253  ;;  %v8114_v20 = vsel %vm11585_vm15, %v8109_v26, %v14669_v37  ;;  %vm17312_vm7 = vmmov %vm17290_vm0 }
 0x2d0   : > { %v5153_v60 = vsel %vm12717_vm2, 0, %v5152_v49  ;;  %v7424_v15 = vld [vmem:[#allocation4 + $0x5c] sm:$0x1]  ;;  %v6520_v45 = vrot.slane %v6518_v53, 4  ;;  %v7422_v10 = vld [vmem:[#allocation4 + $0x54] sm:$0xe]  ;;  %v7035_v61 = vor.u32 %v7034_v56, %v7031_v36  ;;  %8385 = vrot.lane.b32.xlu0 %v8114_v20, %s11320_s28 }
 0x2d1   : > { %5154 = vst [vmem:[#allocation4 + $0x9c] sm:$0x1] %v5153_v60  ;;  %7711 = vst.msk [vmem:[#allocation5 + $0x28] sm:$0xf] %vm6345_vm1, %v7619_v2  ;;  %v6032_v12 = vsel %vm11585_vm15, %v14680_v7, %v6031_v22  ;;  %v7546_v50 = vrot.slane %v7544_v8, 4  ;;  %v6017_v28 = vrot.slane %v6016_v57, 4 }
 0x2d2   : > { %v8511_v31 = vld [vmem:[#allocation4 + $0x60] sm:$0xe]  ;;  %v6034_v51 = vshrl.u32 %v14745_v39, 16  ;;  %6275 = vrot.lane.b32.xlu1 %v6032_v12, %s11317_s20  ;;  %6348 = vst.msk [vmem:[#allocation5 + $0x18] sm:$0xf] %vm6345_vm1, %v6254_v29  ;;  %v14779_v7 = vrot.slane %v6043_v24, 5  ;;  %v6522_v40 = vsel %vm11511_vm6, %v6520_v45, %v6521_v48  ;;  %v7812_v16 = vpop.permute.xlu1 %7811 }
 0x2d3   : > { %v14781_v17 = vrot.slane %v6047_v62, 4  ;;  %v7036_v18 = vrot.slane %v7035_v61, 4  ;;  %v7547_v32 = vrot.slane %v7424_v15, 5  ;;  %v10454_v21 = vrot.slane %v7422_v10, 9  ;;  %v14784_v58 = vld [vmem:[#allocation4 + $0x5c] sm:$0x1]  ;;  %v7617_v46 = vpop.permute.xlu0 %7616  ;;  %v4761_v10 = vpop.f32.mrf.mxu1 }
 0x2d4   : > { %v10438_v57 = vrot.slane %v6396_v11, 9  ;;  %v8512_v30 = vld [vmem:[#allocation4 + $0x64] sm:$0xf]  ;;  %v8513_v41 = vld [vmem:[#allocation4 + $0x68] sm:$0x1]  ;;  %v10470_v33 = vrot.slane %v8511_v31, 9  ;;  %v6022_v34 = vsel %vm11585_vm15, %v6017_v28, %v14631_v52 }
 0x2d5   : > { %v6037_v37 = vshll.u32 %v14745_v39, 16  ;;  %v7041_v19 = vsel %vm11585_vm15, %v7036_v18, %v14695_v6  ;;  %6686 = vst.msk [vmem:[#allocation5 + $0x24] sm:$0xf] %vm6682_vm4, %v6593_v55  ;;  %v7548_v4 = vsel %vm11511_vm6, %v7546_v50, %v7547_v32  ;;  %v11002_v63 = vld [vmem:[#allocation5] ss:$12 sps:$4 sm:$0xff]   ;;  %v8633_v36 = vrot.slane %v8512_v30, 5  ;;  %v11081_v6 = vpop.eup %11080  ;;  %6273 = vrot.lane.b32.xlu0 %v6022_v34, %s11317_s20 }
 0x2d6   : > { %v11004_v5 = vld [vmem:[#allocation5 + $0x4] ss:$12 sps:$4 sm:$0xff]   ;;  %v14802_v42 = vsel %vm11511_vm6, %v10438_v57, %v6518_v53  ;;  %7378 = vst.msk [vmem:[#allocation5 + $0x4c] sm:$0xf] %vm17290_vm0, %v7041_v19  ;;  %v4830_v23 = vmul.f32 0.5, %v14656_v3  ;;  %7638 = vrot.lane.b32.xlu1 %v7548_v4, %s11317_s20  ;;  %v8636_v49 = vrot.slane %v8513_v41, 5  ;;  %v6050_v38 = vor.u32 %v14781_v17, %v14779_v7  ;;  %v6786_v32 = vpop.permute.xlu1 %6785 }
 0x2d7   : > { %7710 = vst.msk [vmem:[#allocation5 + $0x1c] sm:$0xf] %vm6345_vm1, %v7617_v46  ;;  %v7952_v52 = vld [vmem:[#allocation4 + $0x64] sm:$0xf]  ;;  %v14810_v54 = vrot.slane %v6034_v51, 4  ;;  %v5054_v35 = vadd.f32 1.0, %v11081_v6  ;;  %9301 = vmatprep.mubr.bf16.mxu0 %v11004_v5  ;;  %v8634_v53 = vsel %vm11511_vm6, %v10470_v33, %v8633_v36  ;;  %v7545_v26 = vsel %vm11511_vm6, %v10454_v21, %v7544_v8  ;;  %v6591_v48 = vpop.permute.xlu0 %6590  ;;  %v4762_v21 = vpop.f32.mrf.mxu1 }
 0x2d8   : > { %v8635_v39 = vrot.slane %v8633_v36, 4  ;;  %v8135_v3 = vshll.u32 %v7952_v52, 16  ;;  %v7951_v44 = vld [vmem:[#allocation4 + $0x60] sm:$0xf]  ;;  %v4831_v47 = vmul.f32 0.5, %v14677_v25  ;;  %9302 = vmatmul.mubr.bf16.vlgmr.msra.gmra.mxu0 %v11002_v63  ;;  %v8139_v24 = vshrl.u32 %v7952_v52, 16  ;;  %v11083_v45 = vpop.eup %11082 }
 0x2d9   : > { %8745 = vst.msk [vmem:[#allocation5 + $0x98] sm:$0xf] %vm17308_vm14, %v8634_v53  ;;  %v6053_v62 = vshll.u32 %v14784_v58, 16  ;;  %v14822_v56 = vld [vmem:[#allocation4 + $0x3c] sm:$0xf]  ;;  %v5086_v22 = vmul.f32 %v5054_v35, %v4830_v23  ;;  %v11215_v15 = vld [vmem:[%s17130_s3 + $0x88] sm:$0xff]   ;;  %7636 = vrot.lane.b32.xlu0 %v7545_v26, %s11317_s20  ;;  %v4764_v5 = vpop.f32.mrf.mxu1  ;;  %vm17313_vm14 = vmmov %vm17290_vm0 }
 0x2da   : > { %7904 = vst.msk [vmem:[#allocation5 + $0x28] sm:$0xf] %vm6682_vm4, %v7812_v16  ;;  %v14828_v25 = vld [vmem:[%s17129_s2] ss:$0 sm:$0xff]  ;;  %v8637_v8 = vsel %vm11511_vm6, %v8635_v39, %v8636_v49  ;;  %v14835_v11 = vrot.slane %v8135_v3, 5  ;;  %10823 = vmatpush3.bf16.msra.mxu0 %v11215_v15  ;;  %6612 = vrot.lane.b32.xlu1 %v6522_v40, %s11322_s14  ;;  %v8141_v61 = vrot.slane %v8139_v24, 4  ;;  %v8372_v3 = vpop.permute.xlu1 %8371 }
 0x2db   : > { %v14831_v14 = vadd.f32 %v14828_v25, %v4759_v43  ;;  %v6921_v60 = vld [vmem:[#allocation4 + $0x40] sm:$0xf]  ;;  %v14837_v2 = vld [vmem:[#allocation4 + $0x44] sm:$0x1]  ;;  %6685 = vst.msk [vmem:[#allocation5 + $0x18] sm:$0xf] %vm6682_vm4, %v6591_v48  ;;  %v10619_v31 = vpack.c.bf16 %v5086_v22, %v5086_v22  ;;  %v7810_v4 = vpop.permute.xlu0 %7809  ;;  %v14860_v63 = vadd.f32 %v14828_v25, %v4762_v21 }
 0x2dc   : > { %8746 = vst.msk [vmem:[#allocation5 + $0xa4] sm:$0xf] %vm17309_vm5, %v8637_v8  ;;  %v8126_v12 = vshrl.u32 %v7951_v44, 16  ;;  %v8129_v29 = vshll.u32 %v7951_v44, 16  ;;  %v14845_v50 = vrot.slane %v6037_v37, 5  ;;  %v11216_v28 = vld [vmem:[%s17130_s3 + $0x80] sm:$0xff]   ;;  %v8142_v46 = vor.u32 %v8141_v61, %v14835_v11  ;;  %vm17314_vm5 = vmmov %vm17290_vm0 }
 0x2dd   : > { %10824 = vmatprep.subr.bf16.mxu0 %v11216_v28  ;;  %v5055_v51 = vadd.f32 1.0, %v11083_v45  ;;  %v4864_v20 = vmul.f32 0.044715, %v14831_v14  ;;  %v7953_v17 = vld [vmem:[#allocation4 + $0x68] sm:$0x1]  ;;  %v14852_v18 = vrot.slane %v6050_v38, 4  ;;  %6610 = vrot.lane.b32.xlu0 %v14802_v42, %s11322_s14 }
 0x2de   : > { %v7062_v57 = vshll.u32 %v6921_v60, 16  ;;  %v7066_v55 = vshrl.u32 %v6921_v60, 16  ;;  %v7072_v40 = vshll.u32 %v14837_v2, 16  ;;  %v7053_v30 = vshrl.u32 %v14822_v56, 16  ;;  %6879 = vst.msk [vmem:[#allocation5 + $0x24] sm:$0xf] %vm6875_vm10, %v6786_v32  ;;  %10825 = vmatpush3.bf16.msra.mxu0 %v11216_v28  ;;  %v6260_v21 = vpop.permute.xlu1 %6259 }
 0x2df   : > { %v5455_v41 = vshrl.u32 %v10619_v31, 16  ;;  %v5087_v33 = vmul.f32 %v5055_v51, %v4831_v47  ;;  %v4896_v37 = vmul.f32 %v4864_v20, %v14831_v14  ;;  %v7754_v19 = vld [vmem:[#allocation4 + $0x64] sm:$0xf]  ;;  %v5697_v34 = vld [vmem:[#allocation4 + $0x6c] sm:$0xf]  ;;  %v8145_v36 = vshll.u32 %v7953_v17, 16  ;;  %v6784_v24 = vpop.permute.xlu0 %6783 }
 0x2e0   : > { %7831 = vrot.lane.b32.xlu1 %v7754_v19, %s11322_s14  ;;  %7903 = vst.msk [vmem:[#allocation5 + $0x1c] sm:$0xf] %vm6682_vm4, %v7810_v4  ;;  %v8128_v6 = vrot.slane %v8126_v12, 4  ;;  %v8131_v23 = vrot.slane %v8129_v29, 5  ;;  %v5458_v52 = vshll.u32 %v10619_v31, 16  ;;  %v14868_v44 = vrot.slane %v7062_v57, 5 }
 0x2e1   : > { %v5457_v49 = vrot.slane %v5455_v41, 7  ;;  %v10620_v38 = vpack.c.bf16 %v5087_v33, %v5087_v33  ;;  %v4928_v35 = vmul.f32 %v4896_v37, %v14831_v14  ;;  %v6728_v53 = vld [vmem:[#allocation4 + $0x58] sm:$0xf]  ;;  %v4865_v39 = vmul.f32 0.044715, %v14860_v63 }
 0x2e2   : > { %v14870_v47 = vrot.slane %v7066_v55, 4  ;;  %v7056_v16 = vshll.u32 %v14822_v56, 16  ;;  %8464 = vst.msk [vmem:[#allocation5 + $0x28] sm:$0xf] %vm6875_vm10, %v8372_v3  ;;  %v8143_v22 = vrot.slane %v8142_v46, 4  ;;  %v8132_v10 = vor.u32 %v8131_v23, %v8128_v6 }
 0x2e3   : > { %v5460_v43 = vor.u32 %v5458_v52, %v5457_v49  ;;  %v5463_v26 = vshrl.u32 %v10620_v38, 16  ;;  %v14874_v48 = vld [vmem:[#allocation4 + $0x64] sm:$0xf]  ;;  %v5701_v8 = vld [vmem:[#allocation4 + $0x74] sm:$0x1]  ;;  %v4960_v42 = vadd.f32 %v4928_v35, %v14831_v14  ;;  %v4897_v60 = vmul.f32 %v4865_v39, %v14860_v63  ;;  %v8370_v19 = vpop.permute.xlu0 %8369 }
 0x2e4   : > { %6805 = vrot.lane.b32.xlu1 %v6728_v53, %s11320_s28  ;;  %6878 = vst.msk [vmem:[#allocation5 + $0x18] sm:$0xf] %vm6875_vm10, %v6784_v24  ;;  %v7753_v15 = vld [vmem:[#allocation4 + $0x60] sm:$0xf]  ;;  %v11005_v45 = vld [vmem:[#allocation5 + $0x98] ss:$12 sps:$4 sm:$0xff]   ;;  %v6040_v61 = vor.u32 %v14845_v50, %v14810_v54  ;;  %v7069_v57 = vor.u32 %v14870_v47, %v14868_v44 }
 0x2e5   : > { %v5770_v12 = vld [vmem:[#allocation4 + $0x64] sm:$0xf]  ;;  %v5698_v29 = vsel %vm13344_vm8, %v5460_v43, %v5697_v34  ;;  %v5465_v28 = vrot.slane %v5463_v26, 7  ;;  %v5466_v31 = vshll.u32 %v10620_v38, 16  ;;  %7829 = vrot.lane.b32.xlu0 %v7753_v15, %s11322_s14  ;;  %v8147_v51 = vrot.slane %v8145_v36, 5  ;;  %10838 = vmatprep.mubr.msk.bf16.mxu1 %vm9220_vm9, %v11005_v45 }
 0x2e6   : > { %5802 = vst.msk [vmem:[#allocation5 + $0xcc] sm:$0xf] %vm17310_vm3, %v5770_v12  ;;  %v5769_v20 = vld [vmem:[#allocation4 + $0x60] sm:$0xf]  ;;  %5699 = vst [vmem:[#allocation4 + $0x6c] sm:$0xf] %v5698_v29  ;;  %v4929_v32 = vmul.f32 %v4897_v60, %v14860_v63 }
 0x2e7   : > { %v4992_v17 = vmul.f32 0.7978846, %v4960_v42  ;;  %v7551_v54 = vrot.slane %v14874_v48, 5  ;;  %v14889_v50 = vld [vmem:[#allocation4 + $0x58] sm:$0xf]  ;;  %v5461_v55 = vrot.slane %v5457_v49, 4  ;;  %v5468_v41 = vor.u32 %v5466_v31, %v5465_v28  ;;  %v6258_v47 = vpop.permute.xlu0 %6257  ;;  %vm17315_vm3 = vmmov %vm17290_vm0 }
 0x2e8   : > { %5801 = vst.msk [vmem:[#allocation5 + $0xc0] sm:$0xf] %vm17311_vm12, %v5769_v20  ;;  %v5470_v33 = vrot.slane %v5465_v28, 4  ;;  %v8148_v37 = vsel %vm11585_vm15, %v8143_v22, %v8147_v51  ;;  %v4961_v4 = vadd.f32 %v4929_v32, %v14860_v63  ;;  %v6727_v46 = vld [vmem:[#allocation4 + $0x54] sm:$0xf]  ;;  %v6055_v34 = vrot.slane %v6053_v62, 5  ;;  %v7623_v62 = vpop.permute.xlu1 %7622  ;;  %vm17316_vm12 = vmmov %vm17290_vm0 }
 0x2e9   : > { %6351 = vst.msk [vmem:[#allocation5 + $0x3c] sm:$0xf] %vm6345_vm1, %v6260_v21  ;;  %11084 = vtanh.f32 %v4992_v17  ;;  %8391 = vrot.lane.b32.xlu1 %v8148_v37, %s11320_s28  ;;  %v8133_v5 = vrot.slane %v8132_v10, 4  ;;  %v5842_v36 = vld [vmem:[#allocation4 + $0x64] sm:$0xf]  ;;  %v5469_v6 = vsel %vm11542_vm13, %v5461_v55, %v5468_v41  ;;  %6803 = vrot.lane.b32.xlu0 %v6727_v46, %s11320_s28  ;;  %v6525_v49 = vrot.slane %v14889_v50, 5 }
 0x2ea   : > { %8463 = vst.msk [vmem:[#allocation5 + $0x1c] sm:$0xf] %vm6875_vm10, %v8370_v19  ;;  %v5702_v23 = vsel %vm12717_vm2, %v5470_v33, %v5701_v8  ;;  %v14908_v52 = vld [vmem:[#allocation4 + $0x54] sm:$0xe]  ;;  %v7055_v38 = vrot.slane %v7053_v30, 4  ;;  %v6056_v35 = vsel %vm11585_vm15, %v14852_v18, %v6055_v34  ;;  %v6041_v39 = vrot.slane %v6040_v61, 4 }
 0x2eb   : > { %5700 = vst.msk [vmem:[#allocation4 + $0x70] sm:$0xf] %vm17312_vm7, %v5469_v6  ;;  %5703 = vst [vmem:[#allocation4 + $0x74] sm:$0x1] %v5702_v23  ;;  %v4993_v58 = vmul.f32 0.7978846, %v4961_v4  ;;  %v8138_v2 = vsel %vm11585_vm15, %v8133_v5, %v14835_v11  ;;  %v7621_v12 = vpop.permute.xlu0 %7620 }
 0x2ec   : > { %v7427_v53 = vld [vmem:[#allocation4 + $0x68] sm:$0x1]  ;;  %v7074_v3 = vrot.slane %v7072_v40, 5  ;;  %7713 = vst.msk [vmem:[#allocation5 + $0x40] sm:$0xf] %vm6345_vm1, %v7623_v62  ;;  %v7553_v30 = vrot.slane %v7551_v54, 4  ;;  %v6597_v60 = vpop.permute.xlu1 %6596  ;;  %v6046_v29 = vsel %vm11585_vm15, %v6041_v39, %v14779_v7  ;;  %vm17317_vm7 = vmmov %vm17290_vm0 }
 0x2ed   : > { %v6401_v43 = vld [vmem:[#allocation4 + $0x5c] sm:$0x1]  ;;  %v6067_v26 = vshll.u32 %v5842_v36, 16  ;;  %v7070_v24 = vrot.slane %v7069_v57, 4  ;;  %v7058_v22 = vrot.slane %v7056_v16, 5  ;;  %11086 = vtanh.f32 %v4993_v58  ;;  %6279 = vrot.lane.b32.xlu1 %v6056_v35, %s11317_s20  ;;  %8389 = vrot.lane.b32.xlu0 %v8138_v2, %s11320_s28 }
 0x2ee   : > { %6350 = vst.msk [vmem:[#allocation5 + $0x30] sm:$0xf] %vm6345_vm1, %v6258_v47  ;;  %v6071_v18 = vshrl.u32 %v5842_v36, 16  ;;  %v7554_v40 = vrot.slane %v7427_v53, 5  ;;  %v6527_v8 = vrot.slane %v6525_v49, 4  ;;  %v8771_v15 = vld [vmem:[#allocation5 + $0x24] sm:$0xff] }
 0x2ef   : > { %v5841_v42 = vld [vmem:[#allocation4 + $0x60] sm:$0xf]  ;;  %v7075_v56 = vsel %vm11585_vm15, %v7070_v24, %v7074_v3  ;;  %v7059_v16 = vor.u32 %v7058_v22, %v7055_v38  ;;  %v6528_v45 = vrot.slane %v6401_v43, 5  ;;  %v10439_v61 = vrot.slane %v14908_v52, 9  ;;  %6688 = vst.msk [vmem:[#allocation5 + $0x3c] sm:$0xf] %vm6682_vm4, %v6597_v60  ;;  %v6595_v23 = vpop.permute.xlu0 %6594 }
 0x2f0   : > { %v7425_v10 = vld [vmem:[#allocation4 + $0x60] sm:$0xe]  ;;  %7381 = vst.msk [vmem:[#allocation5 + $0x70] sm:$0xf] %vm17290_vm0, %v7075_v56  ;;  %v7555_v11 = vsel %vm11511_vm6, %v7553_v30, %v7554_v40  ;;  %v14941_v51 = vrot.slane %v6067_v26, 5  ;;  %v6073_v21 = vrot.slane %v6071_v18, 4  ;;  %v7816_v4 = vpop.permute.xlu1 %7815  ;;  %v4767_v40 = vpop.f32.mrf.mxu1 }
 0x2f1   : > { %v8769_v28 = vld [vmem:[#allocation5 + $0x18] sm:$0xff]  ;;  %v7954_v20 = vld [vmem:[#allocation4 + $0x6c] sm:$0xf]  ;;  %7642 = vrot.lane.b32.xlu1 %v7555_v11, %s11317_s20  ;;  %7712 = vst.msk [vmem:[#allocation5 + $0x34] sm:$0xf] %vm6345_vm1, %v7621_v12  ;;  %v6058_v57 = vshrl.u32 %v5841_v42, 16  ;;  %6277 = vrot.lane.b32.xlu0 %v6046_v29, %s11317_s20  ;;  %v6529_v7 = vsel %vm11511_vm6, %v6527_v8, %v6528_v45  ;;  %v14977_v60 = vadd.f32 %v14828_v25, %v4767_v40 }
 0x2f2   : > { %v11006_v31 = vld [vmem:[#allocation5 + $0x1c] ss:$12 sps:$4 sm:$0xff]   ;;  %v10484_v17 = vcombine.low %v8769_v28, %v8771_v15  ;;  %v8514_v32 = vld [vmem:[#allocation4 + $0x6c] sm:$0xe]  ;;  %v7060_v55 = vrot.slane %v7059_v16, 4  ;;  %v4832_v41 = vmul.f32 0.5, %v14831_v14  ;;  %v6074_v48 = vor.u32 %v6073_v21, %v14941_v51  ;;  %v4769_v28 = vpop.f32.mrf.mxu1 }
 0x2f3   : > { %9309 = vmatprep.mubr.bf16.mxu0 %v11006_v31  ;;  %v10455_v33 = vrot.slane %v7425_v10, 9  ;;  %v7955_v37 = vld [vmem:[#allocation4 + $0x70] sm:$0xf]  ;;  %v6061_v19 = vshll.u32 %v5841_v42, 16  ;;  %v8150_v36 = vshrl.u32 %v7954_v20, 16  ;;  %v8153_v6 = vshll.u32 %v7954_v20, 16  ;;  %v7814_v45 = vpop.permute.xlu0 %7813 }
 0x2f4   : > { %9310 = vmatmul.mubr.bf16.gmra.mxu0 %v10484_v17  ;;  %v8159_v46 = vshll.u32 %v7955_v37, 16  ;;  %v8163_v34 = vshrl.u32 %v7955_v37, 16  ;;  %v8515_v5 = vld [vmem:[#allocation4 + $0x70] sm:$0xf]  ;;  %7906 = vst.msk [vmem:[#allocation5 + $0x40] sm:$0xf] %vm6682_vm4, %v7816_v4  ;;  %v7065_v53 = vsel %vm11585_vm15, %v7060_v55, %v14868_v44  ;;  %v6790_v18 = vpop.permute.xlu1 %6789  ;;  %v6526_v10 = vsel %vm11511_vm6, %v10439_v61, %v6525_v49 }
 0x2f5   : > { %v7552_v14 = vsel %vm11511_vm6, %v10455_v33, %v7551_v54  ;;  %v8516_v38 = vld [vmem:[#allocation4 + $0x74] sm:$0x1]  ;;  %v10471_v58 = vrot.slane %v8514_v32, 9  ;;  %v8640_v62 = vrot.slane %v8515_v5, 5  ;;  %v5843_v35 = vld [vmem:[#allocation4 + $0x68] sm:$0x1]  ;;  %6616 = vrot.lane.b32.xlu1 %v6529_v7, %s11322_s14  ;;  %v4770_v7 = vpop.f32.mrf.mxu1 }
 0x2f6   : > { %6687 = vst.msk [vmem:[#allocation5 + $0x30] sm:$0xf] %vm6682_vm4, %v6595_v23  ;;  %v14959_v39 = vrot.slane %v8159_v46, 5  ;;  %v8165_v3 = vrot.slane %v8163_v34, 4  ;;  %v14962_v47 = vrot.slane %v6058_v57, 4  ;;  %v11085_v30 = vpop.eup %11084  ;;  %7640 = vrot.lane.b32.xlu0 %v7552_v14, %s11317_s20  ;;  %v8643_v26 = vrot.slane %v8516_v38, 5 }
 0x2f7   : > { %7380 = vst.msk [vmem:[#allocation5 + $0x64] sm:$0xf] %vm17313_vm14, %v7065_v53  ;;  %v14965_v54 = vld [vmem:[#allocation4 + $0x4c] sm:$0xf]  ;;  %v8641_v44 = vsel %vm11511_vm6, %v10471_v58, %v8640_v62  ;;  %v8642_v43 = vrot.slane %v8640_v62, 4  ;;  %v14970_v24 = vrot.slane %v6061_v19, 5  ;;  %v6788_v46 = vpop.permute.xlu0 %6787  ;;  %v4772_v38 = vpop.f32.mrf.mxu1  ;;  %vm17318_vm14 = vmmov %vm17290_vm0 }
 0x2f8   : > { %v14972_v22 = vld [vmem:[#allocation4 + $0x64] sm:$0xf]  ;;  %v5056_v2 = vadd.f32 1.0, %v11085_v30  ;;  %v7956_v8 = vld [vmem:[#allocation4 + $0x74] sm:$0x1]  ;;  %v6077_v42 = vshll.u32 %v5843_v35, 16  ;;  %v8166_v11 = vor.u32 %v8165_v3, %v14959_v39 }
 0x2f9   : > { %8747 = vst.msk [vmem:[#allocation5 + $0xb0] sm:$0xf] %vm17314_vm5, %v8641_v44  ;;  %v8152_v56 = vrot.slane %v8150_v36, 4  ;;  %v8155_v16 = vrot.slane %v8153_v6, 5  ;;  %v7756_v15 = vld [vmem:[#allocation4 + $0x70] sm:$0xf]  ;;  %v8644_v12 = vsel %vm11511_vm6, %v8642_v43, %v8643_v26  ;;  %v6064_v21 = vor.u32 %v14970_v24, %v14962_v47  ;;  %vm17319_vm5 = vmmov %vm17290_vm0 }
 0x2fa   : > { %6881 = vst.msk [vmem:[#allocation5 + $0x3c] sm:$0xf] %vm6875_vm10, %v6790_v18  ;;  %v5088_v29 = vmul.f32 %v5056_v2, %v4832_v41  ;;  %7835 = vrot.lane.b32.xlu1 %v7756_v15, %s11322_s14  ;;  %v14991_v31 = vrot.slane %v6074_v48, 4  ;;  %v14993_v50 = vld [vmem:[#allocation4 + $0x68] sm:$0x1]  ;;  %v6532_v52 = vrot.slane %v14972_v22, 5  ;;  %v11087_v61 = vpop.eup %11086  ;;  %6614 = vrot.lane.b32.xlu0 %v6526_v10, %s11322_s14  ;;  %v8376_v41 = vpop.permute.xlu1 %8375 }
 0x2fb   : > { %7905 = vst.msk [vmem:[#allocation5 + $0x34] sm:$0xf] %vm6682_vm4, %v7814_v45  ;;  %v7086_v49 = vshll.u32 %v14965_v54, 16  ;;  %v4833_v20 = vmul.f32 0.5, %v14860_v63  ;;  %v4866_v17 = vmul.f32 0.044715, %v14977_v60  ;;  %v8156_v19 = vor.u32 %v8155_v16, %v8152_v56  ;;  %v8374_v15 = vpop.permute.xlu0 %8373 }
 0x2fc   : > { %8748 = vst.msk [vmem:[#allocation5 + $0xbc] sm:$0xf] %vm17315_vm3, %v8644_v12  ;;  %v8169_v32 = vshll.u32 %v7956_v8, 16  ;;  %v10621_v57 = vpack.c.bf16 %v5088_v29, %v5088_v29  ;;  %v5057_v55 = vadd.f32 1.0, %v11087_v61  ;;  %v6730_v33 = vld [vmem:[#allocation4 + $0x64] sm:$0xf]  ;;  %v15007_v63 = vadd.f32 %v14828_v25, %v4770_v7  ;;  %vm17320_vm3 = vmmov %vm17290_vm0 }
 0x2fd   : > { %v15002_v37 = vrot.slane %v6077_v42, 5  ;;  %v4898_v4 = vmul.f32 %v4866_v17, %v14977_v60  ;;  %8466 = vst.msk [vmem:[#allocation5 + $0x40] sm:$0xf] %vm6875_vm10, %v8376_v41  ;;  %v7755_v34 = vld [vmem:[#allocation4 + $0x6c] sm:$0xf]  ;;  %v8167_v5 = vrot.slane %v8166_v11, 4 }
 0x2fe   : > { %v6535_v36 = vrot.slane %v14993_v50, 5  ;;  %v5772_v6 = vld [vmem:[#allocation4 + $0x70] sm:$0xf]  ;;  %v5472_v23 = vshrl.u32 %v10621_v57, 16  ;;  %v5089_v14 = vmul.f32 %v5057_v55, %v4833_v20  ;;  %6809 = vrot.lane.b32.xlu1 %v6730_v33, %s11320_s28  ;;  %6880 = vst.msk [vmem:[#allocation5 + $0x30] sm:$0xf] %vm6875_vm10, %v6788_v46  ;;  %7833 = vrot.lane.b32.xlu0 %v7755_v34, %s11322_s14  ;;  %v6264_v18 = vpop.permute.xlu1 %6263 }
 0x2ff   : > { %v6080_v58 = vsel %vm11585_vm15, %v14991_v31, %v15002_v37  ;;  %v15016_v62 = vld [vmem:[#allocation4 + $0x70] sm:$0xf]  ;;  %v15020_v35 = vrot.slane %v6532_v52, 4  ;;  %v15022_v53 = vld [vmem:[#allocation4 + $0x6c] sm:$0xe]  ;;  %v4930_v47 = vmul.f32 %v4898_v4, %v14977_v60  ;;  %v8171_v44 = vrot.slane %v8169_v32, 5  ;;  %v6262_v4 = vpop.permute.xlu0 %6261 }
 0x300   : > { %5804 = vst.msk [vmem:[#allocation5 + $0xe4] sm:$0xf] %vm17316_vm12, %v5772_v6  ;;  %v5771_v3 = vld [vmem:[#allocation4 + $0x6c] sm:$0xf]  ;;  %v5704_v48 = vld [vmem:[#allocation4 + $0x78] sm:$0xf]  ;;  %v10622_v2 = vpack.c.bf16 %v5089_v14, %v5089_v14  ;;  %vm17321_vm12 = vmmov %vm17290_vm0 }
 0x301   : > { %v4867_v30 = vmul.f32 0.044715, %v15007_v63  ;;  %v15028_v43 = vrot.slane %v6064_v21, 4  ;;  %5803 = vst.msk [vmem:[#allocation5 + $0xd8] sm:$0xf] %vm17317_vm7, %v5771_v3  ;;  %v5474_v26 = vrot.slane %v5472_v23, 7  ;;  %v4962_v42 = vadd.f32 %v4930_v47, %v14977_v60  ;;  %vm17322_vm7 = vmmov %vm17290_vm0 }
 0x302   : > { %v5475_v24 = vshll.u32 %v10621_v57, 16  ;;  %v8157_v40 = vrot.slane %v8156_v19, 4  ;;  %v15031_v8 = vld [vmem:[#allocation4 + $0x6c] sm:$0xf]  ;;  %6353 = vst.msk [vmem:[#allocation5 + $0x54] sm:$0xf] %vm6345_vm1, %v6264_v18  ;;  %v8172_v16 = vsel %vm11585_vm15, %v8167_v5, %v8171_v44  ;;  %v7627_v41 = vpop.permute.xlu1 %7626 }
 0x303   : > { %v4899_v56 = vmul.f32 %v4867_v30, %v15007_v63  ;;  %v11008_v45 = vld [vmem:[#allocation5 + $0xb0] ss:$12 sps:$4 sm:$0xff]   ;;  %v7558_v10 = vrot.slane %v15016_v62, 5  ;;  %v5480_v12 = vshrl.u32 %v10622_v2, 16  ;;  %8395 = vrot.lane.b32.xlu1 %v8172_v16, %s11320_s28  ;;  %8465 = vst.msk [vmem:[#allocation5 + $0x34] sm:$0xf] %vm6875_vm10, %v8374_v15 }
 0x304   : > { %v5477_v11 = vor.u32 %v5475_v24, %v5474_v26  ;;  %v6729_v29 = vld [vmem:[#allocation4 + $0x60] sm:$0xf]  ;;  %v15041_v28 = vrot.slane %v7086_v49, 5  ;;  %v7090_v31 = vshrl.u32 %v14965_v54, 16  ;;  %v4994_v61 = vmul.f32 0.7978846, %v4962_v42  ;;  %10839 = vmatmul.mubr.msk.bf16.gmra.mxu1 %vm9220_vm9, %v11008_v45  ;;  %v7625_v42 = vpop.permute.xlu0 %7624 }
 0x305   : > { %v4931_v20 = vmul.f32 %v4899_v56, %v15007_v63  ;;  %6807 = vrot.lane.b32.xlu0 %v6729_v29, %s11320_s28  ;;  %v10456_v17 = vrot.slane %v15022_v53, 9  ;;  %v6082_v32 = vshrl.u32 %v15031_v8, 16  ;;  %v6925_v21 = vld [vmem:[#allocation4 + $0x50] sm:$0x1]  ;;  %v5482_v55 = vrot.slane %v5480_v12, 7  ;;  %v8775_v16 = vld [vmem:[#allocation5 + $0x3c] sm:$0xff] }
 0x306   : > { %v5705_v57 = vsel %vm13344_vm8, %v5477_v11, %v5704_v48  ;;  %v5483_v49 = vshll.u32 %v10622_v2, 16  ;;  %v7430_v7 = vld [vmem:[#allocation4 + $0x74] sm:$0x1]  ;;  %v6070_v54 = vsel %vm11585_vm15, %v15028_v43, %v14941_v51  ;;  %v15055_v33 = vld [vmem:[#allocation4 + $0x70] sm:$0xf]  ;;  %11088 = vtanh.f32 %v4994_v61 }
 0x307   : > { %5706 = vst [vmem:[#allocation4 + $0x78] sm:$0xf] %v5705_v57  ;;  %v5708_v37 = vld [vmem:[#allocation4 + $0x80] sm:$0x1]  ;;  %v4963_v19 = vadd.f32 %v4931_v20, %v15007_v63  ;;  %7715 = vst.msk [vmem:[#allocation5 + $0x58] sm:$0xf] %vm6345_vm1, %v7627_v41  ;;  %v8162_v46 = vsel %vm11585_vm15, %v8157_v40, %v14959_v39  ;;  %6283 = vrot.lane.b32.xlu1 %v6080_v58, %s11317_s20  ;;  %v6601_v58 = vpop.permute.xlu1 %6600  ;;  %v6536_v41 = vsel %vm11511_vm6, %v15020_v35, %v6535_v36 }
 0x308   : > { %v7560_v34 = vrot.slane %v7558_v10, 4  ;;  %v5207_v5 = vld [vmem:[#allocation4 + $0xa4] sm:$0x1]  ;;  %v5478_v6 = vrot.slane %v5474_v26, 4  ;;  %v5485_v51 = vor.u32 %v5483_v49, %v5482_v55  ;;  %v5487_v23 = vrot.slane %v5482_v55, 4 }
 0x309   : > { %6352 = vst.msk [vmem:[#allocation5 + $0x48] sm:$0xf] %vm6345_vm1, %v6262_v4  ;;  %v7092_v14 = vrot.slane %v7090_v31, 4  ;;  %v6923_v38 = vld [vmem:[#allocation4 + $0x48] sm:$0xf]  ;;  %8393 = vrot.lane.b32.xlu0 %v8162_v46, %s11320_s28  ;;  %v7561_v48 = vrot.slane %v7430_v7, 5  ;;  %v7559_v50 = vsel %vm11511_vm6, %v10456_v17, %v7558_v10 }
 0x30a   : > { %v4995_v3 = vmul.f32 0.7978846, %v4963_v19  ;;  %v15067_v47 = vld [vmem:[#allocation4 + $0x60] sm:$0xe]  ;;  %v6091_v39 = vshll.u32 %v15055_v33, 16  ;;  %v7096_v30 = vshll.u32 %v6925_v21, 16  ;;  %v5486_v44 = vsel %vm11542_vm13, %v5478_v6, %v5485_v51  ;;  %v6599_v19 = vpop.permute.xlu0 %6598 }
 0x30b   : > { %v5709_v43 = vsel %vm12717_vm2, %v5487_v23, %v5708_v37  ;;  %v5846_v26 = vld [vmem:[#allocation4 + $0x74] sm:$0x1]  ;;  %v7093_v24 = vor.u32 %v7092_v14, %v15041_v28  ;;  %v5208_v2 = vsel %vm12738_vm11, 0, %v5207_v5  ;;  %v5155_v18 = vld [vmem:[#allocation4 + $0xa8] sm:$0x1]  ;;  %v7562_v40 = vsel %vm11511_vm6, %v7560_v34, %v7561_v48  ;;  %v7820_v49 = vpop.permute.xlu1 %7819 }
 0x30c   : > { %5707 = vst.msk [vmem:[#allocation4 + $0x7c] sm:$0xf] %vm17290_vm0, %v5486_v44  ;;  %5710 = vst [vmem:[#allocation4 + $0x80] sm:$0x1] %v5709_v43  ;;  %11090 = vtanh.f32 %v4995_v3  ;;  %v8773_v56 = vld [vmem:[#allocation5 + $0x30] sm:$0xff]  ;;  %v6095_v45 = vshrl.u32 %v15055_v33, 16  ;;  %7646 = vrot.lane.b32.xlu1 %v7562_v40, %s11317_s20 }
 0x30d   : > { %6690 = vst.msk [vmem:[#allocation5 + $0x54] sm:$0xf] %vm6682_vm4, %v6601_v58  ;;  %v11009_v15 = vld [vmem:[#allocation5 + $0x34] ss:$12 sps:$4 sm:$0xff]   ;;  %5209 = vst [vmem:[#allocation4 + $0xa4] sm:$0x1] %v5208_v2  ;;  %v10487_v12 = vcombine.low %v8773_v56, %v8775_v16  ;;  %6281 = vrot.lane.b32.xlu0 %v6070_v54, %s11317_s20  ;;  %v4775_v56 = vpop.f32.mrf.mxu1 }
 0x30e   : > { %v7077_v11 = vshrl.u32 %v6923_v38, 16  ;;  %7714 = vst.msk [vmem:[#allocation5 + $0x4c] sm:$0xf] %vm6345_vm1, %v7625_v42  ;;  %v7094_v29 = vrot.slane %v7093_v24, 4  ;;  %v7098_v31 = vrot.slane %v7096_v30, 5  ;;  %v7080_v61 = vshll.u32 %v6923_v38, 16  ;;  %9317 = vmatprep.mubr.bf16.mxu0 %v11009_v15 }
 0x30f   : > { %v6101_v20 = vshll.u32 %v5846_v26, 16  ;;  %v6085_v21 = vshll.u32 %v15031_v8, 16  ;;  %v5156_v55 = vsel %vm12717_vm2, 0, %v5155_v18  ;;  %9318 = vmatmul.mubr.bf16.gmra.mxu0 %v10487_v12  ;;  %v10440_v7 = vrot.slane %v15067_v47, 9  ;;  %v7957_v33 = vld [vmem:[#allocation4 + $0x78] sm:$0xf]  ;;  %v6794_v51 = vpop.permute.xlu1 %6793  ;;  %v7818_v8 = vpop.permute.xlu0 %7817 }
 0x310   : > { %v7079_v57 = vrot.slane %v7077_v11, 4  ;;  %v15094_v54 = vld [vmem:[#allocation4 + $0x70] sm:$0xf]  ;;  %v7099_v37 = vsel %vm11585_vm15, %v7094_v29, %v7098_v31  ;;  %5157 = vst [vmem:[#allocation4 + $0xa8] sm:$0x1] %v5156_v55  ;;  %v15105_v36 = vrot.slane %v6091_v39, 5  ;;  %6620 = vrot.lane.b32.xlu1 %v6536_v41, %s11322_s14  ;;  %v15143_v31 = vadd.f32 %v14828_v25, %v4775_v56  ;;  %v4777_v41 = vpop.f32.mrf.mxu1 }
 0x311   : > { %7908 = vst.msk [vmem:[#allocation5 + $0x58] sm:$0xf] %vm6682_vm4, %v7820_v49  ;;  %v6097_v35 = vrot.slane %v6095_v45, 4  ;;  %v8517_v4 = vld [vmem:[#allocation4 + $0x78] sm:$0xe]  ;;  %v7082_v46 = vrot.slane %v7080_v61, 5  ;;  %7644 = vrot.lane.b32.xlu0 %v7559_v50, %s11317_s20 }
 0x312   : > { %7383 = vst.msk [vmem:[#allocation5 + $0x88] sm:$0xf] %vm17318_vm14, %v7099_v37  ;;  %v4834_v34 = vmul.f32 0.5, %v14977_v60  ;;  %v8174_v5 = vshrl.u32 %v7957_v33, 16  ;;  %v8177_v62 = vshll.u32 %v7957_v33, 16  ;;  %v15113_v53 = vrot.slane %v6082_v32, 4  ;;  %vm17323_vm14 = vmmov %vm17290_vm0 }
 0x313   : > { %6689 = vst.msk [vmem:[#allocation5 + $0x48] sm:$0xf] %vm6682_vm4, %v6599_v19  ;;  %v15116_v10 = vmul.f32 0.5, %v15007_v63  ;;  %v15119_v17 = vrot.slane %v6101_v20, 5  ;;  %v15121_v6 = vrot.slane %v6085_v21, 5  ;;  %v7083_v60 = vor.u32 %v7082_v46, %v7079_v57  ;;  %v11089_v44 = vpop.eup %11088  ;;  %v8380_v42 = vpop.permute.xlu1 %8379 }
 0x314   : > { %v7758_v23 = vld [vmem:[#allocation4 + $0x7c] sm:$0xf]  ;;  %v10472_v38 = vrot.slane %v8517_v4, 9  ;;  %v6539_v3 = vrot.slane %v15094_v54, 5  ;;  %6883 = vst.msk [vmem:[#allocation5 + $0x54] sm:$0xf] %vm6875_vm10, %v6794_v51  ;;  %v6533_v63 = vsel %vm11511_vm6, %v10440_v7, %v6532_v52  ;;  %v6098_v39 = vor.u32 %v6097_v35, %v15105_v36  ;;  %v6792_v20 = vpop.permute.xlu0 %6791 }
 0x315   : > { %v7958_v14 = vld [vmem:[#allocation4 + $0x7c] sm:$0xf]  ;;  %v7959_v32 = vld [vmem:[#allocation4 + $0x80] sm:$0x1]  ;;  %7839 = vrot.lane.b32.xlu1 %v7758_v23, %s11322_s14  ;;  %7907 = vst.msk [vmem:[#allocation5 + $0x4c] sm:$0xf] %vm6682_vm4, %v7818_v8  ;;  %6618 = vrot.lane.b32.xlu0 %v6533_v63, %s11322_s14  ;;  %v6088_v40 = vor.u32 %v15121_v6, %v15113_v53  ;;  %v4778_v6 = vpop.f32.mrf.mxu1 }
 0x316   : > { %v8183_v48 = vshll.u32 %v7958_v14, 16  ;;  %v8187_v47 = vshrl.u32 %v7958_v14, 16  ;;  %v8518_v30 = vld [vmem:[#allocation4 + $0x7c] sm:$0xf]  ;;  %v8176_v43 = vrot.slane %v8174_v5, 4  ;;  %v8179_v58 = vrot.slane %v8177_v62, 5 }
 0x317   : > { %v8519_v26 = vld [vmem:[#allocation4 + $0x80] sm:$0x1]  ;;  %v8647_v24 = vrot.slane %v8518_v30, 5  ;;  %v7084_v2 = vrot.slane %v7083_v60, 4  ;;  %v5058_v22 = vadd.f32 1.0, %v11089_v44  ;;  %v8193_v16 = vshll.u32 %v7959_v32, 16  ;;  %v6268_v53 = vpop.permute.xlu1 %6267  ;;  %v4780_v30 = vpop.f32.mrf.mxu1 }
 0x318   : > { %v15133_v52 = vrot.slane %v8183_v48, 5  ;;  %v8189_v18 = vrot.slane %v8187_v47, 4  ;;  %v8650_v11 = vrot.slane %v8519_v26, 5  ;;  %v15139_v12 = vld [vmem:[#allocation4 + $0x74] sm:$0x1]  ;;  %v15146_v57 = vrot.slane %v6098_v39, 4  ;;  %v8378_v63 = vpop.permute.xlu0 %8377 }
 0x319   : > { %v8648_v15 = vsel %vm11511_vm6, %v10472_v38, %v8647_v24  ;;  %v8649_v45 = vrot.slane %v8647_v24, 4  ;;  %v5090_v29 = vmul.f32 %v5058_v22, %v4834_v34  ;;  %8468 = vst.msk [vmem:[#allocation5 + $0x58] sm:$0xf] %vm6875_vm10, %v8380_v42  ;;  %v6732_v61 = vld [vmem:[#allocation4 + $0x70] sm:$0xf]  ;;  %v11091_v49 = vpop.eup %11090  ;;  %v8180_v33 = vor.u32 %v8179_v58, %v8176_v43 }
 0x31a   : > { %v8190_v21 = vor.u32 %v8189_v18, %v15133_v52  ;;  %8749 = vst.msk [vmem:[#allocation5 + $0xc8] sm:$0xf] %vm17319_vm5, %v8648_v15  ;;  %v15149_v55 = vld [vmem:[#allocation4 + $0x6c] sm:$0xe]  ;;  %6813 = vrot.lane.b32.xlu1 %v6732_v61, %s11320_s28  ;;  %v7757_v7 = vld [vmem:[#allocation4 + $0x78] sm:$0xf]  ;;  %v7089_v50 = vsel %vm11585_vm15, %v7084_v2, %v15041_v28  ;;  %v15179_v47 = vadd.f32 %v14828_v25, %v4778_v6  ;;  %v15192_v25 = vpop.f32.mrf.mxu0  ;;  %vm17324_vm5 = vmmov %vm17290_vm0 }
 0x31b   : > { %6882 = vst.msk [vmem:[#allocation5 + $0x48] sm:$0xf] %vm6875_vm10, %v6792_v20  ;;  %v8651_v37 = vsel %vm11511_vm6, %v8649_v45, %v8650_v11  ;;  %v15157_v19 = vrot.slane %v6539_v3, 4  ;;  %v15162_v35 = vld [vmem:[#allocation4 + $0x58] sm:$0xf]  ;;  %v10623_v4 = vpack.c.bf16 %v5090_v29, %v5090_v29  ;;  %v5059_v46 = vadd.f32 1.0, %v11091_v49  ;;  %7837 = vrot.lane.b32.xlu0 %v7757_v7, %s11322_s14  ;;  %v7631_v56 = vpop.permute.xlu1 %7630 }
 0x31c   : > { %v4868_v34 = vmul.f32 0.044715, %v15143_v31  ;;  %8750 = vst.msk [vmem:[#allocation5 + $0xd4] sm:$0xf] %vm17320_vm3, %v8651_v37  ;;  %v15167_v5 = vld [vmem:[#allocation4 + $0x7c] sm:$0xf]  ;;  %v6266_v29 = vpop.permute.xlu0 %6265  ;;  %vm17325_vm3 = vmmov %vm17290_vm0 }
 0x31d   : > { %v6542_v62 = vrot.slane %v15139_v12, 5  ;;  %7382 = vst.msk [vmem:[#allocation5 + $0x7c] sm:$0xf] %vm17321_vm12, %v7089_v50  ;;  %v8191_v60 = vrot.slane %v8190_v21, 4  ;;  %v8195_v28 = vrot.slane %v8193_v16, 5  ;;  %v15171_v51 = vrot.slane %v6088_v40, 4  ;;  %vm17326_vm12 = vmmov %vm17290_vm0 }
 0x31e   : > { %v10441_v23 = vrot.slane %v15149_v55, 9  ;;  %v5489_v14 = vshrl.u32 %v10623_v4, 16  ;;  %v5091_v38 = vmul.f32 %v5059_v46, %v15116_v10  ;;  %v4900_v8 = vmul.f32 %v4868_v34, %v15143_v31  ;;  %6355 = vst.msk [vmem:[#allocation5 + $0x6c] sm:$0xf] %vm6345_vm1, %v6268_v53  ;;  %v5711_v48 = vld [vmem:[#allocation4 + $0x84] sm:$0xf]  ;;  %v15217_v53 = vpop.f32.mrf.mxu0 }
 0x31f   : > { %v7110_v32 = vshll.u32 %v15162_v35, 16  ;;  %8467 = vst.msk [vmem:[#allocation5 + $0x4c] sm:$0xf] %vm6875_vm10, %v8378_v63  ;;  %v8196_v39 = vsel %vm11585_vm15, %v8191_v60, %v8195_v28  ;;  %v6731_v44 = vld [vmem:[#allocation4 + $0x6c] sm:$0xf]  ;;  %v8181_v43 = vrot.slane %v8180_v33, 4  ;;  %v6104_v16 = vsel %vm11585_vm15, %v15146_v57, %v15119_v17  ;;  %v6605_v60 = vpop.permute.xlu1 %6604 }
 0x320   : > { %v7565_v10 = vrot.slane %v15167_v5, 5  ;;  %v15185_v58 = vld [vmem:[#allocation4 + $0x5c] sm:$0x1]  ;;  %v15187_v26 = vrot.slane %v5489_v14, 7  ;;  %v5492_v24 = vshll.u32 %v10623_v4, 16  ;;  %v10624_v2 = vpack.c.bf16 %v5091_v38, %v5091_v38  ;;  %8399 = vrot.lane.b32.xlu1 %v8196_v39, %s11320_s28  ;;  %6811 = vrot.lane.b32.xlu0 %v6731_v44, %s11320_s28  ;;  %v7629_v39 = vpop.permute.xlu0 %7628 }
 0x321   : > { %v4932_v22 = vmul.f32 %v4900_v8, %v15143_v31  ;;  %v5774_v18 = vld [vmem:[#allocation4 + $0x7c] sm:$0xf]  ;;  %v5773_v40 = vld [vmem:[#allocation4 + $0x78] sm:$0xf]  ;;  %v4869_v42 = vmul.f32 0.044715, %v15179_v47  ;;  %v8186_v57 = vsel %vm11585_vm15, %v8181_v43, %v15133_v52  ;;  %v6094_v30 = vsel %vm11585_vm15, %v15171_v51, %v15105_v36 }
 0x322   : > { %v7433_v15 = vld [vmem:[#allocation4 + $0x80] sm:$0x1]  ;;  %5806 = vst.msk [vmem:[#allocation5 + $0xfc] sm:$0xf] %vm17322_vm7, %v5774_v18  ;;  %v5494_v45 = vor.u32 %v5492_v24, %v15187_v26  ;;  %v5497_v11 = vshrl.u32 %v10624_v2, 16  ;;  %v7114_v20 = vshrl.u32 %v15162_v35, 16  ;;  %v6540_v12 = vsel %vm11511_vm6, %v10441_v23, %v6539_v3  ;;  %vm17328_vm7 = vmmov %vm17290_vm0 }
 0x323   : > { %5805 = vst.msk [vmem:[#allocation5 + $0xf0] sm:$0xf] %vm17290_vm0, %v5773_v40  ;;  %v5848_v61 = vld [vmem:[#allocation4 + $0x7c] sm:$0xf]  ;;  %v7120_v21 = vshll.u32 %v15185_v58, 16  ;;  %v4964_v41 = vadd.f32 %v4932_v22, %v15143_v31  ;;  %v4901_v17 = vmul.f32 %v4869_v42, %v15179_v47  ;;  %v7567_v33 = vrot.slane %v7565_v10, 4 }
 0x324   : > { %7717 = vst.msk [vmem:[#allocation5 + $0x70] sm:$0xf] %vm6345_vm1, %v7631_v56  ;;  %v5715_v49 = vld [vmem:[#allocation4 + $0x8c] sm:$0x1]  ;;  %6354 = vst.msk [vmem:[#allocation5 + $0x60] sm:$0xf] %vm6345_vm1, %v6266_v29  ;;  %v5712_v37 = vsel %vm13344_vm8, %v5494_v45, %v5711_v48  ;;  %6287 = vrot.lane.b32.xlu1 %v6104_v16, %s11317_s20  ;;  %8397 = vrot.lane.b32.xlu0 %v8186_v57, %s11320_s28  ;;  %v15241_v16 = vpop.f32.mrf.mxu0  ;;  %v7824_v45 = vpop.permute.xlu1 %7823  ;;  %v6543_v57 = vsel %vm11511_vm6, %v15157_v19, %v6542_v62 }
 0x325   : > { %v11011_v7 = vld [vmem:[#allocation5 + $0xc8] ss:$12 sps:$4 sm:$0xff]   ;;  %v5499_v50 = vrot.slane %v5497_v11, 7  ;;  %v5500_v4 = vshll.u32 %v10624_v2, 16  ;;  %v7568_v46 = vrot.slane %v7433_v15, 5  ;;  %v4933_v52 = vmul.f32 %v4901_v17, %v15179_v47 }
 0x326   : > { %v7431_v34 = vld [vmem:[#allocation4 + $0x78] sm:$0xe]  ;;  %5713 = vst [vmem:[#allocation4 + $0x84] sm:$0xf] %v5712_v37  ;;  %v4996_v6 = vmul.f32 0.7978846, %v4964_v41  ;;  %10842 = vmatprep.mubr.msk.bf16.mxu1 %vm9220_vm9, %v11011_v7 }
 0x327   : > { %v6115_v28 = vshll.u32 %v5848_v61, 16  ;;  %v6119_v14 = vshrl.u32 %v5848_v61, 16  ;;  %v5847_v38 = vld [vmem:[#allocation4 + $0x78] sm:$0xf]  ;;  %v5495_v8 = vrot.slane %v15187_v26, 4  ;;  %v5502_v63 = vor.u32 %v5500_v4, %v5499_v50  ;;  %v8777_v44 = vld [vmem:[#allocation5 + $0x48] sm:$0xff] }
 0x328   : > { %v5504_v48 = vrot.slane %v5499_v50, 4  ;;  %6692 = vst.msk [vmem:[#allocation5 + $0x6c] sm:$0xf] %vm6682_vm4, %v6605_v60  ;;  %v8779_v43 = vld [vmem:[#allocation5 + $0x54] sm:$0xff]  ;;  %11092 = vtanh.f32 %v4996_v6  ;;  %v4965_v2 = vadd.f32 %v4933_v52, %v15179_v47  ;;  %v7569_v26 = vsel %vm11511_vm6, %v7567_v33, %v7568_v46  ;;  %v5849_v18 = vld [vmem:[#allocation4 + $0x80] sm:$0x1]  ;;  %6285 = vrot.lane.b32.xlu0 %v6094_v30, %s11317_s20 }
 0x329   : > { %v11012_v24 = vld [vmem:[#allocation5 + $0x4c] ss:$12 sps:$4 sm:$0xff]   ;;  %7716 = vst.msk [vmem:[#allocation5 + $0x64] sm:$0xf] %vm6345_vm1, %v7629_v39  ;;  %v10490_v22 = vcombine.low %v8777_v44, %v8779_v43  ;;  %v5503_v42 = vsel %vm11542_vm13, %v5495_v8, %v5502_v63  ;;  %7650 = vrot.lane.b32.xlu1 %v7569_v26, %s11317_s20  ;;  %v10457_v51 = vrot.slane %v7431_v34, 9  ;;  %v15239_v56 = vrot.slane %v7110_v32, 5 }
 0x32a   : > { %v5210_v40 = vld [vmem:[#allocation4 + $0xb0] sm:$0x1]  ;;  %v5716_v36 = vsel %vm12717_vm2, %v5504_v48, %v5715_v49  ;;  %5714 = vst.msk [vmem:[#allocation4 + $0x88] sm:$0xf] %vm17323_vm14, %v5503_v42  ;;  %v4997_v15 = vmul.f32 0.7978846, %v4965_v2  ;;  %9325 = vmatprep.mubr.bf16.mxu0 %v11012_v24  ;;  %v6603_v49 = vpop.permute.xlu0 %6602  ;;  %vm17330_vm14 = vmmov %vm17290_vm0 }
 0x32b   : > { %5717 = vst [vmem:[#allocation4 + $0x8c] sm:$0x1] %v5716_v36  ;;  %v15244_v11 = vrot.slane %v6115_v28, 5  ;;  %v6121_v29 = vrot.slane %v6119_v14, 4  ;;  %v6106_v61 = vshrl.u32 %v5847_v38, 16  ;;  %9326 = vmatmul.mubr.bf16.gmra.mxu0 %v10490_v22  ;;  %v6125_v41 = vshll.u32 %v5849_v18, 16 }
 0x32c   : > { %7910 = vst.msk [vmem:[#allocation5 + $0x70] sm:$0xf] %vm6682_vm4, %v7824_v45  ;;  %v6109_v35 = vshll.u32 %v5847_v38, 16  ;;  %v7116_v32 = vrot.slane %v7114_v20, 4  ;;  %v5211_v17 = vsel %vm12738_vm11, 0, %v5210_v40  ;;  %11094 = vtanh.f32 %v4997_v15 }
 0x32d   : > { %6691 = vst.msk [vmem:[#allocation5 + $0x60] sm:$0xf] %vm6682_vm4, %v6603_v49  ;;  %v7566_v7 = vsel %vm11511_vm6, %v10457_v51, %v7565_v10  ;;  %5212 = vst [vmem:[#allocation4 + $0xb0] sm:$0x1] %v5211_v17  ;;  %v15260_v20 = vmul.f32 0.5, %v15143_v31  ;;  %v15263_v33 = vmul.f32 0.5, %v15179_v47  ;;  %6624 = vrot.lane.b32.xlu1 %v6543_v57, %s11322_s14  ;;  %v15274_v31 = vpop.f32.mrf.mxu0  ;;  %v6798_v10 = vpop.permute.xlu1 %6797  ;;  %v6122_v50 = vor.u32 %v6121_v29, %v15244_v11 }
 0x32e   : > { %7648 = vrot.lane.b32.xlu0 %v7566_v7, %s11317_s20  ;;  %v7960_v19 = vld [vmem:[#allocation4 + $0x84] sm:$0xf]  ;;  %v7117_v5 = vor.u32 %v7116_v32, %v15239_v56  ;;  %v6926_v62 = vld [vmem:[#allocation4 + $0x54] sm:$0xf]  ;;  %v15277_v4 = vrot.slane %v6106_v61, 4  ;;  %v7822_v54 = vpop.permute.xlu0 %7821  ;;  %v15280_v55 = vrot.slane %v6125_v41, 5 }
 0x32f   : > { %v8198_v47 = vshrl.u32 %v7960_v19, 16  ;;  %v8201_v37 = vshll.u32 %v7960_v19, 16  ;;  %6885 = vst.msk [vmem:[#allocation5 + $0x6c] sm:$0xf] %vm6875_vm10, %v6798_v10  ;;  %v15282_v46 = vrot.slane %v6109_v35, 5  ;;  %v7122_v34 = vrot.slane %v7120_v21, 5  ;;  %v15292_v39 = vpop.f32.mrf.mxu0 }
 0x330   : > { %v15284_v3 = vld [vmem:[#allocation4 + $0x7c] sm:$0xf]  ;;  %v7118_v23 = vrot.slane %v7117_v5, 4  ;;  %7909 = vst.msk [vmem:[#allocation5 + $0x64] sm:$0xf] %vm6682_vm4, %v7822_v54  ;;  %v7101_v28 = vshrl.u32 %v6926_v62, 16  ;;  %v4783_v5 = vpop.f32.mrf.mxu1 }
 0x331   : > { %v8200_v6 = vrot.slane %v8198_v47, 4  ;;  %v8203_v52 = vrot.slane %v8201_v37, 5  ;;  %v8520_v60 = vld [vmem:[#allocation4 + $0x84] sm:$0xe]  ;;  %v7104_v14 = vshll.u32 %v6926_v62, 16  ;;  %v8384_v30 = vpop.permute.xlu1 %8383  ;;  %v15295_v44 = vrot.slane %v6122_v50, 4  ;;  %v15310_v7 = vpop.f32.mrf.mxu0 }
 0x332   : > { %6622 = vrot.lane.b32.xlu0 %v6540_v12, %s11322_s14  ;;  %v7760_v38 = vld [vmem:[#allocation4 + $0x88] sm:$0xf]  ;;  %v7962_v63 = vld [vmem:[#allocation4 + $0x8c] sm:$0x1]  ;;  %v7123_v48 = vsel %vm11585_vm15, %v7118_v23, %v7122_v34  ;;  %v6546_v24 = vrot.slane %v15284_v3, 5  ;;  %v6796_v2 = vpop.permute.xlu0 %6795  ;;  %v10473_v40 = vrot.slane %v8520_v60, 9  ;;  %v6112_v41 = vor.u32 %v15282_v46, %v15277_v4  ;;  %v4785_v60 = vpop.f32.mrf.mxu1 }
 0x333   : > { %v7961_v8 = vld [vmem:[#allocation4 + $0x88] sm:$0xf]  ;;  %7843 = vrot.lane.b32.xlu1 %v7760_v38, %s11322_s14  ;;  %7385 = vst.msk [vmem:[#allocation5 + $0xa0] sm:$0xf] %vm17324_vm5, %v7123_v48  ;;  %v8217_v26 = vshll.u32 %v7962_v63, 16  ;;  %v8204_v22 = vor.u32 %v8203_v52, %v8200_v6  ;;  %v7103_v45 = vrot.slane %v7101_v28, 4  ;;  %v6128_v10 = vsel %vm11585_vm15, %v15295_v44, %v15280_v55  ;;  %vm17333_vm5 = vmmov %vm17290_vm0 }
 0x334   : > { %v8207_v58 = vshll.u32 %v7961_v8, 16  ;;  %v8211_v21 = vshrl.u32 %v7961_v8, 16  ;;  %v8521_v43 = vld [vmem:[#allocation4 + $0x88] sm:$0xf]  ;;  %8470 = vst.msk [vmem:[#allocation5 + $0x70] sm:$0xf] %vm6875_vm10, %v8384_v30 }
 0x335   : > { %v8522_v18 = vld [vmem:[#allocation4 + $0x8c] sm:$0x1]  ;;  %v8654_v42 = vrot.slane %v8521_v43, 5  ;;  %6884 = vst.msk [vmem:[#allocation5 + $0x60] sm:$0xf] %vm6875_vm10, %v6796_v2  ;;  %v7106_v29 = vrot.slane %v7104_v14, 5  ;;  %v11093_v61 = vpop.eup %11092  ;;  %v6272_v19 = vpop.permute.xlu1 %6271 }
 0x336   : > { %v7759_v36 = vld [vmem:[#allocation4 + $0x84] sm:$0xf]  ;;  %v15301_v51 = vrot.slane %v8207_v58, 5  ;;  %v8213_v15 = vrot.slane %v8211_v21, 4  ;;  %v6734_v49 = vld [vmem:[#allocation4 + $0x7c] sm:$0xf]  ;;  %v8382_v46 = vpop.permute.xlu0 %8381  ;;  %v15348_v43 = vpop.f32.mrf.mxu0 }
 0x337   : > { %7841 = vrot.lane.b32.xlu0 %v7759_v36, %s11322_s14  ;;  %v8655_v35 = vsel %vm11511_vm6, %v10473_v40, %v8654_v42  ;;  %v8656_v32 = vrot.slane %v8654_v42, 4  ;;  %v8657_v17 = vrot.slane %v8522_v18, 5  ;;  %v15308_v57 = vld [vmem:[#allocation4 + $0x88] sm:$0xf]  ;;  %v5060_v12 = vadd.f32 1.0, %v11093_v61  ;;  %6817 = vrot.lane.b32.xlu1 %v6734_v49, %s11320_s28  ;;  %17327 = vst [vmem:[#allocation14_spill] sm:$0xff] %v15348_v43  ;;  %v4786_v18 = vpop.f32.mrf.mxu1 }
 0x338   : > { %v8214_v62 = vor.u32 %v8213_v15, %v15301_v51  ;;  %8751 = vst.msk [vmem:[#allocation5 + $0xe0] sm:$0xf] %vm17325_vm3, %v8655_v35  ;;  %v15319_v47 = vld [vmem:[#allocation4 + $0x80] sm:$0x1]  ;;  %v15323_v37 = vrot.slane %v6546_v24, 4  ;;  %v8219_v23 = vrot.slane %v8217_v26, 5  ;;  %v7107_v63 = vor.u32 %v7106_v29, %v7103_v45  ;;  %vm17336_vm3 = vmmov %vm17290_vm0 }
 0x339   : > { %v15325_v50 = vld [vmem:[#allocation4 + $0x78] sm:$0xe]  ;;  %6357 = vst.msk [vmem:[#allocation5 + $0x84] sm:$0xf] %vm6345_vm1, %v6272_v19  ;;  %v15331_v4 = vld [vmem:[%s17129_s2] ss:$0 sm:$0xff]  ;;  %v8658_v6 = vsel %vm11511_vm6, %v8656_v32, %v8657_v17  ;;  %v5092_v52 = vmul.f32 %v5060_v12, %v15260_v20  ;;  %v11095_v48 = vpop.eup %11094  ;;  %v4788_v12 = vpop.f32.mrf.mxu1 }
 0x33a   : > { %v15334_v54 = vadd.f32 %v15331_v4, %v4783_v5  ;;  %v8205_v34 = vrot.slane %v8204_v22, 4  ;;  %8469 = vst.msk [vmem:[#allocation5 + $0x64] sm:$0xf] %vm6875_vm10, %v8382_v46  ;;  %v6733_v28 = vld [vmem:[#allocation4 + $0x78] sm:$0xf]  ;;  %v8215_v14 = vrot.slane %v8214_v62, 4  ;;  %v7635_v22 = vpop.permute.xlu1 %7634  ;;  %v15355_v29 = vadd.f32 %v15331_v4, %v4786_v18  ;;  %v6270_v61 = vpop.permute.xlu0 %6269 }
 0x33b   : > { %8752 = vst.msk [vmem:[#allocation5 + $0xec] sm:$0xf] %vm17326_vm12, %v8658_v6  ;;  %v7572_v38 = vrot.slane %v15308_v57, 5  ;;  %v15342_v8 = vld [vmem:[#allocation4 + $0x84] sm:$0xe]  ;;  %6815 = vrot.lane.b32.xlu0 %v6733_v28, %s11320_s28  ;;  %v6113_v58 = vrot.slane %v6112_v41, 4  ;;  %v10625_v2 = vpack.c.bf16 %v5092_v52, %v5092_v52  ;;  %v15376_v6 = vpop.f32.mrf.mxu0  ;;  %vm17338_vm12 = vmmov %vm17290_vm0 }
 0x33c   : > { %v4870_v30 = vmul.f32 0.044715, %v15334_v54  ;;  %v6549_v20 = vrot.slane %v15319_v47, 5  ;;  %v10442_v21 = vrot.slane %v15325_v50, 9  ;;  %v5061_v26 = vadd.f32 1.0, %v11095_v48  ;;  %17329 = vst [vmem:[#allocation15_spill] sm:$0xff] %v15376_v6 }
 0x33d   : > { %v8220_v40 = vsel %vm11585_vm15, %v8215_v14, %v8219_v23  ;;  %v7436_v42 = vld [vmem:[#allocation4 + $0x8c] sm:$0x1]  ;;  %v7108_v36 = vrot.slane %v7107_v63, 4  ;;  %v5850_v15 = vld [vmem:[#allocation4 + $0x84] sm:$0xf]  ;;  %v8210_v49 = vsel %vm11585_vm15, %v8205_v34, %v15301_v51  ;;  %v10458_v41 = vrot.slane %v15342_v8, 9 }
 0x33e   : > { %v4902_v45 = vmul.f32 %v4870_v30, %v15334_v54  ;;  %7719 = vst.msk [vmem:[#allocation5 + $0x88] sm:$0xf] %vm6345_vm1, %v7635_v22  ;;  %8403 = vrot.lane.b32.xlu1 %v8220_v40, %s11320_s28  ;;  %v5775_v35 = vld [vmem:[#allocation4 + $0x84] sm:$0xf]  ;;  %v5506_v32 = vshrl.u32 %v10625_v2, 16  ;;  %v5093_v17 = vmul.f32 %v5061_v26, %v15263_v33  ;;  %v7574_v19 = vrot.slane %v7572_v38, 4  ;;  %v6609_v14 = vpop.permute.xlu1 %6608  ;;  %v7633_v26 = vpop.permute.xlu0 %7632 }
 0x33f   : > { %6356 = vst.msk [vmem:[#allocation5 + $0x78] sm:$0xf] %vm6345_vm1, %v6270_v61  ;;  %v7113_v5 = vsel %vm11585_vm15, %v7108_v36, %v15239_v56  ;;  %v15369_v62 = vld [vmem:[#allocation4 + $0x64] sm:$0xf]  ;;  %v5776_v51 = vld [vmem:[#allocation4 + $0x88] sm:$0xf]  ;;  %8401 = vrot.lane.b32.xlu0 %v8210_v49, %s11320_s28  ;;  %v6118_v36 = vsel %vm11585_vm15, %v6113_v58, %v15244_v11  ;;  %v6547_v57 = vsel %vm11511_vm6, %v10442_v21, %v6546_v24 }
 0x340   : > { %5807 = vst.msk [vmem:[#allocation5 + $0x108] sm:$0xf] %vm17328_vm7, %v5775_v35  ;;  %v4934_v46 = vmul.f32 %v4902_v45, %v15334_v54  ;;  %v4871_v23 = vmul.f32 0.044715, %v15355_v29  ;;  %v7575_v33 = vrot.slane %v7436_v42, 5  ;;  %v6130_v34 = vshrl.u32 %v5850_v15, 16  ;;  %vm17340_vm7 = vmmov %vm17290_vm0 }
 0x341   : > { %7384 = vst.msk [vmem:[#allocation5 + $0x94] sm:$0xf] %vm17290_vm0, %v7113_v5  ;;  %v5508_v56 = vrot.slane %v5506_v32, 7  ;;  %v5509_v52 = vshll.u32 %v10625_v2, 16  ;;  %v5718_v60 = vld [vmem:[#allocation4 + $0x90] sm:$0xf]  ;;  %v10626_v28 = vpack.c.bf16 %v5093_v17, %v5093_v17  ;;  %v15399_v32 = vpop.f32.mrf.mxu0 }
 0x342   : > { %5808 = vst.msk [vmem:[#allocation5 + $0x114] sm:$0xf] %vm17330_vm14, %v5776_v51  ;;  %v6133_v63 = vshll.u32 %v5850_v15, 16  ;;  %v4966_v48 = vadd.f32 %v4934_v46, %v15334_v54  ;;  %v4903_v30 = vmul.f32 %v4871_v23, %v15355_v29  ;;  %6291 = vrot.lane.b32.xlu1 %v6128_v10, %s11317_s20  ;;  %v8781_v22 = vld [vmem:[#allocation5 + $0x60] sm:$0xff]  ;;  %v7134_v18 = vshll.u32 %v15369_v62, 16  ;;  %v8783_v15 = vld [vmem:[#allocation5 + $0x6c] sm:$0xff]  ;;  %v7828_v12 = vpop.permute.xlu1 %7827  ;;  %v6607_v46 = vpop.permute.xlu0 %6606  ;;  %vm17343_vm14 = vmmov %vm17290_vm0 }
 0x343   : > { %6694 = vst.msk [vmem:[#allocation5 + $0x84] sm:$0xf] %vm6682_vm4, %v6609_v14  ;;  %v11014_v2 = vld [vmem:[#allocation5 + $0x64] ss:$12 sps:$4 sm:$0xff]   ;;  %v5511_v40 = vor.u32 %v5509_v52, %v5508_v56  ;;  %v5514_v42 = vshrl.u32 %v10626_v28, 16  ;;  %v7576_v61 = vsel %vm11511_vm6, %v7574_v19, %v7575_v33  ;;  %6289 = vrot.lane.b32.xlu0 %v6118_v36, %s11317_s20  ;;  %v10493_v10 = vcombine.low %v8781_v22, %v8783_v15 }
 0x344   : > { %7718 = vst.msk [vmem:[#allocation5 + $0x7c] sm:$0xf] %vm6345_vm1, %v7633_v26  ;;  %v11016_v45 = vld [vmem:[#allocation5 + $0xe0] ss:$12 sps:$4 sm:$0xff]   ;;  %v5851_v49 = vld [vmem:[#allocation4 + $0x88] sm:$0xf]  ;;  %v4935_v44 = vmul.f32 %v4903_v30, %v15355_v29  ;;  %9333 = vmatprep.mubr.bf16.mxu0 %v11014_v2 }
 0x345   : > { %v4998_v55 = vmul.f32 0.7978846, %v4966_v48  ;;  %v15397_v35 = vrot.slane %v6130_v34, 4  ;;  %17331 = vst [vmem:[#allocation16_spill] sm:$0xff] %v15399_v32  ;;  %v5719_v11 = vsel %vm13344_vm8, %v5511_v40, %v5718_v60  ;;  %v5516_v58 = vrot.slane %v5514_v42, 7  ;;  %10843 = vmatmul.mubr.msk.bf16.gmra.mxu1 %vm9220_vm9, %v11016_v45  ;;  %9334 = vmatmul.mubr.bf16.gmra.mxu0 %v10493_v10 }
 0x346   : > { %v5517_v17 = vshll.u32 %v10626_v28, 16  ;;  %v6135_v19 = vrot.slane %v6133_v63, 5  ;;  %5720 = vst [vmem:[#allocation4 + $0x90] sm:$0xf] %v5719_v11  ;;  %v5722_v5 = vld [vmem:[#allocation4 + $0x98] sm:$0x1]  ;;  %v4967_v51 = vadd.f32 %v4935_v44, %v15355_v29  ;;  %7654 = vrot.lane.b32.xlu1 %v7576_v61, %s11317_s20  ;;  %v7573_v28 = vsel %vm11511_vm6, %v10458_v41, %v7572_v38  ;;  %v15426_v38 = vpop.f32.mrf.mxu0  ;;  %v6802_v30 = vpop.permute.xlu1 %6801 }
 0x347   : > { %11096 = vtanh.f32 %v4998_v55  ;;  %7912 = vst.msk [vmem:[#allocation5 + $0x88] sm:$0xf] %vm6682_vm4, %v7828_v12  ;;  %v6139_v23 = vshll.u32 %v5851_v49, 16  ;;  %v6143_v33 = vshrl.u32 %v5851_v49, 16  ;;  %v5512_v34 = vrot.slane %v5508_v56, 4  ;;  %7652 = vrot.lane.b32.xlu0 %v7573_v28, %s11317_s20  ;;  %17332 = vst [vmem:[#allocation17_spill] sm:$0xff] %v15426_v38  ;;  %v7826_v24 = vpop.permute.xlu0 %7825 }
 0x348   : > { %v5519_v52 = vor.u32 %v5517_v17, %v5516_v58  ;;  %v5521_v60 = vrot.slane %v5516_v58, 4  ;;  %6693 = vst.msk [vmem:[#allocation5 + $0x78] sm:$0xf] %vm6682_vm4, %v6607_v46  ;;  %v6931_v14 = vld [vmem:[#allocation4 + $0x68] sm:$0x1]  ;;  %v6550_v56 = vsel %vm11511_vm6, %v15323_v37, %v6549_v20  ;;  %v15432_v26 = vrot.slane %v7134_v18, 5  ;;  %v15447_v15 = vpop.f32.mrf.mxu0 }
 0x349   : > { %v4999_v63 = vmul.f32 0.7978846, %v4967_v51  ;;  %v5158_v8 = vld [vmem:[#allocation4 + $0xb4] sm:$0x1]  ;;  %v6929_v48 = vld [vmem:[#allocation4 + $0x60] sm:$0xf]  ;;  %v6136_v50 = vor.u32 %v6135_v19, %v15397_v35 }
 0x34a   : > { %v5520_v41 = vsel %vm11542_vm13, %v5512_v34, %v5519_v52  ;;  %v5723_v47 = vsel %vm12717_vm2, %v5521_v60, %v5722_v5  ;;  %v7138_v3 = vshrl.u32 %v15369_v62, 16  ;;  %v5213_v37 = vld [vmem:[#allocation4 + $0xbc] sm:$0x1]  ;;  %6887 = vst.msk [vmem:[#allocation5 + $0x84] sm:$0xf] %vm6875_vm10, %v6802_v30  ;;  %6628 = vrot.lane.b32.xlu1 %v6550_v56, %s11322_s14  ;;  %v15439_v20 = vrot.slane %v6139_v23, 5  ;;  %v8388_v61 = vpop.permute.xlu1 %8387 }
 0x34b   : > { %5721 = vst.msk [vmem:[#allocation4 + $0x94] sm:$0xf] %vm17333_vm5, %v5520_v41  ;;  %5724 = vst [vmem:[#allocation4 + $0x98] sm:$0x1] %v5723_v47  ;;  %11098 = vtanh.f32 %v4999_v63  ;;  %v5852_v21 = vld [vmem:[#allocation4 + $0x8c] sm:$0x1]  ;;  %6626 = vrot.lane.b32.xlu0 %v6547_v57, %s11322_s14  ;;  %v6800_v35 = vpop.permute.xlu0 %6799 }
 0x34c   : > { %v6145_v22 = vrot.slane %v6143_v33, 4  ;;  %7911 = vst.msk [vmem:[#allocation5 + $0x7c] sm:$0xf] %vm6682_vm4, %v7826_v24  ;;  %v7140_v2 = vrot.slane %v7138_v3, 4  ;;  %v7144_v62 = vshll.u32 %v6931_v14, 16  ;;  %v5159_v18 = vsel %vm12717_vm2, 0, %v5158_v8  ;;  %v15469_v14 = vpop.f32.mrf.mxu0  ;;  %vm17344_vm5 = vmmov %vm17290_vm0 }
 0x34d   : > { %v7125_v40 = vshrl.u32 %v6929_v48, 16  ;;  %5160 = vst [vmem:[#allocation4 + $0xb4] sm:$0x1] %v5159_v18  ;;  %v7128_v42 = vshll.u32 %v6929_v48, 16  ;;  %v5214_v36 = vsel %vm12738_vm11, 0, %v5213_v37  ;;  %17334 = vst [vmem:[#allocation18_spill] sm:$0xff] %v15447_v15 }
 0x34e   : > { %v15450_v45 = vmul.f32 0.5, %v15334_v54  ;;  %v7963_v49 = vld [vmem:[#allocation4 + $0x90] sm:$0xf]  ;;  %v6149_v55 = vshll.u32 %v5852_v21, 16  ;;  %v15452_v44 = vld [vmem:[#allocation4 + $0x84] sm:$0xe]  ;;  %v7141_v10 = vor.u32 %v7140_v2, %v15432_v26  ;;  %v6146_v5 = vor.u32 %v6145_v22, %v15439_v20  ;;  %v6276_v63 = vpop.permute.xlu1 %6275 }
 0x34f   : > { %5215 = vst [vmem:[#allocation4 + $0xbc] sm:$0x1] %v5214_v36  ;;  %8472 = vst.msk [vmem:[#allocation5 + $0x88] sm:$0xf] %vm6875_vm10, %v8388_v61  ;;  %v8222_v11 = vshrl.u32 %v7963_v49, 16  ;;  %v8225_v58 = vshll.u32 %v7963_v49, 16  ;;  %v8386_v30 = vpop.permute.xlu0 %8385 }
 0x350   : > { %v15456_v17 = vrot.slane %v6136_v50, 4  ;;  %v15458_v12 = vld [vmem:[#allocation4 + $0x88] sm:$0xf]  ;;  %v7127_v19 = vrot.slane %v7125_v40, 4  ;;  %6886 = vst.msk [vmem:[#allocation5 + $0x78] sm:$0xf] %vm6875_vm10, %v6800_v35 }
 0x351   : > { %v7761_v54 = vld [vmem:[#allocation4 + $0x90] sm:$0xf]  ;;  %v7142_v51 = vrot.slane %v7141_v10, 4  ;;  %v7146_v46 = vrot.slane %v7144_v62, 5  ;;  %v7130_v23 = vrot.slane %v7128_v42, 5  ;;  %v15463_v33 = vmul.f32 0.5, %v15355_v29 }
 0x352   : > { %7845 = vrot.lane.b32.xlu0 %v7761_v54, %s11322_s14  ;;  %v8224_v34 = vrot.slane %v8222_v11, 4  ;;  %v8227_v52 = vrot.slane %v8225_v58, 5  ;;  %v10443_v60 = vrot.slane %v15452_v44, 9  ;;  %v15467_v28 = vld [vmem:[#allocation4 + $0x8c] sm:$0x1]  ;;  %17335 = vst [vmem:[#allocation19_spill] sm:$0xff] %v15469_v14  ;;  %v6142_v62 = vsel %vm11585_vm15, %v15456_v17, %v15439_v20  ;;  %v15490_v11 = vpop.f32.mrf.mxu0  ;;  %v7639_v58 = vpop.permute.xlu1 %7638 }
 0x353   : > { %v7762_v56 = vld [vmem:[#allocation4 + $0x94] sm:$0xf]  ;;  %v6735_v57 = vld [vmem:[#allocation4 + $0x84] sm:$0xf]  ;;  %v15471_v48 = vrot.slane %v6149_v55, 5  ;;  %v6553_v41 = vrot.slane %v15458_v12, 5  ;;  %v7147_v29 = vsel %vm11585_vm15, %v7142_v51, %v7146_v46  ;;  %v7131_v47 = vor.u32 %v7130_v23, %v7127_v19  ;;  %v4791_v19 = vpop.f32.mrf.mxu1 }
 0x354   : > { %v7964_v8 = vld [vmem:[#allocation4 + $0x94] sm:$0xf]  ;;  %6359 = vst.msk [vmem:[#allocation5 + $0x9c] sm:$0xf] %vm6345_vm1, %v6276_v63  ;;  %7847 = vrot.lane.b32.xlu1 %v7762_v56, %s11322_s14  ;;  %v8228_v3 = vor.u32 %v8227_v52, %v8224_v34  ;;  %v7965_v50 = vld [vmem:[#allocation4 + $0x98] sm:$0x1]  ;;  %v11097_v22 = vpop.eup %11096  ;;  %v15497_v52 = vadd.f32 %v15331_v4, %v4791_v19  ;;  %v6274_v63 = vpop.permute.xlu0 %6273 }
 0x355   : > { %v8231_v37 = vshll.u32 %v7964_v8, 16  ;;  %v8235_v24 = vshrl.u32 %v7964_v8, 16  ;;  %v8523_v21 = vld [vmem:[#allocation4 + $0x90] sm:$0xe]  ;;  %7387 = vst.msk [vmem:[#allocation5 + $0xb8] sm:$0xf] %vm17336_vm3, %v7147_v29  ;;  %v4793_v29 = vpop.f32.mrf.mxu1  ;;  %vm17346_vm3 = vmmov %vm17290_vm0 }
 0x356   : > { %8471 = vst.msk [vmem:[#allocation5 + $0x7c] sm:$0xf] %vm6875_vm10, %v8386_v30  ;;  %v6736_v2 = vld [vmem:[#allocation4 + $0x88] sm:$0xf]  ;;  %v15484_v18 = vrot.slane %v6146_v5, 4  ;;  %v6556_v36 = vrot.slane %v15467_v28, 5  ;;  %6819 = vrot.lane.b32.xlu0 %v6735_v57, %s11320_s28 }
 0x357   : > { %v15486_v40 = vld [vmem:[#allocation4 + $0x90] sm:$0xe]  ;;  %v8524_v42 = vld [vmem:[#allocation4 + $0x94] sm:$0xf]  ;;  %v5062_v61 = vadd.f32 1.0, %v11097_v22  ;;  %v8229_v49 = vrot.slane %v8228_v3, 4 }
 0x358   : > { %v8233_v55 = vrot.slane %v8231_v37, 5  ;;  %v8237_v10 = vrot.slane %v8235_v24, 4  ;;  %v8525_v35 = vld [vmem:[#allocation4 + $0x98] sm:$0x1]  ;;  %17337 = vst [vmem:[#allocation20_spill] sm:$0xff] %v15490_v11  ;;  %v8241_v54 = vshll.u32 %v7965_v50, 16  ;;  %6821 = vrot.lane.b32.xlu1 %v6736_v2, %s11320_s28  ;;  %v11099_v8 = vpop.eup %11098  ;;  %v15510_v2 = vpop.f32.mrf.mxu0 }
 0x359   : > { %v15492_v51 = vld [vmem:[#allocation4 + $0x94] sm:$0xf]  ;;  %v10474_v5 = vrot.slane %v8523_v21, 9  ;;  %v8661_v46 = vrot.slane %v8524_v42, 5  ;;  %v7132_v23 = vrot.slane %v7131_v47, 4  ;;  %v5094_v34 = vmul.f32 %v5062_v61, %v15450_v45  ;;  %17339 = vst [vmem:[#allocation21_spill] sm:$0xff] %v15510_v2  ;;  %v4794_v42 = vpop.f32.mrf.mxu1 }
 0x35a   : > { %7721 = vst.msk [vmem:[#allocation5 + $0xa0] sm:$0xf] %vm6345_vm1, %v7639_v58  ;;  %v8238_v56 = vor.u32 %v8237_v10, %v8233_v55  ;;  %v10459_v57 = vrot.slane %v15486_v40, 9  ;;  %6358 = vst.msk [vmem:[#allocation5 + $0x90] sm:$0xf] %vm6345_vm1, %v6274_v63  ;;  %v8234_v47 = vsel %vm11585_vm15, %v8229_v49, %v8233_v55  ;;  %v8664_v3 = vrot.slane %v8525_v35, 5  ;;  %v6613_v40 = vpop.permute.xlu1 %6612 }
 0x35b   : > { %v8662_v45 = vsel %vm11511_vm6, %v10474_v5, %v8661_v46  ;;  %v8663_v30 = vrot.slane %v8661_v46, 4  ;;  %v10627_v37 = vpack.c.bf16 %v5094_v34, %v5094_v34  ;;  %v5063_v24 = vadd.f32 1.0, %v11099_v8  ;;  %8405 = vrot.lane.b32.xlu0 %v8234_v47, %s11320_s28  ;;  %v5853_v22 = vld [vmem:[#allocation4 + $0x90] sm:$0xf]  ;;  %6696 = vst.msk [vmem:[#allocation5 + $0x9c] sm:$0xf] %vm6682_vm4, %v6613_v40  ;;  %v7637_v5 = vpop.permute.xlu0 %7636 }
 0x35c   : > { %v4872_v50 = vmul.f32 0.044715, %v15497_v52  ;;  %v7579_v21 = vrot.slane %v15492_v51, 5  ;;  %8753 = vst.msk [vmem:[#allocation5 + $0xf8] sm:$0xf] %vm17338_vm12, %v8662_v45  ;;  %v8239_v61 = vrot.slane %v8238_v56, 4  ;;  %v7137_v10 = vsel %vm11585_vm15, %v7132_v23, %v15432_v26  ;;  %vm17350_vm12 = vmmov %vm17290_vm0 }
 0x35d   : > { %v8243_v49 = vrot.slane %v8241_v54, 5  ;;  %v8665_v55 = vsel %vm11511_vm6, %v8663_v30, %v8664_v3  ;;  %v5523_v35 = vshrl.u32 %v10627_v37, 16  ;;  %v5526_v58 = vshll.u32 %v10627_v37, 16  ;;  %v8785_v46 = vld [vmem:[#allocation5 + $0x78] sm:$0xff]  ;;  %v8787_v34 = vld [vmem:[#allocation5 + $0x84] sm:$0xff]  ;;  %v15538_v37 = vpop.f32.mrf.mxu0 }
 0x35e   : > { %v5095_v19 = vmul.f32 %v5063_v24, %v15463_v33  ;;  %v4904_v51 = vmul.f32 %v4872_v50, %v15497_v52  ;;  %v11017_v63 = vld [vmem:[#allocation5 + $0x7c] ss:$12 sps:$4 sm:$0xff]   ;;  %8754 = vst.msk [vmem:[#allocation5 + $0x104] sm:$0xf] %vm17340_vm7, %v8665_v55  ;;  %v15523_v54 = vadd.f32 %v15331_v4, %v4794_v42  ;;  %v4796_v33 = vpop.f32.mrf.mxu1  ;;  %v10496_v23 = vcombine.low %v8785_v46, %v8787_v34  ;;  %v7439_v56 = vld [vmem:[#allocation4 + $0x98] sm:$0x1]  ;;  %v7832_v40 = vpop.permute.xlu1 %7831  ;;  %vm17351_vm7 = vmmov %vm17290_vm0 }
 0x35f   : > { %7386 = vst.msk [vmem:[#allocation5 + $0xac] sm:$0xf] %vm17290_vm0, %v7137_v10  ;;  %v8244_v26 = vsel %vm11585_vm15, %v8239_v61, %v8243_v49  ;;  %v6154_v8 = vshrl.u32 %v5853_v22, 16  ;;  %v5525_v29 = vrot.slane %v5523_v35, 7  ;;  %6293 = vrot.lane.b32.xlu0 %v6142_v62, %s11317_s20  ;;  %v15536_v30 = vld [vmem:[#allocation4 + $0x94] sm:$0xf]  ;;  %9341 = vmatprep.mubr.bf16.mxu0 %v11017_v63  ;;  %v6152_v42 = vsel %vm11585_vm15, %v15484_v18, %v15471_v48  ;;  %v15562_v63 = vpop.f32.mrf.mxu0 }
 0x360   : > { %7720 = vst.msk [vmem:[#allocation5 + $0x94] sm:$0xf] %vm6345_vm1, %v7637_v5  ;;  %v10628_v47 = vpack.c.bf16 %v5095_v19, %v5095_v19  ;;  %v4936_v45 = vmul.f32 %v4904_v51, %v15497_v52  ;;  %8407 = vrot.lane.b32.xlu1 %v8244_v26, %s11320_s28  ;;  %v6157_v3 = vshll.u32 %v5853_v22, 16  ;;  %17341 = vst [vmem:[#allocation22_spill] sm:$0xff] %v15538_v37  ;;  %v5725_v24 = vld [vmem:[#allocation4 + $0x9c] sm:$0xf]  ;;  %v6611_v22 = vpop.permute.xlu0 %6610  ;;  %9342 = vmatmul.mubr.bf16.gmra.mxu0 %v10496_v23 }
 0x361   : > { %v4873_v50 = vmul.f32 0.044715, %v15523_v54  ;;  %v7580_v61 = vsel %vm11511_vm6, %v10459_v57, %v7579_v21  ;;  %v6555_v20 = vrot.slane %v6553_v41, 4  ;;  %v5528_v17 = vor.u32 %v5526_v58, %v5525_v29  ;;  %7914 = vst.msk [vmem:[#allocation5 + $0xa0] sm:$0xf] %vm6682_vm4, %v7832_v40  ;;  %17342 = vst [vmem:[#allocation23_spill] sm:$0xff] %v15562_v63 }
 0x362   : > { %v5531_v62 = vshrl.u32 %v10628_v47, 16  ;;  %v7581_v49 = vrot.slane %v7579_v21, 4  ;;  %v7582_v55 = vrot.slane %v7439_v56, 5  ;;  %v15550_v10 = vld [vmem:[#allocation4 + $0x70] sm:$0xf]  ;;  %v4968_v19 = vadd.f32 %v4936_v45, %v15497_v52  ;;  %v6806_v56 = vpop.permute.xlu1 %6805 }
 0x363   : > { %v5729_v35 = vld [vmem:[#allocation4 + $0xa4] sm:$0x1]  ;;  %v4905_v48 = vmul.f32 %v4873_v50, %v15523_v54  ;;  %6695 = vst.msk [vmem:[#allocation5 + $0x90] sm:$0xf] %vm6682_vm4, %v6611_v22  ;;  %v15555_v18 = vrot.slane %v6154_v8, 4  ;;  %v6163_v57 = vshll.u32 %v15536_v30, 16  ;;  %v5726_v5 = vsel %vm13344_vm8, %v5528_v17, %v5725_v24  ;;  %7656 = vrot.lane.b32.xlu0 %v7580_v61, %s11317_s20  ;;  %v15588_v61 = vpop.f32.mrf.mxu0 }
 0x364   : > { %v5855_v58 = vld [vmem:[#allocation4 + $0x98] sm:$0x1]  ;;  %v5777_v51 = vld [vmem:[#allocation4 + $0x90] sm:$0xf]  ;;  %v5533_v21 = vrot.slane %v5531_v62, 7  ;;  %v5534_v46 = vshll.u32 %v10628_v47, 16  ;;  %6295 = vrot.lane.b32.xlu1 %v6152_v42, %s11317_s20  ;;  %v6554_v47 = vsel %vm11511_vm6, %v10443_v60, %v6553_v41  ;;  %v7830_v50 = vpop.permute.xlu0 %7829  ;;  %v7583_v44 = vsel %vm11511_vm6, %v7581_v49, %v7582_v55 }
 0x365   : > { %v6159_v34 = vrot.slane %v6157_v3, 5  ;;  %5809 = vst.msk [vmem:[#allocation5 + $0x120] sm:$0xf] %vm17343_vm14, %v5777_v51  ;;  %v5778_v26 = vld [vmem:[#allocation4 + $0x94] sm:$0xf]  ;;  %v4937_v23 = vmul.f32 %v4905_v48, %v15523_v54  ;;  %v5529_v45 = vrot.slane %v5525_v29, 4  ;;  %v6557_v55 = vsel %vm11511_vm6, %v6555_v20, %v6556_v36  ;;  %vm17353_vm14 = vmmov %vm17290_vm0 }
 0x366   : > { %5727 = vst [vmem:[#allocation4 + $0x9c] sm:$0xf] %v5726_v5  ;;  %v5000_v33 = vmul.f32 0.7978846, %v4968_v19  ;;  %v11019_v8 = vld [vmem:[#allocation5 + $0xf8] ss:$12 sps:$4 sm:$0xff]   ;;  %v5536_v3 = vor.u32 %v5534_v46, %v5533_v21  ;;  %v8392_v49 = vpop.permute.xlu1 %8391 }
 0x367   : > { %5810 = vst.msk [vmem:[#allocation5 + $0x12c] sm:$0xf] %vm17344_vm5, %v5778_v26  ;;  %v5538_v24 = vrot.slane %v5533_v21, 4  ;;  %v6167_v40 = vshrl.u32 %v15536_v30, 16  ;;  %v4969_v42 = vadd.f32 %v4937_v23, %v15523_v54  ;;  %10846 = vmatprep.mubr.msk.bf16.mxu1 %vm9220_vm9, %v11019_v8  ;;  %v7158_v12 = vshll.u32 %v15550_v10, 16  ;;  %6630 = vrot.lane.b32.xlu0 %v6554_v47, %s11322_s14  ;;  %17345 = vst [vmem:[#allocation24_spill] sm:$0xff] %v15588_v61  ;;  %v4799_v23 = vpop.f32.mrf.mxu1 }
 0x368   : > { %6889 = vst.msk [vmem:[#allocation5 + $0x9c] sm:$0xf] %vm6875_vm10, %v6806_v56  ;;  %11100 = vtanh.f32 %v5000_v33  ;;  %v5537_v60 = vsel %vm11542_vm13, %v5529_v45, %v5536_v3  ;;  %7658 = vrot.lane.b32.xlu1 %v7583_v44, %s11317_s20  ;;  %v6160_v29 = vor.u32 %v6159_v34, %v15555_v18  ;;  %v6173_v30 = vshll.u32 %v5855_v58, 16  ;;  %v6932_v17 = vld [vmem:[#allocation4 + $0x6c] sm:$0xf]  ;;  %v6804_v48 = vpop.permute.xlu0 %6803  ;;  %v15617_v34 = vpop.f32.mrf.mxu0  ;;  %vm17354_vm5 = vmmov %vm17290_vm0 }
 0x369   : > { %7913 = vst.msk [vmem:[#allocation5 + $0x94] sm:$0xf] %vm6682_vm4, %v7830_v50  ;;  %v5730_v41 = vsel %vm12717_vm2, %v5538_v24, %v5729_v35  ;;  %v15592_v62 = vmul.f32 0.5, %v15497_v52  ;;  %v5001_v22 = vmul.f32 0.7978846, %v4969_v42  ;;  %v15601_v19 = vmul.f32 0.5, %v15523_v54 }
 0x36a   : > { %5728 = vst.msk [vmem:[#allocation4 + $0xa0] sm:$0xf] %vm17346_vm3, %v5537_v60  ;;  %5731 = vst [vmem:[#allocation4 + $0xa4] sm:$0x1] %v5730_v41  ;;  %v15598_v35 = vld [vmem:[#allocation4 + $0x74] sm:$0x1]  ;;  %v6280_v26 = vpop.permute.xlu1 %6279 }
 0x36b   : > { %8474 = vst.msk [vmem:[#allocation5 + $0xa0] sm:$0xf] %vm6875_vm10, %v8392_v49  ;;  %v15604_v18 = vrot.slane %v6163_v57, 5  ;;  %v6169_v58 = vrot.slane %v6167_v40, 4  ;;  %v15606_v52 = vld [vmem:[#allocation4 + $0x90] sm:$0xe]  ;;  %11102 = vtanh.f32 %v5001_v22  ;;  %vm17356_vm3 = vmmov %vm17290_vm0 }
 0x36c   : > { %v7162_v51 = vshrl.u32 %v15550_v10, 16  ;;  %6888 = vst.msk [vmem:[#allocation5 + $0x90] sm:$0xf] %vm6875_vm10, %v6804_v48  ;;  %v15610_v28 = vrot.slane %v7158_v12, 5  ;;  %v7149_v36 = vshrl.u32 %v6932_v17, 16  ;;  %v7152_v20 = vshll.u32 %v6932_v17, 16  ;;  %6632 = vrot.lane.b32.xlu1 %v6557_v55, %s11322_s14  ;;  %v8390_v8 = vpop.permute.xlu0 %8389  ;;  %v15634_v17 = vpop.f32.mrf.mxu0 }
 0x36d   : > { %v5161_v5 = vld [vmem:[#allocation4 + $0xc0] sm:$0x1]  ;;  %v7763_v54 = vld [vmem:[#allocation4 + $0x9c] sm:$0xf]  ;;  %v15613_v46 = vrot.slane %v6160_v29, 4  ;;  %v15615_v57 = vrot.slane %v6173_v30, 5  ;;  %v6170_v47 = vor.u32 %v6169_v58, %v15604_v18 }
 0x36e   : > { %v7966_v21 = vld [vmem:[#allocation4 + $0x9c] sm:$0xf]  ;;  %17347 = vst [vmem:[#allocation25_spill] sm:$0xff] %v15617_v34  ;;  %7849 = vrot.lane.b32.xlu0 %v7763_v54, %s11322_s14  ;;  %v7164_v56 = vrot.slane %v7162_v51, 4  ;;  %6361 = vst.msk [vmem:[#allocation5 + $0xb4] sm:$0xf] %vm6345_vm1, %v6280_v26  ;;  %v7643_v22 = vpop.permute.xlu1 %7642 }
 0x36f   : > { %v8246_v10 = vshrl.u32 %v7966_v21, 16  ;;  %v8249_v33 = vshll.u32 %v7966_v21, 16  ;;  %v15623_v45 = vld [vmem:[#allocation4 + $0x94] sm:$0xf]  ;;  %v7168_v3 = vshll.u32 %v15598_v35, 16  ;;  %v15626_v24 = vrot.slane %v7149_v36, 4 }
 0x370   : > { %v15628_v50 = vrot.slane %v7152_v20, 5  ;;  %8473 = vst.msk [vmem:[#allocation5 + $0x94] sm:$0xf] %vm6875_vm10, %v8390_v8  ;;  %v6737_v40 = vld [vmem:[#allocation4 + $0x90] sm:$0xf]  ;;  %v7165_v12 = vor.u32 %v7164_v56, %v15610_v28  ;;  %v5162_v60 = vsel %vm12717_vm2, 0, %v5161_v5  ;;  %v6278_v51 = vpop.permute.xlu0 %6277  ;;  %v6166_v36 = vsel %vm11585_vm15, %v15613_v46, %v15604_v18 }
 0x371   : > { %v8248_v42 = vrot.slane %v8246_v10, 4  ;;  %v8251_v44 = vrot.slane %v8249_v33, 5  ;;  %v7764_v41 = vld [vmem:[#allocation4 + $0xa0] sm:$0xf]  ;;  %v7968_v30 = vld [vmem:[#allocation4 + $0xa4] sm:$0x1] }
 0x372   : > { %v7967_v29 = vld [vmem:[#allocation4 + $0xa0] sm:$0xf]  ;;  %17348 = vst [vmem:[#allocation26_spill] sm:$0xff] %v15634_v17  ;;  %5163 = vst [vmem:[#allocation4 + $0xc0] sm:$0x1] %v5162_v60  ;;  %7851 = vrot.lane.b32.xlu1 %v7764_v41, %s11322_s14  ;;  %6823 = vrot.lane.b32.xlu0 %v6737_v40, %s11320_s28  ;;  %v6560_v58 = vrot.slane %v15623_v45, 5  ;;  %v7155_v41 = vor.u32 %v15628_v50, %v15626_v24 }
 0x373   : > { %v8252_v49 = vor.u32 %v8251_v44, %v8248_v42  ;;  %v8255_v55 = vshll.u32 %v7967_v29, 16  ;;  %v8259_v35 = vshrl.u32 %v7967_v29, 16  ;;  %v8526_v48 = vld [vmem:[#allocation4 + $0x9c] sm:$0xe]  ;;  %7723 = vst.msk [vmem:[#allocation5 + $0xb8] sm:$0xf] %vm6345_vm1, %v7643_v22  ;;  %v15649_v29 = vpop.f32.mrf.mxu0  ;;  %v6617_v22 = vpop.permute.xlu1 %6616 }
 0x374   : > { %v15644_v20 = vrot.slane %v6170_v47, 4  ;;  %v8527_v5 = vld [vmem:[#allocation4 + $0xa0] sm:$0xf]  ;;  %v8528_v54 = vld [vmem:[#allocation4 + $0xa4] sm:$0x1]  ;;  %v7166_v21 = vrot.slane %v7165_v12, 4  ;;  %v7641_v24 = vpop.permute.xlu0 %7640 }
 0x375   : > { %6360 = vst.msk [vmem:[#allocation5 + $0xa8] sm:$0xf] %vm6345_vm1, %v6278_v51  ;;  %v8253_v26 = vrot.slane %v8252_v49, 4  ;;  %v8257_v10 = vrot.slane %v8255_v55, 5  ;;  %v8261_v33 = vrot.slane %v8259_v35, 4  ;;  %v8265_v56 = vshll.u32 %v7968_v30, 16  ;;  %v11101_v8 = vpop.eup %11100 }
 0x376   : > { %v6738_v40 = vld [vmem:[#allocation4 + $0x94] sm:$0xf]  ;;  %v10475_v42 = vrot.slane %v8526_v48, 9  ;;  %v8668_v44 = vrot.slane %v8527_v5, 5  ;;  %v7170_v60 = vrot.slane %v7168_v3, 5  ;;  %17349 = vst [vmem:[#allocation27_spill] sm:$0xff] %v15649_v29  ;;  %v15658_v3 = vadd.f32 %v15331_v4, %v4799_v23 }
 0x377   : > { %v5064_v47 = vadd.f32 1.0, %v11101_v8  ;;  %6825 = vrot.lane.b32.xlu1 %v6738_v40, %s11320_s28  ;;  %v8258_v12 = vsel %vm11585_vm15, %v8253_v26, %v8257_v10  ;;  %v8262_v49 = vor.u32 %v8261_v33, %v8257_v10  ;;  %v15654_v30 = vld [vmem:[#allocation4 + $0xa0] sm:$0xf]  ;;  %v8671_v55 = vrot.slane %v8528_v54, 5  ;;  %v5216_v35 = vld [vmem:[#allocation4 + $0xc8] sm:$0x1]  ;;  %v4801_v33 = vpop.f32.mrf.mxu1 }
 0x378   : > { %6698 = vst.msk [vmem:[#allocation5 + $0xb4] sm:$0xf] %vm6682_vm4, %v6617_v22  ;;  %8409 = vrot.lane.b32.xlu0 %v8258_v12, %s11320_s28  ;;  %v8789_v50 = vld [vmem:[#allocation5 + $0x90] sm:$0xff]  ;;  %v8791_v48 = vld [vmem:[#allocation5 + $0x9c] sm:$0xff]  ;;  %v8669_v5 = vsel %vm11511_vm6, %v10475_v42, %v8668_v44  ;;  %v8670_v26 = vrot.slane %v8668_v44, 4  ;;  %v7171_v10 = vsel %vm11585_vm15, %v7166_v21, %v7170_v60  ;;  %v8267_v40 = vrot.slane %v8265_v56, 5  ;;  %v11103_v12 = vpop.eup %11102 }
 0x379   : > { %v11020_v51 = vld [vmem:[#allocation5 + $0x94] ss:$12 sps:$4 sm:$0xff]   ;;  %v5096_v54 = vmul.f32 %v5064_v47, %v15592_v62  ;;  %7722 = vst.msk [vmem:[#allocation5 + $0xac] sm:$0xf] %vm6345_vm1, %v7641_v24  ;;  %v10499_v23 = vcombine.low %v8789_v50, %v8791_v48  ;;  %v8263_v8 = vrot.slane %v8262_v49, 4  ;;  %v7586_v44 = vrot.slane %v15654_v30, 5  ;;  %v15675_v47 = vpop.f32.mrf.mxu0  ;;  %v7836_v24 = vpop.permute.xlu1 %7835 }
 0x37a   : > { %v7440_v22 = vld [vmem:[#allocation4 + $0x9c] sm:$0xe]  ;;  %8755 = vst.msk [vmem:[#allocation5 + $0x110] sm:$0xf] %vm17350_vm12, %v8669_v5  ;;  %v4874_v42 = vmul.f32 0.044715, %v15658_v3  ;;  %9349 = vmatprep.mubr.bf16.mxu0 %v11020_v51  ;;  %v8672_v62 = vsel %vm11511_vm6, %v8670_v26, %v8671_v55  ;;  %v4802_v50 = vpop.f32.mrf.mxu1  ;;  %v6615_v51 = vpop.permute.xlu0 %6614  ;;  %vm17360_vm12 = vmmov %vm17290_vm0 }
 0x37b   : > { %7389 = vst.msk [vmem:[#allocation5 + $0xd0] sm:$0xf] %vm17351_vm7, %v7171_v10  ;;  %v15673_v21 = vld [vmem:[#allocation4 + $0x98] sm:$0x1]  ;;  %v7156_v60 = vrot.slane %v7155_v41, 4  ;;  %17352 = vst [vmem:[#allocation28_spill] sm:$0xff] %v15675_v47  ;;  %v10629_v56 = vpack.c.bf16 %v5096_v54, %v5096_v54  ;;  %9350 = vmatmul.mubr.bf16.gmra.mxu0 %v10499_v23  ;;  %v8268_v48 = vsel %vm11585_vm15, %v8263_v8, %v8267_v40  ;;  %v15710_v40 = vpop.f32.mrf.mxu0 }
 0x37c   : > { %v5065_v49 = vadd.f32 1.0, %v11103_v12  ;;  %8756 = vst.msk [vmem:[#allocation5 + $0x11c] sm:$0xf] %vm17290_vm0, %v8672_v62  ;;  %v5217_v30 = vsel %vm12738_vm11, 0, %v5216_v35  ;;  %v4906_v55 = vmul.f32 %v4874_v42, %v15658_v3  ;;  %v15685_v41 = vadd.f32 %v15331_v4, %v4802_v50  ;;  %8411 = vrot.lane.b32.xlu1 %v8268_v48, %s11320_s28  ;;  %6297 = vrot.lane.b32.xlu0 %v6166_v36, %s11317_s20  ;;  %v5779_v26 = vld [vmem:[#allocation4 + $0x9c] sm:$0xf]  ;;  %v4804_v54 = vpop.f32.mrf.mxu1  ;;  %vm17363_vm7 = vmmov %vm17290_vm0 }
 0x37d   : > { %7916 = vst.msk [vmem:[#allocation5 + $0xb8] sm:$0xf] %vm6682_vm4, %v7836_v24  ;;  %v10460_v5 = vrot.slane %v7440_v22, 9  ;;  %v7161_v35 = vsel %vm11585_vm15, %v7156_v60, %v15610_v28  ;;  %5218 = vst [vmem:[#allocation4 + $0xc8] sm:$0x1] %v5217_v30  ;;  %v5540_v10 = vshrl.u32 %v10629_v56, 16  ;;  %v6810_v62 = vpop.permute.xlu1 %6809 }
 0x37e   : > { %v5097_v4 = vmul.f32 %v5065_v49, %v15601_v19  ;;  %6697 = vst.msk [vmem:[#allocation5 + $0xa8] sm:$0xf] %vm6682_vm4, %v6615_v51  ;;  %v6563_v33 = vrot.slane %v15673_v21, 5  ;;  %v5856_v23 = vld [vmem:[#allocation4 + $0x9c] sm:$0xf]  ;;  %v4938_v46 = vmul.f32 %v4906_v55, %v15658_v3  ;;  %v6176_v19 = vsel %vm11585_vm15, %v15644_v20, %v15615_v57  ;;  %17355 = vst [vmem:[#allocation29_spill] sm:$0xff] %v15710_v40  ;;  %v7834_v57 = vpop.permute.xlu0 %7833 }
 0x37f   : > { %7388 = vst.msk [vmem:[#allocation5 + $0xc4] sm:$0xf] %vm17353_vm14, %v7161_v35  ;;  %v5780_v18 = vld [vmem:[#allocation4 + $0xa0] sm:$0xf]  ;;  %v4875_v28 = vmul.f32 0.044715, %v15685_v41  ;;  %v7587_v36 = vsel %vm11511_vm6, %v10460_v5, %v7586_v44  ;;  %vm17366_vm14 = vmmov %vm17290_vm0 }
 0x380   : > { %5811 = vst.msk [vmem:[#allocation5 + $0x138] sm:$0xf] %vm17354_vm5, %v5779_v26  ;;  %v7442_v8 = vld [vmem:[#allocation4 + $0xa4] sm:$0x1]  ;;  %v5542_v22 = vrot.slane %v5540_v10, 7  ;;  %v5543_v12 = vshll.u32 %v10629_v56, 16  ;;  %v10630_v42 = vpack.c.bf16 %v5097_v4, %v5097_v4  ;;  %v4970_v24 = vadd.f32 %v4938_v46, %v15658_v3  ;;  %6299 = vrot.lane.b32.xlu1 %v6176_v19, %s11317_s20  ;;  %7660 = vrot.lane.b32.xlu0 %v7587_v36, %s11317_s20  ;;  %v15722_v26 = vpop.f32.mrf.mxu0  ;;  %vm17368_vm5 = vmmov %vm17290_vm0 }
 0x381   : > { %5812 = vst.msk [vmem:[#allocation5 + $0x144] sm:$0xf] %vm17356_vm3, %v5780_v18  ;;  %v7588_v60 = vrot.slane %v7586_v44, 4  ;;  %v5732_v49 = vld [vmem:[#allocation4 + $0xa8] sm:$0xf]  ;;  %v4907_v50 = vmul.f32 %v4875_v28, %v15685_v41  ;;  %v6562_v20 = vrot.slane %v6560_v58, 4  ;;  %v8396_v18 = vpop.permute.xlu1 %8395  ;;  %vm17369_vm3 = vmmov %vm17290_vm0 }
 0x382   : > { %6891 = vst.msk [vmem:[#allocation5 + $0xb4] sm:$0xf] %vm6875_vm10, %v6810_v62  ;;  %v6178_v48 = vshrl.u32 %v5856_v23, 16  ;;  %v5545_v56 = vor.u32 %v5543_v12, %v5542_v22  ;;  %v5548_v30 = vshrl.u32 %v10630_v42, 16  ;;  %v7589_v44 = vrot.slane %v7442_v8, 5  ;;  %17357 = vst [vmem:[#allocation30_spill] sm:$0xff] %v15722_v26  ;;  %v6808_v36 = vpop.permute.xlu0 %6807 }
 0x383   : > { %7915 = vst.msk [vmem:[#allocation5 + $0xac] sm:$0xf] %vm6682_vm4, %v7834_v57  ;;  %v6181_v55 = vshll.u32 %v5856_v23, 16  ;;  %v5002_v51 = vmul.f32 0.7978846, %v4970_v24  ;;  %v4939_v5 = vmul.f32 %v4907_v50, %v15685_v41  ;;  %v5551_v54 = vshll.u32 %v10630_v42, 16 }
 0x384   : > { %v11022_v35 = vld [vmem:[#allocation5 + $0x110] ss:$12 sps:$4 sm:$0xff]   ;;  %v5733_v10 = vsel %vm13344_vm8, %v5545_v56, %v5732_v49  ;;  %v5550_v4 = vrot.slane %v5548_v30, 7  ;;  %v7590_v46 = vsel %vm11511_vm6, %v7588_v60, %v7589_v44  ;;  %v6936_v28 = vld [vmem:[#allocation4 + $0x7c] sm:$0xf]  ;;  %v17358_v8 = vrot.slane %v15606_v52, 9  ;;  %v15740_v30 = vpop.f32.mrf.mxu0 }
 0x385   : > { %5734 = vst [vmem:[#allocation4 + $0xa8] sm:$0xf] %v5733_v10  ;;  %v5736_v19 = vld [vmem:[#allocation4 + $0xb0] sm:$0x1]  ;;  %11104 = vtanh.f32 %v5002_v51  ;;  %v4971_v23 = vadd.f32 %v4939_v5, %v15685_v41  ;;  %8476 = vst.msk [vmem:[#allocation5 + $0xb8] sm:$0xf] %vm6875_vm10, %v8396_v18  ;;  %10847 = vmatmul.mubr.msk.bf16.gmra.mxu1 %vm9220_vm9, %v11022_v35  ;;  %7662 = vrot.lane.b32.xlu1 %v7590_v46, %s11317_s20 }
 0x386   : > { %v6561_v12 = vsel %vm11511_vm6, %v17358_v8, %v6560_v58  ;;  %v6180_v42 = vrot.slane %v6178_v48, 4  ;;  %v6937_v62 = vld [vmem:[#allocation4 + $0x80] sm:$0x1]  ;;  %v5546_v60 = vrot.slane %v5542_v22, 4  ;;  %v5553_v49 = vor.u32 %v5551_v54, %v5550_v4  ;;  %6890 = vst.msk [vmem:[#allocation5 + $0xa8] sm:$0xf] %vm6875_vm10, %v6808_v36  ;;  %v6284_v22 = vpop.permute.xlu1 %6283  ;;  %v15756_v18 = vpop.f32.mrf.mxu0 }
 0x387   : > { %v5555_v24 = vrot.slane %v5550_v4, 4  ;;  %6634 = vrot.lane.b32.xlu0 %v6561_v12, %s11322_s14  ;;  %v5857_v50 = vld [vmem:[#allocation4 + $0xa0] sm:$0xf]  ;;  %v6183_v57 = vrot.slane %v6181_v55, 5  ;;  %v5003_v56 = vmul.f32 0.7978846, %v4971_v23  ;;  %v6564_v48 = vsel %vm11511_vm6, %v6562_v20, %v6563_v33  ;;  %v8394_v55 = vpop.permute.xlu0 %8393 }
 0x388   : > { %17359 = vst [vmem:[#allocation31_spill] sm:$0xff] %v15740_v30  ;;  %v5858_v45 = vld [vmem:[#allocation4 + $0xa4] sm:$0x1]  ;;  %v7182_v44 = vshll.u32 %v6936_v28, 16  ;;  %v5554_v52 = vsel %vm11542_vm13, %v5546_v60, %v5553_v49  ;;  %v7186_v51 = vshrl.u32 %v6936_v28, 16  ;;  %v6187_v35 = vshll.u32 %v5857_v50, 16 }
 0x389   : > { %v5737_v58 = vsel %vm12717_vm2, %v5555_v24, %v5736_v19  ;;  %v6935_v5 = vld [vmem:[#allocation4 + $0x78] sm:$0xf]  ;;  %5735 = vst.msk [vmem:[#allocation4 + $0xac] sm:$0xf] %vm17360_vm12, %v5554_v52  ;;  %11106 = vtanh.f32 %v5003_v56  ;;  %6636 = vrot.lane.b32.xlu1 %v6564_v48, %s11322_s14  ;;  %v6191_v10 = vshrl.u32 %v5857_v50, 16  ;;  %v6184_v21 = vor.u32 %v6183_v57, %v6180_v42  ;;  %17361 = vst [vmem:[#allocation32_spill] sm:$0xff] %v15756_v18  ;;  %v15780_v48 = vpop.f32.mrf.mxu0 }
 0x38a   : > { %5738 = vst [vmem:[#allocation4 + $0xb0] sm:$0x1] %v5737_v58  ;;  %6363 = vst.msk [vmem:[#allocation5 + $0xcc] sm:$0xf] %vm6345_vm1, %v6284_v22  ;;  %v15753_v4 = vrot.slane %v7182_v44, 5  ;;  %v6197_v54 = vshll.u32 %v5858_v45, 16  ;;  %v7647_v36 = vpop.permute.xlu1 %7646 }
 0x38b   : > { %8475 = vst.msk [vmem:[#allocation5 + $0xac] sm:$0xf] %vm6875_vm10, %v8394_v55  ;;  %v7188_v33 = vrot.slane %v7186_v51, 4  ;;  %v7192_v20 = vshll.u32 %v6937_v62, 16  ;;  %v7173_v46 = vshrl.u32 %v6935_v5, 16  ;;  %v7176_v28 = vshll.u32 %v6935_v5, 16  ;;  %v6282_v42 = vpop.permute.xlu0 %6281  ;;  %vm17370_vm12 = vmmov %vm17290_vm0 }
 0x38c   : > { %v15759_v19 = vmul.f32 0.5, %v15658_v3  ;;  %v15762_v23 = vmul.f32 0.5, %v15685_v41  ;;  %v7765_v8 = vld [vmem:[#allocation4 + $0xa8] sm:$0xf]  ;;  %7725 = vst.msk [vmem:[#allocation5 + $0xd0] sm:$0xf] %vm6345_vm1, %v7647_v36 }
 0x38d   : > { %v7969_v12 = vld [vmem:[#allocation4 + $0xa8] sm:$0xf]  ;;  %v7189_v60 = vor.u32 %v7188_v33, %v15753_v4  ;;  %7853 = vrot.lane.b32.xlu0 %v7765_v8, %s11322_s14  ;;  %v15767_v24 = vrot.slane %v6187_v35, 5  ;;  %v15769_v50 = vrot.slane %v6191_v10, 4  ;;  %v15771_v3 = vld [vmem:[#allocation4 + $0x9c] sm:$0xe] }
 0x38e   : > { %v8270_v62 = vshrl.u32 %v7969_v12, 16  ;;  %v8273_v49 = vshll.u32 %v7969_v12, 16  ;;  %6362 = vst.msk [vmem:[#allocation5 + $0xc0] sm:$0xf] %vm6345_vm1, %v6282_v42  ;;  %v6739_v41 = vld [vmem:[#allocation4 + $0x9c] sm:$0xf]  ;;  %v6621_v35 = vpop.permute.xlu1 %6620 }
 0x38f   : > { %v15774_v57 = vrot.slane %v6184_v21, 4  ;;  %v15776_v56 = vrot.slane %v6197_v54, 5  ;;  %v15778_v45 = vld [vmem:[#allocation4 + $0xa0] sm:$0xf]  ;;  %v7190_v44 = vrot.slane %v7189_v60, 4  ;;  %v7194_v52 = vrot.slane %v7192_v20, 5  ;;  %v7645_v20 = vpop.permute.xlu0 %7644 }
 0x390   : > { %v8272_v58 = vrot.slane %v8270_v62, 4  ;;  %v8275_v22 = vrot.slane %v8273_v49, 5  ;;  %17362 = vst [vmem:[#allocation33_spill] sm:$0xff] %v15780_v48  ;;  %v8529_v51 = vld [vmem:[#allocation4 + $0xa8] sm:$0xe]  ;;  %v15782_v5 = vrot.slane %v7173_v46, 4  ;;  %v6194_v42 = vor.u32 %v15769_v50, %v15767_v24 }
 0x391   : > { %v15784_v55 = vrot.slane %v7176_v28, 5  ;;  %v7766_v10 = vld [vmem:[#allocation4 + $0xac] sm:$0xf]  ;;  %v15786_v21 = vld [vmem:[#allocation4 + $0xb0] sm:$0x1]  ;;  %v7195_v54 = vsel %vm11585_vm15, %v7190_v44, %v7194_v52  ;;  %6827 = vrot.lane.b32.xlu0 %v6739_v41, %s11320_s28  ;;  %v10476_v41 = vrot.slane %v8529_v51, 9 }
 0x392   : > { %v7970_v33 = vld [vmem:[#allocation4 + $0xac] sm:$0xf]  ;;  %6700 = vst.msk [vmem:[#allocation5 + $0xcc] sm:$0xf] %vm6682_vm4, %v6621_v35  ;;  %7855 = vrot.lane.b32.xlu1 %v7766_v10, %s11322_s14  ;;  %v8793_v36 = vld [vmem:[#allocation5 + $0xa8] sm:$0xff]  ;;  %v8276_v28 = vor.u32 %v8275_v22, %v8272_v58  ;;  %v11105_v62 = vpop.eup %11104  ;;  %v17145_v58 = vrot.slane %v15778_v45, 5 }
 0x393   : > { %v8795_v46 = vld [vmem:[#allocation5 + $0xb4] sm:$0xff]  ;;  %v8279_v12 = vshll.u32 %v7970_v33, 16  ;;  %v8283_v60 = vshrl.u32 %v7970_v33, 16  ;;  %7391 = vst.msk [vmem:[#allocation5 + $0xe8] sm:$0xf] %vm17363_vm7, %v7195_v54  ;;  %v5066_v22 = vadd.f32 1.0, %v11105_v62  ;;  %v15803_v54 = vpop.f32.mrf.mxu0  ;;  %v7179_v52 = vor.u32 %v15784_v55, %v15782_v5  ;;  %vm17375_vm7 = vmmov %vm17290_vm0 }
 0x394   : > { %v11023_v8 = vld [vmem:[#allocation5 + $0xac] ss:$12 sps:$4 sm:$0xff]   ;;  %7724 = vst.msk [vmem:[#allocation5 + $0xc4] sm:$0xf] %vm6345_vm1, %v7645_v20  ;;  %v10502_v49 = vcombine.low %v8793_v36, %v8795_v46  ;;  %v8530_v44 = vld [vmem:[#allocation4 + $0xac] sm:$0xf]  ;;  %v7840_v20 = vpop.permute.xlu1 %7839  ;;  %v4807_v36 = vpop.f32.mrf.mxu1 }
 0x395   : > { %9357 = vmatprep.mubr.bf16.mxu0 %v11023_v8  ;;  %v8277_v35 = vrot.slane %v8276_v28, 4  ;;  %v8281_v50 = vrot.slane %v8279_v12, 5  ;;  %v8285_v10 = vrot.slane %v8283_v60, 4  ;;  %v8531_v33 = vld [vmem:[#allocation4 + $0xb0] sm:$0x1]  ;;  %17364 = vst [vmem:[#allocation34_spill] sm:$0xff] %v15803_v54  ;;  %v5098_v62 = vmul.f32 %v5066_v22, %v15759_v19  ;;  %v6619_v12 = vpop.permute.xlu0 %6618 }
 0x396   : > { %v6740_v46 = vld [vmem:[#allocation4 + $0xa0] sm:$0xf]  ;;  %9358 = vmatmul.mubr.bf16.gmra.mxu0 %v10502_v49  ;;  %v8289_v48 = vshll.u32 %v15786_v21, 16  ;;  %v8675_v18 = vrot.slane %v8530_v44, 5  ;;  %7918 = vst.msk [vmem:[#allocation5 + $0xd0] sm:$0xf] %vm6682_vm4, %v7840_v20  ;;  %v11107_v60 = vpop.eup %11106  ;;  %v4809_v19 = vpop.f32.mrf.mxu1 }
 0x397   : > { %v11218_v8 = vld [vmem:[%s17129_s2] ss:$0 sm:$0xff]  ;;  %6829 = vrot.lane.b32.xlu1 %v6740_v46, %s11320_s28  ;;  %v8282_v51 = vsel %vm11585_vm15, %v8277_v35, %v8281_v50  ;;  %v8286_v21 = vor.u32 %v8285_v10, %v8281_v50  ;;  %6699 = vst.msk [vmem:[#allocation5 + $0xc0] sm:$0xf] %vm6682_vm4, %v6619_v12  ;;  %v15820_v5 = vrot.slane %v6194_v42, 4  ;;  %v8678_v22 = vrot.slane %v8531_v33, 5  ;;  %v15828_v10 = vpop.f32.mrf.mxu0 }
 0x398   : > { %v15813_v28 = vadd.f32 %v11218_v8, %v4807_v36  ;;  %8413 = vrot.lane.b32.xlu0 %v8282_v51, %s11320_s28  ;;  %v15822_v55 = vld [vmem:[#allocation4 + $0xac] sm:$0xf]  ;;  %v8676_v49 = vsel %vm11511_vm6, %v10476_v41, %v8675_v18  ;;  %v8677_v44 = vrot.slane %v8675_v18, 4  ;;  %v10631_v20 = vpack.c.bf16 %v5098_v62, %v5098_v62  ;;  %v7443_v50 = vld [vmem:[#allocation4 + $0xa8] sm:$0xe]  ;;  %17365 = vst [vmem:[#allocation35_spill] sm:$0xff] %v15828_v10  ;;  %v6814_v46 = vpop.permute.xlu1 %6813  ;;  %v4810_v12 = vpop.f32.mrf.mxu1 }
 0x399   : > { %v5067_v36 = vadd.f32 1.0, %v11107_v60  ;;  %8757 = vst.msk [vmem:[#allocation5 + $0x128] sm:$0xf] %vm17290_vm0, %v8676_v49  ;;  %v15832_v42 = vrot.slane %v17145_v58, 4  ;;  %v8287_v51 = vrot.slane %v8286_v21, 4  ;;  %v8291_v19 = vrot.slane %v8289_v48, 5  ;;  %v7838_v10 = vpop.permute.xlu0 %7837 }
 0x39a   : > { %v4876_v35 = vmul.f32 0.044715, %v15813_v28  ;;  %v8679_v18 = vsel %vm11511_vm6, %v8677_v44, %v8678_v22  ;;  %v7180_v41 = vrot.slane %v7179_v52, 4  ;;  %v15836_v33 = vld [vmem:[#allocation4 + $0x88] sm:$0xf]  ;;  %v5557_v62 = vshrl.u32 %v10631_v20, 16 }
 0x39b   : > { %v5099_v60 = vmul.f32 %v5067_v36, %v15762_v23  ;;  %6893 = vst.msk [vmem:[#allocation5 + $0xcc] sm:$0xf] %vm6875_vm10, %v6814_v46  ;;  %v7593_v58 = vrot.slane %v15822_v55, 5  ;;  %v15843_v21 = vld [vmem:[#allocation4 + $0xa4] sm:$0x1]  ;;  %v15845_v54 = vadd.f32 %v11218_v8, %v4810_v12  ;;  %v8292_v52 = vsel %vm11585_vm15, %v8287_v51, %v8291_v19  ;;  %v4812_v55 = vpop.f32.mrf.mxu1 }
 0x39c   : > { %v4908_v49 = vmul.f32 %v4876_v35, %v15813_v28  ;;  %8758 = vst.msk [vmem:[#allocation5 + $0x134] sm:$0xf] %vm17366_vm14, %v8679_v18  ;;  %v5781_v48 = vld [vmem:[#allocation4 + $0xa8] sm:$0xf]  ;;  %v17367_v23 = vsel %vm11585_vm15, %v15774_v57, %v15767_v24  ;;  %v10461_v44 = vrot.slane %v7443_v50, 9  ;;  %v7185_v22 = vsel %vm11585_vm15, %v7180_v41, %v15753_v4  ;;  %8415 = vrot.lane.b32.xlu1 %v8292_v52, %s11320_s28  ;;  %v15869_v57 = vpop.f32.mrf.mxu0  ;;  %vm17379_vm14 = vmmov %vm17290_vm0 }
 0x39d   : > { %7917 = vst.msk [vmem:[#allocation5 + $0xc4] sm:$0xf] %vm6682_vm4, %v7838_v10  ;;  %6301 = vrot.lane.b32.xlu0 %v17367_v23, %s11317_s20  ;;  %v5782_v8 = vld [vmem:[#allocation4 + $0xac] sm:$0xf]  ;;  %v5559_v36 = vrot.slane %v5557_v62, 7  ;;  %v5560_v35 = vshll.u32 %v10631_v20, 16  ;;  %v10632_v46 = vpack.c.bf16 %v5099_v60, %v5099_v60  ;;  %v6200_v4 = vsel %vm11585_vm15, %v15820_v5, %v15776_v56  ;;  %v8400_v62 = vpop.permute.xlu1 %8399  ;;  %v6812_v60 = vpop.permute.xlu0 %6811 }
 0x39e   : > { %5813 = vst.msk [vmem:[#allocation5 + $0x150] sm:$0xf] %vm17368_vm5, %v5781_v48  ;;  %v5739_v10 = vld [vmem:[#allocation4 + $0xb4] sm:$0xf]  ;;  %v4940_v12 = vmul.f32 %v4908_v49, %v15813_v28  ;;  %v7445_v51 = vld [vmem:[#allocation4 + $0xb0] sm:$0x1]  ;;  %v7594_v49 = vsel %vm11511_vm6, %v10461_v44, %v7593_v58  ;;  %vm17380_vm5 = vmmov %vm17290_vm0 }
 0x39f   : > { %7390 = vst.msk [vmem:[#allocation5 + $0xdc] sm:$0xf] %vm17369_vm3, %v7185_v22  ;;  %v4877_v24 = vmul.f32 0.044715, %v15845_v54  ;;  %17371 = vst [vmem:[#allocation36_spill] sm:$0xff] %v15869_v57  ;;  %v6570_v20 = vrot.slane %v15843_v21, 5  ;;  %v5562_v18 = vor.u32 %v5560_v35, %v5559_v36 }
 0x3a0   : > { %5814 = vst.msk [vmem:[#allocation5 + $0x15c] sm:$0xf] %vm17370_vm12, %v5782_v8  ;;  %v5859_v50 = vld [vmem:[#allocation4 + $0xa8] sm:$0xf]  ;;  %v7206_v19 = vshll.u32 %v15836_v33, 16  ;;  %v5565_v41 = vshrl.u32 %v10632_v46, 16  ;;  %v4972_v23 = vadd.f32 %v4940_v12, %v15813_v28  ;;  %6303 = vrot.lane.b32.xlu1 %v6200_v4, %s11317_s20  ;;  %vm17381_vm3 = vmmov %vm17290_vm0 }
 0x3a1   : > { %v7210_v48 = vshrl.u32 %v15836_v33, 16  ;;  %v5743_v52 = vld [vmem:[#allocation4 + $0xbc] sm:$0x1]  ;;  %v4909_v56 = vmul.f32 %v4877_v24, %v15845_v54  ;;  %8478 = vst.msk [vmem:[#allocation5 + $0xd0] sm:$0xf] %vm6875_vm10, %v8400_v62  ;;  %7664 = vrot.lane.b32.xlu0 %v7594_v49, %s11317_s20  ;;  %v7595_v5 = vrot.slane %v7593_v58, 4  ;;  %v5740_v55 = vsel %vm13344_vm8, %v5562_v18, %v5739_v10  ;;  %v6288_v4 = vpop.permute.xlu1 %6287  ;;  %vm17382_vm12 = vmmov %vm17290_vm0 }
 0x3a2   : > { %6892 = vst.msk [vmem:[#allocation5 + $0xc0] sm:$0xf] %vm6875_vm10, %v6812_v60  ;;  %v7596_v21 = vrot.slane %v7445_v51, 5  ;;  %v5567_v22 = vrot.slane %v5565_v41, 7  ;;  %v5568_v44 = vshll.u32 %v10632_v46, 16  ;;  %v6202_v8 = vshrl.u32 %v5859_v50, 16  ;;  %v15891_v51 = vpop.f32.mrf.mxu0  ;;  %v8398_v41 = vpop.permute.xlu0 %8397 }
 0x3a3   : > { %v5860_v33 = vld [vmem:[#allocation4 + $0xac] sm:$0xf]  ;;  %5741 = vst [vmem:[#allocation4 + $0xb4] sm:$0xf] %v5740_v55  ;;  %v5004_v35 = vmul.f32 0.7978846, %v4972_v23  ;;  %v4941_v12 = vmul.f32 %v4909_v56, %v15845_v54 }
 0x3a4   : > { %v11025_v24 = vld [vmem:[#allocation5 + $0x128] ss:$12 sps:$4 sm:$0xff]   ;;  %v17372_v62 = vrot.slane %v15778_v45, 5  ;;  %v17373_v60 = vrot.slane %v15771_v3, 9  ;;  %17374 = vst [vmem:[#allocation37_spill] sm:$0xff] %v15891_v51  ;;  %v5563_v10 = vrot.slane %v5559_v36, 4  ;;  %v5570_v46 = vor.u32 %v5568_v44, %v5567_v22 }
 0x3a5   : > { %v5572_v18 = vrot.slane %v5567_v22, 4  ;;  %v6205_v49 = vshll.u32 %v5859_v50, 16  ;;  %11108 = vtanh.f32 %v5004_v35  ;;  %v4973_v23 = vadd.f32 %v4941_v12, %v15845_v54  ;;  %10850 = vmatprep.mubr.msk.bf16.mxu1 %vm9220_vm9, %v11025_v24  ;;  %6365 = vst.msk [vmem:[#allocation5 + $0xe4] sm:$0xf] %vm6345_vm1, %v6288_v4  ;;  %v6940_v45 = vld [vmem:[#allocation4 + $0x8c] sm:$0x1]  ;;  %v15914_v35 = vpop.f32.mrf.mxu0  ;;  %v7651_v24 = vpop.permute.xlu1 %7650 }
 0x3a6   : > { %v6568_v58 = vsel %vm11511_vm6, %v17373_v60, %v17372_v62  ;;  %8477 = vst.msk [vmem:[#allocation5 + $0xc4] sm:$0xf] %vm6875_vm10, %v8398_v41  ;;  %v7597_v3 = vsel %vm11511_vm6, %v7595_v5, %v7596_v21  ;;  %v15900_v36 = vrot.slane %v7206_v19, 5  ;;  %v6938_v56 = vld [vmem:[#allocation4 + $0x84] sm:$0xf]  ;;  %v5571_v50 = vsel %vm11542_vm13, %v5563_v10, %v5570_v46  ;;  %17376 = vst [vmem:[#allocation38_spill] sm:$0xff] %v15914_v35 }
 0x3a7   : > { %6638 = vrot.lane.b32.xlu0 %v6568_v58, %s11322_s14  ;;  %v5744_v55 = vsel %vm12717_vm2, %v5572_v18, %v5743_v52  ;;  %7666 = vrot.lane.b32.xlu1 %v7597_v3, %s11317_s20  ;;  %v6211_v22 = vshll.u32 %v5860_v33, 16  ;;  %v6215_v44 = vshrl.u32 %v5860_v33, 16  ;;  %5742 = vst.msk [vmem:[#allocation4 + $0xb8] sm:$0xf] %vm17375_vm7, %v5571_v50  ;;  %v15909_v5 = vmul.f32 0.5, %v15813_v28  ;;  %v6286_v52 = vpop.permute.xlu0 %6285  ;;  %v15926_v4 = vpop.f32.mrf.mxu0  ;;  %vm17383_vm7 = vmmov %vm17290_vm0 }
 0x3a8   : > { %5745 = vst [vmem:[#allocation4 + $0xbc] sm:$0x1] %v5744_v55  ;;  %v5005_v21 = vmul.f32 0.7978846, %v4973_v23  ;;  %v6571_v19 = vsel %vm11511_vm6, %v15832_v42, %v6570_v20  ;;  %v7212_v12 = vrot.slane %v7210_v48, 4  ;;  %v6204_v62 = vrot.slane %v6202_v8, 4 }
 0x3a9   : > { %v6207_v60 = vrot.slane %v6205_v49, 5  ;;  %v5861_v58 = vld [vmem:[#allocation4 + $0xb0] sm:$0x1]  ;;  %v7216_v33 = vshll.u32 %v6940_v45, 16  ;;  %v7197_v10 = vshrl.u32 %v6938_v56, 16  ;;  %v15917_v46 = vmul.f32 0.5, %v15845_v54  ;;  %v6625_v45 = vpop.permute.xlu1 %6624 }
 0x3aa   : > { %11110 = vtanh.f32 %v5005_v21  ;;  %7727 = vst.msk [vmem:[#allocation5 + $0xe8] sm:$0xf] %vm6345_vm1, %v7651_v24  ;;  %6364 = vst.msk [vmem:[#allocation5 + $0xd8] sm:$0xf] %vm6345_vm1, %v6286_v52  ;;  %v7213_v28 = vor.u32 %v7212_v12, %v15900_v36  ;;  %v7200_v42 = vshll.u32 %v6938_v56, 16  ;;  %v15923_v8 = vrot.slane %v6211_v22, 5 }
 0x3ab   : > { %6640 = vrot.lane.b32.xlu1 %v6571_v19, %s11322_s14  ;;  %v7767_v20 = vld [vmem:[#allocation4 + $0xb4] sm:$0xf]  ;;  %v6217_v18 = vrot.slane %v6215_v44, 4  ;;  %17377 = vst [vmem:[#allocation39_spill] sm:$0xff] %v15926_v4  ;;  %v6221_v49 = vshll.u32 %v5861_v58, 16  ;;  %v7649_v50 = vpop.permute.xlu0 %7648  ;;  %v8799_v55 = vld [vmem:[#allocation5 + $0xcc] sm:$0xff]  ;;  %v6208_v12 = vor.u32 %v6207_v60, %v6204_v62  ;;  %v10669_v60 = vpop.f32.mrf.mxu0 }
 0x3ac   : > { %v7972_v48 = vld [vmem:[#allocation4 + $0xb4] sm:$0xf]  ;;  %7857 = vrot.lane.b32.xlu0 %v7767_v20, %s11322_s14  ;;  %v15928_v23 = vld [vmem:[#allocation4 + $0xac] sm:$0xf]  ;;  %v7214_v3 = vrot.slane %v7213_v28, 4  ;;  %v7218_v22 = vrot.slane %v7216_v33, 5 }
 0x3ad   : > { %v8294_v54 = vshrl.u32 %v7972_v48, 16  ;;  %v8297_v41 = vshll.u32 %v7972_v48, 16  ;;  %v8797_v56 = vld [vmem:[#allocation5 + $0xc0] sm:$0xff]  ;;  %v6741_v19 = vld [vmem:[#allocation4 + $0xa8] sm:$0xf]  ;;  %v7199_v24 = vrot.slane %v7197_v10, 4  ;;  %v6218_v51 = vor.u32 %v6217_v18, %v15923_v8 }
 0x3ae   : > { %v11026_v21 = vld [vmem:[#allocation5 + $0xc4] ss:$12 sps:$4 sm:$0xff]   ;;  %6702 = vst.msk [vmem:[#allocation5 + $0xe4] sm:$0xf] %vm6682_vm4, %v6625_v45  ;;  %v10505_v44 = vcombine.low %v8797_v56, %v8799_v55  ;;  %v7202_v48 = vrot.slane %v7200_v42, 5  ;;  %v7219_v62 = vsel %vm11585_vm15, %v7214_v3, %v7218_v22  ;;  %v15943_v18 = vrot.slane %v6221_v49, 5 }
 0x3af   : > { %7726 = vst.msk [vmem:[#allocation5 + $0xdc] sm:$0xf] %vm6345_vm1, %v7649_v50  ;;  %v8296_v52 = vrot.slane %v8294_v54, 4  ;;  %v8299_v20 = vrot.slane %v8297_v41, 5  ;;  %v15932_v58 = vld [vmem:[#allocation4 + $0xa8] sm:$0xe]  ;;  %9365 = vmatprep.mubr.bf16.mxu0 %v11026_v21  ;;  %v6623_v45 = vpop.permute.xlu0 %6622  ;;  %v7844_v21 = vpop.permute.xlu1 %7843 }
 0x3b0   : > { %v7768_v28 = vld [vmem:[#allocation4 + $0xb8] sm:$0xf]  ;;  %v7974_v35 = vld [vmem:[#allocation4 + $0xbc] sm:$0x1]  ;;  %6831 = vrot.lane.b32.xlu0 %v6741_v19, %s11320_s28  ;;  %v8532_v41 = vld [vmem:[#allocation4 + $0xb4] sm:$0xe]  ;;  %9366 = vmatmul.mubr.bf16.gmra.mxu0 %v10505_v44  ;;  %v7203_v55 = vor.u32 %v7202_v48, %v7199_v24  ;;  %v10670_v19 = vpop.f32.mrf.mxu0 }
 0x3b1   : > { %v7973_v4 = vld [vmem:[#allocation4 + $0xb8] sm:$0xf]  ;;  %7859 = vrot.lane.b32.xlu1 %v7768_v28, %s11322_s14  ;;  %v8300_v33 = vor.u32 %v8299_v20, %v8296_v52  ;;  %7393 = vst.msk [vmem:[#allocation5 + $0x100] sm:$0xf] %vm17290_vm0, %v7219_v62  ;;  %v15941_v50 = vrot.slane %v6208_v12, 4  ;;  %v8313_v20 = vshll.u32 %v7974_v35, 16  ;;  %v15948_v12 = vadd.f32 %v10670_v19, %v10669_v60 }
 0x3b2   : > { %v8303_v10 = vshll.u32 %v7973_v4, 16  ;;  %v8307_v54 = vshrl.u32 %v7973_v4, 16  ;;  %v8533_v3 = vld [vmem:[#allocation4 + $0xb8] sm:$0xf]  ;;  %6701 = vst.msk [vmem:[#allocation5 + $0xd8] sm:$0xf] %vm6682_vm4, %v6623_v45  ;;  %v11109_v62 = vpop.eup %11108  ;;  %v10672_v48 = vpop.f32.mrf.mxu0 }
 0x3b3   : > { %v8301_v4 = vrot.slane %v8300_v33, 4  ;;  %v8534_v28 = vld [vmem:[#allocation4 + $0xbc] sm:$0x1]  ;;  %7920 = vst.msk [vmem:[#allocation5 + $0xe8] sm:$0xf] %vm6682_vm4, %v7844_v21  ;;  %v15950_v44 = vrot.slane %v6218_v51, 4  ;;  %v7842_v60 = vpop.permute.xlu0 %7841 }
 0x3b4   : > { %v8305_v22 = vrot.slane %v8303_v10, 5  ;;  %v8309_v52 = vrot.slane %v8307_v54, 4  ;;  %v6742_v49 = vld [vmem:[#allocation4 + $0xac] sm:$0xf]  ;;  %v10477_v42 = vrot.slane %v8532_v41, 9  ;;  %v8682_v56 = vrot.slane %v8533_v3, 5 }
 0x3b5   : > { %v5068_v24 = vadd.f32 1.0, %v11109_v62  ;;  %6833 = vrot.lane.b32.xlu1 %v6742_v49, %s11320_s28  ;;  %v7447_v35 = vld [vmem:[#allocation4 + $0xb8] sm:$0xf]  ;;  %v17378_v54 = vrot.slane %v15928_v23, 5  ;;  %v7446_v51 = vld [vmem:[#allocation4 + $0xb4] sm:$0xe] }
 0x3b6   : > { %v8306_v33 = vsel %vm11585_vm15, %v8301_v4, %v8305_v22  ;;  %v8310_v10 = vor.u32 %v8309_v52, %v8305_v22  ;;  %v8683_v41 = vsel %vm11511_vm6, %v10477_v42, %v8682_v56  ;;  %v8684_v3 = vrot.slane %v8682_v56, 4  ;;  %v15962_v62 = vld [vmem:[#allocation4 + $0x90] sm:$0xf]  ;;  %7919 = vst.msk [vmem:[#allocation5 + $0xdc] sm:$0xf] %vm6682_vm4, %v7842_v60  ;;  %v6818_v22 = vpop.permute.xlu1 %6817  ;;  %v10673_v52 = vpop.f32.mrf.mxu0 }
 0x3b7   : > { %v15957_v45 = vrot.slane %v17378_v54, 4  ;;  %8417 = vrot.lane.b32.xlu0 %v8306_v33, %s11320_s28  ;;  %v8685_v21 = vrot.slane %v8534_v28, 5  ;;  %v7204_v19 = vrot.slane %v7203_v55, 4  ;;  %v5100_v4 = vmul.f32 %v5068_v24, %v15909_v5  ;;  %8759 = vst.msk [vmem:[#allocation5 + $0x140] sm:$0xf] %vm17379_vm14, %v8683_v41  ;;  %v11111_v55 = vpop.eup %11110  ;;  %vm17391_vm14 = vmmov %vm17290_vm0 }
 0x3b8   : > { %v8311_v49 = vrot.slane %v8310_v10, 4  ;;  %v8315_v54 = vrot.slane %v8313_v20, 5  ;;  %v6214_v33 = vsel %vm11585_vm15, %v15941_v50, %v15923_v8  ;;  %v5862_v42 = vld [vmem:[#allocation4 + $0xb4] sm:$0xf]  ;;  %v5863_v56 = vld [vmem:[#allocation4 + $0xb8] sm:$0xf]  ;;  %v15972_v28 = vadd.f32 %v10673_v52, %v10672_v48 }
 0x3b9   : > { %6895 = vst.msk [vmem:[#allocation5 + $0xe4] sm:$0xf] %vm6875_vm10, %v6818_v22  ;;  %v7600_v5 = vrot.slane %v7447_v35, 5  ;;  %v8686_v24 = vsel %vm11511_vm6, %v8684_v3, %v8685_v21  ;;  %v7448_v10 = vld [vmem:[#allocation4 + $0xbc] sm:$0x1]  ;;  %v7209_v20 = vsel %vm11585_vm15, %v7204_v19, %v15900_v36  ;;  %v10633_v8 = vpack.c.bf16 %v5100_v4, %v5100_v4  ;;  %v6816_v21 = vpop.permute.xlu0 %6815 }
 0x3ba   : > { %v15979_v60 = vld [vmem:[#allocation4 + $0xb0] sm:$0x1]  ;;  %v5069_v50 = vadd.f32 1.0, %v11111_v55  ;;  %v8316_v41 = vsel %vm11585_vm15, %v8311_v49, %v8315_v54  ;;  %v6224_v48 = vsel %vm11585_vm15, %v15950_v44, %v15943_v18  ;;  %8760 = vst.msk [vmem:[#allocation5 + $0x14c] sm:$0xf] %vm17380_vm5, %v8686_v24  ;;  %v10462_v36 = vrot.slane %v7446_v51, 9  ;;  %v8404_v55 = vpop.permute.xlu1 %8403  ;;  %vm17393_vm5 = vmmov %vm17290_vm0 }
 0x3bb   : > { %7392 = vst.msk [vmem:[#allocation5 + $0xf4] sm:$0xf] %vm17381_vm3, %v7209_v20  ;;  %v5783_v35 = vld [vmem:[#allocation4 + $0xb4] sm:$0xf]  ;;  %v5784_v3 = vld [vmem:[#allocation4 + $0xb8] sm:$0xf]  ;;  %8419 = vrot.lane.b32.xlu1 %v8316_v41, %s11320_s28  ;;  %6305 = vrot.lane.b32.xlu0 %v6214_v33, %s11317_s20  ;;  %vm17394_vm3 = vmmov %vm17290_vm0 }
 0x3bc   : > { %v6226_v19 = vshrl.u32 %v5862_v42, 16  ;;  %v6229_v4 = vshll.u32 %v5862_v42, 16  ;;  %v6235_v22 = vshll.u32 %v5863_v56, 16  ;;  %5815 = vst.msk [vmem:[#allocation5 + $0x168] sm:$0xf] %vm17382_vm12, %v5783_v35  ;;  %v5574_v18 = vshrl.u32 %v10633_v8, 16  ;;  %vm17395_vm12 = vmmov %vm17290_vm0 }
 0x3bd   : > { %5816 = vst.msk [vmem:[#allocation5 + $0x174] sm:$0xf] %vm17383_vm7, %v5784_v3  ;;  %v5101_v44 = vmul.f32 %v5069_v50, %v15917_v46  ;;  %v6577_v52 = vrot.slane %v15979_v60, 5  ;;  %v6942_v49 = vld [vmem:[#allocation4 + $0x94] sm:$0xf]  ;;  %v7221_v54 = vshrl.u32 %v15962_v62, 16  ;;  %v7601_v51 = vsel %vm11511_vm6, %v10462_v36, %v7600_v5  ;;  %v8402_v50 = vpop.permute.xlu0 %8401  ;;  %vm17396_vm7 = vmmov %vm17290_vm0 }
 0x3be   : > { %6894 = vst.msk [vmem:[#allocation5 + $0xd8] sm:$0xf] %vm6875_vm10, %v6816_v21  ;;  %v7602_v33 = vrot.slane %v7600_v5, 4  ;;  %v7603_v42 = vrot.slane %v7448_v10, 5  ;;  %v6239_v24 = vshrl.u32 %v5863_v56, 16  ;;  %v5576_v20 = vrot.slane %v5574_v18, 7  ;;  %v6292_v57 = vpop.permute.xlu1 %6291 }
 0x3bf   : > { %v5577_v41 = vshll.u32 %v10633_v8, 16  ;;  %v5746_v35 = vld [vmem:[#allocation4 + $0xc0] sm:$0xf]  ;;  %v10634_v3 = vpack.c.bf16 %v5101_v44, %v5101_v44  ;;  %8480 = vst.msk [vmem:[#allocation5 + $0xe8] sm:$0xf] %vm6875_vm10, %v8404_v55  ;;  %v7224_v46 = vshll.u32 %v15962_v62, 16  ;;  %6307 = vrot.lane.b32.xlu1 %v6224_v48, %s11317_s20  ;;  %7668 = vrot.lane.b32.xlu0 %v7601_v51, %s11317_s20 }
 0x3c0   : > { %v16003_v60 = vrot.slane %v6226_v19, 4  ;;  %v16005_v21 = vrot.slane %v6229_v4, 5  ;;  %v16007_v5 = vrot.slane %v6235_v22, 5  ;;  %v7230_v56 = vshll.u32 %v6942_v49, 16  ;;  %8479 = vst.msk [vmem:[#allocation5 + $0xdc] sm:$0xf] %vm6875_vm10, %v8402_v50 }
 0x3c1   : > { %v5579_v10 = vor.u32 %v5577_v41, %v5576_v20  ;;  %v5582_v8 = vshrl.u32 %v10634_v3, 16  ;;  %v16010_v36 = vld [vmem:[#allocation4 + $0xbc] sm:$0x1]  ;;  %v7223_v18 = vrot.slane %v7221_v54, 4  ;;  %v7234_v62 = vshrl.u32 %v6942_v49, 16 }
 0x3c2   : > { %v6943_v44 = vld [vmem:[#allocation4 + $0x98] sm:$0x1]  ;;  %v5585_v55 = vshll.u32 %v10634_v3, 16  ;;  %v7604_v19 = vsel %vm11511_vm6, %v7602_v33, %v7603_v42  ;;  %v16014_v4 = vrot.slane %v6239_v24, 4  ;;  %6367 = vst.msk [vmem:[#allocation5 + $0xfc] sm:$0xf] %vm6345_vm1, %v6292_v57  ;;  %v6290_v3 = vpop.permute.xlu0 %6289  ;;  %v6578_v57 = vsel %vm11511_vm6, %v15957_v45, %v6577_v52 }
 0x3c3   : > { %v11028_v48 = vld [vmem:[#allocation5 + $0x140] ss:$12 sps:$4 sm:$0xff]   ;;  %v5747_v22 = vsel %vm13344_vm8, %v5579_v10, %v5746_v35  ;;  %v5584_v51 = vrot.slane %v5582_v8, 7  ;;  %v7226_v41 = vrot.slane %v7224_v46, 5  ;;  %v7232_v50 = vrot.slane %v7230_v56, 5  ;;  %7670 = vrot.lane.b32.xlu1 %v7604_v19, %s11317_s20  ;;  %vm17386_vm8 = vmmov %vm17290_vm0 }
 0x3c4   : > { %v16019_v30 = vld [vmem:[#allocation4 + $0xb8] sm:$0xf]  ;;  %v5580_v49 = vrot.slane %v5576_v20, 4  ;;  %5748 = vst [vmem:[#allocation4 + $0xc0] sm:$0xf] %v5747_v22  ;;  %10851 = vmatmul.mubr.msk.bf16.gmra.mxu1 %vm9220_vm9, %v11028_v48  ;;  %v17384_v33 = vrot.slane %v15928_v23, 5  ;;  %v6232_v8 = vor.u32 %v16005_v21, %v16003_v60  ;;  %v6242_v48 = vor.u32 %v16014_v4, %v16007_v5 }
 0x3c5   : > { %v5750_v54 = vld [vmem:[#allocation4 + $0xc8] sm:$0x1]  ;;  %v17385_v59 = vrot.slane %v15932_v58, 9  ;;  %v6245_v24 = vshll.u32 %v16010_v36, 16  ;;  %v5587_v20 = vor.u32 %v5585_v55, %v5584_v51  ;;  %v5589_v35 = vrot.slane %v5584_v51, 4  ;;  %v7655_v58 = vpop.permute.xlu1 %7654 }
 0x3c6   : > { %6366 = vst.msk [vmem:[#allocation5 + $0xf0] sm:$0xf] %vm6345_vm1, %v6290_v3  ;;  %v7227_v46 = vor.u32 %v7226_v41, %v7223_v18  ;;  %v7236_v56 = vrot.slane %v7234_v62, 4  ;;  %v5164_v23 = vld [vmem:[#allocation4 + $0xcc] sm:$0x1]  ;;  %v6581_v45 = vrot.slane %v16019_v30, 5  ;;  %v7653_v60 = vpop.permute.xlu0 %7652 }
 0x3c7   : > { %v6575_v42 = vsel %vm11511_vm6, %v17385_v59, %v17384_v33  ;;  %v7979_v10 = vld [vmem:[#allocation4 + $0xd0] sm:$0xf]  ;;  %v7240_v52 = vshll.u32 %v6943_v44, 16  ;;  %v5588_v36 = vsel %vm11542_vm13, %v5580_v49, %v5587_v20  ;;  %v5751_v55 = vsel %vm12717_vm2, %v5589_v35, %v5750_v54  ;;  %7729 = vst.msk [vmem:[#allocation5 + $0x100] sm:$0xf] %vm6345_vm1, %v7655_v58  ;;  %v8803_v18 = vld [vmem:[#allocation5 + $0xe4] sm:$0xff]  ;;  %6644 = vrot.lane.b32.xlu1 %v6578_v57, %s11322_s14  ;;  %vm17387_vm13 = vmmov %vm17290_vm0 }
 0x3c8   : > { %6642 = vrot.lane.b32.xlu0 %v6575_v42, %s11322_s14  ;;  %v7228_v62 = vrot.slane %v7227_v46, 4  ;;  %v7237_v19 = vor.u32 %v7236_v56, %v7232_v50  ;;  %v5219_v22 = vld [vmem:[#allocation4 + $0xd4] sm:$0x1]  ;;  %v6944_v51 = vld [vmem:[#allocation4 + $0x9c] sm:$0xf]  ;;  %v5165_v4 = vsel %vm12717_vm2, 0, %v5164_v23  ;;  %vm17388_vm2 = vmmov %vm17290_vm0 }
 0x3c9   : > { %5749 = vst.msk [vmem:[#allocation4 + $0xc4] sm:$0xf] %vm17386_vm8, %v5588_v36  ;;  %5752 = vst [vmem:[#allocation4 + $0xc8] sm:$0x1] %v5751_v55  ;;  %v8801_v21 = vld [vmem:[#allocation5 + $0xd8] sm:$0xff]  ;;  %v7242_v27 = vrot.slane %v7240_v52, 5  ;;  %v6629_v42 = vpop.permute.xlu1 %6628 }
 0x3ca   : > { %v11029_v44 = vld [vmem:[#allocation5 + $0xdc] ss:$12 sps:$4 sm:$0xff]   ;;  %v8351_v41 = vshll.u32 %v7979_v10, 16  ;;  %7728 = vst.msk [vmem:[#allocation5 + $0xf4] sm:$0xf] %vm6345_vm1, %v7653_v60  ;;  %v10508_v49 = vcombine.low %v8801_v21, %v8803_v18  ;;  %v7233_v54 = vsel %vm11585_vm15, %v7228_v62, %v7232_v50  ;;  %v7238_v33 = vrot.slane %v7237_v19, 4  ;;  %v10675_v50 = vpop.f32.mrf.mxu0  ;;  %v6627_v0 = vpop.permute.xlu0 %6626  ;;  %vm17397_vm8 = vmmov %vm17290_vm0 }
 0x3cb   : > { %v6423_v3 = vld [vmem:[#allocation4 + $0xb4] sm:$0xe]  ;;  %5166 = vst [vmem:[#allocation4 + $0xcc] sm:$0x1] %v5165_v4  ;;  %v8355_v59 = vshrl.u32 %v7979_v10, 16  ;;  %9373 = vmatprep.mubr.bf16.mxu0 %v11029_v44  ;;  %v16052_v57 = vrot.slane %v6245_v24, 5 }
 0x3cc   : > { %7394 = vst.msk [vmem:[#allocation5 + $0x10c] sm:$0xf] %vm17387_vm13, %v7233_v54  ;;  %v6425_v20 = vld [vmem:[#allocation4 + $0xbc] sm:$0x1]  ;;  %v5220_v13 = vsel %vm12738_vm11, 0, %v5219_v22  ;;  %v7245_v35 = vshrl.u32 %v6944_v51, 16  ;;  %9374 = vmatmul.mubr.bf16.gmra.mxu0 %v10508_v49  ;;  %v7243_v24 = vsel %vm11585_vm15, %v7238_v33, %v7242_v27  ;;  %vm17389_vm11 = vmmov %vm17290_vm0 }
 0x3cd   : > { %v7248_v46 = vshll.u32 %v6944_v51, 16  ;;  %6704 = vst.msk [vmem:[#allocation5 + $0xfc] sm:$0xf] %vm6682_vm4, %v6629_v42  ;;  %v7769_v56 = vld [vmem:[#allocation4 + $0xc0] sm:$0xf]  ;;  %v16058_v58 = vrot.slane %v6232_v8, 4  ;;  %v10676_v8 = vpop.f32.mrf.mxu0  ;;  %vm17398_vm13 = vmmov %vm17290_vm0 }
 0x3ce   : > { %v7975_v23 = vld [vmem:[#allocation4 + $0xc0] sm:$0xf]  ;;  %v16060_v10 = vrot.slane %v6242_v48, 4  ;;  %5221 = vst [vmem:[#allocation4 + $0xd4] sm:$0x1] %v5220_v13  ;;  %7861 = vrot.lane.b32.xlu0 %v7769_v56, %s11322_s14  ;;  %v10447_v55 = vrot.slane %v6423_v3, 9  ;;  %v16071_v60 = vadd.f32 %v10676_v8, %v10675_v50 }
 0x3cf   : > { %v8318_v52 = vshrl.u32 %v7975_v23, 16  ;;  %v8321_v36 = vshll.u32 %v7975_v23, 16  ;;  %7395 = vst.msk [vmem:[#allocation5 + $0x118] sm:$0xf] %vm17388_vm2, %v7243_v24  ;;  %v6583_v18 = vrot.slane %v6581_v45, 4  ;;  %v16069_v62 = vrot.slane %v8351_v41, 5  ;;  %v10678_v3 = vpop.f32.mrf.mxu0  ;;  %vm17399_vm2 = vmmov %vm17290_vm0 }
 0x3d0   : > { %6703 = vst.msk [vmem:[#allocation5 + $0xf0] sm:$0xf] %vm6682_vm4, %v6627_v0  ;;  %v6743_v48 = vld [vmem:[#allocation4 + $0xb4] sm:$0xf]  ;;  %v8357_v19 = vrot.slane %v8355_v59, 4  ;;  %v7247_v22 = vrot.slane %v7245_v35, 4 }
 0x3d1   : > { %v7250_v51 = vrot.slane %v7248_v46, 5  ;;  %v8320_v21 = vrot.slane %v8318_v52, 4  ;;  %v8323_v44 = vrot.slane %v8321_v36, 5  ;;  %v16073_v27 = vld [vmem:[#allocation4 + $0xc0] sm:$0xe]  ;;  %v6584_v4 = vrot.slane %v6425_v20, 5  ;;  %v7846_v20 = vpop.permute.xlu0 %7845  ;;  %v10679_v23 = vpop.f32.mrf.mxu0 }
 0x3d2   : > { %v16075_v49 = vld [vmem:[#allocation4 + $0xa0] sm:$0xf]  ;;  %v7770_v54 = vld [vmem:[#allocation4 + $0xc4] sm:$0xf]  ;;  %v7977_v42 = vld [vmem:[#allocation4 + $0xc8] sm:$0x1]  ;;  %6835 = vrot.lane.b32.xlu0 %v6743_v48, %s11320_s28  ;;  %v16092_v36 = vsel %vm11511_vm6, %v10447_v55, %v6581_v45  ;;  %v8358_v48 = vor.u32 %v8357_v19, %v16069_v62 }
 0x3d3   : > { %v7976_v33 = vld [vmem:[#allocation4 + $0xc4] sm:$0xf]  ;;  %7863 = vrot.lane.b32.xlu1 %v7770_v54, %s11322_s14  ;;  %v8324_v13 = vor.u32 %v8323_v44, %v8320_v21  ;;  %v8337_v56 = vshll.u32 %v7977_v42, 16  ;;  %v8535_v50 = vld [vmem:[#allocation4 + $0xc0] sm:$0xe]  ;;  %v16096_v8 = vsel %vm11511_vm6, %v6583_v18, %v6584_v4  ;;  %v7251_v21 = vor.u32 %v7250_v51, %v7247_v22  ;;  %v7848_v44 = vpop.permute.xlu1 %7847 }
 0x3d4   : > { %v8327_v35 = vshll.u32 %v7976_v33, 16  ;;  %v8331_v46 = vshrl.u32 %v7976_v33, 16  ;;  %7921 = vst.msk [vmem:[#allocation5 + $0xf4] sm:$0xf] %vm6682_vm4, %v7846_v20  ;;  %v7450_v24 = vld [vmem:[#allocation4 + $0xc4] sm:$0xf]  ;;  %v16099_v54 = vadd.f32 %v10679_v23, %v10678_v3 }
 0x3d5   : > { %v8536_v0 = vld [vmem:[#allocation4 + $0xc4] sm:$0xf]  ;;  %v8537_v52 = vld [vmem:[#allocation4 + $0xc8] sm:$0x1]  ;;  %v8325_v33 = vrot.slane %v8324_v13, 4  ;;  %v10463_v59 = vrot.slane %v16073_v27, 9  ;;  %v6820_v18 = vpop.permute.xlu0 %6819 }
 0x3d6   : > { %v8329_v42 = vrot.slane %v8327_v35, 5  ;;  %v8333_v20 = vrot.slane %v8331_v46, 4  ;;  %7922 = vst.msk [vmem:[#allocation5 + $0x100] sm:$0xf] %vm6682_vm4, %v7848_v44  ;;  %v6744_v30 = vld [vmem:[#allocation4 + $0xb8] sm:$0xf] }
 0x3d7   : > { %v10478_v45 = vrot.slane %v8535_v50, 9  ;;  %v8689_v55 = vrot.slane %v8536_v0, 5  ;;  %v7254_v41 = vshll.u32 %v16075_v49, 16  ;;  %6837 = vrot.lane.b32.xlu1 %v6744_v30, %s11320_s28  ;;  %v7607_v51 = vrot.slane %v7450_v24, 5  ;;  %v7978_v3 = vld [vmem:[#allocation4 + $0xcc] sm:$0xf]  ;;  %v6822_v0 = vpop.permute.xlu1 %6821 }
 0x3d8   : > { %v8330_v19 = vsel %vm11585_vm15, %v8325_v33, %v8329_v42  ;;  %v8334_v22 = vor.u32 %v8333_v20, %v8329_v42  ;;  %v8692_v4 = vrot.slane %v8537_v52, 5  ;;  %v6946_v13 = vld [vmem:[#allocation4 + $0xa4] sm:$0x1]  ;;  %6896 = vst.msk [vmem:[#allocation5 + $0xf0] sm:$0xf] %vm6875_vm10, %v6820_v18  ;;  %v8342_v46 = vshrl.u32 %v7978_v3, 16 }
 0x3d9   : > { %8421 = vrot.lane.b32.xlu0 %v8330_v19, %s11320_s28  ;;  %v8690_v27 = vsel %vm11511_vm6, %v10478_v45, %v8689_v55  ;;  %v8691_v35 = vrot.slane %v8689_v55, 4  ;;  %v8345_v50 = vshll.u32 %v7978_v3, 16  ;;  %v6947_v23 = vld [vmem:[#allocation4 + $0xa8] sm:$0xf]  ;;  %v8339_v30 = vrot.slane %v8337_v56, 5  ;;  %v8406_v19 = vpop.permute.xlu0 %8405 }
 0x3da   : > { %v8335_v44 = vrot.slane %v8334_v22, 4  ;;  %8761 = vst.msk [vmem:[#allocation5 + $0x158] sm:$0xf] %vm17389_vm11, %v8690_v27  ;;  %v16112_v24 = vrot.slane %v8358_v48, 4  ;;  %v7252_v52 = vrot.slane %v7251_v21, 4  ;;  %v8344_v45 = vrot.slane %v8342_v46, 4  ;;  %vm17400_vm11 = vmmov %vm17290_vm0 }
 0x3db   : > { %v6948_v33 = vld [vmem:[#allocation4 + $0xac] sm:$0xf]  ;;  %6897 = vst.msk [vmem:[#allocation5 + $0xfc] sm:$0xf] %vm6875_vm10, %v6822_v0  ;;  %v8693_v42 = vsel %vm11511_vm6, %v8691_v35, %v8692_v4  ;;  %v7451_v20 = vld [vmem:[#allocation4 + $0xc8] sm:$0x1]  ;;  %v7608_v56 = vsel %vm11511_vm6, %v10463_v59, %v7607_v51 }
 0x3dc   : > { %v8347_v55 = vrot.slane %v8345_v50, 5  ;;  %v7256_v18 = vrot.slane %v7254_v41, 5  ;;  %v8340_v22 = vsel %vm11585_vm15, %v8335_v44, %v8339_v30  ;;  %8762 = vst.msk [vmem:[#allocation5 + $0x164] sm:$0xf] %vm17290_vm0, %v8693_v42  ;;  %v7609_v48 = vrot.slane %v7607_v51, 4 }
 0x3dd   : > { %v16122_v21 = vld [vmem:[#allocation4 + $0xd4] sm:$0x1]  ;;  %v7258_v3 = vshrl.u32 %v16075_v49, 16  ;;  %v6949_v27 = vld [vmem:[#allocation4 + $0xb0] sm:$0x1]  ;;  %8423 = vrot.lane.b32.xlu1 %v8340_v22, %s11320_s28  ;;  %v17390_v41 = vsel %vm11585_vm15, %v16058_v58, %v16007_v5  ;;  %v7264_v51 = vshll.u32 %v6946_v13, 16  ;;  %v8408_v58 = vpop.permute.xlu1 %8407 }
 0x3de   : > { %8481 = vst.msk [vmem:[#allocation5 + $0xf4] sm:$0xf] %vm6875_vm10, %v8406_v19  ;;  %6309 = vrot.lane.b32.xlu0 %v17390_v41, %s11317_s20  ;;  %v7257_v59 = vsel %vm11585_vm15, %v7252_v52, %v7256_v18  ;;  %v7269_v4 = vshrl.u32 %v6947_v23, 16  ;;  %v7272_v35 = vshll.u32 %v6947_v23, 16  ;;  %v6950_v46 = vld [vmem:[#allocation4 + $0xb4] sm:$0xf]  ;;  %v8348_v50 = vor.u32 %v8347_v55, %v8344_v45  ;;  %v6294_v41 = vpop.permute.xlu0 %6293 }
 0x3df   : > { %v7610_v49 = vrot.slane %v7451_v20, 5  ;;  %7396 = vst.msk [vmem:[#allocation5 + $0x124] sm:$0xf] %vm17391_vm14, %v7257_v59  ;;  %v7260_v0 = vrot.slane %v7258_v3, 4  ;;  %v7278_v44 = vshll.u32 %v6948_v33, 16  ;;  %v8361_v30 = vshll.u32 %v16122_v21, 16  ;;  %vm17401_vm14 = vmmov %vm17290_vm0 }
 0x3e0   : > { %v7271_v42 = vrot.slane %v7269_v4, 4  ;;  %v7274_v19 = vrot.slane %v7272_v35, 5  ;;  %v7282_v22 = vshrl.u32 %v6948_v33, 16  ;;  %v6951_v5 = vld [vmem:[#allocation4 + $0xb8] sm:$0xf]  ;;  %v7288_v13 = vshll.u32 %v6949_v27, 16 }
 0x3e1   : > { %v7261_v26 = vor.u32 %v7260_v0, %v7256_v18  ;;  %v7280_v52 = vrot.slane %v7278_v44, 5  ;;  %v7293_v40 = vshrl.u32 %v6950_v46, 16  ;;  %v6953_v23 = vld [vmem:[#allocation4 + $0xc0] sm:$0xf]  ;;  %8482 = vst.msk [vmem:[#allocation5 + $0x100] sm:$0xf] %vm6875_vm10, %v8408_v58  ;;  %v17392_v20 = vsel %vm11585_vm15, %v16060_v10, %v16052_v57 }
 0x3e2   : > { %6368 = vst.msk [vmem:[#allocation5 + $0x108] sm:$0xf] %vm6345_vm1, %v6294_v41  ;;  %6311 = vrot.lane.b32.xlu1 %v17392_v20, %s11317_s20  ;;  %7672 = vrot.lane.b32.xlu0 %v7608_v56, %s11317_s20  ;;  %v7266_v33 = vrot.slane %v7264_v51, 5  ;;  %v7275_v45 = vor.u32 %v7274_v19, %v7271_v42  ;;  %v7284_v55 = vrot.slane %v7282_v22, 4  ;;  %v7296_v18 = vshll.u32 %v6950_v46, 16  ;;  %v6296_v56 = vpop.permute.xlu1 %6295  ;;  %v7657_v51 = vpop.permute.xlu0 %7656 }
 0x3e3   : > { %v16146_v3 = vld [vmem:[#allocation4 + $0xbc] sm:$0x1]  ;;  %v16148_v27 = vrot.slane %v8348_v50, 4  ;;  %v7262_v59 = vrot.slane %v7261_v26, 4  ;;  %v7295_v4 = vrot.slane %v7293_v40, 4  ;;  %v7302_v35 = vshll.u32 %v6951_v5, 16 }
 0x3e4   : > { %v6954_v0 = vld [vmem:[#allocation4 + $0xc4] sm:$0xf]  ;;  %v11031_v44 = vld [vmem:[#allocation5 + $0x158] ss:$12 sps:$4 sm:$0xff]   ;;  %v7611_v58 = vsel %vm11511_vm6, %v7609_v48, %v7610_v49  ;;  %v7276_v57 = vrot.slane %v7275_v45, 4  ;;  %v7285_v10 = vor.u32 %v7284_v55, %v7280_v52  ;;  %v7298_v41 = vrot.slane %v7296_v18, 5 }
 0x3e5   : > { %v7267_v46 = vsel %vm11585_vm15, %v7262_v59, %v7266_v33  ;;  %v7290_v42 = vrot.slane %v7288_v13, 5  ;;  %v7304_v19 = vrot.slane %v7302_v35, 5  ;;  %v7306_v50 = vshrl.u32 %v6951_v5, 16  ;;  %10854 = vmatprep.mubr.msk.bf16.mxu1 %vm9220_vm9, %v11031_v44  ;;  %6369 = vst.msk [vmem:[#allocation5 + $0x114] sm:$0xf] %vm6345_vm1, %v6296_v56  ;;  %v10681_v59 = vpop.f32.mrf.mxu0 }
 0x3e6   : > { %7730 = vst.msk [vmem:[#allocation5 + $0x10c] sm:$0xf] %vm6345_vm1, %v7657_v51  ;;  %7674 = vrot.lane.b32.xlu1 %v7611_v58, %s11317_s20  ;;  %v7771_v40 = vld [vmem:[#allocation4 + $0xcc] sm:$0xf]  ;;  %v7281_v26 = vsel %vm11585_vm15, %v7276_v57, %v7280_v52  ;;  %v7286_v48 = vrot.slane %v7285_v10, 4  ;;  %v7299_v49 = vor.u32 %v7298_v41, %v7295_v4  ;;  %v7317_v22 = vshrl.u32 %v6953_v23, 16  ;;  %6646 = vrot.lane.b32.xlu0 %v16092_v36, %s11322_s14  ;;  %v7659_v10 = vpop.permute.xlu1 %7658  ;;  %v6631_v36 = vpop.permute.xlu0 %6630 }
 0x3e7   : > { %7397 = vst.msk [vmem:[#allocation5 + $0x130] sm:$0xf] %vm17393_vm5, %v7267_v46  ;;  %v16161_v13 = vld [vmem:[#allocation4 + $0xc8] sm:$0x1]  ;;  %v16163_v5 = vld [vmem:[#allocation4 + $0xcc] sm:$0xe]  ;;  %vm17402_vm5 = vmmov %vm17290_vm0 }
 0x3e8   : > { %7398 = vst.msk [vmem:[#allocation5 + $0x13c] sm:$0xf] %vm17394_vm3, %v7281_v26  ;;  %v7308_v20 = vrot.slane %v7306_v50, 4  ;;  %v7312_v33 = vshll.u32 %v16146_v3, 16  ;;  %v7320_v45 = vshll.u32 %v6953_v23, 16  ;;  %v7326_v55 = vshll.u32 %v6954_v0, 16  ;;  %vm17403_vm3 = vmmov %vm17290_vm0 }
 0x3e9   : > { %v8539_v18 = vld [vmem:[#allocation4 + $0xd0] sm:$0xf]  ;;  %v8805_v52 = vld [vmem:[#allocation5 + $0xf0] sm:$0xff]  ;;  %v7291_v4 = vsel %vm11585_vm15, %v7286_v48, %v7290_v42  ;;  %v7300_v35 = vrot.slane %v7299_v49, 4  ;;  %v7319_v44 = vrot.slane %v7317_v22, 4  ;;  %v7330_v58 = vshrl.u32 %v6954_v0, 16  ;;  %v10682_v0 = vpop.f32.mrf.mxu0 }
 0x3ea   : > { %v16171_v57 = vld [vmem:[#allocation4 + $0xd4] sm:$0x1]  ;;  %v11032_v56 = vld [vmem:[#allocation5 + $0xf4] ss:$12 sps:$4 sm:$0xff]   ;;  %7399 = vst.msk [vmem:[#allocation5 + $0x148] sm:$0xf] %vm17395_vm12, %v7291_v4  ;;  %v7309_v3 = vor.u32 %v7308_v20, %v7304_v19  ;;  %6648 = vrot.lane.b32.xlu1 %v16096_v8, %s11322_s14  ;;  %7865 = vrot.lane.b32.xlu0 %v7771_v40, %s11322_s14  ;;  %v7850_v21 = vpop.permute.xlu0 %7849  ;;  %vm17404_vm12 = vmmov %vm17290_vm0 }
 0x3eb   : > { %v8807_v41 = vld [vmem:[#allocation5 + $0xfc] sm:$0xff]  ;;  %v7322_v23 = vrot.slane %v7320_v45, 5  ;;  %v7328_v51 = vrot.slane %v7326_v55, 5  ;;  %v7336_v46 = vshll.u32 %v16161_v13, 16  ;;  %7731 = vst.msk [vmem:[#allocation5 + $0x118] sm:$0xf] %vm6345_vm1, %v7659_v10  ;;  %v7305_v50 = vsel %vm11585_vm15, %v7300_v35, %v7304_v19  ;;  %9381 = vmatprep.mubr.bf16.mxu0 %v11032_v56  ;;  %v10684_v4 = vpop.f32.mrf.mxu0 }
 0x3ec   : > { %6705 = vst.msk [vmem:[#allocation5 + $0x108] sm:$0xf] %vm6682_vm4, %v6631_v36  ;;  %v10511_v42 = vcombine.low %v8805_v52, %v8807_v41  ;;  %v7332_v26 = vrot.slane %v7330_v58, 4  ;;  %v10479_v48 = vrot.slane %v16163_v5, 9  ;;  %v8493_v49 = vld [vmem:[#allocation4 + $0x18] sm:$0xe]  ;;  %v16183_v13 = vadd.f32 %v10682_v0, %v10681_v59  ;;  %v6633_v59 = vpop.permute.xlu1 %6632 }
 0x3ed   : > { %v8494_v22 = vld [vmem:[#allocation4 + $0x1c] sm:$0xf]  ;;  %v7772_v20 = vld [vmem:[#allocation4 + $0xd0] sm:$0xf]  ;;  %7400 = vst.msk [vmem:[#allocation5 + $0x154] sm:$0xf] %vm17396_vm7, %v7305_v50  ;;  %v7323_v55 = vor.u32 %v7322_v23, %v7319_v44 }
 0x3ee   : > { %v7310_v45 = vrot.slane %v7309_v3, 4  ;;  %v7314_v8 = vrot.slane %v7312_v33, 5  ;;  %v8495_v52 = vld [vmem:[#allocation4 + $0x20] sm:$0x1]  ;;  %9382 = vmatmul.mubr.bf16.gmra.mxu0 %v10511_v42  ;;  %v8363_v19 = vrot.slane %v8361_v30, 5  ;;  %v7333_v5 = vor.u32 %v7332_v26, %v7328_v51  ;;  %7867 = vrot.lane.b32.xlu1 %v7772_v20, %s11322_s14  ;;  %v10685_v30 = vpop.f32.mrf.mxu0  ;;  %s11253_s20 = scalar_lea.vmem %s11252_s27, 8192 }
 0x3ef   : > { %v8696_v35 = vrot.slane %v8539_v18, 5  ;;  %v8699_v58 = vrot.slane %v16171_v57, 5  ;;  %v8496_v40 = vld [vmem:[#allocation4 + $0x24] sm:$0xe]  ;;  %v7324_v36 = vrot.slane %v7323_v55, 4  ;;  %v10464_v41 = vrot.slane %v8493_v49, 9  ;;  %p11255_p7 = scmp.lt.s32.totalorder %s11253_s20, %s11247_s26 }
 0x3f0   : > { %v7315_v10 = vsel %vm11585_vm15, %v7310_v45, %v7314_v8  ;;  %v8591_v56 = vrot.slane %v8494_v22, 5  ;;  %v8497_v33 = vld [vmem:[#allocation4 + $0x28] sm:$0xf]  ;;  %6706 = vst.msk [vmem:[#allocation5 + $0x114] sm:$0xf] %vm6682_vm4, %v6633_v59  ;;  %v7334_v18 = vrot.slane %v7333_v5, 4  ;;  %v16198_v0 = vadd.f32 %v10685_v30, %v10684_v4  ;;  %v7852_v45 = vpop.permute.xlu1 %7851  ;;  %v6824_v8 = vpop.permute.xlu0 %6823 }
 0x3f1   : > { %v6745_v44 = vld [vmem:[#allocation4 + $0xc0] sm:$0xf]  ;;  %7401 = vst.msk [vmem:[#allocation5 + $0x160] sm:$0xf] %vm17397_vm8, %v7315_v10  ;;  %v7338_v57 = vrot.slane %v7336_v46, 5  ;;  %v8697_v3 = vsel %vm11511_vm6, %v10479_v48, %v8696_v35  ;;  %v8698_v23 = vrot.slane %v8696_v35, 4  ;;  %v8354_v42 = vsel %vm11585_vm15, %v16148_v27, %v16069_v62  ;;  %p11256_p8 = por %p11255_p7, %p11254_p5 }
 0x3f2   : > { %6839 = vrot.lane.b32.xlu0 %v6745_v44, %s11320_s28  ;;  %7923 = vst.msk [vmem:[#allocation5 + $0x10c] sm:$0xf] %vm6682_vm4, %v7850_v21  ;;  %v7329_v50 = vsel %vm11585_vm15, %v7324_v36, %v7328_v51  ;;  %v8592_v46 = vsel %vm11511_vm6, %v10464_v41, %v8591_v56  ;;  %v8593_v49 = vrot.slane %v8591_v56, 4  ;;  %v8594_v22 = vrot.slane %v8495_v52, 5  ;;  %v8498_v62 = vld [vmem:[#allocation4 + $0x2c] sm:$0x1]  ;;  %v10687_v36 = vpop.f32.mrf.mxu0 }
 0x3f3   : > { %8763 = vst.msk [vmem:[#allocation5 + $0x170] sm:$0xf] %vm17398_vm13, %v8697_v3  ;;  %v7339_v26 = vsel %vm11585_vm15, %v7334_v18, %v7338_v57  ;;  %v8700_v48 = vsel %vm11511_vm6, %v8698_v23, %v8699_v58  ;;  %v6746_v27 = vld [vmem:[#allocation4 + $0xc4] sm:$0xf]  ;;  %v10465_v51 = vrot.slane %v8496_v40, 9  ;;  %v8598_v20 = vrot.slane %v8497_v33, 5  ;;  %p11257_p10 = pnand %p11256_p8, %p11250_p4 }
 0x3f4   : > { %7402 = vst.msk [vmem:[#allocation5 + $0x16c] sm:$0xf] %vm17399_vm2, %v7329_v50  ;;  %6841 = vrot.lane.b32.xlu1 %v6746_v27, %s11320_s28  ;;  %v8595_v55 = vsel %vm11511_vm6, %v8593_v49, %v8594_v22  ;;  %v8364_v52 = vsel %vm11585_vm15, %v16112_v24, %v8363_v19  ;;  %v8601_v35 = vrot.slane %v8498_v62, 5  ;;  %v6826_v40 = vpop.permute.xlu1 %6825  ;;  %v8410_v9 = vpop.permute.xlu0 %8409 }
 0x3f5   : > { %8733 = vst.msk [vmem:[#allocation5 + $0x8] sm:$0xf] %vm17400_vm11, %v8592_v46  ;;  %v8599_v4 = vsel %vm11511_vm6, %v10465_v51, %v8598_v20  ;;  %v8600_v5 = vrot.slane %v8598_v20, 4  ;;  %v10688_v41 = vpop.f32.mrf.mxu0 }
 0x3f6   : > { %7403 = vst.msk [vmem:[#allocation5 + $0x178] sm:$0xf] %vm17290_vm0, %v7339_v26  ;;  %8425 = vrot.lane.b32.xlu0 %v8354_v42, %s11320_s28  ;;  %v16241_v30 = vadd.f32 %v10688_v41, %v10687_v36 }
 0x3f7   : > { %8764 = vst.msk [vmem:[#allocation5 + $0x17c] sm:$0xf] %vm17401_vm14, %v8700_v48  ;;  %v8602_v58 = vsel %vm11511_vm6, %v8600_v5, %v8601_v35  ;;  %v10690_v3 = vpop.f32.mrf.mxu0  ;;  %vm11325_vm6 = vmmov 0  }
 0x3f8   : > { %7924 = vst.msk [vmem:[#allocation5 + $0x118] sm:$0xf] %vm6682_vm4, %v7852_v45  ;;  %8427 = vrot.lane.b32.xlu1 %v8364_v52, %s11320_s28  ;;  %v8412_v19 = vpop.permute.xlu1 %8411  ;;  %v6298_v59 = vpop.permute.xlu0 %6297 }
 0x3f9   : > { %6898 = vst.msk [vmem:[#allocation5 + $0x108] sm:$0xf] %vm6875_vm10, %v6824_v8  ;;  %6899 = vst.msk [vmem:[#allocation5 + $0x114] sm:$0xf] %vm6875_vm10, %v6826_v40  ;;  %v10691_v23 = vpop.f32.mrf.mxu0 }
 0x3fa   : > { %8734 = vst.msk [vmem:[#allocation5 + $0x14] sm:$0xf] %vm17402_vm5, %v8595_v55  ;;  %v16245_v50 = vadd.f32 %v10691_v23, %v10690_v3 }
 0x3fb   : > { %8735 = vst.msk [vmem:[#allocation5 + $0x20] sm:$0xf] %vm17403_vm3, %v8599_v4 }
 0x3fc   : > { %8736 = vst.msk [vmem:[#allocation5 + $0x2c] sm:$0xf] %vm17404_vm12, %v8602_v58  ;;  %v6300_v1 = vpop.permute.xlu1 %6299  ;;  %v7661_v10 = vpop.permute.xlu0 %7660 }
 0x3fd   : > { %8483 = vst.msk [vmem:[#allocation5 + $0x10c] sm:$0xf] %vm6875_vm10, %v8410_v9  ;;  %8484 = vst.msk [vmem:[#allocation5 + $0x118] sm:$0xf] %vm6875_vm10, %v8412_v19 }
 0x3fe   : > { %v11042_v24 = vld [vmem:[#allocation5 + $0x170] ss:$12 sps:$4 sm:$0xff]   ;;  %6370 = vst.msk [vmem:[#allocation5 + $0x120] sm:$0xf] %vm6345_vm1, %v6298_v59  ;;  %6371 = vst.msk [vmem:[#allocation5 + $0x12c] sm:$0xf] %vm6345_vm1, %v6300_v1 }
 0x3ff   : > { %10855 = vmatmul.mubr.msk.bf16.gmra.mxu1 %vm9220_vm9, %v11042_v24  ;;  %7732 = vst.msk [vmem:[#allocation5 + $0x124] sm:$0xf] %vm6345_vm1, %v7661_v10 }
 0x400   : > { %v7663_v56 = vpop.permute.xlu1 %7662  ;;  %v6635_v18 = vpop.permute.xlu0 %6634 }
 0x401   : > { %7733 = vst.msk [vmem:[#allocation5 + $0x130] sm:$0xf] %vm6345_vm1, %v7663_v56 }
 0x402   : > { %6707 = vst.msk [vmem:[#allocation5 + $0x120] sm:$0xf] %vm6682_vm4, %v6635_v18 }
 0x404   : > { %v8809_v33 = vld [vmem:[#allocation5 + $0x108] sm:$0xff]  ;;  %v8811_v44 = vld [vmem:[#allocation5 + $0x114] sm:$0xff]  ;;  %v6637_v42 = vpop.permute.xlu1 %6636  ;;  %v7854_v46 = vpop.permute.xlu0 %7853 }
 0x405   : > { %v11034_v21 = vld [vmem:[#allocation5 + $0x10c] ss:$12 sps:$4 sm:$0xff]   ;;  %v10514_v57 = vcombine.low %v8809_v33, %v8811_v44  ;;  %6708 = vst.msk [vmem:[#allocation5 + $0x12c] sm:$0xf] %vm6682_vm4, %v6637_v42  ;;  %7925 = vst.msk [vmem:[#allocation5 + $0x124] sm:$0xf] %vm6682_vm4, %v7854_v46  ;;  %v10693_v51 = vpop.f32.mrf.mxu0 }
 0x406   : > { %9389 = vmatprep.mubr.bf16.mxu0 %v11034_v21 }
 0x407   : > { %9390 = vmatmul.mubr.bf16.gmra.mxu0 %v10514_v57  ;;  %v10694_v20 = vpop.f32.mrf.mxu0 }
 0x408   : > { %v7856_v26 = vpop.permute.xlu1 %7855  ;;  %v6828_v48 = vpop.permute.xlu0 %6827  ;;  %v16255_v45 = vadd.f32 %v10694_v20, %v10693_v51 }
 0x409   : > { %7926 = vst.msk [vmem:[#allocation5 + $0x130] sm:$0xf] %vm6682_vm4, %v7856_v26  ;;  %v10696_v52 = vpop.f32.mrf.mxu0 }
 0x40a   : > { %6900 = vst.msk [vmem:[#allocation5 + $0x120] sm:$0xf] %vm6875_vm10, %v6828_v48 }
 0x40b   : > { %v10697_v4 = vpop.f32.mrf.mxu0 }
 0x40c   : > { %v6830_v49 = vpop.permute.xlu1 %6829  ;;  %v8414_v22 = vpop.permute.xlu0 %8413  ;;  %v16259_v5 = vadd.f32 %v10697_v4, %v10696_v52 }
 0x40d   : > { %6901 = vst.msk [vmem:[#allocation5 + $0x12c] sm:$0xf] %vm6875_vm10, %v6830_v49  ;;  %8485 = vst.msk [vmem:[#allocation5 + $0x124] sm:$0xf] %vm6875_vm10, %v8414_v22 }
 0x410   : > { %v6302_v62 = vpop.permute.xlu0 %6301  ;;  %v8416_v27 = vpop.permute.xlu1 %8415 }
 0x411   : > { %6372 = vst.msk [vmem:[#allocation5 + $0x138] sm:$0xf] %vm6345_vm1, %v6302_v62 }
 0x412   : > { %8486 = vst.msk [vmem:[#allocation5 + $0x130] sm:$0xf] %vm6875_vm10, %v8416_v27 }
 0x414   : > { %v7665_v8 = vpop.permute.xlu0 %7664  ;;  %v6304_v55 = vpop.permute.xlu1 %6303  ;;  %v8813_v40 = vld [vmem:[#allocation5 + $0x120] sm:$0xff] }
 0x415   : > { %7734 = vst.msk [vmem:[#allocation5 + $0x13c] sm:$0xf] %vm6345_vm1, %v7665_v8  ;;  %6373 = vst.msk [vmem:[#allocation5 + $0x144] sm:$0xf] %vm6345_vm1, %v6304_v55 }
 0x419   : > { %v6639_v35 = vpop.permute.xlu0 %6638  ;;  %v7667_v58 = vpop.permute.xlu1 %7666  ;;  %v8815_v9 = vld [vmem:[#allocation5 + $0x12c] sm:$0xff] }
 0x41a   : > { %6709 = vst.msk [vmem:[#allocation5 + $0x138] sm:$0xf] %vm6682_vm4, %v6639_v35  ;;  %v11036_v24 = vld [vmem:[#allocation5 + $0x124] ss:$12 sps:$4 sm:$0xff]   ;;  %v10517_v19 = vcombine.low %v8813_v40, %v8815_v9 }
 0x41b   : > { %7735 = vst.msk [vmem:[#allocation5 + $0x148] sm:$0xf] %vm6345_vm1, %v7667_v58  ;;  %9397 = vmatprep.mubr.bf16.mxu0 %v11036_v24 }
 0x41c   : > { %9398 = vmatmul.mubr.bf16.gmra.mxu0 %v10517_v19 }
 0x41d   : > { %v6641_v59 = vpop.permute.xlu1 %6640 }
 0x41e   : > { %6710 = vst.msk [vmem:[#allocation5 + $0x144] sm:$0xf] %vm6682_vm4, %v6641_v59  ;;  %v7858_v1 = vpop.permute.xlu0 %7857 }
 0x41f   : > { %7927 = vst.msk [vmem:[#allocation5 + $0x13c] sm:$0xf] %vm6682_vm4, %v7858_v1 }
 0x420   : > { %v10699_v33 = vpop.f32.mrf.mxu0 }
 0x422   : > { %v6832_v36 = vpop.permute.xlu0 %6831  ;;  %v10700_v44 = vpop.f32.mrf.mxu0 }
 0x423   : > { %v7860_v10 = vpop.permute.xlu1 %7859  ;;  %6902 = vst.msk [vmem:[#allocation5 + $0x138] sm:$0xf] %vm6875_vm10, %v6832_v36  ;;  %v16269_v18 = vadd.f32 %v10700_v44, %v10699_v33 }
 0x424   : > { %7928 = vst.msk [vmem:[#allocation5 + $0x148] sm:$0xf] %vm6682_vm4, %v7860_v10  ;;  %v10702_v3 = vpop.f32.mrf.mxu0 }
 0x426   : > { %v10703_v23 = vpop.f32.mrf.mxu0 }
 0x427   : > { %v6834_v41 = vpop.permute.xlu1 %6833  ;;  %v16273_v46 = vadd.f32 %v10703_v23, %v10702_v3 }
 0x428   : > { %6903 = vst.msk [vmem:[#allocation5 + $0x144] sm:$0xf] %vm6875_vm10, %v6834_v41 }
 0x429   : > { %v8418_v56 = vpop.permute.xlu0 %8417 }
 0x42a   : > { %8487 = vst.msk [vmem:[#allocation5 + $0x13c] sm:$0xf] %vm6875_vm10, %v8418_v56 }
 0x42d   : > { %v8420_v21 = vpop.permute.xlu1 %8419  ;;  %v6306_v57 = vpop.permute.xlu0 %6305 }
 0x42e   : > { %8488 = vst.msk [vmem:[#allocation5 + $0x148] sm:$0xf] %vm6875_vm10, %v8420_v21 }
 0x42f   : > { %6374 = vst.msk [vmem:[#allocation5 + $0x150] sm:$0xf] %vm6345_vm1, %v6306_v57 }
 0x431   : > { %v6308_v42 = vpop.permute.xlu1 %6307  ;;  %v7669_v26 = vpop.permute.xlu0 %7668  ;;  %v8817_v49 = vld [vmem:[#allocation5 + $0x138] sm:$0xff] }
 0x432   : > { %6375 = vst.msk [vmem:[#allocation5 + $0x15c] sm:$0xf] %vm6345_vm1, %v6308_v42  ;;  %7736 = vst.msk [vmem:[#allocation5 + $0x154] sm:$0xf] %vm6345_vm1, %v7669_v26 }
 0x435   : > { %v7671_v48 = vpop.permute.xlu1 %7670  ;;  %v8819_v22 = vld [vmem:[#allocation5 + $0x144] sm:$0xff] }
 0x436   : > { %v11038_v62 = vld [vmem:[#allocation5 + $0x13c] ss:$12 sps:$4 sm:$0xff]   ;;  %7737 = vst.msk [vmem:[#allocation5 + $0x160] sm:$0xf] %vm6345_vm1, %v7671_v48  ;;  %v10520_v51 = vcombine.low %v8817_v49, %v8819_v22 }
 0x437   : > { %9405 = vmatprep.mubr.bf16.mxu0 %v11038_v62 }
 0x438   : > { %9406 = vmatmul.mubr.bf16.gmra.mxu0 %v10520_v51 }
 0x439   : > { %v6645_v20 = vpop.permute.xlu1 %6644 }
 0x43a   : > { %v6643_v27 = vpop.permute.xlu0 %6642  ;;  %6712 = vst.msk [vmem:[#allocation5 + $0x15c] sm:$0xf] %vm6682_vm4, %v6645_v20 }
 0x43b   : > { %6711 = vst.msk [vmem:[#allocation5 + $0x150] sm:$0xf] %vm6682_vm4, %v6643_v27  ;;  %v10705_v4 = vpop.f32.mrf.mxu0 }
 0x43d   : > { %v10706_v35 = vpop.f32.mrf.mxu0 }
 0x43e   : > { %v16283_v40 = vadd.f32 %v10706_v35, %v10705_v4 }
 0x43f   : > { %v10708_v24 = vpop.f32.mrf.mxu0 }
 0x440   : > { %v7862_v8 = vpop.permute.xlu0 %7861 }
 0x441   : > { %7929 = vst.msk [vmem:[#allocation5 + $0x154] sm:$0xf] %vm6682_vm4, %v7862_v8  ;;  %v10709_v19 = vpop.f32.mrf.mxu0 }
 0x442   : > { %v16287_v59 = vadd.f32 %v10709_v19, %v10708_v24  ;;  %v11047_v24 = vld [vmem:[#allocation5 + $0x20] ss:$12 sps:$4 sm:$0xff]  }
 0x444   : > { %v6836_v52 = vpop.permute.xlu0 %6835 }
 0x445   : > { %v7864_v55 = vpop.permute.xlu1 %7863  ;;  %6904 = vst.msk [vmem:[#allocation5 + $0x150] sm:$0xf] %vm6875_vm10, %v6836_v52 }
 0x446   : > { %7930 = vst.msk [vmem:[#allocation5 + $0x160] sm:$0xf] %vm6682_vm4, %v7864_v55 }
 0x449   : > { %v6838_v58 = vpop.permute.xlu1 %6837 }
 0x44a   : > { %6905 = vst.msk [vmem:[#allocation5 + $0x15c] sm:$0xf] %vm6875_vm10, %v6838_v58  ;;  %v11046_v58 = vld [vmem:[#allocation5 + $0x8] ss:$12 sps:$4 sm:$0xff]  }
 0x44b   : > { %v8422_v9 = vpop.permute.xlu0 %8421 }
 0x44c   : > { %8489 = vst.msk [vmem:[#allocation5 + $0x154] sm:$0xf] %vm6875_vm10, %v8422_v9 }
 0x44f   : > { %v8424_v1 = vpop.permute.xlu1 %8423 }
 0x450   : > { %v6310_v10 = vpop.permute.xlu0 %6309  ;;  %8490 = vst.msk [vmem:[#allocation5 + $0x160] sm:$0xf] %vm6875_vm10, %v8424_v1 }
 0x451   : > { %6376 = vst.msk [vmem:[#allocation5 + $0x168] sm:$0xf] %vm6345_vm1, %v6310_v10 }
 0x453   : > { %v8821_v33 = vld [vmem:[#allocation5 + $0x150] sm:$0xff] }
 0x454   : > { %v6312_v36 = vpop.permute.xlu1 %6311  ;;  %v7673_v41 = vpop.permute.xlu0 %7672 }
 0x455   : > { %6377 = vst.msk [vmem:[#allocation5 + $0x174] sm:$0xf] %vm6345_vm1, %v6312_v36  ;;  %7738 = vst.msk [vmem:[#allocation5 + $0x16c] sm:$0xf] %vm6345_vm1, %v7673_v41 }
 0x456   : > { %v10711_v48 = vpop.f32.mrf.mxu0 }
 0x457   : > { %v8823_v44 = vld [vmem:[#allocation5 + $0x15c] sm:$0xff] }
 0x458   : > { %v7675_v56 = vpop.permute.xlu1 %7674  ;;  %v11040_v21 = vld [vmem:[#allocation5 + $0x154] ss:$12 sps:$4 sm:$0xff]   ;;  %v6647_v57 = vpop.permute.xlu0 %6646  ;;  %v10523_v3 = vcombine.low %v8821_v33, %v8823_v44 }
 0x459   : > { %7739 = vst.msk [vmem:[#allocation5 + $0x178] sm:$0xf] %vm6345_vm1, %v7675_v56  ;;  %9413 = vmatprep.mubr.bf16.mxu0 %v11040_v21  ;;  %v10712_v22 = vpop.f32.mrf.mxu0 }
 0x45a   : > { %6713 = vst.msk [vmem:[#allocation5 + $0x168] sm:$0xf] %vm6682_vm4, %v6647_v57  ;;  %9414 = vmatmul.mubr.bf16.gmra.mxu0 %v10523_v3  ;;  %v16299_v62 = vadd.f32 %v10712_v22, %v10711_v48 }
 0x45b   : > { %v10714_v51 = vpop.f32.mrf.mxu0 }
 0x45c   : > { %v6649_v23 = vpop.permute.xlu1 %6648  ;;  %v7866_v42 = vpop.permute.xlu0 %7865 }
 0x45d   : > { %6714 = vst.msk [vmem:[#allocation5 + $0x174] sm:$0xf] %vm6682_vm4, %v6649_v23  ;;  %7931 = vst.msk [vmem:[#allocation5 + $0x16c] sm:$0xf] %vm6682_vm4, %v7866_v42  ;;  %v10715_v8 = vpop.f32.mrf.mxu0 }
 0x45e   : > { %v16303_v55 = vadd.f32 %v10715_v8, %v10714_v51 }
 0x460   : > { %v7868_v26 = vpop.permute.xlu1 %7867 }
 0x461   : > { %7932 = vst.msk [vmem:[#allocation5 + $0x178] sm:$0xf] %vm6682_vm4, %v7868_v26 }
 0x464   : > { %v6840_v49 = vpop.permute.xlu0 %6839 }
 0x465   : > { %6906 = vst.msk [vmem:[#allocation5 + $0x168] sm:$0xf] %vm6875_vm10, %v6840_v49 }
 0x466   : > { %v6842_v27 = vpop.permute.xlu1 %6841 }
 0x467   : > { %6907 = vst.msk [vmem:[#allocation5 + $0x174] sm:$0xf] %vm6875_vm10, %v6842_v27 }
 0x468   : > { %v8426_v20 = vpop.permute.xlu0 %8425 }
 0x469   : > { %8491 = vst.msk [vmem:[#allocation5 + $0x16c] sm:$0xf] %vm6875_vm10, %v8426_v20 }
 0x46a   : > { %v8428_v52 = vpop.permute.xlu1 %8427 }
 0x46b   : > { %8492 = vst.msk [vmem:[#allocation5 + $0x178] sm:$0xf] %vm6875_vm10, %v8428_v52 }
 0x46e   : > { %v11045_v35 = vld [vmem:[#allocation5 + $0x168] ss:$12 sps:$4 sm:$0xff]  }
 0x470   : > { %v10717_v9 = vpop.f32.mrf.mxu0 }
 0x472   : > { %v11043_v4 = vld [vmem:[#allocation5 + $0x16c] ss:$12 sps:$4 sm:$0xff]   ;;  %v10718_v19 = vpop.f32.mrf.mxu0 }
 0x473   : > { %9421 = vmatprep.mubr.bf16.mxu0 %v11043_v4  ;;  %v16308_v1 = vadd.f32 %v10718_v19, %v10717_v9  ;;  %v9664_v19 = vld [vmem:[%s17132_s5 + $0x18] sm:$0xff] }
 0x474   : > { %9422 = vmatmul.mubr.bf16.gmra.mxu0 %v11045_v35  ;;  %v10720_v10 = vpop.f32.mrf.mxu0 }
 0x475   : > { %10826 = vmatprep.mubr.msk.bf16.mxu0 %vm9220_vm9, %v11046_v58 }
 0x476   : > { %v10721_v36 = vpop.f32.mrf.mxu0 }
 0x477   : > { %v16310_v41 = vadd.f32 %v10721_v36, %v10720_v10  ;;  %v11324_v36 = vmov 0.0  }
 0x478   : > { %10858 = vmatprep.subr.mxu0 %v11324_v36 }
 0x47c   : > { %10827 = vmatmul.mubr.msk.bf16.vlgmr.msra.gmra.mxu0 %vm9220_vm9, %v11047_v24 }
 0x47d   : > { %10866 = vmatprep.mubr.msk.f32.mxu0 %vm11325_vm6, %v11324_v36  ;;  %10859 = vmatpush3.msra.mxu0 %v9664_v19 }
 0x47e   : > { %10860 = vmatprep.subr.mxu0 %v11324_v36 }
 0x48c   : > { %v10723_v56 = vpop.f32.mrf.mxu0 }
 0x48e   : > { %v10724_v33 = vpop.f32.mrf.mxu0 }
 0x48f   : > { %v16312_v44 = vadd.f32 %v10724_v33, %v10723_v56  ;;  %v9663_v56 = vld [vmem:[%s17132_s5 + $0x10] sm:$0xff] }
 0x490   : > { %v10726_v21 = vpop.f32.mrf.mxu0  ;;  %10861 = vmatpush3.msra.mxu0 %v9663_v56 }
 0x491   : > { %10862 = vmatprep.subr.mxu0 %v11324_v36 }
 0x492   : > { %v10727_v57 = vpop.f32.mrf.mxu0 }
 0x493   : > { %v16314_v3 = vadd.f32 %v10727_v57, %v10726_v21  ;;  %v9662_v21 = vld [vmem:[%s17132_s5 + $0x8] sm:$0xff]  ;;  %v9661_v57 = vld [vmem:[%s17132_s5] sm:$0xff] }
 0x494   : > { %10863 = vmatpush3.msra.mxu0 %v9662_v21 }
 0x495   : > { %10864 = vmatprep.subr.mxu0 %v11324_v36 }
 0x496   : > { %10865 = vmatpush3.msra.mxu0 %v9661_v57 }
 0x4ae   : > { %v10729_v23 = vpop.f32.mrf.mxu0 }
 0x4b0   : > { %v10730_v42 = vpop.f32.mrf.mxu0 }
 0x4b1   : > { %v16316_v26 = vadd.f32 %v10730_v42, %v10729_v23 }
 0x4b2   : > { %v10732_v48 = vpop.f32.mrf.mxu0 }
 0x4b4   : > { %v10733_v49 = vpop.f32.mrf.mxu0 }
 0x4b5   : > { %v16318_v22 = vadd.f32 %v10733_v49, %v10732_v48 }
 0x4c7   : > { %v10735_v27 = vpop.f32.mrf.mxu0 }
 0x4c9   : > { %v10736_v51 = vpop.f32.mrf.mxu0 }
 0x4ca   : > { %v16320_v20 = vadd.f32 %v10736_v51, %v10735_v27 }
 0x4cb   : > { %v10738_v8 = vpop.f32.mrf.mxu0 }
 0x4cd   : > { %v10739_v52 = vpop.f32.mrf.mxu0 }
 0x4ce   : > { %v16322_v4 = vadd.f32 %v10739_v52, %v10738_v8  ;;  %v10832_v8 = vpop.f32.mrf.mxu1 }
 0x4d0   : > { %v9480_v52 = vpop.f32.mrf.mxu1 }
 0x4dc   : > { %v10741_v35 = vpop.f32.mrf.mxu0 }
 0x4de   : > { %v10742_v58 = vpop.f32.mrf.mxu0 }
 0x4df   : > { %v16324_v9 = vadd.f32 %v10742_v58, %v10741_v35  ;;  %v10833_v35 = vpop.f32.mrf.mxu1 }
 0x4e0   : > { %v10744_v24 = vpop.f32.mrf.mxu0 }
 0x4e2   : > { %v10745_v10 = vpop.f32.mrf.mxu0 }
 0x4e3   : > { %v16332_v33 = vadd.f32 %v10745_v10, %v10744_v24  ;;  %v9483_v10 = vpop.f32.mrf.mxu1 }
 0x4e5   : > { %v16348_v57 = vpop.f32.mrf.mxu1 }
 0x4f8   : > { %v10747_v23 = vpop.f32.mrf.mxu0 }
 0x4fa   : > { %v10748_v42 = vpop.f32.mrf.mxu0 }
 0x4fb   : > { %v16340_v48 = vadd.f32 %v10748_v42, %v10747_v23  ;;  %v9496_v23 = vpop.f32.mrf.mxu1 }
 0x4fc   : > { %v10750_v49 = vpop.f32.mrf.mxu0 }
 0x4fd   : > { %v16350_v42 = vpop.f32.mrf.mxu1 }
 0x4fe   : > { %v10751_v27 = vpop.f32.mrf.mxu0 }
 0x4ff   : > { %v16342_v51 = vadd.f32 %v10751_v27, %v10750_v49  ;;  %v9499_v47 = vpop.f32.mrf.mxu1 }
 0x501   : > { %v16352_v49 = vpop.f32.mrf.mxu1 }
 0x503   : > { %v16354_v29 = vpop.f32.mrf.mxu1 }
 0x51a   : > { %v10753_v58 = vpop.f32.mrf.mxu0 }
 0x51c   : > { %v10754_v24 = vpop.f32.mrf.mxu0 }
 0x51d   : > { %v16344_v19 = vadd.f32 %v10754_v24, %v10753_v58  ;;  %v16358_v24 = vpop.f32.mrf.mxu1 }
 0x51e   : > { %v10756_v56 = vpop.f32.mrf.mxu0 }
 0x51f   : > { %v9515_v37 = vpop.f32.mrf.mxu1 }
 0x520   : > { %v10757_v21 = vpop.f32.mrf.mxu0 }
 0x521   : > { %v16346_v36 = vadd.f32 %v10757_v21, %v10756_v56  ;;  %v16365_v21 = vld [vmem:[%s17131_s4] ss:$0 sm:$0xff]  ;;  %v16369_v14 = vpop.f32.mrf.mxu1 }
 0x522   : > { %v9304_v11 = vadd.f32 %v15948_v12, %v16365_v21  ;;  %v9320_v38 = vadd.f32 %v16183_v13, %v16365_v21  ;;  %v9315_v12 = vadd.f32 %v16099_v54, %v16365_v21  ;;  %v9328_v54 = vadd.f32 %v16241_v30, %v16365_v21 }
 0x523   : > { %v9528_v43 = vpop.f32.mrf.mxu1  ;;  %v9336_v30 = vadd.f32 %v16255_v45, %v16365_v21  ;;  %v9344_v45 = vadd.f32 %v16269_v18, %v16365_v21  ;;  %v9352_v18 = vadd.f32 %v16283_v40, %v16365_v21  ;;  %v9360_v40 = vadd.f32 %v16299_v62, %v16365_v21 }
 0x524   : > { %v9368_v62 = vadd.f32 %v16308_v1, %v16365_v21  ;;  %v9376_v1 = vadd.f32 %v16312_v44, %v16365_v21  ;;  %v9384_v44 = vadd.f32 %v16316_v26, %v16365_v21  ;;  %v9392_v26 = vadd.f32 %v16320_v20, %v16365_v21 }
 0x525   : > { %v9400_v20 = vadd.f32 %v16324_v9, %v16365_v21 }
 0x534   : > { %v10759_v27 = vpop.f32.mrf.mxu0 }
 0x536   : > { %v10760_v17 = vpop.f32.mrf.mxu0 }
 0x537   : > { %v16356_v34 = vadd.f32 %v10760_v17, %v10759_v27  ;;  %v9312_v27 = vadd.f32 %v16071_v60, %v16365_v21  ;;  %v9323_v60 = vadd.f32 %v16198_v0, %v16365_v21 }
 0x538   : > { %v10762_v58 = vpop.f32.mrf.mxu0 }
 0x53a   : > { %v10763_v61 = vpop.f32.mrf.mxu0 }
 0x53b   : > { %v16360_v56 = vadd.f32 %v10763_v61, %v10762_v58  ;;  %v9307_v61 = vadd.f32 %v15972_v28, %v16365_v21 }
 0x53c   : > { %v10828_v63 = vpop.f32.mrf.mxu0 }
 0x53d   : > { %v16379_v32 = vadd.f32 %v10828_v63, %v9312_v27  ;;  %v16393_v63 = vadd.f32 %v9480_v52, %v9320_v38  ;;  %v16409_v52 = vadd.f32 %v10832_v8, %v9328_v54  ;;  %v16423_v54 = vadd.f32 %v9496_v23, %v9336_v30 }
 0x53e   : > { %v9464_v2 = vpop.f32.mrf.mxu0  ;;  %v16436_v23 = vadd.f32 %v16348_v57, %v9344_v45  ;;  %v16450_v57 = vadd.f32 %v16354_v29, %v9352_v18  ;;  %v16463_v29 = vadd.f32 %v16352_v49, %v9360_v40  ;;  %v16476_v49 = vadd.f32 %v9528_v43, %v9368_v62 }
 0x53f   : > { %v16373_v15 = vadd.f32 %v9464_v2, %v9304_v11  ;;  %17405 = vst [vmem:[#allocation40_spill] sm:$0xff] %v16379_v32  ;;  %v9594_v27 = vsel %vm9220_vm9, %v16379_v32, 0.0  ;;  %v9598_v38 = vsel %vm9220_vm9, %v16393_v63, 0.0  ;;  %v9602_v8 = vsel %vm9220_vm9, %v16409_v52, 0.0 }
 0x540   : > { %v10829_v17 = vpop.f32.mrf.mxu0  ;;  %v16489_v43 = vadd.f32 %v16369_v14, %v9376_v1 }
 0x541   : > { %v9591_v11 = vsel %vm9220_vm9, %v16373_v15, 0.0  ;;  %v16389_v2 = vadd.f32 %v10829_v17, %v9315_v12  ;;  %v9331_v17 = vadd.f32 %v16245_v50, %v16365_v21  ;;  %v9339_v50 = vadd.f32 %v16259_v5, %v16365_v21 }
 0x542   : > { %v9467_v58 = vpop.f32.mrf.mxu0  ;;  %v9347_v5 = vadd.f32 %v16273_v46, %v16365_v21  ;;  %v9355_v46 = vadd.f32 %v16287_v59, %v16365_v21  ;;  %v9363_v59 = vadd.f32 %v16303_v55, %v16365_v21  ;;  %v9371_v55 = vadd.f32 %v16310_v41, %v16365_v21 }
 0x543   : > { %v16383_v6 = vadd.f32 %v9467_v58, %v9307_v61  ;;  %v16399_v61 = vpop.f32.mrf.mxu1  ;;  %v16401_v58 = vadd.f32 %v9483_v10, %v9323_v60  ;;  %v9596_v12 = vsel %vm9220_vm9, %v16389_v2, 0.0  ;;  %v16415_v60 = vadd.f32 %v10833_v35, %v9331_v17 }
 0x544   : > { %v16429_v35 = vadd.f32 %v9499_v47, %v9339_v50  ;;  %v16443_v47 = vadd.f32 %v16350_v42, %v9347_v5  ;;  %v16456_v42 = vadd.f32 %v9515_v37, %v9355_v46  ;;  %v9614_v5 = vsel %vm9220_vm9, %v16450_v57, 0.0 }
 0x545   : > { %v9592_v28 = vsel %vm9220_vm9, %v16383_v6, 0.0  ;;  %v9600_v10 = vsel %vm9220_vm9, %v16401_v58, 0.0  ;;  %v16470_v18 = vadd.f32 %v16358_v24, %v9363_v59  ;;  %v9379_v24 = vadd.f32 %v16314_v3, %v16365_v21 }
 0x546   : > { %v9593_v13 = vadd.f32 %v9592_v28, %v9591_v11  ;;  %v9531_v28 = vpop.f32.mrf.mxu1  ;;  %v9608_v30 = vsel %vm9220_vm9, %v16429_v35, 0.0  ;;  %v9612_v45 = vsel %vm9220_vm9, %v16443_v47, 0.0  ;;  %v9616_v37 = vsel %vm9220_vm9, %v16456_v42, 0.0 }
 0x547   : > { %v16482_v40 = vadd.f32 %v9531_v28, %v9371_v55  ;;  %v16496_v28 = vadd.f32 %v16399_v61, %v9379_v24  ;;  %v9387_v3 = vadd.f32 %v16318_v22, %v16365_v21  ;;  %v9626_v62 = vsel %vm9220_vm9, %v16489_v43, 0.0 }
 0x548   : > { %v9595_v0 = vadd.f32 %v9594_v27, %v9593_v13  ;;  %v16419_v13 = vpop.f32.mrf.mxu1  ;;  %v9395_v61 = vadd.f32 %v16322_v4, %v16365_v21  ;;  %v9403_v4 = vadd.f32 %v16332_v33, %v16365_v21 }
 0x549   : > { %v9628_v55 = vsel %vm9220_vm9, %v16496_v28, 0.0 }
 0x54a   : > { %v9597_v11 = vadd.f32 %v9596_v12, %v9595_v0  ;;  %v9604_v12 = vsel %vm9220_vm9, %v16415_v60, 0.0  ;;  %v9544_v17 = vpop.f32.mrf.mxu1 }
 0x54b   : > { %v16502_v14 = vadd.f32 %v9544_v17, %v9384_v44  ;;  %v16515_v17 = vadd.f32 %v16419_v13, %v9392_v26  ;;  %v9408_v13 = vadd.f32 %v16340_v48, %v16365_v21 }
 0x54c   : > { %v9599_v32 = vadd.f32 %v9598_v38, %v9597_v11 }
 0x54d   : > { %v9630_v1 = vsel %vm9220_vm9, %v16502_v14, 0.0 }
 0x54e   : > { %v9601_v27 = vadd.f32 %v9600_v10, %v9599_v32  ;;  %v9606_v32 = vsel %vm9220_vm9, %v16423_v54, 0.0  ;;  %v10849_v10 = vpop.f32.mrf.mxu1 }
 0x550   : > { %v9603_v0 = vadd.f32 %v9602_v8, %v9601_v27  ;;  %v9610_v27 = vsel %vm9220_vm9, %v16436_v23, 0.0 }
 0x552   : > { %v9605_v11 = vadd.f32 %v9604_v12, %v9603_v0  ;;  %v9547_v0 = vpop.f32.mrf.mxu1 }
 0x554   : > { %v9607_v38 = vadd.f32 %v9606_v32, %v9605_v11  ;;  %v10852_v11 = vpop.f32.mrf.mxu1 }
 0x556   : > { %v9609_v50 = vadd.f32 %v9608_v30, %v9607_v38  ;;  %v9618_v30 = vsel %vm9220_vm9, %v16463_v29, 0.0  ;;  %v9560_v46 = vpop.f32.mrf.mxu1 }
 0x557   : > { %v16527_v44 = vadd.f32 %v9560_v46, %v9400_v20  ;;  %v9416_v46 = vadd.f32 %v16344_v19, %v16365_v21 }
 0x558   : > { %v9611_v8 = vadd.f32 %v9610_v27, %v9609_v50  ;;  %v9620_v27 = vsel %vm9220_vm9, %v16470_v18, 0.0 }
 0x55a   : > { %v9613_v12 = vadd.f32 %v9612_v45, %v9611_v8  ;;  %v9622_v8 = vsel %vm9220_vm9, %v16476_v49, 0.0  ;;  %v10853_v45 = vpop.f32.mrf.mxu1 }
 0x55c   : > { %v9615_v32 = vadd.f32 %v9614_v5, %v9613_v12  ;;  %v9624_v12 = vsel %vm9220_vm9, %v16482_v40, 0.0 }
 0x55e   : > { %v9617_v38 = vadd.f32 %v9616_v37, %v9615_v32  ;;  %v9563_v32 = vpop.f32.mrf.mxu1 }
 0x560   : > { %v9619_v50 = vadd.f32 %v9618_v30, %v9617_v38  ;;  %v16508_v38 = vadd.f32 %v9547_v0, %v9387_v3  ;;  %v10856_v22 = vpop.f32.mrf.mxu1  ;;  %v16521_v0 = vadd.f32 %v10849_v10, %v9395_v61  ;;  %v9411_v10 = vadd.f32 %v16342_v51, %v16365_v21 }
 0x562   : > { %v9621_v41 = vadd.f32 %v9620_v27, %v9619_v50  ;;  %v9632_v27 = vsel %vm9220_vm9, %v16508_v38, 0.0  ;;  %v9576_v24 = vpop.f32.mrf.mxu1 }
 0x564   : > { %v9623_v59 = vadd.f32 %v9622_v8, %v9621_v41  ;;  %v9634_v8 = vsel %vm9220_vm9, %v16515_v17, 0.0  ;;  %v10857_v33 = vpop.f32.mrf.mxu1 }
 0x566   : > { %v9625_v5 = vadd.f32 %v9624_v12, %v9623_v59  ;;  %v9636_v59 = vsel %vm9220_vm9, %v16521_v0, 0.0  ;;  %v16533_v12 = vadd.f32 %v9563_v32, %v9403_v4  ;;  %v9419_v32 = vadd.f32 %v16346_v36, %v16365_v21  ;;  %v9579_v51 = vpop.f32.mrf.mxu1 }
 0x568   : > { %v9627_v37 = vadd.f32 %v9626_v62, %v9625_v5  ;;  %v9638_v5 = vsel %vm9220_vm9, %v16527_v44, 0.0  ;;  %v16539_v62 = vadd.f32 %v10852_v11, %v9408_v13  ;;  %v9640_v26 = vsel %vm9220_vm9, %v16533_v12, 0.0 }
 0x569   : > { %v9424_v11 = vadd.f32 %v16356_v34, %v16365_v21  ;;  %v16557_v20 = vadd.f32 %v9579_v51, %v9419_v32  ;;  %v9747_v51 = vld [vmem:[%s17133_s6 + $0x1] sm:$0x1] }
 0x56a   : > { %v9629_v30 = vadd.f32 %v9628_v55, %v9627_v37  ;;  %v16545_v37 = vadd.f32 %v10853_v45, %v9411_v10  ;;  %v9642_v61 = vsel %vm9220_vm9, %v16539_v62, 0.0  ;;  %v9427_v45 = vadd.f32 %v16360_v56, %v16365_v21 }
 0x56c   : > { %v9631_v50 = vadd.f32 %v9630_v1, %v9629_v30  ;;  %v16551_v30 = vadd.f32 %v9576_v24, %v9416_v46  ;;  %v9644_v1 = vsel %vm9220_vm9, %v16545_v37, 0.0  ;;  %v9648_v24 = vsel %vm9220_vm9, %v16557_v20, 0.0 }
 0x56d   : > { %v16567_v34 = vadd.f32 %v10857_v33, %v9427_v45  ;;  %v11326_v33 = vmov 1  }
 0x56e   : > { %v9633_v41 = vadd.f32 %v9632_v27, %v9631_v50  ;;  %v9646_v50 = vsel %vm9220_vm9, %v16551_v30, 0.0  ;;  %v16563_v27 = vadd.f32 %v10856_v22, %v9424_v11  ;;  %10935 = vset.pattern.permute.xlu1 %v11326_v33 }
 0x56f   : > { %v9652_v56 = vsel %vm9220_vm9, %v16567_v34, 0.0 }
 0x570   : > { %v9635_v9 = vadd.f32 %v9634_v8, %v9633_v41  ;;  %v9650_v8 = vsel %vm9220_vm9, %v16563_v27, 0.0 }
 0x572   : > { %v9637_v3 = vadd.f32 %v9636_v59, %v9635_v9 }
 0x574   : > { %v9639_v48 = vadd.f32 %v9638_v5, %v9637_v3 }
 0x576   : > { %v9641_v55 = vadd.f32 %v9640_v26, %v9639_v48 }
 0x578   : > { %v9643_v19 = vadd.f32 %v9642_v61, %v9641_v55  ;;  %v9739_v55 = vld [vmem:[%s17133_s6] sm:$0x1] }
 0x57a   : > { %v9645_v36 = vadd.f32 %v9644_v1, %v9643_v19 }
 0x57c   : > { %v9647_v4 = vadd.f32 %v9646_v50, %v9645_v36 }
 0x57e   : > { %v9649_v41 = vadd.f32 %v9648_v24, %v9647_v4  ;;  %v9760_v24 = vlaneseq }
 0x580   : > { %v9651_v13 = vadd.f32 %v9650_v8, %v9649_v41  ;;  %v10244_v41 = vld [vmem:[%s17135_s8] ss:$0 sm:$0xff]  ;;  %v9761_v8 = vshrl.u32 %v9760_v24, 7  ;;  %v17419_v24 = vld [vmem:[#allocation25_spill] sm:$0xff] }
 0x582   : > { %v9653_v21 = vadd.f32 %v9652_v56, %v9651_v13  ;;  %v16584_v13 = vadd.f32 %v15192_v25, %v10244_v41  ;;  %v16587_v56 = vadd.f32 %v10244_v41, %v15217_v53 }
 0x584   : > { %v9654_v9 = vrot.slane %v9653_v21, 4 }
 0x586   : > { %v9655_v59 = vadd.f32 %v9654_v9, %v9653_v21  ;;  %v16590_v21 = vadd.f32 %v15241_v16, %v10244_v41  ;;  %v16593_v9 = vadd.f32 %v10244_v41, %v15274_v31 }
 0x588   : > { %v9656_v10 = vrot.slane %v9655_v59, 2 }
 0x58a   : > { %v9657_v22 = vadd.f32 %v9656_v10, %v9655_v59  ;;  %v16596_v59 = vadd.f32 %v15292_v39, %v10244_v41  ;;  %v9762_v10 = vsub.s32 0, %v9761_v8  ;;  %v16635_v8 = vadd.f32 %v10244_v41, %v17419_v24  ;;  %v17432_v24 = vld [vmem:[#allocation32_spill] sm:$0xff] }
 0x58c   : > { %v9658_v3 = vrot.slane %v9657_v22, 1 }
 0x58e   : > { %v9659_v5 = vadd.f32 %v9658_v3, %v9657_v22  ;;  %v16599_v3 = vadd.f32 %v10244_v41, %v15310_v7  ;;  %v17412_v7 = vld [vmem:[#allocation20_spill] sm:$0xff] }
 0x590   : > { %v9660_v46 = vmul.f32 0.00390625, %v9659_v5  ;;  %v17406_v5 = vld [vmem:[#allocation14_spill] sm:$0xff] }
 0x591   : > { %v16602_v25 = vadd.f32 %v17406_v5, %v10244_v41  ;;  %v17421_v5 = vld [vmem:[#allocation26_spill] sm:$0xff] }
 0x592   : > { %10867 = vmatmul.mubr.msk.f32.vlgmr.msra.gmra.mxu0 %vm9220_vm9, %v9660_v46  ;;  %v17407_v46 = vld [vmem:[#allocation15_spill] sm:$0xff] }
 0x593   : > { %v16605_v53 = vadd.f32 %v10244_v41, %v17407_v46  ;;  %v16638_v46 = vadd.f32 %v17421_v5, %v10244_v41  ;;  %v17434_v5 = vld [vmem:[#allocation33_spill] sm:$0xff] }
 0x652   : > { %v9734_v48 = vpop.f32.mrf.mxu0 }
 0x653   : > { %v9738_v26 = vmax.f32 %v9734_v48, 0.0  ;;  %v17409_v48 = vld [vmem:[#allocation17_spill] sm:$0xff] }
 0x654   : > { %v10868_v32 = vpop.f32.mrf.mxu0  ;;  %v16611_v31 = vadd.f32 %v10244_v41, %v17409_v48  ;;  %17422 = vst [vmem:[#allocation17_spill] sm:$0xff] %v16638_v46  ;;  %v16657_v46 = vadd.f32 %v10244_v41, %v17434_v5 }
 0x655   : > { %9749 = vperm.xlu1 %10935, %v9738_v26   ;;  %9742 = vperm.xlu0 %10934, %v9738_v26   ;;  %v17410_v26 = vld [vmem:[#allocation18_spill] sm:$0xff]  ;;  %v17411_v32 = vld [vmem:[#allocation19_spill] sm:$0xff] }
 0x656   : > { %v16614_v39 = vadd.f32 %v17410_v26, %v10244_v41 }
 0x659   : > { %10936 = vset.pattern.permute.xlu0 %v11326_v33  ;;  %v17408_v33 = vld [vmem:[#allocation16_spill] sm:$0xff] }
 0x65a   : > { %v16608_v16 = vadd.f32 %v17408_v33, %v10244_v41  ;;  %17420 = vst [vmem:[#allocation16_spill] sm:$0xff] %v16635_v8  ;;  %v17423_v33 = vld [vmem:[#allocation27_spill] sm:$0xff]  ;;  %v16654_v8 = vadd.f32 %v17432_v24, %v10244_v41 }
 0x65b   : > { %v16641_v48 = vadd.f32 %v10244_v41, %v17423_v33  ;;  %v17436_v33 = vld [vmem:[#allocation34_spill] sm:$0xff] }
 0x65d   : > { %17424 = vst [vmem:[#allocation18_spill] sm:$0xff] %v16641_v48  ;;  %v16660_v48 = vadd.f32 %v17436_v33, %v10244_v41 }
 0x6d0   : > { %v9750_v61 = vpop.permute.xlu1 %9749  ;;  %v9743_v11 = vpop.permute.xlu0 %9742 }
 0x6d1   : > { %v9752_v19 = vmul.f32 %v9750_v61, %v9747_v51  ;;  %v9745_v1 = vmul.f32 %v9743_v11, %v9739_v55  ;;  %v16617_v51 = vadd.f32 %v10244_v41, %v17411_v32  ;;  %v16620_v55 = vadd.f32 %v17412_v7, %v10244_v41  ;;  %v17413_v61 = vld [vmem:[#allocation21_spill] sm:$0xff]  ;;  %v17425_v32 = vld [vmem:[#allocation28_spill] sm:$0xff] }
 0x6d2   : > { %v16623_v11 = vadd.f32 %v10244_v41, %v17413_v61  ;;  %v16644_v7 = vadd.f32 %v17425_v32, %v10244_v41  ;;  %v17427_v61 = vld [vmem:[#allocation29_spill] sm:$0xff]  ;;  %v17439_v32 = vld [vmem:[#allocation36_spill] sm:$0xff] }
 0x6d3   : > { %v9753_v45 = vadd.f32 %v9752_v19, %v9745_v1  ;;  %v17414_v19 = vld [vmem:[#allocation22_spill] sm:$0xff] }
 0x6d4   : > { %v16626_v1 = vadd.f32 %v17414_v19, %v10244_v41  ;;  %17426 = vst [vmem:[#allocation19_spill] sm:$0xff] %v16644_v7  ;;  %v16647_v19 = vadd.f32 %v10244_v41, %v17427_v61  ;;  %17433 = vst [vmem:[#allocation22_spill] sm:$0xff] %v16654_v8  ;;  %v16664_v7 = vadd.f32 %v17439_v32, %v10244_v41  ;;  %v17441_v61 = vld [vmem:[#allocation37_spill] sm:$0xff] }
 0x6d5   : > { %v10564_v36 = vmul.f32 -1.442695, %v9753_v45  ;;  %v17416_v45 = vld [vmem:[#allocation23_spill] sm:$0xff] }
 0x6d6   : > { %17415 = vst [vmem:[#allocation14_spill] sm:$0xff] %v16626_v1  ;;  %17428 = vst [vmem:[#allocation20_spill] sm:$0xff] %v16647_v19  ;;  %v16667_v19 = vadd.f32 %v10244_v41, %v17441_v61 }
 0x6d7   : > { %11112 = vpow2.f32 %v10564_v36  ;;  %v16629_v36 = vadd.f32 %v10244_v41, %v17416_v45  ;;  %v17429_v45 = vld [vmem:[#allocation30_spill] sm:$0xff]  ;;  %17435 = vst [vmem:[#allocation23_spill] sm:$0xff] %v16657_v46  ;;  %17440 = vst [vmem:[#allocation25_spill] sm:$0xff] %v16664_v7  ;;  %v17444_v46 = vld [vmem:[#allocation40_spill] sm:$0xff] }
 0x6d8   : > { %v16650_v1 = vadd.f32 %v17429_v45, %v10244_v41  ;;  %v17442_v45 = vld [vmem:[#allocation38_spill] sm:$0xff] }
 0x6da   : > { %17430 = vst [vmem:[#allocation21_spill] sm:$0xff] %v16650_v1  ;;  %v16670_v1 = vadd.f32 %v17442_v45, %v10244_v41 }
 0x6e4   : > { %v11113_v50 = vpop.eup %11112 }
 0x6e5   : > { %v9757_v4 = vadd.f32 1.0, %v11113_v50  ;;  %v17417_v50 = vld [vmem:[#allocation24_spill] sm:$0xff] }
 0x6e6   : > { %17437 = vst [vmem:[#allocation24_spill] sm:$0xff] %v16660_v48 }
 0x6e7   : > { %11114 = vrcp.f32 %v9757_v4  ;;  %v16632_v4 = vadd.f32 %v17417_v50, %v10244_v41  ;;  %v17431_v50 = vld [vmem:[#allocation31_spill] sm:$0xff] }
 0x6e9   : > { %17418 = vst [vmem:[#allocation15_spill] sm:$0xff] %v16632_v4  ;;  %v582_v4 = vadd.f32 %v10244_v41, %v17431_v50  ;;  %v17443_v50 = vld [vmem:[#allocation39_spill] sm:$0xff] }
 0x6ea   : > { %v614_v24 = vadd.f32 %v10244_v41, %v17443_v50 }
 0x6f4   : > { %v11115_v22 = vpop.eup %11114 }
 0x6f5   : > { %v9763_v26 = vrot.slane %v11115_v22, %v9762_v10  ;;  %v17438_v10 = vld [vmem:[#allocation35_spill] sm:$0xff] }
 0x6f6   : > { %v598_v22 = vadd.f32 %v10244_v41, %v17438_v10 }
 0x6f7   : > { %v9764_v8 = vmul.f32 %v9763_v26, %v16373_v15  ;;  %v9765_v5 = vmul.f32 %v9763_v26, %v16383_v6  ;;  %v9766_v33 = vmul.f32 %v9763_v26, %v17444_v46  ;;  %v9767_v48 = vmul.f32 %v9763_v26, %v16389_v2 }
 0x6f8   : > { %v9768_v10 = vmul.f32 %v9763_v26, %v16393_v63  ;;  %v9769_v32 = vmul.f32 %v9763_v26, %v16401_v58  ;;  %v9770_v61 = vmul.f32 %v9763_v26, %v16409_v52  ;;  %v9771_v7 = vmul.f32 %v9763_v26, %v16415_v60 }
 0x6f9   : > { %v9772_v45 = vmul.f32 %v9763_v26, %v16423_v54  ;;  %v9773_v41 = vmul.f32 %v9763_v26, %v16429_v35  ;;  %v9774_v15 = vmul.f32 %v9763_v26, %v16436_v23  ;;  %v9775_v6 = vmul.f32 %v9763_v26, %v16443_v47 }
 0x6fa   : > { %v9776_v46 = vmul.f32 %v9763_v26, %v16450_v57  ;;  %v9777_v2 = vmul.f32 %v9763_v26, %v16456_v42  ;;  %v9778_v63 = vmul.f32 %v9763_v26, %v16463_v29  ;;  %v9779_v58 = vmul.f32 %v9763_v26, %v16470_v18 }
 0x6fb   : > { %v9780_v52 = vmul.f32 %v9763_v26, %v16476_v49  ;;  %v9781_v60 = vmul.f32 %v9763_v26, %v16482_v40  ;;  %v9782_v54 = vmul.f32 %v9763_v26, %v16489_v43  ;;  %v9783_v35 = vmul.f32 %v9763_v26, %v16496_v28 }
 0x6fc   : > { %v9784_v23 = vmul.f32 %v9763_v26, %v16502_v14  ;;  %v9785_v47 = vmul.f32 %v9763_v26, %v16508_v38  ;;  %v9786_v57 = vmul.f32 %v9763_v26, %v16515_v17  ;;  %v9787_v42 = vmul.f32 %v9763_v26, %v16521_v0 }
 0x6fd   : > { %v9788_v29 = vmul.f32 %v9763_v26, %v16527_v44  ;;  %v9789_v18 = vmul.f32 %v9763_v26, %v16533_v12  ;;  %v9790_v49 = vmul.f32 %v9763_v26, %v16539_v62  ;;  %v9791_v40 = vmul.f32 %v9763_v26, %v16545_v37 }
 0x6fe   : > { %v9792_v43 = vmul.f32 %v9763_v26, %v16551_v30  ;;  %v9793_v28 = vmul.f32 %v9763_v26, %v16557_v20  ;;  %v9794_v14 = vmul.f32 %v9763_v26, %v16563_v27  ;;  %v9795_v38 = vmul.f32 %v9763_v26, %v16567_v34 }
 0x6ff   : > { %v16706_v17 = vadd.f32 %v9764_v8, %v16587_v56  ;;  %v16709_v0 = vadd.f32 %v9765_v5, %v16593_v9  ;;  %v16712_v44 = vadd.f32 %v9766_v33, %v16584_v13  ;;  %v16715_v12 = vadd.f32 %v9767_v48, %v16590_v21  ;;  %v17467_v5 = vld [vmem:[#allocation21_spill] sm:$0xff] }
 0x700   : > { %v16718_v62 = vadd.f32 %v9768_v10, %v16599_v3  ;;  %v16721_v37 = vadd.f32 %v9769_v32, %v16605_v53  ;;  %v16724_v30 = vadd.f32 %v9770_v61, %v16596_v59  ;;  %v16727_v20 = vadd.f32 %v9771_v7, %v16602_v25  ;;  %v17454_v3 = vld [vmem:[#allocation14_spill] sm:$0xff]  ;;  %v17456_v53 = vld [vmem:[#allocation16_spill] sm:$0xff]  ;;  %v17465_v7 = vld [vmem:[#allocation19_spill] sm:$0xff] }
 0x701   : > { %17445 = vst [vmem:[#allocation26_spill] sm:$0xff] %v16706_v17  ;;  %17446 = vst [vmem:[#allocation27_spill] sm:$0xff] %v16709_v0  ;;  %v16730_v27 = vadd.f32 %v9772_v45, %v16611_v31  ;;  %v16733_v34 = vadd.f32 %v9773_v41, %v16617_v51  ;;  %v16736_v13 = vadd.f32 %v9774_v15, %v16608_v16  ;;  %v17457_v16 = vld [vmem:[#allocation18_spill] sm:$0xff]  ;;  %v17469_v10 = vld [vmem:[#allocation23_spill] sm:$0xff] }
 0x702   : > { %17447 = vst [vmem:[#allocation28_spill] sm:$0xff] %v16712_v44  ;;  %17448 = vst [vmem:[#allocation29_spill] sm:$0xff] %v16715_v12  ;;  %v16739_v56 = vadd.f32 %v9775_v6, %v16614_v39  ;;  %v16742_v21 = vadd.f32 %v9776_v46, %v16623_v11  ;;  %v16745_v9 = vadd.f32 %v9777_v2, %v16629_v36  ;;  %v17459_v39 = vld [vmem:[#allocation15_spill] sm:$0xff]  ;;  %v17461_v11 = vld [vmem:[#allocation17_spill] sm:$0xff] }
 0x703   : > { %17449 = vst [vmem:[#allocation30_spill] sm:$0xff] %v16718_v62  ;;  %17450 = vst [vmem:[#allocation31_spill] sm:$0xff] %v16721_v37  ;;  %v16748_v59 = vadd.f32 %v9778_v63, %v16620_v55  ;;  %v16751_v25 = vadd.f32 %v9779_v58, %v17454_v3  ;;  %v16754_v31 = vadd.f32 %v9780_v52, %v17456_v53  ;;  %v17462_v36 = vld [vmem:[#allocation20_spill] sm:$0xff]  ;;  %v17472_v45 = vld [vmem:[#allocation22_spill] sm:$0xff]  ;;  %v16796_v58 = vmul.f32 0.5, %v16706_v17 }
 0x704   : > { %17451 = vst [vmem:[#allocation32_spill] sm:$0xff] %v16724_v30  ;;  %17452 = vst [vmem:[#allocation33_spill] sm:$0xff] %v16727_v20  ;;  %v16757_v51 = vadd.f32 %v9781_v60, %v17457_v16  ;;  %v16760_v8 = vadd.f32 %v9782_v54, %v17459_v39  ;;  %v16763_v48 = vadd.f32 %v9783_v35, %v17461_v11  ;;  %v17474_v15 = vld [vmem:[#allocation24_spill] sm:$0xff]  ;;  %v17478_v2 = vld [vmem:[#allocation25_spill] sm:$0xff]  ;;  %v16802_v52 = vmul.f32 0.5, %v16712_v44 }
 0x705   : > { %17453 = vst [vmem:[#allocation34_spill] sm:$0xff] %v16745_v9  ;;  %17455 = vst [vmem:[#allocation35_spill] sm:$0xff] %v16751_v25  ;;  %v16766_v26 = vadd.f32 %v9784_v23, %v17462_v36  ;;  %v16768_v55 = vadd.f32 %v9785_v47, %v582_v4  ;;  %v16771_v50 = vadd.f32 %v9786_v57, %v17465_v7  ;;  %v16805_v60 = vmul.f32 0.5, %v16715_v12 }
 0x706   : > { %17458 = vst [vmem:[#allocation36_spill] sm:$0xff] %v16757_v51  ;;  %17460 = vst [vmem:[#allocation37_spill] sm:$0xff] %v16760_v8  ;;  %v16774_v33 = vadd.f32 %v9787_v42, %v17467_v5  ;;  %v16777_v32 = vadd.f32 %v9788_v29, %v17469_v10  ;;  %v16779_v61 = vadd.f32 %v9789_v18, %v598_v22  ;;  %v16799_v22 = vmul.f32 0.5, %v16709_v0 }
 0x707   : > { %17463 = vst [vmem:[#allocation38_spill] sm:$0xff] %v16766_v26  ;;  %17464 = vst [vmem:[#allocation39_spill] sm:$0xff] %v16768_v55  ;;  %v16782_v41 = vadd.f32 %v9790_v49, %v17472_v45  ;;  %v16785_v6 = vadd.f32 %v9791_v40, %v17474_v15  ;;  %v16788_v4 = vadd.f32 %v9792_v43, %v16667_v19  ;;  %v16808_v19 = vmul.f32 0.5, %v16718_v62 }
 0x708   : > { %17466 = vst [vmem:[#allocation40_spill] sm:$0xff] %v16771_v50  ;;  %17468 = vst [vmem:[#allocation14_spill] sm:$0xff] %v16774_v33  ;;  %v16790_v46 = vadd.f32 %v9793_v28, %v614_v24  ;;  %v16793_v63 = vadd.f32 %v9794_v14, %v17478_v2  ;;  %v16811_v24 = vmul.f32 0.5, %v16721_v37  ;;  %v16814_v54 = vmul.f32 0.5, %v16724_v30 }
 0x709   : > { %17470 = vst [vmem:[#allocation16_spill] sm:$0xff] %v16777_v32  ;;  %17471 = vst [vmem:[#allocation18_spill] sm:$0xff] %v16779_v61  ;;  %v16817_v35 = vmul.f32 0.5, %v16727_v20  ;;  %v9860_v23 = vmul.f32 0.044715, %v16706_v17  ;;  %v16821_v47 = vmul.f32 0.5, %v16730_v27  ;;  %v16841_v28 = vadd.f32 %v9795_v38, %v16670_v1 }
 0x70a   : > { %17473 = vst [vmem:[#allocation15_spill] sm:$0xff] %v16782_v41  ;;  %17475 = vst [vmem:[#allocation17_spill] sm:$0xff] %v16785_v6  ;;  %v16824_v57 = vmul.f32 0.5, %v16733_v34  ;;  %v16827_v42 = vmul.f32 0.5, %v16736_v13  ;;  %v9861_v29 = vmul.f32 0.044715, %v16709_v0 }
 0x70b   : > { %17476 = vst [vmem:[#allocation20_spill] sm:$0xff] %v16788_v4  ;;  %17477 = vst [vmem:[#allocation19_spill] sm:$0xff] %v16790_v46  ;;  %v16831_v18 = vmul.f32 0.5, %v16739_v56  ;;  %v16834_v49 = vmul.f32 0.5, %v16742_v21  ;;  %v16837_v40 = vmul.f32 0.5, %v16745_v9  ;;  %v9892_v36 = vmul.f32 %v9860_v23, %v16706_v17 }
 0x70c   : > { %17479 = vst [vmem:[#allocation21_spill] sm:$0xff] %v16796_v58  ;;  %17480 = vst [vmem:[#allocation23_spill] sm:$0xff] %v16799_v22  ;;  %v9862_v43 = vmul.f32 0.044715, %v16712_v44  ;;  %v9863_v14 = vmul.f32 0.044715, %v16715_v12  ;;  %v9893_v38 = vmul.f32 %v9861_v29, %v16709_v0 }
 0x70d   : > { %17481 = vst [vmem:[#allocation22_spill] sm:$0xff] %v16802_v52  ;;  %17482 = vst [vmem:[#allocation24_spill] sm:$0xff] %v16805_v60  ;;  %v9864_v3 = vmul.f32 0.044715, %v16718_v62  ;;  %v9865_v53 = vmul.f32 0.044715, %v16721_v37 }
 0x70e   : > { %17483 = vst [vmem:[#allocation25_spill] sm:$0xff] %v16808_v19  ;;  %17484 = vst [vmem:[#allocation41_spill] sm:$0xff] %v16811_v24  ;;  %v9866_v16 = vmul.f32 0.044715, %v16724_v30  ;;  %v9867_v39 = vmul.f32 0.044715, %v16727_v20  ;;  %v9894_v2 = vmul.f32 %v9862_v43, %v16712_v44 }
 0x70f   : > { %17485 = vst [vmem:[#allocation42_spill] sm:$0xff] %v16814_v54  ;;  %17486 = vst [vmem:[#allocation43_spill] sm:$0xff] %v16817_v35  ;;  %v9868_v11 = vmul.f32 0.044715, %v16730_v27  ;;  %v9869_v7 = vmul.f32 0.044715, %v16733_v34  ;;  %v9897_v24 = vmul.f32 %v9865_v53, %v16721_v37 }
 0x710   : > { %17487 = vst [vmem:[#allocation44_spill] sm:$0xff] %v16821_v47  ;;  %17488 = vst [vmem:[#allocation45_spill] sm:$0xff] %v16824_v57  ;;  %v9870_v5 = vmul.f32 0.044715, %v16736_v13  ;;  %v9871_v1 = vmul.f32 0.044715, %v16739_v56  ;;  %v9896_v47 = vmul.f32 %v9864_v3, %v16718_v62  ;;  %v9898_v52 = vmul.f32 %v9866_v16, %v16724_v30 }
 0x711   : > { %17489 = vst [vmem:[#allocation46_spill] sm:$0xff] %v16827_v42  ;;  %17490 = vst [vmem:[#allocation47_spill] sm:$0xff] %v16831_v18  ;;  %v9872_v10 = vmul.f32 0.044715, %v16742_v21  ;;  %v9873_v45 = vmul.f32 0.044715, %v16745_v9  ;;  %v9895_v18 = vmul.f32 %v9863_v14, %v16715_v12  ;;  %v9899_v62 = vmul.f32 %v9867_v39, %v16727_v20 }
 0x712   : > { %17491 = vst [vmem:[#allocation48_spill] sm:$0xff] %v16834_v49  ;;  %17492 = vst [vmem:[#allocation49_spill] sm:$0xff] %v16837_v40  ;;  %v9874_v15 = vmul.f32 0.044715, %v16748_v59  ;;  %v9875_v40 = vmul.f32 0.044715, %v16751_v25  ;;  %v9900_v37 = vmul.f32 %v9868_v11, %v16730_v27  ;;  %v9901_v44 = vmul.f32 %v9869_v7, %v16733_v34 }
 0x713   : > { %17493 = vst [vmem:[#allocation50_spill] sm:$0xff] %v16841_v28  ;;  %v9876_v23 = vmul.f32 0.044715, %v16754_v31  ;;  %v9877_v49 = vmul.f32 0.044715, %v16757_v51  ;;  %v9902_v0 = vmul.f32 %v9870_v5, %v16736_v13  ;;  %v9903_v16 = vmul.f32 %v9871_v1, %v16739_v56 }
 0x714   : > { %v9878_v42 = vmul.f32 0.044715, %v16760_v8  ;;  %v9879_v29 = vmul.f32 0.044715, %v16763_v48  ;;  %v9880_v57 = vmul.f32 0.044715, %v16766_v26  ;;  %v9904_v30 = vmul.f32 %v9872_v10, %v16742_v21 }
 0x715   : > { %v9881_v35 = vmul.f32 0.044715, %v16768_v55  ;;  %v9882_v43 = vmul.f32 0.044715, %v16771_v50  ;;  %v9883_v54 = vmul.f32 0.044715, %v16774_v33  ;;  %v9905_v17 = vmul.f32 %v9873_v45, %v16745_v9 }
 0x716   : > { %v9884_v19 = vmul.f32 0.044715, %v16777_v32  ;;  %v9885_v14 = vmul.f32 0.044715, %v16779_v61  ;;  %v9886_v60 = vmul.f32 0.044715, %v16782_v41  ;;  %v9907_v39 = vmul.f32 %v9875_v40, %v16751_v25 }
 0x717   : > { %v9887_v22 = vmul.f32 0.044715, %v16785_v6  ;;  %v9888_v3 = vmul.f32 0.044715, %v16788_v4  ;;  %v9889_v58 = vmul.f32 0.044715, %v16790_v46  ;;  %v9906_v46 = vmul.f32 %v9874_v15, %v16748_v59 }
 0x718   : > { %v9890_v12 = vmul.f32 0.044715, %v16793_v63  ;;  %v9891_v53 = vmul.f32 0.044715, %v16841_v28  ;;  %v9908_v20 = vmul.f32 %v9876_v23, %v16754_v31  ;;  %v9909_v28 = vmul.f32 %v9877_v49, %v16757_v51 }
 0x719   : > { %v9910_v11 = vmul.f32 %v9878_v42, %v16760_v8  ;;  %v9911_v7 = vmul.f32 %v9879_v29, %v16763_v48  ;;  %v9912_v5 = vmul.f32 %v9880_v57, %v16766_v26  ;;  %v9913_v1 = vmul.f32 %v9881_v35, %v16768_v55  ;;  %v17494_v8 = vld [vmem:[#allocation19_spill] sm:$0xff]  ;;  %v17496_v55 = vld [vmem:[#allocation26_spill] sm:$0xff] }
 0x71a   : > { %v9914_v10 = vmul.f32 %v9882_v43, %v16771_v50  ;;  %v9915_v45 = vmul.f32 %v9883_v54, %v16774_v33  ;;  %v9916_v15 = vmul.f32 %v9884_v19, %v16777_v32  ;;  %v9917_v40 = vmul.f32 %v9885_v14, %v16779_v61  ;;  %v17495_v26 = vld [vmem:[#allocation50_spill] sm:$0xff]  ;;  %v17497_v50 = vld [vmem:[#allocation27_spill] sm:$0xff]  ;;  %v17498_v33 = vld [vmem:[#allocation28_spill] sm:$0xff] }
 0x71b   : > { %v9918_v23 = vmul.f32 %v9886_v60, %v16782_v41  ;;  %v9919_v49 = vmul.f32 %v9887_v22, %v16785_v6  ;;  %v9920_v42 = vmul.f32 %v9888_v3, %v16788_v4  ;;  %v9921_v29 = vmul.f32 %v9889_v58, %v17494_v8  ;;  %v17499_v32 = vld [vmem:[#allocation29_spill] sm:$0xff]  ;;  %v17500_v61 = vld [vmem:[#allocation30_spill] sm:$0xff]  ;;  %v17501_v41 = vld [vmem:[#allocation31_spill] sm:$0xff] }
 0x71c   : > { %v9922_v57 = vmul.f32 %v9890_v12, %v16793_v63  ;;  %v9923_v35 = vmul.f32 %v9891_v53, %v17495_v26  ;;  %v9924_v43 = vmul.f32 %v9892_v36, %v17496_v55  ;;  %v9925_v54 = vmul.f32 %v9893_v38, %v17497_v50  ;;  %v17502_v6 = vld [vmem:[#allocation32_spill] sm:$0xff]  ;;  %v17503_v4 = vld [vmem:[#allocation33_spill] sm:$0xff] }
 0x71d   : > { %v9926_v19 = vmul.f32 %v9894_v2, %v17498_v33  ;;  %v9927_v14 = vmul.f32 %v9895_v18, %v17499_v32  ;;  %v9928_v60 = vmul.f32 %v9896_v47, %v17500_v61  ;;  %v9929_v22 = vmul.f32 %v9897_v24, %v17501_v41  ;;  %v17504_v26 = vld [vmem:[#allocation37_spill] sm:$0xff] }
 0x71e   : > { %v9930_v3 = vmul.f32 %v9898_v52, %v17502_v6  ;;  %v9931_v58 = vmul.f32 %v9899_v62, %v17503_v4  ;;  %v9932_v12 = vmul.f32 %v9900_v37, %v16730_v27  ;;  %v9933_v53 = vmul.f32 %v9901_v44, %v16733_v34 }
 0x71f   : > { %v9934_v36 = vmul.f32 %v9902_v0, %v16736_v13  ;;  %v9935_v38 = vmul.f32 %v9903_v16, %v16739_v56  ;;  %v9936_v2 = vmul.f32 %v9904_v30, %v16742_v21  ;;  %v9937_v18 = vmul.f32 %v9905_v17, %v16745_v9  ;;  %v17505_v9 = vld [vmem:[#allocation38_spill] sm:$0xff] }
 0x720   : > { %v9938_v47 = vmul.f32 %v9906_v46, %v16748_v59  ;;  %v9939_v24 = vmul.f32 %v9907_v39, %v16751_v25  ;;  %v9956_v52 = vadd.f32 %v9924_v43, %v17496_v55  ;;  %v9957_v62 = vadd.f32 %v9925_v54, %v17497_v50  ;;  %v17506_v25 = vld [vmem:[#allocation39_spill] sm:$0xff]  ;;  %v17507_v43 = vld [vmem:[#allocation40_spill] sm:$0xff]  ;;  %v17508_v54 = vld [vmem:[#allocation14_spill] sm:$0xff] }
 0x721   : > { %v9940_v37 = vmul.f32 %v9908_v20, %v16754_v31  ;;  %v9941_v44 = vmul.f32 %v9909_v28, %v16757_v51  ;;  %v9958_v0 = vadd.f32 %v9926_v19, %v17498_v33  ;;  %v9959_v16 = vadd.f32 %v9927_v14, %v17499_v32  ;;  %v17509_v51 = vld [vmem:[#allocation16_spill] sm:$0xff]  ;;  %v17510_v14 = vld [vmem:[#allocation18_spill] sm:$0xff] }
 0x722   : > { %v9942_v30 = vmul.f32 %v9910_v11, %v17504_v26  ;;  %v9943_v17 = vmul.f32 %v9911_v7, %v16763_v48  ;;  %v9944_v46 = vmul.f32 %v9912_v5, %v17505_v9  ;;  %v9960_v39 = vadd.f32 %v9928_v60, %v17500_v61  ;;  %v17511_v60 = vld [vmem:[#allocation15_spill] sm:$0xff] }
 0x723   : > { %v9945_v55 = vmul.f32 %v9913_v1, %v17506_v25  ;;  %v9946_v50 = vmul.f32 %v9914_v10, %v17507_v43  ;;  %v9947_v20 = vmul.f32 %v9915_v45, %v17508_v54  ;;  %v9961_v28 = vadd.f32 %v9929_v22, %v17501_v41  ;;  %v17512_v45 = vld [vmem:[#allocation17_spill] sm:$0xff] }
 0x724   : > { %v9948_v33 = vmul.f32 %v9916_v15, %v17509_v51  ;;  %v9962_v32 = vadd.f32 %v9930_v3, %v17502_v6  ;;  %v9988_v19 = vmul.f32 0.7978846, %v9956_v52  ;;  %v9989_v11 = vmul.f32 0.7978846, %v9957_v62  ;;  %v17513_v6 = vld [vmem:[#allocation20_spill] sm:$0xff]  ;;  %v17515_v62 = vld [vmem:[#allocation34_spill] sm:$0xff] }
 0x725   : > { %v9949_v7 = vmul.f32 %v9917_v40, %v17510_v14  ;;  %v9963_v5 = vadd.f32 %v9931_v58, %v17503_v4  ;;  %v9990_v9 = vmul.f32 0.7978846, %v9958_v0  ;;  %v9991_v61 = vmul.f32 0.7978846, %v9959_v16 }
 0x726   : > { %v9950_v1 = vmul.f32 %v9918_v23, %v17511_v60  ;;  %v9964_v10 = vadd.f32 %v9932_v12, %v16730_v27  ;;  %v9992_v43 = vmul.f32 0.7978846, %v9960_v39  ;;  %11116 = vtanh.f32 %v9988_v19 }
 0x727   : > { %v9951_v41 = vmul.f32 %v9919_v49, %v17512_v45  ;;  %v9965_v15 = vadd.f32 %v9933_v53, %v16733_v34  ;;  %v9993_v22 = vmul.f32 0.7978846, %v9961_v28  ;;  %11118 = vtanh.f32 %v9989_v11  ;;  %v17514_v34 = vld [vmem:[#allocation50_spill] sm:$0xff] }
 0x728   : > { %v9952_v3 = vmul.f32 %v9920_v42, %v17513_v6  ;;  %v9966_v40 = vadd.f32 %v9934_v36, %v16736_v13  ;;  %v9994_v52 = vmul.f32 0.7978846, %v9962_v32  ;;  %11120 = vtanh.f32 %v9990_v9  ;;  %v17516_v9 = vld [vmem:[#allocation35_spill] sm:$0xff] }
 0x729   : > { %v9953_v4 = vmul.f32 %v9921_v29, %v17494_v8  ;;  %v9967_v23 = vadd.f32 %v9935_v38, %v16739_v56  ;;  %v9995_v58 = vmul.f32 0.7978846, %v9963_v5  ;;  %11122 = vtanh.f32 %v9991_v61  ;;  %v17517_v38 = vld [vmem:[#allocation36_spill] sm:$0xff] }
 0x72a   : > { %v9954_v27 = vmul.f32 %v9922_v57, %v16793_v63  ;;  %v9968_v49 = vadd.f32 %v9936_v2, %v16742_v21  ;;  %v9996_v12 = vmul.f32 0.7978846, %v9964_v10  ;;  %11124 = vtanh.f32 %v9992_v43 }
 0x72b   : > { %v9955_v53 = vmul.f32 %v9923_v35, %v17514_v34  ;;  %v9969_v42 = vadd.f32 %v9937_v18, %v17515_v62  ;;  %v9997_v0 = vmul.f32 0.7978846, %v9965_v15  ;;  %11126 = vtanh.f32 %v9993_v22  ;;  %v17518_v18 = vld [vmem:[#allocation38_spill] sm:$0xff] }
 0x72c   : > { %v9970_v13 = vadd.f32 %v9938_v47, %v16748_v59  ;;  %v9971_v29 = vadd.f32 %v9939_v24, %v17516_v9  ;;  %v9998_v36 = vmul.f32 0.7978846, %v9966_v40  ;;  %11128 = vtanh.f32 %v9994_v52  ;;  %v17519_v24 = vld [vmem:[#allocation40_spill] sm:$0xff] }
 0x72d   : > { %v9972_v56 = vadd.f32 %v9940_v37, %v16754_v31  ;;  %v9973_v57 = vadd.f32 %v9941_v44, %v17517_v38  ;;  %v9999_v16 = vmul.f32 0.7978846, %v9967_v23  ;;  %11130 = vtanh.f32 %v9995_v58 }
 0x72e   : > { %v9974_v21 = vadd.f32 %v9942_v30, %v17504_v26  ;;  %v9975_v35 = vadd.f32 %v9943_v17, %v16763_v48  ;;  %v10000_v2 = vmul.f32 0.7978846, %v9968_v49  ;;  %11132 = vtanh.f32 %v9996_v12  ;;  %v17521_v12 = vld [vmem:[#allocation23_spill] sm:$0xff] }
 0x72f   : > { %v9976_v39 = vadd.f32 %v9944_v46, %v17518_v18  ;;  %v9977_v47 = vadd.f32 %v9945_v55, %v17506_v25  ;;  %v10001_v43 = vmul.f32 0.7978846, %v9969_v42  ;;  %11134 = vtanh.f32 %v9997_v0 }
 0x730   : > { %v9978_v28 = vadd.f32 %v9946_v50, %v17519_v24  ;;  %v9979_v37 = vadd.f32 %v9947_v20, %v17508_v54  ;;  %v10002_v32 = vmul.f32 0.7978846, %v9970_v13  ;;  %11136 = vtanh.f32 %v9998_v36  ;;  %v17522_v13 = vld [vmem:[#allocation22_spill] sm:$0xff] }
 0x731   : > { %v9980_v44 = vadd.f32 %v9948_v33, %v17509_v51  ;;  %v9981_v30 = vadd.f32 %v9949_v7, %v17510_v14  ;;  %v10003_v19 = vmul.f32 0.7978846, %v9971_v29  ;;  %11138 = vtanh.f32 %v9999_v16  ;;  %v17523_v16 = vld [vmem:[#allocation24_spill] sm:$0xff] }
 0x732   : > { %v9982_v17 = vadd.f32 %v9950_v1, %v17511_v60  ;;  %v9983_v46 = vadd.f32 %v9951_v41, %v17512_v45  ;;  %v10004_v11 = vmul.f32 0.7978846, %v9972_v56  ;;  %11140 = vtanh.f32 %v10000_v2 }
 0x733   : > { %v11117_v55 = vpop.eup %11116  ;;  %v9984_v5 = vadd.f32 %v9952_v3, %v17513_v6  ;;  %v16966_v50 = vadd.f32 %v9953_v4, %v17494_v8  ;;  %v10005_v20 = vmul.f32 0.7978846, %v9973_v57  ;;  %11142 = vtanh.f32 %v10001_v43  ;;  %v17520_v4 = vld [vmem:[#allocation21_spill] sm:$0xff] }
 0x734   : > { %v11119_v61 = vpop.eup %11118  ;;  %v16969_v33 = vadd.f32 %v9954_v27, %v16793_v63  ;;  %v10006_v7 = vmul.f32 0.7978846, %v9974_v21  ;;  %11144 = vtanh.f32 %v10002_v32  ;;  %v10052_v10 = vadd.f32 1.0, %v11117_v55 }
 0x735   : > { %v11121_v1 = vpop.eup %11120  ;;  %v16972_v41 = vadd.f32 %v9955_v53, %v17514_v34  ;;  %v10007_v15 = vmul.f32 0.7978846, %v9975_v35  ;;  %11146 = vtanh.f32 %v10003_v19  ;;  %v10053_v22 = vadd.f32 1.0, %v11119_v61  ;;  %v17525_v19 = vld [vmem:[#allocation41_spill] sm:$0xff]  ;;  %v17526_v61 = vld [vmem:[#allocation42_spill] sm:$0xff] }
 0x736   : > { %v11123_v3 = vpop.eup %11122  ;;  %v10008_v40 = vmul.f32 0.7978846, %v9976_v39  ;;  %11148 = vtanh.f32 %v10004_v11  ;;  %v10054_v52 = vadd.f32 1.0, %v11121_v1  ;;  %v10084_v23 = vmul.f32 %v10052_v10, %v17520_v4 }
 0x737   : > { %v11125_v58 = vpop.eup %11124  ;;  %v10009_v27 = vmul.f32 0.7978846, %v9977_v47  ;;  %11150 = vtanh.f32 %v10005_v20  ;;  %v10055_v49 = vadd.f32 1.0, %v11123_v3  ;;  %v10085_v62 = vmul.f32 %v10053_v22, %v17521_v12  ;;  %v17524_v47 = vld [vmem:[#allocation25_spill] sm:$0xff] }
 0x738   : > { %v11127_v42 = vpop.eup %11126  ;;  %v10010_v0 = vmul.f32 0.7978846, %v9978_v28  ;;  %11152 = vtanh.f32 %v10006_v7  ;;  %v10056_v53 = vadd.f32 1.0, %v11125_v58  ;;  %v10086_v29 = vmul.f32 %v10054_v52, %v17522_v13  ;;  %10116 = vst.msk [vmem:[%s16979_s16] sm:$0xff] %vm9220_vm9, %v10084_v23  ;;  %v17528_v52 = vld [vmem:[#allocation44_spill] sm:$0xff] }
 0x739   : > { %v11129_v36 = vpop.eup %11128  ;;  %v10011_v56 = vmul.f32 0.7978846, %v9979_v37  ;;  %11154 = vtanh.f32 %v10007_v15  ;;  %v10057_v57 = vadd.f32 1.0, %v11127_v42  ;;  %v10087_v21 = vmul.f32 %v10055_v49, %v17523_v16  ;;  %10117 = vst.msk [vmem:[%s16979_s16 + $0x8] sm:$0xff] %vm9220_vm9, %v10085_v62  ;;  %v17527_v15 = vld [vmem:[#allocation43_spill] sm:$0xff]  ;;  %v17530_v42 = vld [vmem:[#allocation46_spill] sm:$0xff] }
 0x73a   : > { %v11131_v35 = vpop.eup %11130  ;;  %v10012_v2 = vmul.f32 0.7978846, %v9980_v44  ;;  %11156 = vtanh.f32 %v10008_v40  ;;  %v10058_v39 = vadd.f32 1.0, %v11129_v36  ;;  %v10088_v43 = vmul.f32 %v10056_v53, %v17524_v47  ;;  %10118 = vst.msk [vmem:[%s16979_s16 + $0x10] sm:$0xff] %vm9220_vm9, %v10086_v29  ;;  %v17531_v29 = vld [vmem:[#allocation47_spill] sm:$0xff]  ;;  %v17532_v16 = vld [vmem:[#allocation48_spill] sm:$0xff] }
 0x73b   : > { %v11133_v28 = vpop.eup %11132  ;;  %v10013_v32 = vmul.f32 0.7978846, %v9981_v30  ;;  %11158 = vtanh.f32 %v10009_v27  ;;  %v10059_v37 = vadd.f32 1.0, %v11131_v35  ;;  %v10089_v11 = vmul.f32 %v10057_v57, %v17525_v19  ;;  %10119 = vst.msk [vmem:[%s16979_s16 + $0x18] sm:$0xff] %vm9220_vm9, %v10087_v21  ;;  %v17529_v27 = vld [vmem:[#allocation45_spill] sm:$0xff] }
 0x73c   : > { %v11135_v55 = vpop.eup %11134  ;;  %v10014_v20 = vmul.f32 0.7978846, %v9982_v17  ;;  %11160 = vtanh.f32 %v10010_v0  ;;  %v10060_v44 = vadd.f32 1.0, %v11133_v28  ;;  %v10090_v7 = vmul.f32 %v10058_v39, %v17526_v61  ;;  %10120 = vst.msk [vmem:[%s16979_s16 + $0x20] sm:$0xff] %vm9220_vm9, %v10088_v43  ;;  %v17533_v39 = vld [vmem:[#allocation49_spill] sm:$0xff] }
 0x73d   : > { %v11137_v10 = vpop.eup %11136  ;;  %v10015_v1 = vmul.f32 0.7978846, %v9983_v46  ;;  %11162 = vtanh.f32 %v10011_v56  ;;  %v10061_v30 = vadd.f32 1.0, %v11135_v55  ;;  %v10091_v22 = vmul.f32 %v10059_v37, %v17527_v15  ;;  %10121 = vst.msk [vmem:[%s16979_s16 + $0x28] sm:$0xff] %vm9220_vm9, %v10089_v11 }
 0x73e   : > { %v11139_v3 = vpop.eup %11138  ;;  %v10016_v40 = vmul.f32 0.7978846, %v9984_v5  ;;  %11164 = vtanh.f32 %v10012_v2  ;;  %v10062_v17 = vadd.f32 1.0, %v11137_v10  ;;  %v10092_v4 = vmul.f32 %v10060_v44, %v17528_v52  ;;  %10122 = vst.msk [vmem:[%s16979_s16 + $0x30] sm:$0xff] %vm9220_vm9, %v10090_v7 }
 0x73f   : > { %v11141_v23 = vpop.eup %11140  ;;  %v10017_v58 = vmul.f32 0.7978846, %v16966_v50  ;;  %11166 = vtanh.f32 %v10013_v32  ;;  %v10063_v46 = vadd.f32 1.0, %v11139_v3  ;;  %v10093_v49 = vmul.f32 %v10061_v30, %v17529_v27  ;;  %10123 = vst.msk [vmem:[%s16979_s16 + $0x38] sm:$0xff] %vm9220_vm9, %v10091_v22 }
 0x740   : > { %v11143_v12 = vpop.eup %11142  ;;  %v10018_v5 = vmul.f32 0.7978846, %v16969_v33  ;;  %11168 = vtanh.f32 %v10014_v20  ;;  %v10064_v62 = vadd.f32 1.0, %v11141_v23  ;;  %v10094_v0 = vmul.f32 %v10062_v17, %v17530_v42  ;;  %10124 = vst.msk [vmem:[%s16979_s16 + $0x40] sm:$0xff] %vm9220_vm9, %v10092_v4 }
 0x741   : > { %v11145_v53 = vpop.eup %11144  ;;  %v10019_v50 = vmul.f32 0.7978846, %v16972_v41  ;;  %11170 = vtanh.f32 %v10015_v1  ;;  %v10065_v13 = vadd.f32 1.0, %v11143_v12  ;;  %v10095_v36 = vmul.f32 %v10063_v46, %v17531_v29  ;;  %10125 = vst.msk [vmem:[%s16979_s16 + $0x48] sm:$0xff] %vm9220_vm9, %v10093_v49 }
 0x742   : > { %v11147_v56 = vpop.eup %11146  ;;  %v9842_v33 = vmul.f32 0.5, %v16748_v59  ;;  %11172 = vtanh.f32 %v10016_v40  ;;  %v10066_v57 = vadd.f32 1.0, %v11145_v53  ;;  %v10096_v21 = vmul.f32 %v10064_v62, %v17532_v16  ;;  %10126 = vst.msk [vmem:[%s16979_s16 + $0x50] sm:$0xff] %vm9220_vm9, %v10094_v0 }
 0x743   : > { %v11149_v35 = vpop.eup %11148  ;;  %v9843_v41 = vmul.f32 0.5, %v17516_v9  ;;  %11174 = vtanh.f32 %v10017_v58  ;;  %v10067_v2 = vadd.f32 1.0, %v11147_v56  ;;  %v10097_v47 = vmul.f32 %v10065_v13, %v17533_v39  ;;  %10127 = vst.msk [vmem:[%s16979_s16 + $0x58] sm:$0xff] %vm9220_vm9, %v10095_v36 }
 0x744   : > { %v11151_v43 = vpop.eup %11150  ;;  %v9844_v59 = vmul.f32 0.5, %v16754_v31  ;;  %11176 = vtanh.f32 %v10018_v5  ;;  %v10068_v28 = vadd.f32 1.0, %v11149_v35  ;;  %v10098_v32 = vmul.f32 %v10066_v57, %v9842_v33  ;;  %10128 = vst.msk [vmem:[%s16979_s16 + $0x60] sm:$0xff] %vm9220_vm9, %v10096_v21 }
 0x745   : > { %v11153_v37 = vpop.eup %11152  ;;  %v9845_v9 = vmul.f32 0.5, %v17517_v38  ;;  %11178 = vtanh.f32 %v10019_v50  ;;  %v10069_v19 = vadd.f32 1.0, %v11151_v43  ;;  %v10099_v11 = vmul.f32 %v10067_v2, %v9843_v41  ;;  %10129 = vst.msk [vmem:[%s16979_s16 + $0x68] sm:$0xff] %vm9220_vm9, %v10097_v47 }
 0x746   : > { %v11155_v55 = vpop.eup %11154  ;;  %v9846_v20 = vmul.f32 0.5, %v17504_v26  ;;  %v10070_v44 = vadd.f32 1.0, %v11153_v37  ;;  %v10100_v31 = vmul.f32 %v10068_v28, %v9844_v59  ;;  %10130 = vst.msk [vmem:[%s16979_s16 + $0x70] sm:$0xff] %vm9220_vm9, %v10098_v32  ;;  %v9847_v7 = vmul.f32 0.5, %v16763_v48 }
 0x747   : > { %v11157_v61 = vpop.eup %11156  ;;  %v10071_v10 = vadd.f32 1.0, %v11155_v55  ;;  %v10101_v1 = vmul.f32 %v10069_v19, %v9845_v9  ;;  %10131 = vst.msk [vmem:[%s16979_s16 + $0x78] sm:$0xff] %vm9220_vm9, %v10099_v11  ;;  %v9848_v30 = vmul.f32 0.5, %v17518_v18  ;;  %v9849_v3 = vmul.f32 0.5, %v17506_v25 }
 0x748   : > { %v11159_v38 = vpop.eup %11158  ;;  %v10072_v15 = vadd.f32 1.0, %v11157_v61  ;;  %v10102_v22 = vmul.f32 %v10070_v44, %v9846_v20  ;;  %10132 = vst.msk [vmem:[%s16979_s16 + $0x80] sm:$0xff] %vm9220_vm9, %v10100_v31  ;;  %v9850_v52 = vmul.f32 0.5, %v17519_v24  ;;  %v9851_v58 = vmul.f32 0.5, %v17508_v54 }
 0x749   : > { %v11161_v26 = vpop.eup %11160  ;;  %v10073_v40 = vadd.f32 1.0, %v11159_v38  ;;  %v10103_v17 = vmul.f32 %v10071_v10, %v9847_v7  ;;  %10133 = vst.msk [vmem:[%s16979_s16 + $0x88] sm:$0xff] %vm9220_vm9, %v10101_v1  ;;  %v9852_v49 = vmul.f32 0.5, %v17509_v51  ;;  %v9853_v62 = vmul.f32 0.5, %v17510_v14 }
 0x74a   : > { %v11163_v48 = vpop.eup %11162  ;;  %v10074_v4 = vadd.f32 1.0, %v11161_v26  ;;  %v10104_v23 = vmul.f32 %v10072_v15, %v9848_v30  ;;  %10134 = vst.msk [vmem:[%s16979_s16 + $0x90] sm:$0xff] %vm9220_vm9, %v10102_v22  ;;  %v9854_v53 = vmul.f32 0.5, %v17511_v60  ;;  %v9855_v29 = vmul.f32 0.5, %v17512_v45 }
 0x74b   : > { %v11165_v18 = vpop.eup %11164  ;;  %v10075_v46 = vadd.f32 1.0, %v11163_v48  ;;  %v10105_v27 = vmul.f32 %v10073_v40, %v9849_v3  ;;  %10135 = vst.msk [vmem:[%s16979_s16 + $0x98] sm:$0xff] %vm9220_vm9, %v10103_v17  ;;  %v9856_v33 = vmul.f32 0.5, %v17513_v6  ;;  %v9857_v21 = vmul.f32 0.5, %v17494_v8 }
 0x74c   : > { %v11167_v25 = vpop.eup %11166  ;;  %v10076_v12 = vadd.f32 1.0, %v11165_v18  ;;  %v10106_v5 = vmul.f32 %v10074_v4, %v9850_v52  ;;  %10136 = vst.msk [vmem:[%s16979_s16 + $0xa0] sm:$0xff] %vm9220_vm9, %v10104_v23  ;;  %v9858_v6 = vmul.f32 0.5, %v16793_v63  ;;  %v9859_v8 = vmul.f32 0.5, %v17514_v34 }
 0x74d   : > { %v11169_v24 = vpop.eup %11168  ;;  %v10077_v42 = vadd.f32 1.0, %v11167_v25  ;;  %v10107_v0 = vmul.f32 %v10075_v46, %v9851_v58  ;;  %10137 = vst.msk [vmem:[%s16979_s16 + $0xa8] sm:$0xff] %vm9220_vm9, %v10105_v27 }
 0x74e   : > { %v11171_v54 = vpop.eup %11170  ;;  %v10078_v50 = vadd.f32 1.0, %v11169_v24  ;;  %v10108_v13 = vmul.f32 %v10076_v12, %v9852_v49  ;;  %10138 = vst.msk [vmem:[%s16979_s16 + $0xb0] sm:$0xff] %vm9220_vm9, %v10106_v5 }
 0x74f   : > { %v11173_v51 = vpop.eup %11172  ;;  %v10079_v36 = vadd.f32 1.0, %v11171_v54  ;;  %v10109_v14 = vmul.f32 %v10077_v42, %v9853_v62  ;;  %10139 = vst.msk [vmem:[%s16979_s16 + $0xb8] sm:$0xff] %vm9220_vm9, %v10107_v0 }
 0x750   : > { %v11175_v56 = vpop.eup %11174  ;;  %v10080_v57 = vadd.f32 1.0, %v11173_v51  ;;  %v10110_v60 = vmul.f32 %v10078_v50, %v9854_v53  ;;  %10140 = vst.msk [vmem:[%s16979_s16 + $0xc0] sm:$0xff] %vm9220_vm9, %v10108_v13 }
 0x751   : > { %v11177_v16 = vpop.eup %11176  ;;  %v10081_v35 = vadd.f32 1.0, %v11175_v56  ;;  %v10111_v41 = vmul.f32 %v10079_v36, %v9855_v29  ;;  %10141 = vst.msk [vmem:[%s16979_s16 + $0xc8] sm:$0xff] %vm9220_vm9, %v10109_v14 }
 0x752   : > { %v11179_v45 = vpop.eup %11178  ;;  %v10082_v2 = vadd.f32 1.0, %v11177_v16  ;;  %v10112_v39 = vmul.f32 %v10080_v57, %v9856_v33  ;;  %10142 = vst.msk [vmem:[%s16979_s16 + $0xd0] sm:$0xff] %vm9220_vm9, %v10110_v60 }
 0x753   : > { %v10083_v47 = vadd.f32 1.0, %v11179_v45  ;;  %v10113_v43 = vmul.f32 %v10081_v35, %v9857_v21  ;;  %10143 = vst.msk [vmem:[%s16979_s16 + $0xd8] sm:$0xff] %vm9220_vm9, %v10111_v41 }
 0x754   : > { %v10114_v59 = vmul.f32 %v10082_v2, %v9858_v6  ;;  %10144 = vst.msk [vmem:[%s16979_s16 + $0xe0] sm:$0xff] %vm9220_vm9, %v10112_v39 }
 0x755   : > { %v10115_v63 = vmul.f32 %v10083_v47, %v9859_v8  ;;  %10145 = vst.msk [vmem:[%s16979_s16 + $0xe8] sm:$0xff] %vm9220_vm9, %v10113_v43 }
 0x756   : > { %10146 = vst.msk [vmem:[%s16979_s16 + $0xf0] sm:$0xff] %vm9220_vm9, %v10114_v59 }
 0x757   : > { %10147 = vst.msk [vmem:[%s16979_s16 + $0xf8] sm:$0xff] %vm9220_vm9, %v10115_v63 }
 0x758   : > { %11260 = shalt.err (!%p11257_p10)
}
 0x759   : > { %s11261_s28 = scalar_lea.hbm %s17076_s18, 4096  ;;  %s11265_s16 = scalar_lea.hbm %s17136_s9, 8192 }
 0x75a   : > { %p11262_p0 = scmp.ne.s32.totalorder %s17076_s18, %s11261_s28  ;;  %p11266_p1 = scmp.lt.s32.totalorder %s17076_s18, %s17136_s9 }
 0x75b   : > { %p11267_p3 = scmp.lt.s32.totalorder %s11265_s16, %s11261_s28 }
 0x75c   : > { %p11263_p2 = pnand %p11262_p0, %p17534_p12 }
 0x75d   : > { %p11268_p6 = por %p11267_p3, %p11266_p1 }
 0x75e   : > { %p11264_p9 = pneg %p11263_p2 }
 0x760   : > { %p11269_p11 = pnand %p11268_p6, %p11264_p9 }
 0x762   : > { %11272 = shalt.err (!%p11269_p11)
}
 0x763   : > { %s11328_s17 = smov 128   ;;  %s11329_s26 = smov 8  }
 0x764   : > { %10875 = dma.vmem_to_hbm [thread:$0]  (%p17534_p12), %s17078_s29, 4096, %s17076_s18, %s10149_s24, %s11328_s17, %s11328_s17, %s11329_s26  }
 0x765 PF: > { %s10177_s19 = sand.u32 1, %s11299_s30   ;;  %p17535_p13 = scmp.ne.s32.totalorder %s17197_s22, 0 }
 0x766   : > { %p17536_p4 = scmp.ge.s32.totalorder %s11311_s12, 2  ;;  %s10178_s27 = scalar_lea.sflag [#allocation8], %s10177_s19 }
 0x768   : > { %p10882_p5 = pnand %p17536_p4, %p17535_p13 }
 0x76a   : > { %p10883_p7 = pneg %p10882_p5 }
 0x76c   : > { %11294 = dma.done.wait (%p10883_p7), %s10178_s27, 4096  }
 0x76d   : > { %11296 = vsyncadd (%p10883_p7), %s10178_s27, 4294963200  ;;  %s17537_s20 = sld [smem:[#allocation12_spill]]  ;;  %p22_p8 = scmp.ge.s32.totalorder %s11405_s15, 4  }
 0x76e   : > { %s17538_s11 = sld [smem:[#allocation13_spill]]  ;;  %s17539_s30 = smov %s11303_s10 }
 0x76f   : > { %s17541_s12 = smov %s11405_s15  ;;  %24 = sbr.rel (!%p22_p8) target bundleno = 5 (0x5), region = 107 }
 0x773   : > { %s17540_s10 = smov %s17537_s20 }
 0x774   :  { %10183 = vsyncpa [#allocation7], 1 }
 0x775   :  { %10185 = vsyncpa [#allocation7 + $0x1], 1 }
 0x776   :  { %10186 = vsyncpa [#allocation8], 1 }
 0x777   :  { %10188 = vsyncpa [#allocation8 + $0x1], 1 }

</bundles_post_ra>
